<compile_context>
chip_gen: v5e
topology: v5e:2x2
jax: 0.10.0
libtpu: 0.0.40
codegen_flags: <defaults>
</compile_context>

<pallas_src>
import functools
import numpy as np
import jax
import jax.numpy as jnp
from jax.experimental import pallas as pl
from jax.experimental.pallas import tpu as pltpu


def _lrelu(x):
    # LeakyReLU(negative_slope=0.01)
    return jnp.where(x >= 0, x, 0.01 * x)


def _round_up(x, m):
    return (x + m - 1) // m * m


# bias-slab row indices
_B_BS, _B_BI, _B_BA1, _B_BA2, _B_BAV, _B_B1, _B_B2, _B_B3 = range(8)


def _rnn_at2_kernel(time_len, offs, state_ref, inp_ref, w_ref, b_ref, out_ref):
    f32 = jnp.float32
    T = time_len
    Bt = out_ref.shape[0]

    def wblk(name):
        o, r, c = offs[name]          # static python ints -> free ref slices
        return w_ref[o:o + r, :c]

    bias = b_ref[...]                 # (8, slab_w), loaded once

    def brow(idx, c):
        return bias[idx:idx + 1, :c]

    HP = offs["ws"][2]                # padded hidden width (128)
    A = offs["wa1"][2]                # attention width (256)

    # ---- state_net over ALL timesteps in one MXU pass (rows are t-major) --------
    st2 = jnp.concatenate([state_ref[t] for t in range(T)], axis=0)   # (T*Bt, SP)
    hs_all = _lrelu(jnp.dot(st2, wblk("ws"), preferred_element_type=f32)
                    + brow(_B_BS, HP))                                # (T*Bt, HP)
    hs_head = hs_all[:(T - 1) * Bt, :]                                # steps 0..T-2
    last_data = hs_all[(T - 1) * Bt:, :]                              # step T-1, (Bt, HP)

    # ---- attention: ONE stacked matmul / lane-reduce / exp over all T-1 steps ----
    sv = _lrelu(jnp.dot(hs_head, wblk("wa1"), preferred_element_type=f32)
                + brow(_B_BA1, A))                                    # ((T-1)*Bt, A)
    sr = _lrelu(jnp.sum(sv * wblk("wa2t"), axis=-1, keepdims=True)
                + bias[_B_BA2:_B_BA2 + 1, 0:1])                       # ((T-1)*Bt, 1)
    e = jnp.exp(sr)                                                   # one EUP pass
    wsv = e * sv

    # time reduction: T-1 contiguous, tile-aligned sublane slabs
    x_sum = e[0:Bt, :]
    acc_hs = wsv[0:Bt, :]
    for t in range(1, T - 1):
        x_sum = x_sum + e[t * Bt:(t + 1) * Bt, :]
        acc_hs = acc_hs + wsv[t * Bt:(t + 1) * Bt, :]

    inv0 = pl.reciprocal(x_sum, approx=True)                          # EUP vrcp
    inv = inv0 * (2.0 - x_sum * inv0)                                 # one Newton step
    attention_hs = acc_hs * inv                                       # (Bt, A)
    # attention_net_v has no activation in the reference
    attention_hs_out = (jnp.dot(attention_hs, wblk("wav"), preferred_element_type=f32)
                        + brow(_B_BAV, HP))                           # (Bt, HP)

    # ---- input branch ------------------------------------------------------------
    h_i_1 = _lrelu(jnp.dot(inp_ref[...], wblk("wi"), preferred_element_type=f32)
                   + brow(_B_BI, HP))                                 # (Bt, HP)

    # ---- MLP head: one K-pass on the lane-concat (pieces are 128-lane aligned) ----
    h_cat = jnp.concatenate([attention_hs_out, h_i_1, last_data], axis=1)  # (Bt, 3*HP)
    h1 = _lrelu(jnp.dot(h_cat, wblk("w1"), preferred_element_type=f32)
                + brow(_B_B1, offs["w1"][2]))                         # (Bt, 128)
    h2 = _lrelu(jnp.dot(h1, wblk("w2"), preferred_element_type=f32)
                + brow(_B_B2, offs["w2"][2]))                         # (Bt, 128)
    out_ref[...] = jnp.tanh(jnp.dot(h2, wblk("w3"), preferred_element_type=f32)
                            + brow(_B_B3, offs["w3"][2]))             # (Bt, OW)


def _pack_params(p):
    """Pack the 16 weight/bias tensors into two f32 slabs (two DMAs total)."""
    f32 = jnp.float32
    S, h = p["ws"].shape              # (state_dim, 64)
    I = p["wi"].shape[0]
    A = p["wa1"].shape[1]             # 256
    L1 = p["w1"].shape[1]             # 128
    L2 = p["w2"].shape[1]             # 64
    out_dim = p["w3"].shape[1]
    assert p["w1"].shape[0] == 3 * h and p["w2"].shape[0] == L1 and p["w3"].shape[0] == L2

    HP = _round_up(h, 128)            # 64  -> 128 (lane-dense hidden width)
    L2P = _round_up(L2, 128)
    OW = _round_up(out_dim, 128)
    SP = _round_up(S, 8)
    IP = _round_up(I, 8)
    slab_w = max(256, A, HP, L1, L2P, OW)

    def pad_to(a, rows, cols):
        out = jnp.zeros((rows, cols), f32)
        return out.at[:a.shape[0], :a.shape[1]].set(a.astype(f32))

    # layer_1 input is cat([attn_out, h_i_1, last]); each piece is HP wide with its
    # real h features in the first h lanes -> scatter w1's K rows to match.
    w1s = jnp.zeros((3 * HP, L1), f32)
    w1s = w1s.at[0 * HP:0 * HP + h, :].set(p["w1"][0 * h:1 * h, :])
    w1s = w1s.at[1 * HP:1 * HP + h, :].set(p["w1"][1 * h:2 * h, :])
    w1s = w1s.at[2 * HP:2 * HP + h, :].set(p["w1"][2 * h:3 * h, :])

    blocks, offs = [], {}

    def add(name, blk, use_rows, use_cols):
        rp = _round_up(blk.shape[0], 8)
        offs[name] = (sum(b.shape[0] for b in blocks), use_rows, use_cols)
        blocks.append(pad_to(blk, rp, slab_w))

    add("ws",   pad_to(p["ws"], SP, HP),   SP,     HP)
    add("wi",   pad_to(p["wi"], IP, HP),   IP,     HP)
    add("wa1",  pad_to(p["wa1"], HP, A),   HP,     A)
    add("wa2t", pad_to(p["wa2"].T, 1, A),  1,      A)
    add("wav",  pad_to(p["wav"], A, HP),   A,      HP)
    add("w1",   w1s,                       3 * HP, L1)
    add("w2",   pad_to(p["w2"], L1, L2P),  L1,     L2P)
    add("w3",   pad_to(p["w3"], L2P, OW),  L2P,    OW)
    wslab = jnp.concatenate(blocks, axis=0)

    bslab = jnp.zeros((8, slab_w), f32)
    bslab = bslab.at[_B_BS,  :h].set(p["bs"][0])
    bslab = bslab.at[_B_BI,  :h].set(p["bi"][0])
    bslab = bslab.at[_B_BA1, :A].set(p["ba1"][0])
    bslab = bslab.at[_B_BA2, 0].set(p["ba2"][0, 0])
    bslab = bslab.at[_B_BAV, :h].set(p["bav"][0])
    bslab = bslab.at[_B_B1,  :L1].set(p["b1"][0])
    bslab = bslab.at[_B_B2,  :L2].set(p["b2"][0])
    bslab = bslab.at[_B_B3,  :out_dim].set(p["b3"][0])

    dims = dict(SP=SP, IP=IP, OW=OW, out_dim=out_dim)
    return wslab, bslab, offs, dims


def _num_tensorcores():
    """2 TensorCores per chip on v4/v5p/v7x, 1 on v5e/v6e."""
    try:
        kind = jax.devices()[0].device_kind.lower()
    except Exception:
        return 1
    return 2 if any(t in kind for t in ("v4", "v5p", "v7")) else 1


def rnn_net_at_2(state, inp, params, *, time_len, batch_tile=None):
    """Forward pass of RNN_net_AT_2 as a single Pallas call, tiled over the batch."""
    B, T, S = state.shape
    assert T == time_len and time_len >= 2
    I = inp.shape[1]

    wslab, bslab, offs, dims = _pack_params(params)
    SP, IP, OW, out_dim = dims["SP"], dims["IP"], dims["OW"], dims["out_dim"]

    # one grid step per TensorCore (grid is a serial loop on 1-TC chips); VMEM use is
    # ~2 MiB per step so bigger tiles are always better here -- cap at 512 rows.
    if batch_tile is None:
        batch_tile = min(512, _round_up(pl.cdiv(B, _num_tensorcores()), 8))
    Bp = _round_up(B, batch_tile)

    # time-major state, batch/feature dims zero-padded: (T, Bp, SP).  Padded batch
    # rows are benign: exp(lrelu(bias)) > 0 so the attention normalizer never hits 0.
    state_t = jnp.transpose(state.astype(jnp.float32), (1, 0, 2))
    state_t = jnp.pad(state_t, ((0, 0), (0, Bp - B), (0, SP - S)))
    inp_p = jnp.pad(inp.astype(jnp.float32), ((0, Bp - B), (0, IP - I)))

    kernel = functools.partial(_rnn_at2_kernel, T, offs)

    out = pl.pallas_call(
        kernel,
        out_shape=jax.ShapeDtypeStruct((Bp, OW), jnp.float32),
        grid=(Bp // batch_tile,),
        in_specs=[
            pl.BlockSpec((T, batch_tile, SP), lambda i: (0, i, 0)),
            pl.BlockSpec((batch_tile, IP), lambda i: (i, 0)),
            pl.BlockSpec(wslab.shape, lambda i: (0, 0)),
            pl.BlockSpec(bslab.shape, lambda i: (0, 0)),
        ],
        out_specs=pl.BlockSpec((batch_tile, OW), lambda i: (i, 0)),
        compiler_params=pltpu.CompilerParams(dimension_semantics=("parallel",)),
    )(state_t, inp_p, wslab, bslab)

    return out[:B, :out_dim]


def reference_forward(state, inp, p, *, time_len):
    """Pure-JAX re-implementation of the PyTorch forward, for verification."""
    h_s_1 = _lrelu(state @ p["ws"] + p["bs"])                     # (B, T, 64)
    last = h_s_1[:, time_len - 1]                                 # (B, 64)
    time_data = h_s_1[:, 0:time_len - 1]                          # (B, T-1, 64)
    s_value_1 = _lrelu(time_data @ p["wa1"] + p["ba1"])           # (B, T-1, 256)
    s_rate = _lrelu(s_value_1 @ p["wa2"] + p["ba2"])              # (B, T-1, 1)
    x_exp = jnp.exp(s_rate)
    x_sum = jnp.sum(x_exp, axis=1)                                # (B, 1)
    at_w = x_exp / x_sum[:, None, :]                              # (B, T-1, 1)
    at_w = jnp.transpose(at_w, (0, 2, 1))                         # (B, 1, T-1)
    attention_hs = jnp.squeeze(jnp.matmul(at_w, s_value_1), 1)    # (B, 256)
    attention_hs_out = attention_hs @ p["wav"] + p["bav"]         # (B, 64)
    h_i_1 = _lrelu(inp @ p["wi"] + p["bi"])                       # (B, 64)
    h_all_2 = jnp.concatenate([attention_hs_out, h_i_1, last], 1) # (B, 192)
    h1 = _lrelu(h_all_2 @ p["w1"] + p["b1"])
    h2 = _lrelu(h1 @ p["w2"] + p["b2"])
    return jnp.tanh(h2 @ p["w3"] + p["b3"])


def make_params(key, state_dim=3, input_dim=3, out_dim=3):
    """Deterministic synthetic parameters (shapes match RNN_net_AT_2.__init__)."""
    def w(k, shape):
        bound = float(np.sqrt(6.0 / shape[0]))   # kaiming-uniform-ish
        return jax.random.uniform(k, shape, jnp.float32, -bound, bound)

    ks = jax.random.split(key, 16)
    p = {
        "ws":  w(ks[0], (state_dim, 64)),  "bs":  jnp.zeros((1, 64), jnp.float32),
        "wi":  w(ks[1], (input_dim, 64)),  "bi":  jnp.zeros((1, 64), jnp.float32),
        "wa1": w(ks[2], (64, 256)),        "ba1": jnp.zeros((1, 256), jnp.float32),
        "wa2": w(ks[3], (256, 1)),         "ba2": jnp.zeros((1, 1), jnp.float32),
        "wav": w(ks[4], (256, 64)),        "bav": jnp.zeros((1, 64), jnp.float32),
        # nn.Linear weights stored pre-transposed as (in, out)
        "w1":  w(ks[5], (192, 128)), "b1": w(ks[6],  (1, 128)) * 0.1,
        "w2":  w(ks[7], (128, 64)),  "b2": w(ks[8],  (1, 64)) * 0.1,
        "w3":  w(ks[9], (64, out_dim)), "b3": w(ks[10], (1, out_dim)) * 0.1,
    }
    return p


if __name__ == "__main__":
    B, T = 256, 4               # 1 grid step on v5e/v6e, 2 steps (one per TC) on v7x
    state_dim = input_dim = out_dim = 3

    key = jax.random.PRNGKey(0)
    k_state, k_inp, k_par = jax.random.split(key, 3)

    train_state_data = jax.random.normal(k_state, (B, T, state_dim), jnp.float32)
    train_input_data = jax.random.normal(k_inp, (B, input_dim), jnp.float32)
    params = make_params(k_par, state_dim, input_dim, out_dim)

    out = rnn_net_at_2(train_state_data, train_input_data, params, time_len=T)
    out = jax.block_until_ready(out)

    ref = jax.block_until_ready(
        reference_forward(train_state_data, train_input_data, params, time_len=T))

    np.testing.assert_allclose(np.asarray(out), np.asarray(ref), rtol=2e-5, atol=2e-5)
    print("KERNEL_OK")
</pallas_src>

<mosaic_0001>
module attributes {stable_mosaic.version = 11 : i64} {
  func.func @_rnn_at2_kernel(%arg0: i32, %arg1: memref<4x256x8xf32, #tpu.memory_space<vmem>>, %arg2: memref<256x8xf32, #tpu.memory_space<vmem>>, %arg3: memref<1048x256xf32, #tpu.memory_space<vmem>>, %arg4: memref<8x256xf32, #tpu.memory_space<vmem>>, %arg5: memref<256x128xf32, #tpu.memory_space<vmem>>) attributes {dimension_semantics = [#tpu.dimension_semantics<parallel>], iteration_bounds = array<i64: 1>, scalar_prefetch = 0 : i64, scratch_operands = 0 : i64, tpu.core_type = #tpu.core_type<tc>, window_params = [{transform_indices = @transform_0, window_bounds = array<i64: 4, 256, 8>}, {transform_indices = @transform_1, window_bounds = array<i64: 256, 8>}, {pipeline_mode = #tpu.pipeline_mode<synchronous>, transform_indices = @transform_2, window_bounds = array<i64: 1048, 256>}, {pipeline_mode = #tpu.pipeline_mode<synchronous>, transform_indices = @transform_3, window_bounds = array<i64: 8, 256>}, {transform_indices = @transform_4, window_bounds = array<i64: 256, 128>}]} {
    %c0 = arith.constant 0 : index
    %c0_0 = arith.constant 0 : index
    %0 = vector.load %arg4[%c0, %c0_0] : memref<8x256xf32, #tpu.memory_space<vmem>>, vector<8x256xf32>
    %c0_1 = arith.constant 0 : index
    %c0_2 = arith.constant 0 : index
    %c0_3 = arith.constant 0 : index
    %1 = vector.load %arg1[%c0_1, %c0_2, %c0_3] : memref<4x256x8xf32, #tpu.memory_space<vmem>>, vector<1x256x8xf32>
    %2 = vector.shape_cast %1 : vector<1x256x8xf32> to vector<256x8xf32>
    %c1 = arith.constant 1 : index
    %c0_4 = arith.constant 0 : index
    %c0_5 = arith.constant 0 : index
    %3 = vector.load %arg1[%c1, %c0_4, %c0_5] : memref<4x256x8xf32, #tpu.memory_space<vmem>>, vector<1x256x8xf32>
    %4 = vector.shape_cast %3 : vector<1x256x8xf32> to vector<256x8xf32>
    %c2 = arith.constant 2 : index
    %c0_6 = arith.constant 0 : index
    %c0_7 = arith.constant 0 : index
    %5 = vector.load %arg1[%c2, %c0_6, %c0_7] : memref<4x256x8xf32, #tpu.memory_space<vmem>>, vector<1x256x8xf32>
    %6 = vector.shape_cast %5 : vector<1x256x8xf32> to vector<256x8xf32>
    %c3 = arith.constant 3 : index
    %c0_8 = arith.constant 0 : index
    %c0_9 = arith.constant 0 : index
    %7 = vector.load %arg1[%c3, %c0_8, %c0_9] : memref<4x256x8xf32, #tpu.memory_space<vmem>>, vector<1x256x8xf32>
    %8 = vector.shape_cast %7 : vector<1x256x8xf32> to vector<256x8xf32>
    %9 = tpu.concatenate %2, %4, %6, %8 in 0 : vector<256x8xf32>, vector<256x8xf32>, vector<256x8xf32>, vector<256x8xf32> -> vector<1024x8xf32>
    %c0_10 = arith.constant 0 : index
    %c0_11 = arith.constant 0 : index
    %10 = vector.load %arg3[%c0_10, %c0_11] : memref<1048x256xf32, #tpu.memory_space<vmem>>, vector<8x128xf32>
    %cst = arith.constant dense<0.000000e+00> : vector<1024x128xf32>
    %11 = tpu.matmul %9, %10, %cst {dimension_numbers = #tpu.dot_dimension_numbers<[1], [0], [0], [1], [0, 0, 1, 1], [], []>} : vector<1024x8xf32>, vector<8x128xf32>, vector<1024x128xf32> -> vector<1024x128xf32>
    %12 = vector.extract_strided_slice %0 {offsets = [0, 0], sizes = [1, 128], strides = [1, 1]} : vector<8x256xf32> to vector<1x128xf32>
    %13 = vector.broadcast %12 : vector<1x128xf32> to vector<1024x128xf32>
    %14 = arith.addf %11, %13 : vector<1024x128xf32>
    %cst_12 = arith.constant 0.000000e+00 : f32
    %15 = vector.broadcast %cst_12 : f32 to vector<1024x128xf32>
    %16 = arith.cmpf oge, %14, %15 : vector<1024x128xf32>
    %cst_13 = arith.constant 0.00999999977 : f32
    %17 = vector.broadcast %cst_13 : f32 to vector<1024x128xf32>
    %18 = arith.mulf %17, %14 : vector<1024x128xf32>
    %19 = arith.select %16, %14, %18 : vector<1024x128xi1>, vector<1024x128xf32>
    %20 = vector.extract_strided_slice %19 {offsets = [0, 0], sizes = [768, 128], strides = [1, 1]} : vector<1024x128xf32> to vector<768x128xf32>
    %21 = vector.extract_strided_slice %19 {offsets = [768, 0], sizes = [256, 128], strides = [1, 1]} : vector<1024x128xf32> to vector<256x128xf32>
    %c16 = arith.constant 16 : index
    %c0_14 = arith.constant 0 : index
    %22 = vector.load %arg3[%c16, %c0_14] : memref<1048x256xf32, #tpu.memory_space<vmem>>, vector<128x256xf32>
    %cst_15 = arith.constant dense<0.000000e+00> : vector<768x256xf32>
    %23 = tpu.matmul %20, %22, %cst_15 {dimension_numbers = #tpu.dot_dimension_numbers<[1], [0], [0], [1], [0, 0, 1, 1], [], []>} : vector<768x128xf32>, vector<128x256xf32>, vector<768x256xf32> -> vector<768x256xf32>
    %24 = vector.extract_strided_slice %0 {offsets = [2, 0], sizes = [1, 256], strides = [1, 1]} : vector<8x256xf32> to vector<1x256xf32>
    %25 = vector.broadcast %24 : vector<1x256xf32> to vector<768x256xf32>
    %26 = arith.addf %23, %25 : vector<768x256xf32>
    %cst_16 = arith.constant 0.000000e+00 : f32
    %27 = vector.broadcast %cst_16 : f32 to vector<768x256xf32>
    %28 = arith.cmpf oge, %26, %27 : vector<768x256xf32>
    %cst_17 = arith.constant 0.00999999977 : f32
    %29 = vector.broadcast %cst_17 : f32 to vector<768x256xf32>
    %30 = arith.mulf %29, %26 : vector<768x256xf32>
    %31 = arith.select %28, %26, %30 : vector<768x256xi1>, vector<768x256xf32>
    %c144 = arith.constant 144 : index
    %c0_18 = arith.constant 0 : index
    %32 = vector.load %arg3[%c144, %c0_18] : memref<1048x256xf32, #tpu.memory_space<vmem>>, vector<1x256xf32>
    %33 = vector.broadcast %32 : vector<1x256xf32> to vector<768x256xf32>
    %34 = arith.mulf %31, %33 : vector<768x256xf32>
    %cst_19 = arith.constant dense<0.000000e+00> : vector<768xf32>
    %35 = vector.multi_reduction <add>, %34, %cst_19 [1] : vector<768x256xf32> to vector<768xf32>
    %36 = vector.shape_cast %35 : vector<768xf32> to vector<768x1xf32>
    %37 = vector.extract_strided_slice %0 {offsets = [3, 0], sizes = [1, 1], strides = [1, 1]} : vector<8x256xf32> to vector<1x1xf32>
    %38 = vector.broadcast %37 : vector<1x1xf32> to vector<768x1xf32>
    %39 = arith.addf %36, %38 : vector<768x1xf32>
    %cst_20 = arith.constant 0.000000e+00 : f32
    %40 = vector.broadcast %cst_20 : f32 to vector<768x1xf32>
    %41 = arith.cmpf oge, %39, %40 : vector<768x1xf32>
    %cst_21 = arith.constant 0.00999999977 : f32
    %42 = vector.broadcast %cst_21 : f32 to vector<768x1xf32>
    %43 = arith.mulf %42, %39 : vector<768x1xf32>
    %44 = arith.select %41, %39, %43 : vector<768x1xi1>, vector<768x1xf32>
    %45 = math.exp %44 : vector<768x1xf32>
    %46 = vector.broadcast %45 : vector<768x1xf32> to vector<768x256xf32>
    %47 = arith.mulf %46, %31 : vector<768x256xf32>
    %48 = vector.extract_strided_slice %45 {offsets = [0, 0], sizes = [256, 1], strides = [1, 1]} : vector<768x1xf32> to vector<256x1xf32>
    %49 = vector.extract_strided_slice %47 {offsets = [0, 0], sizes = [256, 256], strides = [1, 1]} : vector<768x256xf32> to vector<256x256xf32>
    %50 = vector.extract_strided_slice %45 {offsets = [256, 0], sizes = [256, 1], strides = [1, 1]} : vector<768x1xf32> to vector<256x1xf32>
    %51 = arith.addf %48, %50 : vector<256x1xf32>
    %52 = vector.extract_strided_slice %47 {offsets = [256, 0], sizes = [256, 256], strides = [1, 1]} : vector<768x256xf32> to vector<256x256xf32>
    %53 = arith.addf %49, %52 : vector<256x256xf32>
    %54 = vector.extract_strided_slice %45 {offsets = [512, 0], sizes = [256, 1], strides = [1, 1]} : vector<768x1xf32> to vector<256x1xf32>
    %55 = arith.addf %51, %54 : vector<256x1xf32>
    %56 = vector.extract_strided_slice %47 {offsets = [512, 0], sizes = [256, 256], strides = [1, 1]} : vector<768x256xf32> to vector<256x256xf32>
    %57 = arith.addf %53, %56 : vector<256x256xf32>
    %58 = tpu.reciprocal %55 {approx = true} : vector<256x1xf32> -> vector<256x1xf32>
    %59 = arith.mulf %55, %58 : vector<256x1xf32>
    %cst_22 = arith.constant 2.000000e+00 : f32
    %60 = vector.broadcast %cst_22 : f32 to vector<256x1xf32>
    %61 = arith.subf %60, %59 : vector<256x1xf32>
    %62 = arith.mulf %58, %61 : vector<256x1xf32>
    %63 = vector.broadcast %62 : vector<256x1xf32> to vector<256x256xf32>
    %64 = arith.mulf %57, %63 : vector<256x256xf32>
    %c152 = arith.constant 152 : index
    %c0_23 = arith.constant 0 : index
    %65 = vector.load %arg3[%c152, %c0_23] : memref<1048x256xf32, #tpu.memory_space<vmem>>, vector<256x128xf32>
    %cst_24 = arith.constant dense<0.000000e+00> : vector<256x128xf32>
    %66 = tpu.matmul %64, %65, %cst_24 {dimension_numbers = #tpu.dot_dimension_numbers<[1], [0], [0], [1], [0, 0, 1, 1], [], []>} : vector<256x256xf32>, vector<256x128xf32>, vector<256x128xf32> -> vector<256x128xf32>
    %67 = vector.extract_strided_slice %0 {offsets = [4, 0], sizes = [1, 128], strides = [1, 1]} : vector<8x256xf32> to vector<1x128xf32>
    %68 = vector.broadcast %67 : vector<1x128xf32> to vector<256x128xf32>
    %69 = arith.addf %66, %68 : vector<256x128xf32>
    %c0_25 = arith.constant 0 : index
    %c0_26 = arith.constant 0 : index
    %70 = vector.load %arg2[%c0_25, %c0_26] : memref<256x8xf32, #tpu.memory_space<vmem>>, vector<256x8xf32>
    %c8 = arith.constant 8 : index
    %c0_27 = arith.constant 0 : index
    %71 = vector.load %arg3[%c8, %c0_27] : memref<1048x256xf32, #tpu.memory_space<vmem>>, vector<8x128xf32>
    %cst_28 = arith.constant dense<0.000000e+00> : vector<256x128xf32>
    %72 = tpu.matmul %70, %71, %cst_28 {dimension_numbers = #tpu.dot_dimension_numbers<[1], [0], [0], [1], [0, 0, 1, 1], [], []>} : vector<256x8xf32>, vector<8x128xf32>, vector<256x128xf32> -> vector<256x128xf32>
    %73 = vector.extract_strided_slice %0 {offsets = [1, 0], sizes = [1, 128], strides = [1, 1]} : vector<8x256xf32> to vector<1x128xf32>
    %74 = vector.broadcast %73 : vector<1x128xf32> to vector<256x128xf32>
    %75 = arith.addf %72, %74 : vector<256x128xf32>
    %cst_29 = arith.constant 0.000000e+00 : f32
    %76 = vector.broadcast %cst_29 : f32 to vector<256x128xf32>
    %77 = arith.cmpf oge, %75, %76 : vector<256x128xf32>
    %cst_30 = arith.constant 0.00999999977 : f32
    %78 = vector.broadcast %cst_30 : f32 to vector<256x128xf32>
    %79 = arith.mulf %78, %75 : vector<256x128xf32>
    %80 = arith.select %77, %75, %79 : vector<256x128xi1>, vector<256x128xf32>
    %81 = tpu.concatenate %69, %80, %21 in 1 : vector<256x128xf32>, vector<256x128xf32>, vector<256x128xf32> -> vector<256x384xf32>
    %c408 = arith.constant 408 : index
    %c0_31 = arith.constant 0 : index
    %82 = vector.load %arg3[%c408, %c0_31] : memref<1048x256xf32, #tpu.memory_space<vmem>>, vector<384x128xf32>
    %cst_32 = arith.constant dense<0.000000e+00> : vector<256x128xf32>
    %83 = tpu.matmul %81, %82, %cst_32 {dimension_numbers = #tpu.dot_dimension_numbers<[1], [0], [0], [1], [0, 0, 1, 1], [], []>} : vector<256x384xf32>, vector<384x128xf32>, vector<256x128xf32> -> vector<256x128xf32>
    %84 = vector.extract_strided_slice %0 {offsets = [5, 0], sizes = [1, 128], strides = [1, 1]} : vector<8x256xf32> to vector<1x128xf32>
    %85 = vector.broadcast %84 : vector<1x128xf32> to vector<256x128xf32>
    %86 = arith.addf %83, %85 : vector<256x128xf32>
    %cst_33 = arith.constant 0.000000e+00 : f32
    %87 = vector.broadcast %cst_33 : f32 to vector<256x128xf32>
    %88 = arith.cmpf oge, %86, %87 : vector<256x128xf32>
    %cst_34 = arith.constant 0.00999999977 : f32
    %89 = vector.broadcast %cst_34 : f32 to vector<256x128xf32>
    %90 = arith.mulf %89, %86 : vector<256x128xf32>
    %91 = arith.select %88, %86, %90 : vector<256x128xi1>, vector<256x128xf32>
    %c792 = arith.constant 792 : index
    %c0_35 = arith.constant 0 : index
    %92 = vector.load %arg3[%c792, %c0_35] : memref<1048x256xf32, #tpu.memory_space<vmem>>, vector<128x128xf32>
    %cst_36 = arith.constant dense<0.000000e+00> : vector<256x128xf32>
    %93 = tpu.matmul %91, %92, %cst_36 {dimension_numbers = #tpu.dot_dimension_numbers<[1], [0], [0], [1], [0, 0, 1, 1], [], []>} : vector<256x128xf32>, vector<128x128xf32>, vector<256x128xf32> -> vector<256x128xf32>
    %94 = vector.extract_strided_slice %0 {offsets = [6, 0], sizes = [1, 128], strides = [1, 1]} : vector<8x256xf32> to vector<1x128xf32>
    %95 = vector.broadcast %94 : vector<1x128xf32> to vector<256x128xf32>
    %96 = arith.addf %93, %95 : vector<256x128xf32>
    %cst_37 = arith.constant 0.000000e+00 : f32
    %97 = vector.broadcast %cst_37 : f32 to vector<256x128xf32>
    %98 = arith.cmpf oge, %96, %97 : vector<256x128xf32>
    %cst_38 = arith.constant 0.00999999977 : f32
    %99 = vector.broadcast %cst_38 : f32 to vector<256x128xf32>
    %100 = arith.mulf %99, %96 : vector<256x128xf32>
    %101 = arith.select %98, %96, %100 : vector<256x128xi1>, vector<256x128xf32>
    %c920 = arith.constant 920 : index
    %c0_39 = arith.constant 0 : index
    %102 = vector.load %arg3[%c920, %c0_39] : memref<1048x256xf32, #tpu.memory_space<vmem>>, vector<128x128xf32>
    %cst_40 = arith.constant dense<0.000000e+00> : vector<256x128xf32>
    %103 = tpu.matmul %101, %102, %cst_40 {dimension_numbers = #tpu.dot_dimension_numbers<[1], [0], [0], [1], [0, 0, 1, 1], [], []>} : vector<256x128xf32>, vector<128x128xf32>, vector<256x128xf32> -> vector<256x128xf32>
    %104 = vector.extract_strided_slice %0 {offsets = [7, 0], sizes = [1, 128], strides = [1, 1]} : vector<8x256xf32> to vector<1x128xf32>
    %105 = vector.broadcast %104 : vector<1x128xf32> to vector<256x128xf32>
    %106 = arith.addf %103, %105 : vector<256x128xf32>
    %107 = math.tanh %106 : vector<256x128xf32>
    %c0_41 = arith.constant 0 : index
    %c0_42 = arith.constant 0 : index
    %108 = vector.load %arg5[%c0_41, %c0_42] : memref<256x128xf32, #tpu.memory_space<vmem>>, vector<256x128xf32>
    tpu.vector_store %arg5[%c0_41, %c0_42], %107 {strides = array<i32>} : memref<256x128xf32, #tpu.memory_space<vmem>>, vector<256x128xf32>,
    return
  }
  func.func @transform_0(%arg0: i32) -> (i32, i32, i32) {
    %c0_i32 = arith.constant 0 : i32
    %c0_i32_0 = arith.constant 0 : i32
    %c0_i32_1 = arith.constant 0 : i32
    return %c0_i32, %arg0, %c0_i32_0 : i32, i32, i32
  }
  func.func @transform_1(%arg0: i32) -> (i32, i32) {
    %c0_i32 = arith.constant 0 : i32
    %c0_i32_0 = arith.constant 0 : i32
    return %arg0, %c0_i32 : i32, i32
  }
  func.func @transform_2(%arg0: i32) -> (i32, i32) {
    %c0_i32 = arith.constant 0 : i32
    %c0_i32_0 = arith.constant 0 : i32
    %c0_i32_1 = arith.constant 0 : i32
    return %c0_i32, %c0_i32_0 : i32, i32
  }
  func.func @transform_3(%arg0: i32) -> (i32, i32) {
    %c0_i32 = arith.constant 0 : i32
    %c0_i32_0 = arith.constant 0 : i32
    %c0_i32_1 = arith.constant 0 : i32
    return %c0_i32, %c0_i32_0 : i32, i32
  }
  func.func @transform_4(%arg0: i32) -> (i32, i32) {
    %c0_i32 = arith.constant 0 : i32
    %c0_i32_0 = arith.constant 0 : i32
    return %arg0, %c0_i32 : i32, i32
  }
}

</mosaic_0001>

<bundles_post_ra>
// kernel: tpu_custom_call.1
= control target key start
LH: loop header
LB: loop body
LE: loop exit
PB: predicated region body
PF: predicated region fallthrough
CT: control target
= control target key end

     0   :  { %9 = vsyncpa [#allocation3], 0  ;;  %s11362_s0 = inlined_call_operand.vmem [shape: f32[4,256,8], index: 0, kind: input, shape index: {}]   ;;  %s11363_s1 = inlined_call_operand.vmem [shape: f32[256,8], index: 1, kind: input, shape index: {}]   ;;  %s11364_s2 = inlined_call_operand.hbm [shape: f32[1048,256], index: 2, kind: input, shape index: {}]   ;;  %s11365_s3 = inlined_call_operand.hbm [shape: f32[8,256], index: 3, kind: input, shape index: {}]   ;;  %s11366_s4 = inlined_call_operand.hbm [shape: f32[256,128], index: 4, kind: output, shape index: {}]  }
   0x1   :  { %10 = vsyncpa [#allocation6], 0 }
   0x2   :  { %11 = vsyncpa [#allocation4], 0  ;;  %s20_s17 = sshll.u32 %s11364_s2, 4  ;;  %s7060_s18 = smov [#allocation2]   ;;  %s21_s17 = int_to_ptr.hbm [resolvable:$true] %s20_s17 }
   0x3   :  { %s22_s19 = sshll.u32 %s7060_s18, 4  ;;  %s34_s22 = sshll.u32 %s11365_s3, 4  ;;  %s23_s19 = int_to_ptr.vmem [resolvable:$true] %s22_s19  ;;  %s35_s22 = int_to_ptr.hbm [resolvable:$true] %s34_s22 }
   0x4   :  { %s7061_s23 = smov 256   ;;  %s7062_s24 = smov 16  }
   0x5   :  { %28 = dma.hbm_to_vmem [thread:$0]  %s21_s17, 33536, %s23_s19, [#allocation3], %s7061_s23, %s7061_s23, %s7062_s24  }
   0x6   :  { %s7063_s25 = smov [#allocation5]  }
   0x7   :  { %s36_s26 = sshll.u32 %s7063_s25, 4  ;;  %s37_s26 = int_to_ptr.vmem [resolvable:$true] %s36_s26 }
   0x8   :  { %39 = dma.hbm_to_vmem [thread:$0]  %s35_s22, 256, %s37_s26, [#allocation6]  }
   0x9   :  { %7054 = dma.done.wait [#allocation3], 33536  }
   0xa   :  { %7055 = vsyncadd [#allocation3], 4294933760 }
   0xb   :  { %7056 = dma.done.wait [#allocation6], 256  }
   0xc   :  { %7057 = vsyncadd [#allocation6], 4294967040  ;;  %vm183_vm0 = vcmask 64512   ;;  %v181_v0 = vld [vmem:[#allocation2] sm:$0xff]  ;;  %v51_v2 = vld [vmem:[%s11362_s0 + $0x8] sm:$0xff]  ;;  %s6361_s13 = sshll.u32 %s11366_s4, 4  ;;  %s6362_s13 = int_to_ptr.hbm [resolvable:$true] %s6361_s13 }
   0xd   :  { %v50_v1 = vld [vmem:[%s11362_s0] sm:$0xff]  ;;  %583 = vmatpush.msra.mxu0 %v181_v0  ;;  %6631 = vmatpush.msra.mxu3 %v181_v0  ;;  %v52_v3 = vld [vmem:[%s11362_s0 + $0x10] sm:$0xff]  ;;  %v53_v4 = vld [vmem:[%s11362_s0 + $0x18] sm:$0xff]  ;;  %s7066_s14 = smov 128   ;;  %s7067_s15 = smov 8  }
   0xe   :  { %6471 = vmatmul.msk.f32.vlgmr.msra.gmra.mxu0 %vm183_vm0, %v50_v1  ;;  %v54_v5 = vld [vmem:[%s11362_s0 + $0x20] sm:$0xff]  ;;  %v55_v6 = vld [vmem:[%s11362_s0 + $0x28] sm:$0xff]  ;;  %v56_v7 = vld [vmem:[%s11362_s0 + $0x30] sm:$0xff] }
   0xf   :  { %v57_v8 = vld [vmem:[%s11362_s0 + $0x38] sm:$0xff]  ;;  %v58_v9 = vld [vmem:[%s11362_s0 + $0x40] sm:$0xff]  ;;  %v1383_v10 = vld [vmem:[#allocation2 + $0x110] sm:$0xff] }
  0x10   :  { %v1381_v11 = vld [vmem:[#allocation2 + $0x100] sm:$0xff]  ;;  %1387 = vmatpush.msra.mxu1 %v1383_v10  ;;  %6632 = vmatpush.msra.mxu2 %v1383_v10  ;;  %v59_v12 = vld [vmem:[%s11362_s0 + $0x48] sm:$0xff]  ;;  %v1379_v13 = vld [vmem:[#allocation2 + $0xf0] sm:$0xff] }
  0x11   :  { %v1377_v14 = vld [vmem:[#allocation2 + $0xe0] sm:$0xff]  ;;  %v1375_v15 = vld [vmem:[#allocation2 + $0xd0] sm:$0xff]  ;;  %v61_v22 = vld [vmem:[%s11362_s0 + $0x58] sm:$0xff] }
  0x12   :  { %1388 = vmatpush.msra.mxu1 %v1381_v11  ;;  %6633 = vmatpush.msra.mxu2 %v1381_v11  ;;  %v1373_v16 = vld [vmem:[#allocation2 + $0xc0] sm:$0xff]  ;;  %v60_v17 = vld [vmem:[%s11362_s0 + $0x50] sm:$0xff]  ;;  %v63_v30 = vld [vmem:[%s11362_s0 + $0x68] sm:$0xff] }
  0x13   :  { %v1371_v18 = vld [vmem:[#allocation2 + $0xb0] sm:$0xff]  ;;  %v1369_v19 = vld [vmem:[#allocation2 + $0xa0] sm:$0xff]  ;;  %v65_v32 = vld [vmem:[%s11362_s0 + $0x78] sm:$0xff] }
  0x14   :  { %1389 = vmatpush.msra.mxu1 %v1379_v13  ;;  %6634 = vmatpush.msra.mxu2 %v1379_v13  ;;  %v1367_v20 = vld [vmem:[#allocation2 + $0x90] sm:$0xff]  ;;  %v1365_v21 = vld [vmem:[#allocation2 + $0x80] sm:$0xff]  ;;  %v67_v41 = vld [vmem:[%s11362_s0 + $0x88] sm:$0xff] }
  0x15   :  { %v1363_v23 = vld [vmem:[#allocation2 + $0x70] sm:$0xff]  ;;  %v1361_v24 = vld [vmem:[#allocation2 + $0x60] sm:$0xff]  ;;  %v69_v51 = vld [vmem:[%s11362_s0 + $0x98] sm:$0xff] }
  0x16   :  { %6472 = vmatmul.msk.f32.gmra.mxu0 %vm183_vm0, %v51_v2  ;;  %1390 = vmatpush.msra.mxu1 %v1377_v14  ;;  %v1359_v25 = vld [vmem:[#allocation2 + $0x50] sm:$0xff]  ;;  %v62_v26 = vld [vmem:[%s11362_s0 + $0x60] sm:$0xff]  ;;  %v71_v61 = vld [vmem:[%s11362_s0 + $0xa8] sm:$0xff] }
  0x17   :  { %6635 = vmatpush.msra.mxu2 %v1377_v14  ;;  %v1357_v27 = vld [vmem:[#allocation2 + $0x40] sm:$0xff]  ;;  %v1355_v28 = vld [vmem:[#allocation2 + $0x30] sm:$0xff] }
  0x18   :  { %1391 = vmatpush.msra.mxu1 %v1375_v15  ;;  %v1353_v29 = vld [vmem:[#allocation2 + $0x20] sm:$0xff]  ;;  %v64_v31 = vld [vmem:[%s11362_s0 + $0x70] sm:$0xff] }
  0x19   :  { %6636 = vmatpush.msra.mxu2 %v1375_v15  ;;  %v48_v33 = vld [vmem:[#allocation5] sm:$0xff]  ;;  %v66_v36 = vld [vmem:[%s11362_s0 + $0x80] sm:$0xff] }
  0x1a   :  { %1392 = vmatpush.msra.mxu1 %v1373_v16  ;;  %v7163_v34 = vperm.slane %v48_v33, 0  ;;  %v68_v46 = vld [vmem:[%s11362_s0 + $0x90] sm:$0xff]  ;;  %v70_v56 = vld [vmem:[%s11362_s0 + $0xa0] sm:$0xff] }
  0x1b   :  { %6637 = vmatpush.msra.mxu2 %v1373_v16  ;;  %v72_v2 = vld [vmem:[%s11362_s0 + $0xb0] sm:$0xff] }
  0x1c   :  { %1393 = vmatpush.msra.mxu1 %v1371_v18  ;;  %11686 = vst [vmem:[#allocation11_spill] sm:$0xff] %v7163_v34 }
  0x1d   :  { %6638 = vmatpush.msra.mxu2 %v1371_v18 }
  0x1e   :  { %6473 = vmatmul.msk.f32.gmra.mxu0 %vm183_vm0, %v52_v3  ;;  %1394 = vmatpush.msra.mxu1 %v1369_v19 }
  0x1f   :  { %6639 = vmatpush.msra.mxu2 %v1369_v19 }
  0x20   :  { %1395 = vmatpush.msra.mxu1 %v1367_v20 }
  0x21   :  { %6640 = vmatpush.msra.mxu2 %v1367_v20 }
  0x22   :  { %1396 = vmatpush.msra.mxu1 %v1365_v21 }
  0x23   :  { %6641 = vmatpush.msra.mxu2 %v1365_v21 }
  0x24   :  { %1397 = vmatpush.msra.mxu1 %v1363_v23 }
  0x25   :  { %6642 = vmatpush.msra.mxu2 %v1363_v23 }
  0x26   :  { %6474 = vmatmul.msk.f32.gmra.mxu0 %vm183_vm0, %v53_v4  ;;  %1398 = vmatpush.msra.mxu1 %v1361_v24 }
  0x27   :  { %6643 = vmatpush.msra.mxu2 %v1361_v24 }
  0x28   :  { %1399 = vmatpush.msra.mxu1 %v1359_v25 }
  0x29   :  { %6644 = vmatpush.msra.mxu2 %v1359_v25 }
  0x2a   :  { %1400 = vmatpush.msra.mxu1 %v1357_v27 }
  0x2b   :  { %6645 = vmatpush.msra.mxu2 %v1357_v27  ;;  %v77_v27 = vld [vmem:[%s11362_s0 + $0xd8] sm:$0xff] }
  0x2c   :  { %1401 = vmatpush.msra.mxu1 %v1355_v28 }
  0x2d   :  { %6646 = vmatpush.msra.mxu2 %v1355_v28 }
  0x2e   :  { %6475 = vmatmul.msk.f32.gmra.mxu0 %vm183_vm0, %v54_v5  ;;  %1402 = vmatpush.msra.mxu1 %v1353_v29 }
  0x2f   :  { %6647 = vmatpush.msra.mxu2 %v1353_v29 }
  0x36   :  { %6476 = vmatmul.msk.f32.gmra.mxu0 %vm183_vm0, %v55_v6 }
  0x3e   :  { %6477 = vmatmul.msk.f32.gmra.mxu0 %vm183_vm0, %v56_v7  ;;  %v73_v7 = vld [vmem:[%s11362_s0 + $0xb8] sm:$0xff] }
  0x46   :  { %6478 = vmatmul.msk.f32.gmra.mxu0 %vm183_vm0, %v57_v8 }
  0x4e   :  { %6479 = vmatmul.msk.f32.gmra.mxu0 %vm183_vm0, %v58_v9 }
  0x56   :  { %6480 = vmatmul.msk.f32.gmra.mxu0 %vm183_vm0, %v59_v12  ;;  %v74_v12 = vld [vmem:[%s11362_s0 + $0xc0] sm:$0xff] }
  0x5e   :  { %6481 = vmatmul.msk.f32.gmra.mxu0 %vm183_vm0, %v60_v17  ;;  %v75_v17 = vld [vmem:[%s11362_s0 + $0xc8] sm:$0xff] }
  0x66   :  { %6482 = vmatmul.msk.f32.gmra.mxu0 %vm183_vm0, %v61_v22  ;;  %v76_v22 = vld [vmem:[%s11362_s0 + $0xd0] sm:$0xff] }
  0x6e   :  { %6483 = vmatmul.msk.f32.gmra.mxu0 %vm183_vm0, %v62_v26 }
  0x76   :  { %6484 = vmatmul.msk.f32.gmra.mxu0 %vm183_vm0, %v63_v30 }
  0x7e   :  { %6485 = vmatmul.msk.f32.gmra.mxu0 %vm183_vm0, %v64_v31 }
  0x86   :  { %6486 = vmatmul.msk.f32.gmra.mxu0 %vm183_vm0, %v65_v32  ;;  %v78_v32 = vld [vmem:[%s11362_s0 + $0xe0] sm:$0xff] }
  0x8b   :  { %v585_v35 = vpop.f32.mrf.mxu0 }
  0x8c   :  { %v586_v37 = vadd.f32 %v585_v35, %v7163_v34 }
  0x8e   :  { %6487 = vmatmul.msk.f32.gmra.mxu0 %vm183_vm0, %v66_v36  ;;  %vm969_vm1 = vcmp.ge.f32.partialorder %v586_v37, 0.0  ;;  %v1097_v38 = vmul.f32 0.01, %v586_v37 }
  0x90   :  { %v7170_v39 = vsel %vm969_vm1, %v586_v37, %v1097_v38  ;;  %v79_v38 = vld [vmem:[%s11362_s0 + $0xe8] sm:$0xff] }
  0x91   :  { %1403 = vmatmul.f32.vlgmr.msra.gmra.mxu1 %v7170_v39 }
  0x93   :  { %v588_v40 = vpop.f32.mrf.mxu0 }
  0x94   :  { %v589_v42 = vadd.f32 %v588_v40, %v7163_v34 }
  0x96   :  { %6488 = vmatmul.msk.f32.gmra.mxu0 %vm183_vm0, %v67_v41  ;;  %vm970_vm2 = vcmp.ge.f32.partialorder %v589_v42, 0.0  ;;  %v1098_v43 = vmul.f32 0.01, %v589_v42 }
  0x98   :  { %v7178_v44 = vsel %vm970_vm2, %v589_v42, %v1098_v43 }
  0x99   :  { %1406 = vmatmul.f32.gmra.mxu1 %v7178_v44 }
  0x9b   :  { %v591_v45 = vpop.f32.mrf.mxu0 }
  0x9c   :  { %v592_v47 = vadd.f32 %v591_v45, %v7163_v34  ;;  %v80_v45 = vld [vmem:[%s11362_s0 + $0xf0] sm:$0xff] }
  0x9e   :  { %6489 = vmatmul.msk.f32.gmra.mxu0 %vm183_vm0, %v68_v46  ;;  %vm971_vm3 = vcmp.ge.f32.partialorder %v592_v47, 0.0  ;;  %v1099_v48 = vmul.f32 0.01, %v592_v47 }
  0xa0   :  { %v7186_v49 = vsel %vm971_vm3, %v592_v47, %v1099_v48 }
  0xa1   :  { %1409 = vmatmul.f32.gmra.mxu1 %v7186_v49 }
  0xa3   :  { %v594_v50 = vpop.f32.mrf.mxu0 }
  0xa4   :  { %v595_v52 = vadd.f32 %v594_v50, %v7163_v34 }
  0xa6   :  { %6490 = vmatmul.msk.f32.gmra.mxu0 %vm183_vm0, %v69_v51  ;;  %vm972_vm4 = vcmp.ge.f32.partialorder %v595_v52, 0.0  ;;  %v1100_v53 = vmul.f32 0.01, %v595_v52  ;;  %v81_v51 = vld [vmem:[%s11362_s0 + $0xf8] sm:$0xff] }
  0xa8   :  { %v7194_v54 = vsel %vm972_vm4, %v595_v52, %v1100_v53 }
  0xa9   :  { %1412 = vmatmul.f32.gmra.mxu1 %v7194_v54 }
  0xab   :  { %v597_v55 = vpop.f32.mrf.mxu0 }
  0xac   :  { %v598_v57 = vadd.f32 %v597_v55, %v7163_v34 }
  0xae   :  { %6491 = vmatmul.msk.f32.gmra.mxu0 %vm183_vm0, %v70_v56  ;;  %vm973_vm5 = vcmp.ge.f32.partialorder %v598_v57, 0.0  ;;  %v1101_v58 = vmul.f32 0.01, %v598_v57 }
  0xb0   :  { %v7202_v59 = vsel %vm973_vm5, %v598_v57, %v1101_v58  ;;  %v6375_v57 = vld [vmem:[%s11362_s0 + $0x100] sm:$0xff] }
  0xb1   :  { %1415 = vmatmul.f32.gmra.mxu1 %v7202_v59 }
  0xb3   :  { %v600_v60 = vpop.f32.mrf.mxu0 }
  0xb4   :  { %v601_v62 = vadd.f32 %v600_v60, %v7163_v34 }
  0xb6   :  { %6492 = vmatmul.msk.f32.gmra.mxu0 %vm183_vm0, %v71_v61  ;;  %vm974_vm6 = vcmp.ge.f32.partialorder %v601_v62, 0.0  ;;  %v1102_v63 = vmul.f32 0.01, %v601_v62 }
  0xb8   :  { %v7210_v0 = vsel %vm974_vm6, %v601_v62, %v1102_v63 }
  0xb9   :  { %1418 = vmatmul.f32.gmra.mxu1 %v7210_v0 }
  0xbb   :  { %v603_v1 = vpop.f32.mrf.mxu0 }
  0xbc   :  { %v604_v3 = vadd.f32 %v603_v1, %v7163_v34  ;;  %v6376_v1 = vld [vmem:[%s11362_s0 + $0x108] sm:$0xff] }
  0xbe   :  { %6493 = vmatmul.msk.f32.gmra.mxu0 %vm183_vm0, %v72_v2  ;;  %vm975_vm7 = vcmp.ge.f32.partialorder %v604_v3, 0.0  ;;  %v1103_v4 = vmul.f32 0.01, %v604_v3 }
  0xc0   :  { %v7218_v5 = vsel %vm975_vm7, %v604_v3, %v1103_v4 }
  0xc1   :  { %1421 = vmatmul.f32.gmra.mxu1 %v7218_v5 }
  0xc3   :  { %v606_v6 = vpop.f32.mrf.mxu0 }
  0xc4   :  { %v607_v8 = vadd.f32 %v606_v6, %v7163_v34 }
  0xc6   :  { %6494 = vmatmul.msk.f32.gmra.mxu0 %vm183_vm0, %v73_v7  ;;  %vm976_vm8 = vcmp.ge.f32.partialorder %v607_v8, 0.0  ;;  %v1104_v9 = vmul.f32 0.01, %v607_v8 }
  0xc8   :  { %v7226_v10 = vsel %vm976_vm8, %v607_v8, %v1104_v9  ;;  %v6377_v8 = vld [vmem:[%s11362_s0 + $0x110] sm:$0xff] }
  0xc9   :  { %1424 = vmatmul.f32.gmra.mxu1 %v7226_v10 }
  0xcb   :  { %v609_v11 = vpop.f32.mrf.mxu0 }
  0xcc   :  { %v610_v13 = vadd.f32 %v609_v11, %v7163_v34 }
  0xce   :  { %6495 = vmatmul.msk.f32.gmra.mxu0 %vm183_vm0, %v74_v12  ;;  %vm977_vm9 = vcmp.ge.f32.partialorder %v610_v13, 0.0  ;;  %v1105_v14 = vmul.f32 0.01, %v610_v13 }
  0xd0   :  { %v7234_v15 = vsel %vm977_vm9, %v610_v13, %v1105_v14 }
  0xd1   :  { %1427 = vmatmul.f32.gmra.mxu1 %v7234_v15 }
  0xd3   :  { %v612_v16 = vpop.f32.mrf.mxu0 }
  0xd4   :  { %v613_v18 = vadd.f32 %v612_v16, %v7163_v34  ;;  %v6378_v16 = vld [vmem:[%s11362_s0 + $0x118] sm:$0xff] }
  0xd6   :  { %6496 = vmatmul.msk.f32.gmra.mxu0 %vm183_vm0, %v75_v17  ;;  %vm978_vm10 = vcmp.ge.f32.partialorder %v613_v18, 0.0  ;;  %v1106_v19 = vmul.f32 0.01, %v613_v18 }
  0xd8   :  { %v7242_v20 = vsel %vm978_vm10, %v613_v18, %v1106_v19 }
  0xd9   :  { %1430 = vmatmul.f32.gmra.mxu1 %v7242_v20 }
  0xdb   :  { %v615_v21 = vpop.f32.mrf.mxu0 }
  0xdc   :  { %v616_v23 = vadd.f32 %v615_v21, %v7163_v34 }
  0xde   :  { %6497 = vmatmul.msk.f32.gmra.mxu0 %vm183_vm0, %v76_v22  ;;  %vm979_vm11 = vcmp.ge.f32.partialorder %v616_v23, 0.0  ;;  %v1107_v24 = vmul.f32 0.01, %v616_v23 }
  0xe0   :  { %v7250_v25 = vsel %vm979_vm11, %v616_v23, %v1107_v24  ;;  %v6379_v23 = vld [vmem:[%s11362_s0 + $0x120] sm:$0xff] }
  0xe1   :  { %1433 = vmatmul.f32.gmra.mxu1 %v7250_v25 }
  0xe3   :  { %v618_v26 = vpop.f32.mrf.mxu0 }
  0xe4   :  { %v619_v28 = vadd.f32 %v618_v26, %v7163_v34 }
  0xe6   :  { %6498 = vmatmul.msk.f32.gmra.mxu0 %vm183_vm0, %v77_v27  ;;  %vm980_vm12 = vcmp.ge.f32.partialorder %v619_v28, 0.0  ;;  %v1108_v29 = vmul.f32 0.01, %v619_v28 }
  0xe8   :  { %v7258_v30 = vsel %vm980_vm12, %v619_v28, %v1108_v29 }
  0xe9   :  { %1436 = vmatmul.f32.gmra.mxu1 %v7258_v30 }
  0xeb   :  { %v621_v31 = vpop.f32.mrf.mxu0 }
  0xec   :  { %v622_v33 = vadd.f32 %v621_v31, %v7163_v34  ;;  %v6380_v31 = vld [vmem:[%s11362_s0 + $0x128] sm:$0xff] }
  0xee   :  { %6499 = vmatmul.msk.f32.gmra.mxu0 %vm183_vm0, %v78_v32  ;;  %vm981_vm13 = vcmp.ge.f32.partialorder %v622_v33, 0.0  ;;  %v1109_v35 = vmul.f32 0.01, %v622_v33 }
  0xf0   :  { %v7266_v36 = vsel %vm981_vm13, %v622_v33, %v1109_v35 }
  0xf1   :  { %1439 = vmatmul.f32.gmra.mxu1 %v7266_v36 }
  0xf3   :  { %v624_v37 = vpop.f32.mrf.mxu0 }
  0xf4   :  { %v625_v40 = vadd.f32 %v624_v37, %v7163_v34 }
  0xf6   :  { %6500 = vmatmul.msk.f32.gmra.mxu0 %vm183_vm0, %v79_v38  ;;  %vm982_vm14 = vcmp.ge.f32.partialorder %v625_v40, 0.0  ;;  %v1110_v41 = vmul.f32 0.01, %v625_v40 }
  0xf8   :  { %v7274_v42 = vsel %vm982_vm14, %v625_v40, %v1110_v41  ;;  %v6381_v40 = vld [vmem:[%s11362_s0 + $0x130] sm:$0xff] }
  0xf9   :  { %1442 = vmatmul.f32.gmra.mxu1 %v7274_v42 }
  0xfb   :  { %v627_v43 = vpop.f32.mrf.mxu0 }
  0xfc   :  { %v628_v46 = vadd.f32 %v627_v43, %v7163_v34 }
  0xfe   :  { %6501 = vmatmul.msk.f32.gmra.mxu0 %vm183_vm0, %v80_v45  ;;  %vm983_vm15 = vcmp.ge.f32.partialorder %v628_v46, 0.0  ;;  %v1111_v47 = vmul.f32 0.01, %v628_v46 }
 0x100   :  { %v7282_v48 = vsel %vm983_vm15, %v628_v46, %v1111_v47 }
 0x101   :  { %1445 = vmatmul.f32.gmra.mxu1 %v7282_v48 }
 0x103   :  { %v630_v50 = vpop.f32.mrf.mxu0 }
 0x104   :  { %v631_v52 = vadd.f32 %v630_v50, %v7163_v34  ;;  %v6382_v50 = vld [vmem:[%s11362_s0 + $0x138] sm:$0xff] }
 0x106   :  { %6502 = vmatmul.msk.f32.gmra.mxu0 %vm183_vm0, %v81_v51  ;;  %vm984_vm1 = vcmp.ge.f32.partialorder %v631_v52, 0.0  ;;  %v1112_v53 = vmul.f32 0.01, %v631_v52 }
 0x108   :  { %v7290_v55 = vsel %vm984_vm1, %v631_v52, %v1112_v53 }
 0x109   :  { %1448 = vmatmul.f32.gmra.mxu1 %v7290_v55 }
 0x10b   :  { %v633_v56 = vpop.f32.mrf.mxu0 }
 0x10c   :  { %v634_v58 = vadd.f32 %v633_v56, %v7163_v34 }
 0x10e   :  { %6503 = vmatmul.msk.f32.gmra.mxu0 %vm183_vm0, %v6375_v57  ;;  %v7298_v60 = vpop.f32.mrf.mxu1  ;;  %vm985_vm2 = vcmp.ge.f32.partialorder %v634_v58, 0.0  ;;  %v1113_v61 = vmul.f32 0.01, %v634_v58 }
 0x110   :  { %v7300_v62 = vsel %vm985_vm2, %v634_v58, %v1113_v61  ;;  %v6383_v58 = vld [vmem:[%s11362_s0 + $0x140] sm:$0xff] }
 0x111   :  { %1451 = vmatmul.f32.gmra.mxu1 %v7300_v62 }
 0x113   :  { %v636_v63 = vpop.f32.mrf.mxu0 }
 0x114   :  { %v637_v2 = vadd.f32 %v636_v63, %v7163_v34 }
 0x116   :  { %6504 = vmatmul.msk.f32.gmra.mxu0 %vm183_vm0, %v6376_v1  ;;  %v7308_v3 = vpop.f32.mrf.mxu1  ;;  %vm986_vm3 = vcmp.ge.f32.partialorder %v637_v2, 0.0  ;;  %v1114_v4 = vmul.f32 0.01, %v637_v2 }
 0x118   :  { %v7310_v6 = vsel %vm986_vm3, %v637_v2, %v1114_v4 }
 0x119   :  { %1454 = vmatmul.f32.gmra.mxu1 %v7310_v6 }
 0x11b   :  { %v639_v7 = vpop.f32.mrf.mxu0 }
 0x11c   :  { %v640_v9 = vadd.f32 %v639_v7, %v7163_v34  ;;  %v6384_v7 = vld [vmem:[%s11362_s0 + $0x148] sm:$0xff] }
 0x11e   :  { %6505 = vmatmul.msk.f32.gmra.mxu0 %vm183_vm0, %v6377_v8  ;;  %v7318_v11 = vpop.f32.mrf.mxu1  ;;  %vm987_vm4 = vcmp.ge.f32.partialorder %v640_v9, 0.0  ;;  %v1115_v12 = vmul.f32 0.01, %v640_v9 }
 0x120   :  { %v7320_v13 = vsel %vm987_vm4, %v640_v9, %v1115_v12 }
 0x121   :  { %1457 = vmatmul.f32.gmra.mxu1 %v7320_v13 }
 0x123   :  { %v642_v14 = vpop.f32.mrf.mxu0 }
 0x124   :  { %v643_v17 = vadd.f32 %v642_v14, %v7163_v34 }
 0x126   :  { %6506 = vmatmul.msk.f32.gmra.mxu0 %vm183_vm0, %v6378_v16  ;;  %v7328_v18 = vpop.f32.mrf.mxu1  ;;  %vm988_vm5 = vcmp.ge.f32.partialorder %v643_v17, 0.0  ;;  %v1116_v19 = vmul.f32 0.01, %v643_v17 }
 0x128   :  { %v7330_v21 = vsel %vm988_vm5, %v643_v17, %v1116_v19  ;;  %v6385_v17 = vld [vmem:[%s11362_s0 + $0x150] sm:$0xff] }
 0x129   :  { %1460 = vmatmul.f32.gmra.mxu1 %v7330_v21 }
 0x12b   :  { %v645_v22 = vpop.f32.mrf.mxu0 }
 0x12c   :  { %v646_v24 = vadd.f32 %v645_v22, %v7163_v34 }
 0x12e   :  { %6507 = vmatmul.msk.f32.gmra.mxu0 %vm183_vm0, %v6379_v23  ;;  %v7338_v26 = vpop.f32.mrf.mxu1  ;;  %vm989_vm6 = vcmp.ge.f32.partialorder %v646_v24, 0.0  ;;  %v1117_v27 = vmul.f32 0.01, %v646_v24 }
 0x130   :  { %v7340_v28 = vsel %vm989_vm6, %v646_v24, %v1117_v27 }
 0x131   :  { %1463 = vmatmul.f32.gmra.mxu1 %v7340_v28 }
 0x133   :  { %v648_v29 = vpop.f32.mrf.mxu0 }
 0x134   :  { %v649_v32 = vadd.f32 %v648_v29, %v7163_v34  ;;  %v6386_v29 = vld [vmem:[%s11362_s0 + $0x158] sm:$0xff] }
 0x136   :  { %6508 = vmatmul.msk.f32.gmra.mxu0 %vm183_vm0, %v6380_v31  ;;  %v7348_v33 = vpop.f32.mrf.mxu1  ;;  %vm990_vm7 = vcmp.ge.f32.partialorder %v649_v32, 0.0  ;;  %v1118_v35 = vmul.f32 0.01, %v649_v32 }
 0x138   :  { %v7350_v37 = vsel %vm990_vm7, %v649_v32, %v1118_v35 }
 0x139   :  { %1466 = vmatmul.f32.gmra.mxu1 %v7350_v37 }
 0x13b   :  { %v651_v38 = vpop.f32.mrf.mxu0 }
 0x13c   :  { %v652_v41 = vadd.f32 %v651_v38, %v7163_v34 }
 0x13e   :  { %6509 = vmatmul.msk.f32.gmra.mxu0 %vm183_vm0, %v6381_v40  ;;  %v7358_v43 = vpop.f32.mrf.mxu1  ;;  %vm991_vm8 = vcmp.ge.f32.partialorder %v652_v41, 0.0  ;;  %v1119_v45 = vmul.f32 0.01, %v652_v41 }
 0x140   :  { %v7360_v46 = vsel %vm991_vm8, %v652_v41, %v1119_v45  ;;  %v6387_v41 = vld [vmem:[%s11362_s0 + $0x160] sm:$0xff] }
 0x141   :  { %1469 = vmatmul.f32.gmra.mxu1 %v7360_v46 }
 0x143   :  { %v654_v47 = vpop.f32.mrf.mxu0 }
 0x144   :  { %v655_v51 = vadd.f32 %v654_v47, %v7163_v34 }
 0x146   :  { %6510 = vmatmul.msk.f32.gmra.mxu0 %vm183_vm0, %v6382_v50  ;;  %v7368_v52 = vpop.f32.mrf.mxu1  ;;  %vm992_vm9 = vcmp.ge.f32.partialorder %v655_v51, 0.0  ;;  %v1120_v53 = vmul.f32 0.01, %v655_v51 }
 0x148   :  { %v7370_v56 = vsel %vm992_vm9, %v655_v51, %v1120_v53 }
 0x149   :  { %1472 = vmatmul.f32.gmra.mxu1 %v7370_v56 }
 0x14b   :  { %v657_v57 = vpop.f32.mrf.mxu0 }
 0x14c   :  { %v658_v61 = vadd.f32 %v657_v57, %v7163_v34  ;;  %v6388_v57 = vld [vmem:[%s11362_s0 + $0x168] sm:$0xff] }
 0x14e   :  { %6511 = vmatmul.msk.f32.gmra.mxu0 %vm183_vm0, %v6383_v58  ;;  %v7378_v63 = vpop.f32.mrf.mxu1  ;;  %vm993_vm10 = vcmp.ge.f32.partialorder %v658_v61, 0.0  ;;  %v1121_v1 = vmul.f32 0.01, %v658_v61 }
 0x150   :  { %v7380_v2 = vsel %vm993_vm10, %v658_v61, %v1121_v1 }
 0x151   :  { %1475 = vmatmul.f32.gmra.mxu1 %v7380_v2 }
 0x153   :  { %v660_v4 = vpop.f32.mrf.mxu0 }
 0x154   :  { %v661_v8 = vadd.f32 %v660_v4, %v7163_v34 }
 0x156   :  { %6512 = vmatmul.msk.f32.gmra.mxu0 %vm183_vm0, %v6384_v7  ;;  %v7388_v9 = vpop.f32.mrf.mxu1  ;;  %vm994_vm11 = vcmp.ge.f32.partialorder %v661_v8, 0.0  ;;  %v1122_v12 = vmul.f32 0.01, %v661_v8 }
 0x158   :  { %v7390_v14 = vsel %vm994_vm11, %v661_v8, %v1122_v12  ;;  %v6389_v8 = vld [vmem:[%s11362_s0 + $0x170] sm:$0xff] }
 0x159   :  { %1478 = vmatmul.f32.gmra.mxu1 %v7390_v14 }
 0x15b   :  { %v663_v16 = vpop.f32.mrf.mxu0 }
 0x15c   :  { %v664_v19 = vadd.f32 %v663_v16, %v7163_v34 }
 0x15e   :  { %6513 = vmatmul.msk.f32.gmra.mxu0 %vm183_vm0, %v6385_v17  ;;  %v7398_v22 = vpop.f32.mrf.mxu1  ;;  %vm995_vm12 = vcmp.ge.f32.partialorder %v664_v19, 0.0  ;;  %v1123_v23 = vmul.f32 0.01, %v664_v19 }
 0x160   :  { %v7400_v24 = vsel %vm995_vm12, %v664_v19, %v1123_v23 }
 0x161   :  { %1481 = vmatmul.f32.gmra.mxu1 %v7400_v24 }
 0x163   :  { %v666_v27 = vpop.f32.mrf.mxu0 }
 0x164   :  { %v667_v31 = vadd.f32 %v666_v27, %v7163_v34  ;;  %v6390_v27 = vld [vmem:[%s11362_s0 + $0x178] sm:$0xff] }
 0x166   :  { %6514 = vmatmul.msk.f32.gmra.mxu0 %vm183_vm0, %v6386_v29  ;;  %v7408_v32 = vpop.f32.mrf.mxu1  ;;  %vm996_vm13 = vcmp.ge.f32.partialorder %v667_v31, 0.0  ;;  %v1124_v35 = vmul.f32 0.01, %v667_v31 }
 0x168   :  { %v7410_v38 = vsel %vm996_vm13, %v667_v31, %v1124_v35 }
 0x169   :  { %1484 = vmatmul.f32.gmra.mxu1 %v7410_v38 }
 0x16b   :  { %v669_v40 = vpop.f32.mrf.mxu0 }
 0x16c   :  { %v670_v45 = vadd.f32 %v669_v40, %v7163_v34 }
 0x16e   :  { %6515 = vmatmul.msk.f32.gmra.mxu0 %vm183_vm0, %v6387_v41  ;;  %v7418_v47 = vpop.f32.mrf.mxu1  ;;  %vm997_vm14 = vcmp.ge.f32.partialorder %v670_v45, 0.0  ;;  %v1125_v50 = vmul.f32 0.01, %v670_v45 }
 0x170   :  { %v7420_v51 = vsel %vm997_vm14, %v670_v45, %v1125_v50  ;;  %v6391_v45 = vld [vmem:[%s11362_s0 + $0x180] sm:$0xff] }
 0x171   :  { %1487 = vmatmul.f32.gmra.mxu1 %v7420_v51 }
 0x173   :  { %v672_v53 = vpop.f32.mrf.mxu0 }
 0x174   :  { %v673_v58 = vadd.f32 %v672_v53, %v7163_v34 }
 0x176   :  { %6516 = vmatmul.msk.f32.gmra.mxu0 %vm183_vm0, %v6388_v57  ;;  %v7428_v61 = vpop.f32.mrf.mxu1  ;;  %vm998_vm15 = vcmp.ge.f32.partialorder %v673_v58, 0.0  ;;  %v1126_v1 = vmul.f32 0.01, %v673_v58 }
 0x178   :  { %v7430_v4 = vsel %vm998_vm15, %v673_v58, %v1126_v1 }
 0x179   :  { %1490 = vmatmul.f32.gmra.mxu1 %v7430_v4 }
 0x17b   :  { %v675_v7 = vpop.f32.mrf.mxu0 }
 0x17c   :  { %v676_v12 = vadd.f32 %v675_v7, %v7163_v34  ;;  %v6392_v7 = vld [vmem:[%s11362_s0 + $0x188] sm:$0xff] }
 0x17e   :  { %6517 = vmatmul.msk.f32.gmra.mxu0 %vm183_vm0, %v6389_v8  ;;  %v7438_v16 = vpop.f32.mrf.mxu1  ;;  %vm999_vm1 = vcmp.ge.f32.partialorder %v676_v12, 0.0  ;;  %v1127_v17 = vmul.f32 0.01, %v676_v12 }
 0x180   :  { %v7440_v19 = vsel %vm999_vm1, %v676_v12, %v1127_v17 }
 0x181   :  { %1493 = vmatmul.f32.gmra.mxu1 %v7440_v19 }
 0x183   :  { %v678_v23 = vpop.f32.mrf.mxu0 }
 0x184   :  { %v679_v29 = vadd.f32 %v678_v23, %v7163_v34 }
 0x186   :  { %6518 = vmatmul.msk.f32.gmra.mxu0 %vm183_vm0, %v6390_v27  ;;  %v7448_v31 = vpop.f32.mrf.mxu1  ;;  %vm1000_vm2 = vcmp.ge.f32.partialorder %v679_v29, 0.0  ;;  %v1128_v35 = vmul.f32 0.01, %v679_v29 }
 0x188   :  { %v7450_v40 = vsel %vm1000_vm2, %v679_v29, %v1128_v35  ;;  %v6393_v29 = vld [vmem:[%s11362_s0 + $0x190] sm:$0xff] }
 0x189   :  { %1496 = vmatmul.f32.gmra.mxu1 %v7450_v40 }
 0x18b   :  { %v681_v41 = vpop.f32.mrf.mxu0 }
 0x18c   :  { %v682_v50 = vadd.f32 %v681_v41, %v7163_v34 }
 0x18e   :  { %6519 = vmatmul.msk.f32.gmra.mxu0 %vm183_vm0, %v6391_v45  ;;  %v7458_v53 = vpop.f32.mrf.mxu1  ;;  %vm1001_vm3 = vcmp.ge.f32.partialorder %v682_v50, 0.0  ;;  %v1129_v57 = vmul.f32 0.01, %v682_v50 }
 0x190   :  { %v7460_v58 = vsel %vm1001_vm3, %v682_v50, %v1129_v57 }
 0x191   :  { %1499 = vmatmul.f32.gmra.mxu1 %v7460_v58 }
 0x193   :  { %v684_v1 = vpop.f32.mrf.mxu0 }
 0x194   :  { %v685_v8 = vadd.f32 %v684_v1, %v7163_v34  ;;  %v6394_v1 = vld [vmem:[%s11362_s0 + $0x198] sm:$0xff] }
 0x196   :  { %6520 = vmatmul.msk.f32.gmra.mxu0 %vm183_vm0, %v6392_v7  ;;  %v7468_v12 = vpop.f32.mrf.mxu1  ;;  %vm1002_vm4 = vcmp.ge.f32.partialorder %v685_v8, 0.0  ;;  %v1130_v17 = vmul.f32 0.01, %v685_v8 }
 0x198   :  { %v7470_v23 = vsel %vm1002_vm4, %v685_v8, %v1130_v17 }
 0x199   :  { %1502 = vmatmul.f32.gmra.mxu1 %v7470_v23 }
 0x19b   :  { %v687_v27 = vpop.f32.mrf.mxu0 }
 0x19c   :  { %v688_v35 = vadd.f32 %v687_v27, %v7163_v34 }
 0x19e   :  { %6521 = vmatmul.msk.f32.gmra.mxu0 %vm183_vm0, %v6393_v29  ;;  %v7478_v41 = vpop.f32.mrf.mxu1  ;;  %vm1003_vm5 = vcmp.ge.f32.partialorder %v688_v35, 0.0  ;;  %v1131_v45 = vmul.f32 0.01, %v688_v35 }
 0x19f   :  { %11687 = vst [vmem:[#allocation12_spill] sm:$0xff] %v7478_v41 }
 0x1a0   :  { %v7480_v50 = vsel %vm1003_vm5, %v688_v35, %v1131_v45  ;;  %v6395_v35 = vld [vmem:[%s11362_s0 + $0x1a0] sm:$0xff] }
 0x1a1   :  { %11688 = vst [vmem:[#allocation13_spill] sm:$0xff] %v7480_v50  ;;  %1505 = vmatmul.f32.gmra.mxu1 %v7480_v50 }
 0x1a3   :  { %v690_v57 = vpop.f32.mrf.mxu0 }
 0x1a4   :  { %v691_v7 = vadd.f32 %v690_v57, %v7163_v34 }
 0x1a6   :  { %6522 = vmatmul.msk.f32.gmra.mxu0 %vm183_vm0, %v6394_v1  ;;  %v7488_v8 = vpop.f32.mrf.mxu1  ;;  %vm1004_vm6 = vcmp.ge.f32.partialorder %v691_v7, 0.0  ;;  %v1132_v17 = vmul.f32 0.01, %v691_v7 }
 0x1a7   :  { %11689 = vst [vmem:[#allocation14_spill] sm:$0xff] %v7488_v8 }
 0x1a8   :  { %v7490_v27 = vsel %vm1004_vm6, %v691_v7, %v1132_v17  ;;  %v6396_v17 = vld [vmem:[%s11362_s0 + $0x1a8] sm:$0xff] }
 0x1a9   :  { %11690 = vst [vmem:[#allocation15_spill] sm:$0xff] %v7490_v27  ;;  %1508 = vmatmul.f32.gmra.mxu1 %v7490_v27 }
 0x1ab   :  { %v693_v29 = vpop.f32.mrf.mxu0 }
 0x1ac   :  { %v694_v45 = vadd.f32 %v693_v29, %v7163_v34 }
 0x1ae   :  { %6523 = vmatmul.msk.f32.gmra.mxu0 %vm183_vm0, %v6395_v35  ;;  %v7498_v57 = vpop.f32.mrf.mxu1  ;;  %vm1005_vm7 = vcmp.ge.f32.partialorder %v694_v45, 0.0  ;;  %v1133_v1 = vmul.f32 0.01, %v694_v45 }
 0x1af   :  { %11691 = vst [vmem:[#allocation16_spill] sm:$0xff] %v7498_v57 }
 0x1b0   :  { %v7500_v8 = vsel %vm1005_vm7, %v694_v45, %v1133_v1  ;;  %v6397_v1 = vld [vmem:[%s11362_s0 + $0x1b0] sm:$0xff] }
 0x1b1   :  { %11692 = vst [vmem:[#allocation17_spill] sm:$0xff] %v7500_v8  ;;  %1511 = vmatmul.f32.gmra.mxu1 %v7500_v8 }
 0x1b3   :  { %v696_v7 = vpop.f32.mrf.mxu0 }
 0x1b4   :  { %v697_v27 = vadd.f32 %v696_v7, %v7163_v34 }
 0x1b6   :  { %6524 = vmatmul.msk.f32.gmra.mxu0 %vm183_vm0, %v6396_v17  ;;  %vm1006_vm8 = vcmp.ge.f32.partialorder %v697_v27, 0.0  ;;  %v1134_v29 = vmul.f32 0.01, %v697_v27  ;;  %v7508_v35 = vpop.f32.mrf.mxu1 }
 0x1b7   :  { %11693 = vst [vmem:[#allocation18_spill] sm:$0xff] %v7508_v35 }
 0x1b8   :  { %v7510_v57 = vsel %vm1006_vm8, %v697_v27, %v1134_v29  ;;  %v6398_v29 = vld [vmem:[%s11362_s0 + $0x1b8] sm:$0xff] }
 0x1b9   :  { %11694 = vst [vmem:[#allocation19_spill] sm:$0xff] %v7510_v57  ;;  %1514 = vmatmul.f32.gmra.mxu1 %v7510_v57 }
 0x1bb   :  { %v699_v45 = vpop.f32.mrf.mxu0 }
 0x1bc   :  { %v700_v8 = vadd.f32 %v699_v45, %v7163_v34 }
 0x1be   :  { %6525 = vmatmul.msk.f32.gmra.mxu0 %vm183_vm0, %v6397_v1  ;;  %vm1007_vm9 = vcmp.ge.f32.partialorder %v700_v8, 0.0  ;;  %v1135_v7 = vmul.f32 0.01, %v700_v8  ;;  %v7520_v50 = vpop.f32.mrf.mxu1 }
 0x1bf   :  { %11696 = vst [vmem:[#allocation21_spill] sm:$0xff] %v7520_v50  ;;  %v6399_v50 = vld [vmem:[%s11362_s0 + $0x1c0] sm:$0xff] }
 0x1c0   :  { %v7518_v17 = vsel %vm1007_vm9, %v700_v8, %v1135_v7 }
 0x1c1   :  { %11695 = vst [vmem:[#allocation20_spill] sm:$0xff] %v7518_v17  ;;  %1517 = vmatmul.f32.gmra.mxu1 %v7518_v17 }
 0x1c3   :  { %v702_v27 = vpop.f32.mrf.mxu0 }
 0x1c4   :  { %v703_v35 = vadd.f32 %v702_v27, %v7163_v34 }
 0x1c6   :  { %6526 = vmatmul.msk.f32.gmra.mxu0 %vm183_vm0, %v6398_v29  ;;  %vm1008_vm10 = vcmp.ge.f32.partialorder %v703_v35, 0.0  ;;  %v1136_v45 = vmul.f32 0.01, %v703_v35  ;;  %v7531_v8 = vpop.f32.mrf.mxu1 }
 0x1c7   :  { %11698 = vst [vmem:[#allocation23_spill] sm:$0xff] %v7531_v8 }
 0x1c8   :  { %v7528_v1 = vsel %vm1008_vm10, %v703_v35, %v1136_v45  ;;  %v6400_v45 = vld [vmem:[%s11362_s0 + $0x1c8] sm:$0xff] }
 0x1c9   :  { %11697 = vst [vmem:[#allocation22_spill] sm:$0xff] %v7528_v1  ;;  %1520 = vmatmul.f32.gmra.mxu1 %v7528_v1 }
 0x1cb   :  { %v705_v7 = vpop.f32.mrf.mxu0 }
 0x1cc   :  { %v706_v17 = vadd.f32 %v705_v7, %v7163_v34 }
 0x1ce   :  { %6527 = vmatmul.msk.f32.gmra.mxu0 %vm183_vm0, %v6399_v50  ;;  %vm1009_vm11 = vcmp.ge.f32.partialorder %v706_v17, 0.0  ;;  %v1137_v27 = vmul.f32 0.01, %v706_v17  ;;  %v7545_v1 = vpop.f32.mrf.mxu1 }
 0x1cf   :  { %11700 = vst [vmem:[#allocation25_spill] sm:$0xff] %v7545_v1 }
 0x1d0   :  { %v7538_v29 = vsel %vm1009_vm11, %v706_v17, %v1137_v27  ;;  %v6401_v27 = vld [vmem:[%s11362_s0 + $0x1d0] sm:$0xff] }
 0x1d1   :  { %11699 = vst [vmem:[#allocation24_spill] sm:$0xff] %v7538_v29  ;;  %1523 = vmatmul.f32.gmra.mxu1 %v7538_v29 }
 0x1d3   :  { %v708_v35 = vpop.f32.mrf.mxu0 }
 0x1d4   :  { %v709_v8 = vadd.f32 %v708_v35, %v7163_v34 }
 0x1d6   :  { %6528 = vmatmul.msk.f32.gmra.mxu0 %vm183_vm0, %v6400_v45  ;;  %vm1010_vm12 = vcmp.ge.f32.partialorder %v709_v8, 0.0  ;;  %v1138_v7 = vmul.f32 0.01, %v709_v8  ;;  %v7556_v1 = vpop.f32.mrf.mxu1 }
 0x1d7   :  { %11702 = vst [vmem:[#allocation27_spill] sm:$0xff] %v7556_v1 }
 0x1d8   :  { %v7548_v50 = vsel %vm1010_vm12, %v709_v8, %v1138_v7  ;;  %v6402_v7 = vld [vmem:[%s11362_s0 + $0x1d8] sm:$0xff] }
 0x1d9   :  { %11701 = vst [vmem:[#allocation26_spill] sm:$0xff] %v7548_v50  ;;  %1526 = vmatmul.f32.gmra.mxu1 %v7548_v50 }
 0x1db   :  { %v711_v17 = vpop.f32.mrf.mxu0 }
 0x1dc   :  { %v712_v29 = vadd.f32 %v711_v17, %v7163_v34 }
 0x1de   :  { %6529 = vmatmul.msk.f32.gmra.mxu0 %vm183_vm0, %v6401_v27  ;;  %vm1011_vm13 = vcmp.ge.f32.partialorder %v712_v29, 0.0  ;;  %v1139_v35 = vmul.f32 0.01, %v712_v29  ;;  %v7568_v57 = vpop.f32.mrf.mxu1 }
 0x1df   :  { %11705 = vst [vmem:[#allocation30_spill] sm:$0xff] %v7568_v57 }
 0x1e0   :  { %v7558_v45 = vsel %vm1011_vm13, %v712_v29, %v1139_v35  ;;  %v6403_v35 = vld [vmem:[%s11362_s0 + $0x1e0] sm:$0xff] }
 0x1e1   :  { %11703 = vst [vmem:[#allocation28_spill] sm:$0xff] %v7558_v45  ;;  %1529 = vmatmul.f32.gmra.mxu1 %v7558_v45 }
 0x1e3   :  { %v714_v8 = vpop.f32.mrf.mxu0 }
 0x1e4   :  { %v715_v50 = vadd.f32 %v714_v8, %v7163_v34 }
 0x1e6   :  { %6530 = vmatmul.msk.f32.gmra.mxu0 %vm183_vm0, %v6402_v7  ;;  %vm1012_vm14 = vcmp.ge.f32.partialorder %v715_v50, 0.0  ;;  %v1140_v17 = vmul.f32 0.01, %v715_v50 }
 0x1e8   :  { %v7566_v27 = vsel %vm1012_vm14, %v715_v50, %v1140_v17  ;;  %v7579_v50 = vpop.f32.mrf.mxu1 }
 0x1e9   :  { %11704 = vst [vmem:[#allocation29_spill] sm:$0xff] %v7566_v27  ;;  %1532 = vmatmul.f32.gmra.mxu1 %v7566_v27  ;;  %v6404_v27 = vld [vmem:[%s11362_s0 + $0x1e8] sm:$0xff] }
 0x1ea   :  { %11707 = vst [vmem:[#allocation32_spill] sm:$0xff] %v7579_v50 }
 0x1eb   :  { %v717_v29 = vpop.f32.mrf.mxu0 }
 0x1ec   :  { %v718_v1 = vadd.f32 %v717_v29, %v7163_v34 }
 0x1ee   :  { %6531 = vmatmul.msk.f32.gmra.mxu0 %vm183_vm0, %v6403_v35  ;;  %vm1013_vm15 = vcmp.ge.f32.partialorder %v718_v1, 0.0  ;;  %v1141_v8 = vmul.f32 0.01, %v718_v1 }
 0x1f0   :  { %v7576_v7 = vsel %vm1013_vm15, %v718_v1, %v1141_v8  ;;  %v6405_v8 = vld [vmem:[%s11362_s0 + $0x1f0] sm:$0xff] }
 0x1f1   :  { %11706 = vst [vmem:[#allocation31_spill] sm:$0xff] %v7576_v7  ;;  %1535 = vmatmul.f32.gmra.mxu1 %v7576_v7  ;;  %v7593_v7 = vpop.f32.mrf.mxu1 }
 0x1f2   :  { %11709 = vst [vmem:[#allocation34_spill] sm:$0xff] %v7593_v7 }
 0x1f3   :  { %v720_v17 = vpop.f32.mrf.mxu0 }
 0x1f4   :  { %v721_v45 = vadd.f32 %v720_v17, %v7163_v34 }
 0x1f6   :  { %6532 = vmatmul.msk.f32.gmra.mxu0 %vm183_vm0, %v6404_v27  ;;  %vm1014_vm1 = vcmp.ge.f32.partialorder %v721_v45, 0.0  ;;  %v1142_v29 = vmul.f32 0.01, %v721_v45 }
 0x1f8   :  { %v7586_v35 = vsel %vm1014_vm1, %v721_v45, %v1142_v29  ;;  %v6406_v29 = vld [vmem:[%s11362_s0 + $0x1f8] sm:$0xff] }
 0x1f9   :  { %11708 = vst [vmem:[#allocation33_spill] sm:$0xff] %v7586_v35  ;;  %1538 = vmatmul.f32.gmra.mxu1 %v7586_v35  ;;  %v7604_v7 = vpop.f32.mrf.mxu1 }
 0x1fa   :  { %11711 = vst [vmem:[#allocation36_spill] sm:$0xff] %v7604_v7 }
 0x1fb   :  { %v723_v1 = vpop.f32.mrf.mxu0 }
 0x1fc   :  { %v724_v50 = vadd.f32 %v723_v1, %v7163_v34 }
 0x1fe   :  { %6533 = vmatmul.msk.f32.gmra.mxu0 %vm183_vm0, %v6405_v8  ;;  %vm1015_vm2 = vcmp.ge.f32.partialorder %v724_v50, 0.0  ;;  %v1143_v17 = vmul.f32 0.01, %v724_v50 }
 0x200   :  { %v7596_v27 = vsel %vm1015_vm2, %v724_v50, %v1143_v17  ;;  %v6407_v17 = vld [vmem:[%s11362_s0 + $0x200] sm:$0xff] }
 0x201   :  { %11710 = vst [vmem:[#allocation35_spill] sm:$0xff] %v7596_v27  ;;  %1541 = vmatmul.f32.gmra.mxu1 %v7596_v27  ;;  %v7616_v57 = vpop.f32.mrf.mxu1 }
 0x202   :  { %11714 = vst [vmem:[#allocation39_spill] sm:$0xff] %v7616_v57  ;;  %v6409_v57 = vld [vmem:[%s11362_s0 + $0x210] sm:$0xff] }
 0x203   :  { %v726_v45 = vpop.f32.mrf.mxu0 }
 0x204   :  { %v727_v35 = vadd.f32 %v726_v45, %v7163_v34 }
 0x206   :  { %6534 = vmatmul.msk.f32.gmra.mxu0 %vm183_vm0, %v6406_v29  ;;  %vm1016_vm3 = vcmp.ge.f32.partialorder %v727_v35, 0.0  ;;  %v1144_v1 = vmul.f32 0.01, %v727_v35 }
 0x208   :  { %v7606_v8 = vsel %vm1016_vm3, %v727_v35, %v1144_v1  ;;  %v6408_v1 = vld [vmem:[%s11362_s0 + $0x208] sm:$0xff] }
 0x209   :  { %11712 = vst [vmem:[#allocation37_spill] sm:$0xff] %v7606_v8  ;;  %1544 = vmatmul.f32.gmra.mxu1 %v7606_v8 }
 0x20b   :  { %v729_v50 = vpop.f32.mrf.mxu0 }
 0x20c   :  { %v730_v27 = vadd.f32 %v729_v50, %v7163_v34 }
 0x20e   :  { %6535 = vmatmul.msk.f32.gmra.mxu0 %vm183_vm0, %v6407_v17  ;;  %vm1017_vm4 = vcmp.ge.f32.partialorder %v730_v27, 0.0  ;;  %v1145_v45 = vmul.f32 0.01, %v730_v27 }
 0x210   :  { %v7614_v29 = vsel %vm1017_vm4, %v730_v27, %v1145_v45  ;;  %v7627_v27 = vpop.f32.mrf.mxu1 }
 0x211   :  { %11713 = vst [vmem:[#allocation38_spill] sm:$0xff] %v7614_v29  ;;  %1547 = vmatmul.f32.gmra.mxu1 %v7614_v29 }
 0x212   :  { %11716 = vst [vmem:[#allocation41_spill] sm:$0xff] %v7627_v27 }
 0x213   :  { %v732_v35 = vpop.f32.mrf.mxu0 }
 0x214   :  { %v733_v7 = vadd.f32 %v732_v35, %v7163_v34 }
 0x216   :  { %6536 = vmatmul.msk.f32.gmra.mxu0 %vm183_vm0, %v6408_v1  ;;  %vm1018_vm5 = vcmp.ge.f32.partialorder %v733_v7, 0.0  ;;  %v1146_v50 = vmul.f32 0.01, %v733_v7 }
 0x218   :  { %v7624_v17 = vsel %vm1018_vm5, %v733_v7, %v1146_v50  ;;  %v6410_v50 = vld [vmem:[%s11362_s0 + $0x218] sm:$0xff] }
 0x219   :  { %11715 = vst [vmem:[#allocation40_spill] sm:$0xff] %v7624_v17  ;;  %1550 = vmatmul.f32.gmra.mxu1 %v7624_v17  ;;  %v7641_v17 = vpop.f32.mrf.mxu1 }
 0x21a   :  { %11718 = vst [vmem:[#allocation43_spill] sm:$0xff] %v7641_v17 }
 0x21b   :  { %v735_v45 = vpop.f32.mrf.mxu0 }
 0x21c   :  { %v736_v29 = vadd.f32 %v735_v45, %v7163_v34 }
 0x21e   :  { %6537 = vmatmul.msk.f32.gmra.mxu0 %vm183_vm0, %v6409_v57  ;;  %vm1019_vm6 = vcmp.ge.f32.partialorder %v736_v29, 0.0  ;;  %v1147_v35 = vmul.f32 0.01, %v736_v29 }
 0x220   :  { %v7634_v1 = vsel %vm1019_vm6, %v736_v29, %v1147_v35  ;;  %v6411_v35 = vld [vmem:[%s11362_s0 + $0x220] sm:$0xff] }
 0x221   :  { %11717 = vst [vmem:[#allocation42_spill] sm:$0xff] %v7634_v1  ;;  %1553 = vmatmul.f32.gmra.mxu1 %v7634_v1  ;;  %v7652_v17 = vpop.f32.mrf.mxu1 }
 0x222   :  { %11720 = vst [vmem:[#allocation45_spill] sm:$0xff] %v7652_v17 }
 0x223   :  { %v738_v7 = vpop.f32.mrf.mxu0 }
 0x224   :  { %v739_v27 = vadd.f32 %v738_v7, %v7163_v34 }
 0x226   :  { %6538 = vmatmul.msk.f32.gmra.mxu0 %vm183_vm0, %v6410_v50  ;;  %vm1020_vm7 = vcmp.ge.f32.partialorder %v739_v27, 0.0  ;;  %v1148_v45 = vmul.f32 0.01, %v739_v27 }
 0x228   :  { %v7644_v57 = vsel %vm1020_vm7, %v739_v27, %v1148_v45  ;;  %v6412_v45 = vld [vmem:[%s11362_s0 + $0x228] sm:$0xff] }
 0x229   :  { %11719 = vst [vmem:[#allocation44_spill] sm:$0xff] %v7644_v57  ;;  %1556 = vmatmul.f32.gmra.mxu1 %v7644_v57  ;;  %v7664_v8 = vpop.f32.mrf.mxu1 }
 0x22a   :  { %11723 = vst [vmem:[#allocation48_spill] sm:$0xff] %v7664_v8  ;;  %v6414_v8 = vld [vmem:[%s11362_s0 + $0x238] sm:$0xff] }
 0x22b   :  { %v741_v29 = vpop.f32.mrf.mxu0 }
 0x22c   :  { %v742_v1 = vadd.f32 %v741_v29, %v7163_v34 }
 0x22e   :  { %6539 = vmatmul.msk.f32.gmra.mxu0 %vm183_vm0, %v6411_v35  ;;  %vm1021_vm8 = vcmp.ge.f32.partialorder %v742_v1, 0.0  ;;  %v1149_v7 = vmul.f32 0.01, %v742_v1 }
 0x230   :  { %v7654_v50 = vsel %vm1021_vm8, %v742_v1, %v1149_v7  ;;  %v6413_v7 = vld [vmem:[%s11362_s0 + $0x230] sm:$0xff] }
 0x231   :  { %11721 = vst [vmem:[#allocation46_spill] sm:$0xff] %v7654_v50  ;;  %1559 = vmatmul.f32.gmra.mxu1 %v7654_v50 }
 0x233   :  { %v744_v27 = vpop.f32.mrf.mxu0 }
 0x234   :  { %v745_v57 = vadd.f32 %v744_v27, %v7163_v34 }
 0x236   :  { %6540 = vmatmul.msk.f32.gmra.mxu0 %vm183_vm0, %v6412_v45  ;;  %vm1022_vm9 = vcmp.ge.f32.partialorder %v745_v57, 0.0  ;;  %v1150_v29 = vmul.f32 0.01, %v745_v57 }
 0x238   :  { %v7662_v35 = vsel %vm1022_vm9, %v745_v57, %v1150_v29  ;;  %v7675_v57 = vpop.f32.mrf.mxu1 }
 0x239   :  { %11722 = vst [vmem:[#allocation47_spill] sm:$0xff] %v7662_v35  ;;  %1562 = vmatmul.f32.gmra.mxu1 %v7662_v35 }
 0x23a   :  { %11725 = vst [vmem:[#allocation50_spill] sm:$0xff] %v7675_v57 }
 0x23b   :  { %v747_v1 = vpop.f32.mrf.mxu0 }
 0x23c   :  { %v748_v50 = vadd.f32 %v747_v1, %v7163_v34 }
 0x23e   :  { %6541 = vmatmul.msk.f32.gmra.mxu0 %vm183_vm0, %v6413_v7  ;;  %vm1023_vm10 = vcmp.ge.f32.partialorder %v748_v50, 0.0  ;;  %v1151_v27 = vmul.f32 0.01, %v748_v50 }
 0x240   :  { %v7672_v45 = vsel %vm1023_vm10, %v748_v50, %v1151_v27  ;;  %v6415_v27 = vld [vmem:[%s11362_s0 + $0x240] sm:$0xff] }
 0x241   :  { %11724 = vst [vmem:[#allocation49_spill] sm:$0xff] %v7672_v45  ;;  %1565 = vmatmul.f32.gmra.mxu1 %v7672_v45  ;;  %v7689_v45 = vpop.f32.mrf.mxu1 }
 0x242   :  { %11727 = vst [vmem:[#allocation52_spill] sm:$0xff] %v7689_v45 }
 0x243   :  { %v750_v29 = vpop.f32.mrf.mxu0 }
 0x244   :  { %v751_v35 = vadd.f32 %v750_v29, %v7163_v34 }
 0x246   :  { %6542 = vmatmul.msk.f32.gmra.mxu0 %vm183_vm0, %v6414_v8  ;;  %vm1024_vm11 = vcmp.ge.f32.partialorder %v751_v35, 0.0  ;;  %v1152_v1 = vmul.f32 0.01, %v751_v35 }
 0x248   :  { %v7682_v7 = vsel %vm1024_vm11, %v751_v35, %v1152_v1  ;;  %v6416_v1 = vld [vmem:[%s11362_s0 + $0x248] sm:$0xff] }
 0x249   :  { %11726 = vst [vmem:[#allocation51_spill] sm:$0xff] %v7682_v7  ;;  %1568 = vmatmul.f32.gmra.mxu1 %v7682_v7  ;;  %v7700_v45 = vpop.f32.mrf.mxu1 }
 0x24a   :  { %11729 = vst [vmem:[#allocation54_spill] sm:$0xff] %v7700_v45 }
 0x24b   :  { %v753_v50 = vpop.f32.mrf.mxu0 }
 0x24c   :  { %v754_v57 = vadd.f32 %v753_v50, %v7163_v34 }
 0x24e   :  { %6543 = vmatmul.msk.f32.gmra.mxu0 %vm183_vm0, %v6415_v27  ;;  %vm1025_vm12 = vcmp.ge.f32.partialorder %v754_v57, 0.0  ;;  %v1153_v29 = vmul.f32 0.01, %v754_v57 }
 0x250   :  { %v7692_v8 = vsel %vm1025_vm12, %v754_v57, %v1153_v29  ;;  %v6417_v29 = vld [vmem:[%s11362_s0 + $0x250] sm:$0xff] }
 0x251   :  { %11728 = vst [vmem:[#allocation53_spill] sm:$0xff] %v7692_v8  ;;  %1571 = vmatmul.f32.gmra.mxu1 %v7692_v8  ;;  %v7712_v17 = vpop.f32.mrf.mxu1 }
 0x252   :  { %11732 = vst [vmem:[#allocation57_spill] sm:$0xff] %v7712_v17  ;;  %v6419_v17 = vld [vmem:[%s11362_s0 + $0x260] sm:$0xff] }
 0x253   :  { %v756_v35 = vpop.f32.mrf.mxu0 }
 0x254   :  { %v757_v7 = vadd.f32 %v756_v35, %v7163_v34 }
 0x256   :  { %6544 = vmatmul.msk.f32.gmra.mxu0 %vm183_vm0, %v6416_v1  ;;  %vm1026_vm13 = vcmp.ge.f32.partialorder %v757_v7, 0.0  ;;  %v1154_v50 = vmul.f32 0.01, %v757_v7 }
 0x258   :  { %v7702_v27 = vsel %vm1026_vm13, %v757_v7, %v1154_v50  ;;  %v6418_v50 = vld [vmem:[%s11362_s0 + $0x258] sm:$0xff] }
 0x259   :  { %11730 = vst [vmem:[#allocation55_spill] sm:$0xff] %v7702_v27  ;;  %1574 = vmatmul.f32.gmra.mxu1 %v7702_v27 }
 0x25b   :  { %v759_v57 = vpop.f32.mrf.mxu0 }
 0x25c   :  { %v760_v8 = vadd.f32 %v759_v57, %v7163_v34 }
 0x25e   :  { %6545 = vmatmul.msk.f32.gmra.mxu0 %vm183_vm0, %v6417_v29  ;;  %vm1027_vm14 = vcmp.ge.f32.partialorder %v760_v8, 0.0  ;;  %v1155_v35 = vmul.f32 0.01, %v760_v8 }
 0x260   :  { %v7710_v1 = vsel %vm1027_vm14, %v760_v8, %v1155_v35  ;;  %v7723_v8 = vpop.f32.mrf.mxu1 }
 0x261   :  { %11731 = vst [vmem:[#allocation56_spill] sm:$0xff] %v7710_v1  ;;  %1577 = vmatmul.f32.gmra.mxu1 %v7710_v1 }
 0x262   :  { %11734 = vst [vmem:[#allocation59_spill] sm:$0xff] %v7723_v8 }
 0x263   :  { %v762_v7 = vpop.f32.mrf.mxu0 }
 0x264   :  { %v763_v45 = vadd.f32 %v762_v7, %v7163_v34 }
 0x266   :  { %6546 = vmatmul.msk.f32.gmra.mxu0 %vm183_vm0, %v6418_v50  ;;  %vm1028_vm15 = vcmp.ge.f32.partialorder %v763_v45, 0.0  ;;  %v1156_v57 = vmul.f32 0.01, %v763_v45 }
 0x268   :  { %v7720_v29 = vsel %vm1028_vm15, %v763_v45, %v1156_v57  ;;  %v6420_v57 = vld [vmem:[%s11362_s0 + $0x268] sm:$0xff] }
 0x269   :  { %11733 = vst [vmem:[#allocation58_spill] sm:$0xff] %v7720_v29  ;;  %1580 = vmatmul.f32.gmra.mxu1 %v7720_v29  ;;  %v7737_v29 = vpop.f32.mrf.mxu1 }
 0x26a   :  { %11736 = vst [vmem:[#allocation61_spill] sm:$0xff] %v7737_v29 }
 0x26b   :  { %v765_v35 = vpop.f32.mrf.mxu0 }
 0x26c   :  { %v766_v1 = vadd.f32 %v765_v35, %v7163_v34 }
 0x26e   :  { %6547 = vmatmul.msk.f32.gmra.mxu0 %vm183_vm0, %v6419_v17  ;;  %vm1029_vm1 = vcmp.ge.f32.partialorder %v766_v1, 0.0  ;;  %v1157_v7 = vmul.f32 0.01, %v766_v1 }
 0x270   :  { %v7730_v50 = vsel %vm1029_vm1, %v766_v1, %v1157_v7  ;;  %v6421_v7 = vld [vmem:[%s11362_s0 + $0x270] sm:$0xff] }
 0x271   :  { %11735 = vst [vmem:[#allocation60_spill] sm:$0xff] %v7730_v50  ;;  %1583 = vmatmul.f32.gmra.mxu1 %v7730_v50  ;;  %v7748_v29 = vpop.f32.mrf.mxu1 }
 0x272   :  { %11738 = vst [vmem:[#allocation63_spill] sm:$0xff] %v7748_v29 }
 0x273   :  { %v768_v45 = vpop.f32.mrf.mxu0 }
 0x274   :  { %v769_v8 = vadd.f32 %v768_v45, %v7163_v34 }
 0x276   :  { %6548 = vmatmul.msk.f32.gmra.mxu0 %vm183_vm0, %v6420_v57  ;;  %vm1030_vm2 = vcmp.ge.f32.partialorder %v769_v8, 0.0  ;;  %v1158_v35 = vmul.f32 0.01, %v769_v8 }
 0x278   :  { %v7740_v17 = vsel %vm1030_vm2, %v769_v8, %v1158_v35  ;;  %v6422_v35 = vld [vmem:[%s11362_s0 + $0x278] sm:$0xff] }
 0x279   :  { %11737 = vst [vmem:[#allocation62_spill] sm:$0xff] %v7740_v17  ;;  %1586 = vmatmul.f32.gmra.mxu1 %v7740_v17  ;;  %v7760_v27 = vpop.f32.mrf.mxu1 }
 0x27a   :  { %11741 = vst [vmem:[#allocation66_spill] sm:$0xff] %v7760_v27 }
 0x27b   :  { %v771_v1 = vpop.f32.mrf.mxu0 }
 0x27c   :  { %v772_v50 = vadd.f32 %v771_v1, %v7163_v34 }
 0x27e   :  { %6549 = vmatmul.msk.f32.gmra.mxu0 %vm183_vm0, %v6421_v7  ;;  %vm1031_vm3 = vcmp.ge.f32.partialorder %v772_v50, 0.0  ;;  %v1159_v45 = vmul.f32 0.01, %v772_v50 }
 0x280   :  { %v7750_v57 = vsel %vm1031_vm3, %v772_v50, %v1159_v45  ;;  %v6423_v45 = vld [vmem:[%s11362_s0 + $0x280] sm:$0xff] }
 0x281   :  { %11739 = vst [vmem:[#allocation64_spill] sm:$0xff] %v7750_v57  ;;  %1589 = vmatmul.f32.gmra.mxu1 %v7750_v57 }
 0x283   :  { %v774_v8 = vpop.f32.mrf.mxu0 }
 0x284   :  { %v775_v17 = vadd.f32 %v774_v8, %v7163_v34 }
 0x286   :  { %6550 = vmatmul.msk.f32.gmra.mxu0 %vm183_vm0, %v6422_v35  ;;  %vm1032_vm4 = vcmp.ge.f32.partialorder %v775_v17, 0.0  ;;  %v1160_v1 = vmul.f32 0.01, %v775_v17 }
 0x288   :  { %v7758_v7 = vsel %vm1032_vm4, %v775_v17, %v1160_v1  ;;  %v7771_v17 = vpop.f32.mrf.mxu1 }
 0x289   :  { %11740 = vst [vmem:[#allocation65_spill] sm:$0xff] %v7758_v7  ;;  %1592 = vmatmul.f32.gmra.mxu1 %v7758_v7  ;;  %v6424_v7 = vld [vmem:[%s11362_s0 + $0x288] sm:$0xff] }
 0x28a   :  { %11743 = vst [vmem:[#allocation68_spill] sm:$0xff] %v7771_v17 }
 0x28b   :  { %v777_v50 = vpop.f32.mrf.mxu0 }
 0x28c   :  { %v778_v29 = vadd.f32 %v777_v50, %v7163_v34 }
 0x28e   :  { %6551 = vmatmul.msk.f32.gmra.mxu0 %vm183_vm0, %v6423_v45  ;;  %vm1033_vm5 = vcmp.ge.f32.partialorder %v778_v29, 0.0  ;;  %v1161_v8 = vmul.f32 0.01, %v778_v29 }
 0x290   :  { %v7768_v35 = vsel %vm1033_vm5, %v778_v29, %v1161_v8  ;;  %v6425_v8 = vld [vmem:[%s11362_s0 + $0x290] sm:$0xff] }
 0x291   :  { %11742 = vst [vmem:[#allocation67_spill] sm:$0xff] %v7768_v35  ;;  %1595 = vmatmul.f32.gmra.mxu1 %v7768_v35  ;;  %v7785_v35 = vpop.f32.mrf.mxu1 }
 0x292   :  { %11745 = vst [vmem:[#allocation70_spill] sm:$0xff] %v7785_v35 }
 0x293   :  { %v780_v1 = vpop.f32.mrf.mxu0 }
 0x294   :  { %v781_v27 = vadd.f32 %v780_v1, %v7163_v34 }
 0x296   :  { %6552 = vmatmul.msk.f32.gmra.mxu0 %vm183_vm0, %v6424_v7  ;;  %vm1034_vm6 = vcmp.ge.f32.partialorder %v781_v27, 0.0  ;;  %v1162_v50 = vmul.f32 0.01, %v781_v27 }
 0x298   :  { %v7778_v45 = vsel %vm1034_vm6, %v781_v27, %v1162_v50  ;;  %v6426_v50 = vld [vmem:[%s11362_s0 + $0x298] sm:$0xff] }
 0x299   :  { %11744 = vst [vmem:[#allocation69_spill] sm:$0xff] %v7778_v45  ;;  %1598 = vmatmul.f32.gmra.mxu1 %v7778_v45  ;;  %v7796_v35 = vpop.f32.mrf.mxu1 }
 0x29a   :  { %11747 = vst [vmem:[#allocation72_spill] sm:$0xff] %v7796_v35 }
 0x29b   :  { %v783_v29 = vpop.f32.mrf.mxu0 }
 0x29c   :  { %v784_v17 = vadd.f32 %v783_v29, %v7163_v34 }
 0x29e   :  { %6553 = vmatmul.msk.f32.gmra.mxu0 %vm183_vm0, %v6425_v8  ;;  %vm1035_vm7 = vcmp.ge.f32.partialorder %v784_v17, 0.0  ;;  %v1163_v1 = vmul.f32 0.01, %v784_v17 }
 0x2a0   :  { %v7788_v7 = vsel %vm1035_vm7, %v784_v17, %v1163_v1  ;;  %v6427_v1 = vld [vmem:[%s11362_s0 + $0x2a0] sm:$0xff] }
 0x2a1   :  { %11746 = vst [vmem:[#allocation71_spill] sm:$0xff] %v7788_v7  ;;  %1601 = vmatmul.f32.gmra.mxu1 %v7788_v7  ;;  %v7808_v57 = vpop.f32.mrf.mxu1 }
 0x2a2   :  { %11750 = vst [vmem:[#allocation75_spill] sm:$0xff] %v7808_v57  ;;  %v6429_v57 = vld [vmem:[%s11362_s0 + $0x2b0] sm:$0xff] }
 0x2a3   :  { %v786_v27 = vpop.f32.mrf.mxu0 }
 0x2a4   :  { %v787_v45 = vadd.f32 %v786_v27, %v7163_v34 }
 0x2a6   :  { %6554 = vmatmul.msk.f32.gmra.mxu0 %vm183_vm0, %v6426_v50  ;;  %vm1036_vm8 = vcmp.ge.f32.partialorder %v787_v45, 0.0  ;;  %v1164_v29 = vmul.f32 0.01, %v787_v45 }
 0x2a8   :  { %v7798_v8 = vsel %vm1036_vm8, %v787_v45, %v1164_v29  ;;  %v6428_v29 = vld [vmem:[%s11362_s0 + $0x2a8] sm:$0xff] }
 0x2a9   :  { %11748 = vst [vmem:[#allocation73_spill] sm:$0xff] %v7798_v8  ;;  %1604 = vmatmul.f32.gmra.mxu1 %v7798_v8 }
 0x2ab   :  { %v789_v17 = vpop.f32.mrf.mxu0 }
 0x2ac   :  { %v790_v7 = vadd.f32 %v789_v17, %v7163_v34 }
 0x2ae   :  { %6555 = vmatmul.msk.f32.gmra.mxu0 %vm183_vm0, %v6427_v1  ;;  %vm1037_vm9 = vcmp.ge.f32.partialorder %v790_v7, 0.0  ;;  %v1165_v27 = vmul.f32 0.01, %v790_v7 }
 0x2b0   :  { %v7806_v50 = vsel %vm1037_vm9, %v790_v7, %v1165_v27  ;;  %v7819_v7 = vpop.f32.mrf.mxu1 }
 0x2b1   :  { %11749 = vst [vmem:[#allocation74_spill] sm:$0xff] %v7806_v50  ;;  %1607 = vmatmul.f32.gmra.mxu1 %v7806_v50 }
 0x2b2   :  { %11752 = vst [vmem:[#allocation77_spill] sm:$0xff] %v7819_v7 }
 0x2b3   :  { %v792_v45 = vpop.f32.mrf.mxu0 }
 0x2b4   :  { %v793_v8 = vadd.f32 %v792_v45, %v7163_v34 }
 0x2b6   :  { %6556 = vmatmul.msk.f32.gmra.mxu0 %vm183_vm0, %v6428_v29  ;;  %vm1038_vm10 = vcmp.ge.f32.partialorder %v793_v8, 0.0  ;;  %v1166_v17 = vmul.f32 0.01, %v793_v8 }
 0x2b8   :  { %v7816_v1 = vsel %vm1038_vm10, %v793_v8, %v1166_v17  ;;  %v6430_v17 = vld [vmem:[%s11362_s0 + $0x2b8] sm:$0xff] }
 0x2b9   :  { %11751 = vst [vmem:[#allocation76_spill] sm:$0xff] %v7816_v1  ;;  %1610 = vmatmul.f32.gmra.mxu1 %v7816_v1  ;;  %v7833_v1 = vpop.f32.mrf.mxu1 }
 0x2ba   :  { %11754 = vst [vmem:[#allocation79_spill] sm:$0xff] %v7833_v1 }
 0x2bb   :  { %v795_v27 = vpop.f32.mrf.mxu0 }
 0x2bc   :  { %v796_v50 = vadd.f32 %v795_v27, %v7163_v34 }
 0x2be   :  { %6557 = vmatmul.msk.f32.gmra.mxu0 %vm183_vm0, %v6429_v57  ;;  %vm1039_vm11 = vcmp.ge.f32.partialorder %v796_v50, 0.0  ;;  %v1167_v45 = vmul.f32 0.01, %v796_v50 }
 0x2c0   :  { %v7826_v29 = vsel %vm1039_vm11, %v796_v50, %v1167_v45  ;;  %v6431_v45 = vld [vmem:[%s11362_s0 + $0x2c0] sm:$0xff] }
 0x2c1   :  { %11753 = vst [vmem:[#allocation78_spill] sm:$0xff] %v7826_v29  ;;  %1613 = vmatmul.f32.gmra.mxu1 %v7826_v29  ;;  %v7844_v1 = vpop.f32.mrf.mxu1 }
 0x2c2   :  { %11756 = vst [vmem:[#allocation81_spill] sm:$0xff] %v7844_v1 }
 0x2c3   :  { %v798_v8 = vpop.f32.mrf.mxu0 }
 0x2c4   :  { %v799_v7 = vadd.f32 %v798_v8, %v7163_v34 }
 0x2c6   :  { %6558 = vmatmul.msk.f32.gmra.mxu0 %vm183_vm0, %v6430_v17  ;;  %vm1040_vm12 = vcmp.ge.f32.partialorder %v799_v7, 0.0  ;;  %v1168_v27 = vmul.f32 0.01, %v799_v7 }
 0x2c8   :  { %v7836_v57 = vsel %vm1040_vm12, %v799_v7, %v1168_v27  ;;  %v6432_v27 = vld [vmem:[%s11362_s0 + $0x2c8] sm:$0xff] }
 0x2c9   :  { %11755 = vst [vmem:[#allocation80_spill] sm:$0xff] %v7836_v57  ;;  %1616 = vmatmul.f32.gmra.mxu1 %v7836_v57  ;;  %v7856_v35 = vpop.f32.mrf.mxu1 }
 0x2ca   :  { %11759 = vst [vmem:[#allocation84_spill] sm:$0xff] %v7856_v35  ;;  %v6434_v35 = vld [vmem:[%s11362_s0 + $0x2d8] sm:$0xff] }
 0x2cb   :  { %v801_v50 = vpop.f32.mrf.mxu0 }
 0x2cc   :  { %v802_v29 = vadd.f32 %v801_v50, %v7163_v34 }
 0x2ce   :  { %6559 = vmatmul.msk.f32.gmra.mxu0 %vm183_vm0, %v6431_v45  ;;  %vm1041_vm13 = vcmp.ge.f32.partialorder %v802_v29, 0.0  ;;  %v1169_v8 = vmul.f32 0.01, %v802_v29 }
 0x2d0   :  { %v7846_v17 = vsel %vm1041_vm13, %v802_v29, %v1169_v8  ;;  %v6433_v8 = vld [vmem:[%s11362_s0 + $0x2d0] sm:$0xff] }
 0x2d1   :  { %11757 = vst [vmem:[#allocation82_spill] sm:$0xff] %v7846_v17  ;;  %1619 = vmatmul.f32.gmra.mxu1 %v7846_v17 }
 0x2d3   :  { %v804_v7 = vpop.f32.mrf.mxu0 }
 0x2d4   :  { %v805_v57 = vadd.f32 %v804_v7, %v7163_v34 }
 0x2d6   :  { %6560 = vmatmul.msk.f32.gmra.mxu0 %vm183_vm0, %v6432_v27  ;;  %vm1042_vm14 = vcmp.ge.f32.partialorder %v805_v57, 0.0  ;;  %v1170_v50 = vmul.f32 0.01, %v805_v57 }
 0x2d8   :  { %v7854_v45 = vsel %vm1042_vm14, %v805_v57, %v1170_v50  ;;  %v7867_v57 = vpop.f32.mrf.mxu1 }
 0x2d9   :  { %11758 = vst [vmem:[#allocation83_spill] sm:$0xff] %v7854_v45  ;;  %1622 = vmatmul.f32.gmra.mxu1 %v7854_v45 }
 0x2da   :  { %11761 = vst [vmem:[#allocation86_spill] sm:$0xff] %v7867_v57 }
 0x2db   :  { %v807_v29 = vpop.f32.mrf.mxu0 }
 0x2dc   :  { %v808_v17 = vadd.f32 %v807_v29, %v7163_v34 }
 0x2de   :  { %6561 = vmatmul.msk.f32.gmra.mxu0 %vm183_vm0, %v6433_v8  ;;  %vm1043_vm15 = vcmp.ge.f32.partialorder %v808_v17, 0.0  ;;  %v1171_v7 = vmul.f32 0.01, %v808_v17 }
 0x2e0   :  { %v7864_v27 = vsel %vm1043_vm15, %v808_v17, %v1171_v7  ;;  %v6435_v7 = vld [vmem:[%s11362_s0 + $0x2e0] sm:$0xff]  ;;  %v7881_v57 = vpop.f32.mrf.mxu1 }
 0x2e1   :  { %11760 = vst [vmem:[#allocation85_spill] sm:$0xff] %v7864_v27  ;;  %1625 = vmatmul.f32.gmra.mxu1 %v7864_v27  ;;  %v1384_v27 = vld [vmem:[#allocation2 + $0x118] sm:$0xff] }
 0x2e2   :  { %1692 = vmatpush.msrb.mxu2 %v1384_v27  ;;  %11763 = vst [vmem:[#allocation88_spill] sm:$0xff] %v7881_v57 }
 0x2e3   :  { %v810_v50 = vpop.f32.mrf.mxu0 }
 0x2e4   :  { %v811_v45 = vadd.f32 %v810_v50, %v7163_v34 }
 0x2e6   :  { %6562 = vmatmul.msk.f32.gmra.mxu0 %vm183_vm0, %v6434_v35  ;;  %vm1044_vm1 = vcmp.ge.f32.partialorder %v811_v45, 0.0  ;;  %v1172_v29 = vmul.f32 0.01, %v811_v45 }
 0x2e8   :  { %v7874_v8 = vsel %vm1044_vm1, %v811_v45, %v1172_v29  ;;  %v1382_v45 = vld [vmem:[#allocation2 + $0x108] sm:$0xff] }
 0x2e9   :  { %11762 = vst [vmem:[#allocation87_spill] sm:$0xff] %v7874_v8  ;;  %1628 = vmatmul.f32.gmra.mxu1 %v7874_v8  ;;  %1693 = vmatpush.msrb.mxu2 %v1382_v45  ;;  %v6436_v8 = vld [vmem:[%s11362_s0 + $0x2e8] sm:$0xff]  ;;  %v6437_v45 = vld [vmem:[%s11362_s0 + $0x2f0] sm:$0xff] }
 0x2eb   :  { %v813_v17 = vpop.f32.mrf.mxu0 }
 0x2ec   :  { %v814_v1 = vadd.f32 %v813_v17, %v7163_v34 }
 0x2ee   :  { %6563 = vmatmul.msk.f32.gmra.mxu0 %vm183_vm0, %v6435_v7  ;;  %vm1045_vm2 = vcmp.ge.f32.partialorder %v814_v1, 0.0  ;;  %v1173_v35 = vmul.f32 0.01, %v814_v1  ;;  %v7892_v7 = vpop.f32.mrf.mxu1 }
 0x2ef   :  { %11765 = vst [vmem:[#allocation90_spill] sm:$0xff] %v7892_v7 }
 0x2f0   :  { %v7884_v50 = vsel %vm1045_vm2, %v814_v1, %v1173_v35  ;;  %v1380_v1 = vld [vmem:[#allocation2 + $0xf8] sm:$0xff] }
 0x2f1   :  { %11764 = vst [vmem:[#allocation89_spill] sm:$0xff] %v7884_v50  ;;  %1631 = vmatmul.f32.gmra.mxu1 %v7884_v50  ;;  %1694 = vmatpush.msrb.mxu2 %v1380_v1 }
 0x2f3   :  { %v816_v29 = vpop.f32.mrf.mxu0 }
 0x2f4   :  { %v817_v17 = vadd.f32 %v816_v29, %v7163_v34 }
 0x2f6   :  { %6564 = vmatmul.msk.f32.gmra.mxu0 %vm183_vm0, %v6436_v8  ;;  %vm1046_vm3 = vcmp.ge.f32.partialorder %v817_v17, 0.0  ;;  %v1174_v27 = vmul.f32 0.01, %v817_v17  ;;  %v7904_v7 = vpop.f32.mrf.mxu1 }
 0x2f7   :  { %11768 = vst [vmem:[#allocation93_spill] sm:$0xff] %v7904_v7 }
 0x2f8   :  { %v7894_v57 = vsel %vm1046_vm3, %v817_v17, %v1174_v27  ;;  %v6438_v27 = vld [vmem:[%s11362_s0 + $0x2f8] sm:$0xff] }
 0x2f9   :  { %11766 = vst [vmem:[#allocation91_spill] sm:$0xff] %v7894_v57  ;;  %1634 = vmatmul.f32.gmra.mxu1 %v7894_v57  ;;  %v1378_v57 = vld [vmem:[#allocation2 + $0xe8] sm:$0xff] }
 0x2fa   :  { %1695 = vmatpush.msrb.mxu2 %v1378_v57 }
 0x2fb   :  { %v819_v35 = vpop.f32.mrf.mxu0 }
 0x2fc   :  { %v820_v50 = vadd.f32 %v819_v35, %v7163_v34 }
 0x2fe   :  { %6565 = vmatmul.msk.f32.gmra.mxu0 %vm183_vm0, %v6437_v45  ;;  %vm1047_vm4 = vcmp.ge.f32.partialorder %v820_v50, 0.0  ;;  %v1175_v8 = vmul.f32 0.01, %v820_v50 }
 0x300   :  { %v7902_v29 = vsel %vm1047_vm4, %v820_v50, %v1175_v8 }
 0x301   :  { %11767 = vst [vmem:[#allocation92_spill] sm:$0xff] %v7902_v29  ;;  %1637 = vmatmul.f32.gmra.mxu1 %v7902_v29  ;;  %v1376_v29 = vld [vmem:[#allocation2 + $0xd8] sm:$0xff] }
 0x302   :  { %1696 = vmatpush.msrb.mxu2 %v1376_v29 }
 0x303   :  { %v822_v17 = vpop.f32.mrf.mxu0 }
 0x304   :  { %v823_v1 = vadd.f32 %v822_v17, %v7163_v34 }
 0x306   :  { %6566 = vmatmul.msk.f32.gmra.mxu0 %vm183_vm0, %v6438_v27  ;;  %vm1048_vm5 = vcmp.ge.f32.partialorder %v823_v1, 0.0  ;;  %v1176_v35 = vmul.f32 0.01, %v823_v1  ;;  %v1374_v27 = vld [vmem:[#allocation2 + $0xc8] sm:$0xff] }
 0x307   :  { %1697 = vmatpush.msrb.mxu2 %v1374_v27 }
 0x308   :  { %v7912_v45 = vsel %vm1048_vm5, %v823_v1, %v1176_v35 }
 0x309   :  { %11769 = vst [vmem:[#allocation94_spill] sm:$0xff] %v7912_v45  ;;  %1640 = vmatmul.f32.vlgmr.msra.gmra.mxu2 %v7912_v45  ;;  %v1372_v45 = vld [vmem:[#allocation2 + $0xb8] sm:$0xff] }
 0x30a   :  { %1698 = vmatpush.msrb.mxu2 %v1372_v45 }
 0x30b   :  { %v825_v50 = vpop.f32.mrf.mxu0 }
 0x30c   :  { %v826_v8 = vadd.f32 %v825_v50, %v7163_v34 }
 0x30e   :  { %vm1049_vm6 = vcmp.ge.f32.partialorder %v826_v8, 0.0  ;;  %v1177_v7 = vmul.f32 0.01, %v826_v8 }
 0x310   :  { %v7916_v41 = vsel %vm1049_vm6, %v826_v8, %v1177_v7 }
 0x311   :  { %11770 = vst [vmem:[#allocation95_spill] sm:$0xff] %v7916_v41  ;;  %1643 = vmatmul.f32.gmra.mxu2 %v7916_v41  ;;  %v1370_v41 = vld [vmem:[#allocation2 + $0xa8] sm:$0xff] }
 0x312   :  { %1699 = vmatpush.msrb.mxu2 %v1370_v41 }
 0x313   :  { %v828_v57 = vpop.f32.mrf.mxu0 }
 0x314   :  { %v829_v17 = vadd.f32 %v828_v57, %v7163_v34 }
 0x316   :  { %vm1050_vm7 = vcmp.ge.f32.partialorder %v829_v17, 0.0  ;;  %v1178_v1 = vmul.f32 0.01, %v829_v17 }
 0x318   :  { %v7920_v35 = vsel %vm1050_vm7, %v829_v17, %v1178_v1 }
 0x319   :  { %11771 = vst [vmem:[#allocation96_spill] sm:$0xff] %v7920_v35  ;;  %1646 = vmatmul.f32.gmra.mxu2 %v7920_v35  ;;  %v1368_v35 = vld [vmem:[#allocation2 + $0x98] sm:$0xff] }
 0x31a   :  { %1700 = vmatpush.msrb.mxu2 %v1368_v35 }
 0x31b   :  { %v831_v50 = vpop.f32.mrf.mxu0 }
 0x31c   :  { %v832_v29 = vadd.f32 %v831_v50, %v7163_v34 }
 0x31e   :  { %vm1051_vm8 = vcmp.ge.f32.partialorder %v832_v29, 0.0  ;;  %v1179_v7 = vmul.f32 0.01, %v832_v29 }
 0x320   :  { %v7924_v8 = vsel %vm1051_vm8, %v832_v29, %v1179_v7 }
 0x321   :  { %11772 = vst [vmem:[#allocation97_spill] sm:$0xff] %v7924_v8  ;;  %1649 = vmatmul.f32.gmra.mxu2 %v7924_v8 }
 0x323   :  { %v834_v57 = vpop.f32.mrf.mxu0 }
 0x324   :  { %v835_v27 = vadd.f32 %v834_v57, %v7163_v34 }
 0x326   :  { %vm1052_vm9 = vcmp.ge.f32.partialorder %v835_v27, 0.0  ;;  %v1180_v17 = vmul.f32 0.01, %v835_v27 }
 0x328   :  { %v7928_v1 = vsel %vm1052_vm9, %v835_v27, %v1180_v17  ;;  %v1366_v17 = vld [vmem:[#allocation2 + $0x88] sm:$0xff] }
 0x329   :  { %11773 = vst [vmem:[#allocation98_spill] sm:$0xff] %v7928_v1  ;;  %1652 = vmatmul.f32.gmra.mxu2 %v7928_v1 }
 0x32a   :  { %1701 = vmatpush.msrb.mxu2 %v1366_v17  ;;  %v1362_v17 = vld [vmem:[#allocation2 + $0x68] sm:$0xff] }
 0x32b   :  { %v837_v50 = vpop.f32.mrf.mxu0 }
 0x32c   :  { %v838_v45 = vadd.f32 %v837_v50, %v7163_v34 }
 0x32e   :  { %vm1053_vm10 = vcmp.ge.f32.partialorder %v838_v45, 0.0  ;;  %v1181_v29 = vmul.f32 0.01, %v838_v45 }
 0x330   :  { %v7932_v7 = vsel %vm1053_vm10, %v838_v45, %v1181_v29  ;;  %v1364_v29 = vld [vmem:[#allocation2 + $0x78] sm:$0xff] }
 0x331   :  { %11774 = vst [vmem:[#allocation99_spill] sm:$0xff] %v7932_v7  ;;  %1655 = vmatmul.f32.gmra.mxu2 %v7932_v7 }
 0x332   :  { %1702 = vmatpush.msrb.mxu2 %v1364_v29  ;;  %v1360_v29 = vld [vmem:[#allocation2 + $0x58] sm:$0xff] }
 0x333   :  { %v840_v57 = vpop.f32.mrf.mxu0 }
 0x334   :  { %v841_v41 = vadd.f32 %v840_v57, %v7163_v34  ;;  %1703 = vmatpush.msrb.mxu2 %v1362_v17  ;;  %v1358_v17 = vld [vmem:[#allocation2 + $0x48] sm:$0xff] }
 0x336   :  { %vm1054_vm11 = vcmp.ge.f32.partialorder %v841_v41, 0.0  ;;  %v1182_v8 = vmul.f32 0.01, %v841_v41  ;;  %1704 = vmatpush.msrb.mxu2 %v1360_v29  ;;  %v1356_v29 = vld [vmem:[#allocation2 + $0x38] sm:$0xff] }
 0x338   :  { %v7936_v27 = vsel %vm1054_vm11, %v841_v41, %v1182_v8  ;;  %1705 = vmatpush.msrb.mxu2 %v1358_v17  ;;  %v1354_v17 = vld [vmem:[#allocation2 + $0x28] sm:$0xff] }
 0x339   :  { %11775 = vst [vmem:[#allocation100_spill] sm:$0xff] %v7936_v27  ;;  %1658 = vmatmul.f32.gmra.mxu2 %v7936_v27 }
 0x33a   :  { %1706 = vmatpush.msrb.mxu2 %v1356_v29 }
 0x33b   :  { %v843_v50 = vpop.f32.mrf.mxu0 }
 0x33c   :  { %v844_v35 = vadd.f32 %v843_v50, %v7163_v34  ;;  %1707 = vmatpush.msrb.mxu2 %v1354_v17 }
 0x33e   :  { %vm1055_vm12 = vcmp.ge.f32.partialorder %v844_v35, 0.0  ;;  %v1183_v1 = vmul.f32 0.01, %v844_v35 }
 0x340   :  { %v7940_v45 = vsel %vm1055_vm12, %v844_v35, %v1183_v1 }
 0x341   :  { %11776 = vst [vmem:[#allocation101_spill] sm:$0xff] %v7940_v45  ;;  %1661 = vmatmul.f32.gmra.mxu2 %v7940_v45 }
 0x343   :  { %v846_v57 = vpop.f32.mrf.mxu0 }
 0x344   :  { %v847_v7 = vadd.f32 %v846_v57, %v7163_v34 }
 0x346   :  { %vm1056_vm13 = vcmp.ge.f32.partialorder %v847_v7, 0.0  ;;  %v1184_v8 = vmul.f32 0.01, %v847_v7 }
 0x348   :  { %v7944_v41 = vsel %vm1056_vm13, %v847_v7, %v1184_v8 }
 0x349   :  { %11777 = vst [vmem:[#allocation102_spill] sm:$0xff] %v7944_v41  ;;  %1664 = vmatmul.f32.gmra.mxu2 %v7944_v41 }
 0x34b   :  { %v849_v50 = vpop.f32.mrf.mxu0 }
 0x34c   :  { %v850_v27 = vadd.f32 %v849_v50, %v7163_v34 }
 0x34e   :  { %vm1057_vm14 = vcmp.ge.f32.partialorder %v850_v27, 0.0  ;;  %v1185_v1 = vmul.f32 0.01, %v850_v27 }
 0x350   :  { %v7948_v35 = vsel %vm1057_vm14, %v850_v27, %v1185_v1 }
 0x351   :  { %11778 = vst [vmem:[#allocation103_spill] sm:$0xff] %v7948_v35  ;;  %1667 = vmatmul.f32.gmra.mxu2 %v7948_v35 }
 0x353   :  { %v852_v57 = vpop.f32.mrf.mxu0 }
 0x354   :  { %v853_v45 = vadd.f32 %v852_v57, %v7163_v34 }
 0x356   :  { %vm1058_vm15 = vcmp.ge.f32.partialorder %v853_v45, 0.0  ;;  %v1186_v7 = vmul.f32 0.01, %v853_v45 }
 0x358   :  { %v7952_v8 = vsel %vm1058_vm15, %v853_v45, %v1186_v7 }
 0x359   :  { %11779 = vst [vmem:[#allocation104_spill] sm:$0xff] %v7952_v8  ;;  %1670 = vmatmul.f32.gmra.mxu2 %v7952_v8 }
 0x35b   :  { %v855_v50 = vpop.f32.mrf.mxu0 }
 0x35c   :  { %v856_v41 = vadd.f32 %v855_v50, %v7163_v34 }
 0x35e   :  { %vm1059_vm1 = vcmp.ge.f32.partialorder %v856_v41, 0.0  ;;  %v1187_v27 = vmul.f32 0.01, %v856_v41 }
 0x360   :  { %v7956_v1 = vsel %vm1059_vm1, %v856_v41, %v1187_v27 }
 0x361   :  { %11780 = vst [vmem:[#allocation105_spill] sm:$0xff] %v7956_v1  ;;  %1673 = vmatmul.f32.gmra.mxu2 %v7956_v1 }
 0x363   :  { %v858_v57 = vpop.f32.mrf.mxu0 }
 0x364   :  { %v859_v35 = vadd.f32 %v858_v57, %v7163_v34 }
 0x366   :  { %vm1060_vm2 = vcmp.ge.f32.partialorder %v859_v35, 0.0  ;;  %v1188_v45 = vmul.f32 0.01, %v859_v35 }
 0x368   :  { %v7960_v7 = vsel %vm1060_vm2, %v859_v35, %v1188_v45 }
 0x369   :  { %11781 = vst [vmem:[#allocation106_spill] sm:$0xff] %v7960_v7  ;;  %1676 = vmatmul.f32.gmra.mxu2 %v7960_v7 }
 0x36b   :  { %v861_v50 = vpop.f32.mrf.mxu0 }
 0x36c   :  { %v862_v8 = vadd.f32 %v861_v50, %v7163_v34 }
 0x36e   :  { %vm1061_vm3 = vcmp.ge.f32.partialorder %v862_v8, 0.0  ;;  %v1189_v41 = vmul.f32 0.01, %v862_v8 }
 0x370   :  { %v7964_v27 = vsel %vm1061_vm3, %v862_v8, %v1189_v41 }
 0x371   :  { %11782 = vst [vmem:[#allocation107_spill] sm:$0xff] %v7964_v27  ;;  %1679 = vmatmul.f32.gmra.mxu2 %v7964_v27 }
 0x373   :  { %v864_v29 = vpop.f32.mrf.mxu0 }
 0x374   :  { %v865_v57 = vadd.f32 %v864_v29, %v7163_v34 }
 0x376   :  { %vm1062_vm4 = vcmp.ge.f32.partialorder %v865_v57, 0.0  ;;  %v1190_v1 = vmul.f32 0.01, %v865_v57 }
 0x378   :  { %v7968_v35 = vsel %vm1062_vm4, %v865_v57, %v1190_v1 }
 0x379   :  { %1682 = vmatmul.f32.gmra.mxu2 %v7968_v35 }
 0x37b   :  { %v867_v45 = vpop.f32.mrf.mxu0 }
 0x37c   :  { %v868_v17 = vadd.f32 %v867_v45, %v7163_v34 }
 0x37e   :  { %vm1063_vm5 = vcmp.ge.f32.partialorder %v868_v17, 0.0  ;;  %v1191_v50 = vmul.f32 0.01, %v868_v17 }
 0x380   :  { %v7972_v7 = vsel %vm1063_vm5, %v868_v17, %v1191_v50 }
 0x381   :  { %1685 = vmatmul.f32.gmra.mxu2 %v7972_v7 }
 0x383   :  { %v870_v8 = vpop.f32.mrf.mxu0 }
 0x384   :  { %v871_v41 = vadd.f32 %v870_v8, %v7163_v34  ;;  %v2574_v34 = vld [vmem:[#allocation2 + $0x120] ss:$8 sm:$0x3] }
 0x386   :  { %vm1064_vm6 = vcmp.ge.f32.partialorder %v871_v41, 0.0  ;;  %v1192_v29 = vmul.f32 0.01, %v871_v41 }
 0x388   :  { %v7976_v27 = vsel %vm1064_vm6, %v871_v41, %v1192_v29 }
 0x389   :  { %1688 = vmatmul.f32.gmra.mxu2 %v7976_v27 }
 0x38c   :  { %v7979_v1 = vpop.f32.mrf.mxu2 }
 0x391   :  { %1708 = vmatmul.f32.vlgmr.msrb.gmra.mxu2 %v7170_v39 }
 0x394   :  { %v7982_v57 = vpop.f32.mrf.mxu2 }
 0x399   :  { %1711 = vmatmul.f32.gmra.mxu2 %v7178_v44 }
 0x39c   :  { %v7985_v45 = vpop.f32.mrf.mxu2 }
 0x3a1   :  { %1714 = vmatmul.f32.gmra.mxu2 %v7186_v49 }
 0x3a4   :  { %v7988_v17 = vpop.f32.mrf.mxu2 }
 0x3a9   :  { %1717 = vmatmul.f32.gmra.mxu2 %v7194_v54 }
 0x3ac   :  { %v7991_v50 = vpop.f32.mrf.mxu2 }
 0x3ad   :  { %11783 = vst [vmem:[#allocation108_spill] sm:$0xff] %v7991_v50 }
 0x3b1   :  { %1720 = vmatmul.f32.gmra.mxu2 %v7202_v59 }
 0x3b4   :  { %v7994_v8 = vpop.f32.mrf.mxu2 }
 0x3b5   :  { %11784 = vst [vmem:[#allocation109_spill] sm:$0xff] %v7994_v8 }
 0x3b9   :  { %1723 = vmatmul.f32.gmra.mxu2 %v7210_v0 }
 0x3bc   :  { %v7997_v39 = vpop.f32.mrf.mxu2 }
 0x3bd   :  { %11785 = vst [vmem:[#allocation110_spill] sm:$0xff] %v7997_v39  ;;  %v11950_v39 = vld [vmem:[#allocation78_spill] sm:$0xff] }
 0x3c1   :  { %1726 = vmatmul.f32.gmra.mxu2 %v7218_v5 }
 0x3c4   :  { %v8000_v44 = vpop.f32.mrf.mxu2 }
 0x3c5   :  { %11786 = vst [vmem:[#allocation111_spill] sm:$0xff] %v8000_v44 }
 0x3c9   :  { %1729 = vmatmul.f32.gmra.mxu2 %v7226_v10 }
 0x3cc   :  { %v8003_v49 = vpop.f32.mrf.mxu2 }
 0x3cd   :  { %11787 = vst [vmem:[#allocation112_spill] sm:$0xff] %v8003_v49 }
 0x3d1   :  { %1732 = vmatmul.f32.gmra.mxu2 %v7234_v15 }
 0x3d4   :  { %v8006_v54 = vpop.f32.mrf.mxu2 }
 0x3d9   :  { %1735 = vmatmul.f32.gmra.mxu2 %v7242_v20 }
 0x3dc   :  { %v8009_v59 = vpop.f32.mrf.mxu2 }
 0x3dd   :  { %11788 = vst [vmem:[#allocation113_spill] sm:$0xff] %v8009_v59 }
 0x3e1   :  { %1738 = vmatmul.f32.gmra.mxu2 %v7250_v25  ;;  %v8027_v25 = vld [vmem:[#allocation5] sm:$0xff] }
 0x3e4   :  { %v8012_v0 = vpop.f32.mrf.mxu2 }
 0x3e5   :  { %11789 = vst [vmem:[#allocation114_spill] sm:$0xff] %v8012_v0 }
 0x3e9   :  { %1741 = vmatmul.f32.gmra.mxu2 %v7258_v30  ;;  %v8030_v30 = vperm.slane %v8027_v25, 2 }
 0x3eb   :  { %v1405_v29 = vadd.f32 %v7298_v60, %v8030_v30 }
 0x3ec   :  { %v8015_v5 = vpop.f32.mrf.mxu2 }
 0x3ed   :  { %11790 = vst [vmem:[#allocation115_spill] sm:$0xff] %v8015_v5  ;;  %vm1997_vm7 = vcmp.ge.f32.partialorder %v1405_v29, 0.0 }
 0x3f1   :  { %1744 = vmatmul.f32.gmra.mxu2 %v7266_v36  ;;  %v49_v36 = vld [vmem:[#allocation5 + $0x8] sm:$0xff] }
 0x3f4   :  { %v8018_v10 = vpop.f32.mrf.mxu2 }
 0x3f5   :  { %11791 = vst [vmem:[#allocation116_spill] sm:$0xff] %v8018_v10 }
 0x3f9   :  { %1747 = vmatmul.f32.gmra.mxu2 %v7274_v42  ;;  %v8037_v42 = vperm.slane %v49_v36, 2 }
 0x3fc   :  { %v8021_v15 = vpop.f32.mrf.mxu2 }
 0x3fd   :  { %11792 = vst [vmem:[#allocation117_spill] sm:$0xff] %v8021_v15  ;;  %v8042_v15 = vperm.slane %v2574_v34, 1 }
 0x401   :  { %1750 = vmatmul.f32.gmra.mxu2 %v7282_v48  ;;  %v2189_v48 = vmul.f32 0.01, %v1405_v29 }
 0x403   :  { %v8046_v60 = vsel %vm1997_vm7, %v1405_v29, %v2189_v48  ;;  %v1411_v29 = vadd.f32 %v7318_v11, %v8030_v30 }
 0x404   :  { %v8024_v20 = vpop.f32.mrf.mxu2  ;;  %11795 = vst [vmem:[#allocation120_spill] sm:$0xff] %v8046_v60 }
 0x405   :  { %11793 = vst [vmem:[#allocation118_spill] sm:$0xff] %v8024_v20  ;;  %v8040_v20 = vperm.slane %v2574_v34, 0  ;;  %vm2001_vm11 = vcmp.ge.f32.partialorder %v1411_v29, 0.0 }
 0x407   :  { %v2580_v36 = vmul.f32 %v8040_v20, %v8046_v60 }
 0x409   :  { %1753 = vmatmul.f32.gmra.mxu2 %v7290_v55 }
 0x40c   :  { %v8032_v41 = vpop.f32.mrf.mxu2 }
 0x40d   :  { %11794 = vst [vmem:[#allocation119_spill] sm:$0xff] %v8032_v41  ;;  %v1408_v41 = vadd.f32 %v7308_v3, %v8030_v30 }
 0x40f   :  { %v2191_v44 = vmul.f32 0.01, %v1408_v41  ;;  %vm1999_vm9 = vcmp.ge.f32.partialorder %v1408_v41, 0.0 }
 0x411   :  { %1756 = vmatmul.f32.gmra.mxu2 %v7300_v62 }
 0x414   :  { %v1709_v59 = vpop.f32.mrf.mxu2 }
 0x415   :  { %v1710_v55 = vadd.f32 %v1709_v59, %v8037_v42 }
 0x417   :  { %v2190_v10 = vmul.f32 0.01, %v1710_v55  ;;  %vm1998_vm8 = vcmp.ge.f32.partialorder %v1710_v55, 0.0 }
 0x419   :  { %1759 = vmatmul.f32.gmra.mxu2 %v7310_v6  ;;  %v8049_v62 = vsel %vm1998_vm8, %v1710_v55, %v2190_v10  ;;  %v8058_v6 = vsel %vm1999_vm9, %v1408_v41, %v2191_v44  ;;  %v1414_v44 = vadd.f32 %v7328_v18, %v8030_v30 }
 0x41a   :  { %11796 = vst [vmem:[#allocation121_spill] sm:$0xff] %v8049_v62  ;;  %v2581_v59 = vmul.f32 %v8042_v15, %v8049_v62  ;;  %v2582_v55 = vmul.f32 %v8040_v20, %v8058_v6 }
 0x41b   :  { %11797 = vst [vmem:[#allocation122_spill] sm:$0xff] %v8058_v6  ;;  %vm2003_vm13 = vcmp.ge.f32.partialorder %v1414_v44, 0.0 }
 0x41c   :  { %v1712_v34 = vpop.f32.mrf.mxu2  ;;  %v2772_v5 = vadd.f32 %v2581_v59, %v2580_v36  ;;  %v2193_v59 = vmul.f32 0.01, %v1411_v29 }
 0x41d   :  { %v1713_v3 = vadd.f32 %v1712_v34, %v8037_v42 }
 0x41e   :  { %2773 = vadd.xlane.f32.xlu0 %v2772_v5  ;;  %v8070_v41 = vsel %vm2001_vm11, %v1411_v29, %v2193_v59  ;;  %v1417_v29 = vadd.f32 %v7338_v26, %v8030_v30 }
 0x41f   :  { %v2192_v48 = vmul.f32 0.01, %v1713_v3  ;;  %vm2000_vm10 = vcmp.ge.f32.partialorder %v1713_v3, 0.0  ;;  %11799 = vst [vmem:[#allocation124_spill] sm:$0xff] %v8070_v41 }
 0x420   :  { %vm2005_vm15 = vcmp.ge.f32.partialorder %v1417_v29, 0.0 }
 0x421   :  { %1762 = vmatmul.f32.gmra.mxu2 %v7320_v13  ;;  %v8061_v10 = vsel %vm2000_vm10, %v1713_v3, %v2192_v48  ;;  %v2584_v48 = vmul.f32 %v8040_v20, %v8070_v41  ;;  %v11887_v41 = vld [vmem:[#allocation42_spill] sm:$0xff] }
 0x422   :  { %11798 = vst [vmem:[#allocation123_spill] sm:$0xff] %v8061_v10  ;;  %v2583_v36 = vmul.f32 %v8042_v15, %v8061_v10 }
 0x424   :  { %v1715_v5 = vpop.f32.mrf.mxu2  ;;  %v2775_v34 = vadd.f32 %v2583_v36, %v2582_v55  ;;  %v2195_v36 = vmul.f32 0.01, %v1414_v44 }
 0x425   :  { %v1716_v11 = vadd.f32 %v1715_v5, %v8037_v42 }
 0x426   :  { %2776 = vadd.xlane.f32.xlu1 %v2775_v34  ;;  %v8082_v59 = vsel %vm2003_vm13, %v1414_v44, %v2195_v36  ;;  %v1420_v44 = vadd.f32 %v7348_v33, %v8030_v30 }
 0x427   :  { %vm2002_vm12 = vcmp.ge.f32.partialorder %v1716_v11, 0.0  ;;  %v2194_v13 = vmul.f32 0.01, %v1716_v11  ;;  %11801 = vst [vmem:[#allocation126_spill] sm:$0xff] %v8082_v59 }
 0x428   :  { %vm2007_vm2 = vcmp.ge.f32.partialorder %v1420_v44, 0.0 }
 0x429   :  { %1765 = vmatmul.f32.gmra.mxu2 %v7330_v21  ;;  %v8073_v3 = vsel %vm2002_vm12, %v1716_v11, %v2194_v13  ;;  %v2586_v13 = vmul.f32 %v8040_v20, %v8082_v59 }
 0x42a   :  { %11800 = vst [vmem:[#allocation125_spill] sm:$0xff] %v8073_v3  ;;  %v2585_v55 = vmul.f32 %v8042_v15, %v8073_v3 }
 0x42c   :  { %v1718_v5 = vpop.f32.mrf.mxu2  ;;  %v2778_v34 = vadd.f32 %v2585_v55, %v2584_v48  ;;  %v2197_v55 = vmul.f32 0.01, %v1417_v29 }
 0x42d   :  { %v1719_v18 = vadd.f32 %v1718_v5, %v8037_v42 }
 0x42e   :  { %2779 = vadd.xlane.f32.xlu0 %v2778_v34  ;;  %v8094_v36 = vsel %vm2005_vm15, %v1417_v29, %v2197_v55  ;;  %v1423_v29 = vadd.f32 %v7358_v43, %v8030_v30 }
 0x42f   :  { %vm2004_vm14 = vcmp.ge.f32.partialorder %v1719_v18, 0.0  ;;  %v2196_v21 = vmul.f32 0.01, %v1719_v18  ;;  %11803 = vst [vmem:[#allocation128_spill] sm:$0xff] %v8094_v36 }
 0x430   :  { %vm2009_vm4 = vcmp.ge.f32.partialorder %v1423_v29, 0.0 }
 0x431   :  { %1768 = vmatmul.f32.gmra.mxu2 %v7340_v28  ;;  %v8085_v11 = vsel %vm2004_vm14, %v1719_v18, %v2196_v21  ;;  %v2588_v21 = vmul.f32 %v8040_v20, %v8094_v36 }
 0x432   :  { %11802 = vst [vmem:[#allocation127_spill] sm:$0xff] %v8085_v11  ;;  %v2587_v48 = vmul.f32 %v8042_v15, %v8085_v11 }
 0x434   :  { %v1721_v5 = vpop.f32.mrf.mxu2  ;;  %v2781_v34 = vadd.f32 %v2587_v48, %v2586_v13  ;;  %v2199_v48 = vmul.f32 0.01, %v1420_v44 }
 0x435   :  { %v1722_v26 = vadd.f32 %v1721_v5, %v8037_v42 }
 0x436   :  { %2782 = vadd.xlane.f32.xlu0 %v2781_v34  ;;  %v8106_v55 = vsel %vm2007_vm2, %v1420_v44, %v2199_v48  ;;  %v1426_v44 = vadd.f32 %v7368_v52, %v8030_v30 }
 0x437   :  { %vm2006_vm1 = vcmp.ge.f32.partialorder %v1722_v26, 0.0  ;;  %v2198_v28 = vmul.f32 0.01, %v1722_v26  ;;  %11805 = vst [vmem:[#allocation130_spill] sm:$0xff] %v8106_v55 }
 0x438   :  { %vm2011_vm6 = vcmp.ge.f32.partialorder %v1426_v44, 0.0 }
 0x439   :  { %1771 = vmatmul.f32.gmra.mxu2 %v7350_v37  ;;  %v8097_v18 = vsel %vm2006_vm1, %v1722_v26, %v2198_v28  ;;  %v2590_v28 = vmul.f32 %v8040_v20, %v8106_v55 }
 0x43a   :  { %11804 = vst [vmem:[#allocation129_spill] sm:$0xff] %v8097_v18  ;;  %v2589_v13 = vmul.f32 %v8042_v15, %v8097_v18 }
 0x43c   :  { %v1724_v5 = vpop.f32.mrf.mxu2  ;;  %v2784_v34 = vadd.f32 %v2589_v13, %v2588_v21  ;;  %v2201_v13 = vmul.f32 0.01, %v1423_v29 }
 0x43d   :  { %v1725_v33 = vadd.f32 %v1724_v5, %v8037_v42 }
 0x43e   :  { %2785 = vadd.xlane.f32.xlu0 %v2784_v34  ;;  %v8118_v48 = vsel %vm2009_vm4, %v1423_v29, %v2201_v13  ;;  %v1429_v29 = vadd.f32 %v7378_v63, %v8030_v30 }
 0x43f   :  { %vm2008_vm3 = vcmp.ge.f32.partialorder %v1725_v33, 0.0  ;;  %v2200_v37 = vmul.f32 0.01, %v1725_v33  ;;  %11807 = vst [vmem:[#allocation132_spill] sm:$0xff] %v8118_v48 }
 0x440   :  { %vm2013_vm8 = vcmp.ge.f32.partialorder %v1429_v29, 0.0 }
 0x441   :  { %1774 = vmatmul.f32.gmra.mxu2 %v7360_v46  ;;  %v8109_v26 = vsel %vm2008_vm3, %v1725_v33, %v2200_v37  ;;  %v2592_v37 = vmul.f32 %v8040_v20, %v8118_v48 }
 0x442   :  { %11806 = vst [vmem:[#allocation131_spill] sm:$0xff] %v8109_v26  ;;  %v2591_v21 = vmul.f32 %v8042_v15, %v8109_v26 }
 0x444   :  { %v1727_v5 = vpop.f32.mrf.mxu2  ;;  %v2787_v34 = vadd.f32 %v2591_v21, %v2590_v28  ;;  %v2203_v21 = vmul.f32 0.01, %v1426_v44 }
 0x445   :  { %v1728_v43 = vadd.f32 %v1727_v5, %v8037_v42 }
 0x446   :  { %2788 = vadd.xlane.f32.xlu0 %v2787_v34  ;;  %v8130_v13 = vsel %vm2011_vm6, %v1426_v44, %v2203_v21  ;;  %v1432_v44 = vadd.f32 %v7388_v9, %v8030_v30 }
 0x447   :  { %vm2010_vm5 = vcmp.ge.f32.partialorder %v1728_v43, 0.0  ;;  %v2202_v46 = vmul.f32 0.01, %v1728_v43  ;;  %11809 = vst [vmem:[#allocation134_spill] sm:$0xff] %v8130_v13 }
 0x448   :  { %vm2015_vm10 = vcmp.ge.f32.partialorder %v1432_v44, 0.0 }
 0x449   :  { %1777 = vmatmul.f32.gmra.mxu2 %v7370_v56  ;;  %v8121_v33 = vsel %vm2010_vm5, %v1728_v43, %v2202_v46  ;;  %v2594_v46 = vmul.f32 %v8040_v20, %v8130_v13 }
 0x44a   :  { %11808 = vst [vmem:[#allocation133_spill] sm:$0xff] %v8121_v33  ;;  %v2593_v28 = vmul.f32 %v8042_v15, %v8121_v33 }
 0x44c   :  { %v1730_v5 = vpop.f32.mrf.mxu2  ;;  %v2790_v34 = vadd.f32 %v2593_v28, %v2592_v37  ;;  %v2205_v28 = vmul.f32 0.01, %v1429_v29 }
 0x44d   :  { %v1731_v52 = vadd.f32 %v1730_v5, %v8037_v42 }
 0x44e   :  { %2791 = vadd.xlane.f32.xlu0 %v2790_v34  ;;  %v8142_v21 = vsel %vm2013_vm8, %v1429_v29, %v2205_v28  ;;  %v1435_v29 = vadd.f32 %v7398_v22, %v8030_v30 }
 0x44f   :  { %vm2012_vm7 = vcmp.ge.f32.partialorder %v1731_v52, 0.0  ;;  %v2204_v56 = vmul.f32 0.01, %v1731_v52  ;;  %11811 = vst [vmem:[#allocation136_spill] sm:$0xff] %v8142_v21 }
 0x450   :  { %vm2017_vm12 = vcmp.ge.f32.partialorder %v1435_v29, 0.0 }
 0x451   :  { %1780 = vmatmul.f32.gmra.mxu2 %v7380_v2  ;;  %v8133_v43 = vsel %vm2012_vm7, %v1731_v52, %v2204_v56  ;;  %v2596_v56 = vmul.f32 %v8040_v20, %v8142_v21 }
 0x452   :  { %11810 = vst [vmem:[#allocation135_spill] sm:$0xff] %v8133_v43  ;;  %v2595_v37 = vmul.f32 %v8042_v15, %v8133_v43 }
 0x454   :  { %v1733_v5 = vpop.f32.mrf.mxu2  ;;  %v2793_v34 = vadd.f32 %v2595_v37, %v2594_v46  ;;  %v2207_v37 = vmul.f32 0.01, %v1432_v44 }
 0x455   :  { %v1734_v63 = vadd.f32 %v1733_v5, %v8037_v42 }
 0x456   :  { %2794 = vadd.xlane.f32.xlu0 %v2793_v34 }
 0x457   :  { %vm2014_vm9 = vcmp.ge.f32.partialorder %v1734_v63, 0.0  ;;  %v2206_v2 = vmul.f32 0.01, %v1734_v63 }
 0x459   :  { %1783 = vmatmul.f32.gmra.mxu2 %v7390_v14  ;;  %v8145_v52 = vsel %vm2014_vm9, %v1734_v63, %v2206_v2  ;;  %v8154_v14 = vsel %vm2015_vm10, %v1432_v44, %v2207_v37  ;;  %v1438_v44 = vadd.f32 %v7408_v32, %v8030_v30 }
 0x45a   :  { %11812 = vst [vmem:[#allocation137_spill] sm:$0xff] %v8145_v52  ;;  %v2597_v46 = vmul.f32 %v8042_v15, %v8145_v52  ;;  %v2598_v2 = vmul.f32 %v8040_v20, %v8154_v14 }
 0x45b   :  { %11813 = vst [vmem:[#allocation138_spill] sm:$0xff] %v8154_v14  ;;  %vm2019_vm14 = vcmp.ge.f32.partialorder %v1438_v44, 0.0 }
 0x45c   :  { %v1736_v5 = vpop.f32.mrf.mxu2  ;;  %v2796_v34 = vadd.f32 %v2597_v46, %v2596_v56  ;;  %v2209_v46 = vmul.f32 0.01, %v1435_v29 }
 0x45d   :  { %v1737_v9 = vadd.f32 %v1736_v5, %v8037_v42 }
 0x45e   :  { %2797 = vadd.xlane.f32.xlu0 %v2796_v34  ;;  %v8166_v37 = vsel %vm2017_vm12, %v1435_v29, %v2209_v46  ;;  %v1441_v29 = vadd.f32 %v7418_v47, %v8030_v30 }
 0x45f   :  { %v2208_v28 = vmul.f32 0.01, %v1737_v9  ;;  %vm2016_vm11 = vcmp.ge.f32.partialorder %v1737_v9, 0.0  ;;  %11815 = vst [vmem:[#allocation140_spill] sm:$0xff] %v8166_v37 }
 0x460   :  { %vm2021_vm1 = vcmp.ge.f32.partialorder %v1441_v29, 0.0 }
 0x461   :  { %1786 = vmatmul.f32.gmra.mxu2 %v7400_v24  ;;  %v8157_v63 = vsel %vm2016_vm11, %v1737_v9, %v2208_v28  ;;  %v2600_v28 = vmul.f32 %v8040_v20, %v8166_v37 }
 0x462   :  { %11814 = vst [vmem:[#allocation139_spill] sm:$0xff] %v8157_v63  ;;  %v2599_v56 = vmul.f32 %v8042_v15, %v8157_v63 }
 0x464   :  { %v1739_v5 = vpop.f32.mrf.mxu2  ;;  %v2799_v34 = vadd.f32 %v2599_v56, %v2598_v2  ;;  %v2211_v56 = vmul.f32 0.01, %v1438_v44 }
 0x465   :  { %v1740_v22 = vadd.f32 %v1739_v5, %v8037_v42 }
 0x466   :  { %2800 = vadd.xlane.f32.xlu2 %v2799_v34  ;;  %v8178_v46 = vsel %vm2019_vm14, %v1438_v44, %v2211_v56  ;;  %v1444_v44 = vadd.f32 %v7428_v61, %v8030_v30 }
 0x467   :  { %vm2018_vm13 = vcmp.ge.f32.partialorder %v1740_v22, 0.0  ;;  %v2210_v24 = vmul.f32 0.01, %v1740_v22  ;;  %11817 = vst [vmem:[#allocation142_spill] sm:$0xff] %v8178_v46 }
 0x468   :  { %vm2023_vm3 = vcmp.ge.f32.partialorder %v1444_v44, 0.0 }
 0x469   :  { %1789 = vmatmul.f32.gmra.mxu2 %v7410_v38  ;;  %v8169_v9 = vsel %vm2018_vm13, %v1740_v22, %v2210_v24  ;;  %v2602_v24 = vmul.f32 %v8040_v20, %v8178_v46 }
 0x46a   :  { %11816 = vst [vmem:[#allocation141_spill] sm:$0xff] %v8169_v9  ;;  %v2601_v2 = vmul.f32 %v8042_v15, %v8169_v9 }
 0x46c   :  { %v1742_v5 = vpop.f32.mrf.mxu2  ;;  %v2802_v34 = vadd.f32 %v2601_v2, %v2600_v28  ;;  %v2213_v2 = vmul.f32 0.01, %v1441_v29 }
 0x46d   :  { %v1743_v32 = vadd.f32 %v1742_v5, %v8037_v42 }
 0x46e   :  { %2803 = vadd.xlane.f32.xlu2 %v2802_v34  ;;  %v8190_v56 = vsel %vm2021_vm1, %v1441_v29, %v2213_v2  ;;  %v1447_v29 = vadd.f32 %v7438_v16, %v8030_v30 }
 0x46f   :  { %vm2020_vm15 = vcmp.ge.f32.partialorder %v1743_v32, 0.0  ;;  %v2212_v38 = vmul.f32 0.01, %v1743_v32  ;;  %11819 = vst [vmem:[#allocation144_spill] sm:$0xff] %v8190_v56 }
 0x470   :  { %vm2025_vm5 = vcmp.ge.f32.partialorder %v1447_v29, 0.0 }
 0x471   :  { %1792 = vmatmul.f32.gmra.mxu2 %v7420_v51  ;;  %v8181_v22 = vsel %vm2020_vm15, %v1743_v32, %v2212_v38  ;;  %v2604_v38 = vmul.f32 %v8040_v20, %v8190_v56 }
 0x472   :  { %11818 = vst [vmem:[#allocation143_spill] sm:$0xff] %v8181_v22  ;;  %v2603_v28 = vmul.f32 %v8042_v15, %v8181_v22  ;;  %v11860_v22 = vld [vmem:[#allocation23_spill] sm:$0xff] }
 0x474   :  { %v1745_v5 = vpop.f32.mrf.mxu2  ;;  %v2805_v34 = vadd.f32 %v2603_v28, %v2602_v24  ;;  %v2215_v28 = vmul.f32 0.01, %v1444_v44 }
 0x475   :  { %v1746_v47 = vadd.f32 %v1745_v5, %v8037_v42 }
 0x476   :  { %2806 = vadd.xlane.f32.xlu0 %v2805_v34  ;;  %v8202_v2 = vsel %vm2023_vm3, %v1444_v44, %v2215_v28  ;;  %v1450_v44 = vadd.f32 %v7448_v31, %v8030_v30 }
 0x477   :  { %vm2022_vm2 = vcmp.ge.f32.partialorder %v1746_v47, 0.0  ;;  %v2214_v51 = vmul.f32 0.01, %v1746_v47  ;;  %11821 = vst [vmem:[#allocation146_spill] sm:$0xff] %v8202_v2 }
 0x478   :  { %vm2027_vm7 = vcmp.ge.f32.partialorder %v1450_v44, 0.0 }
 0x479   :  { %1795 = vmatmul.f32.gmra.mxu2 %v7430_v4  ;;  %v8193_v32 = vsel %vm2022_vm2, %v1746_v47, %v2214_v51  ;;  %v2606_v51 = vmul.f32 %v8040_v20, %v8202_v2 }
 0x47a   :  { %11820 = vst [vmem:[#allocation145_spill] sm:$0xff] %v8193_v32  ;;  %v2605_v24 = vmul.f32 %v8042_v15, %v8193_v32 }
 0x47c   :  { %v1748_v5 = vpop.f32.mrf.mxu2  ;;  %v2808_v34 = vadd.f32 %v2605_v24, %v2604_v38  ;;  %v2217_v24 = vmul.f32 0.01, %v1447_v29 }
 0x47d   :  { %v1749_v61 = vadd.f32 %v1748_v5, %v8037_v42 }
 0x47e   :  { %2809 = vadd.xlane.f32.xlu1 %v2808_v34  ;;  %v8214_v28 = vsel %vm2025_vm5, %v1447_v29, %v2217_v24  ;;  %v1453_v29 = vadd.f32 %v7458_v53, %v8030_v30 }
 0x47f   :  { %vm2024_vm4 = vcmp.ge.f32.partialorder %v1749_v61, 0.0  ;;  %v2216_v4 = vmul.f32 0.01, %v1749_v61  ;;  %11823 = vst [vmem:[#allocation148_spill] sm:$0xff] %v8214_v28 }
 0x480   :  { %vm2029_vm9 = vcmp.ge.f32.partialorder %v1453_v29, 0.0 }
 0x481   :  { %1798 = vmatmul.f32.gmra.mxu2 %v7440_v19  ;;  %v8205_v47 = vsel %vm2024_vm4, %v1749_v61, %v2216_v4  ;;  %v2608_v4 = vmul.f32 %v8040_v20, %v8214_v28 }
 0x482   :  { %11822 = vst [vmem:[#allocation147_spill] sm:$0xff] %v8205_v47  ;;  %v2607_v38 = vmul.f32 %v8042_v15, %v8205_v47  ;;  %v11845_v47 = vld [vmem:[#allocation24_spill] sm:$0xff] }
 0x484   :  { %v1751_v5 = vpop.f32.mrf.mxu2  ;;  %v2811_v34 = vadd.f32 %v2607_v38, %v2606_v51  ;;  %v2219_v38 = vmul.f32 0.01, %v1450_v44 }
 0x485   :  { %v1752_v16 = vadd.f32 %v1751_v5, %v8037_v42 }
 0x486   :  { %2812 = vadd.xlane.f32.xlu1 %v2811_v34  ;;  %v8226_v24 = vsel %vm2027_vm7, %v1450_v44, %v2219_v38  ;;  %v1456_v38 = vadd.f32 %v7468_v12, %v8030_v30 }
 0x487   :  { %vm2026_vm6 = vcmp.ge.f32.partialorder %v1752_v16, 0.0  ;;  %v2218_v19 = vmul.f32 0.01, %v1752_v16  ;;  %11825 = vst [vmem:[#allocation150_spill] sm:$0xff] %v8226_v24 }
 0x488   :  { %vm2031_vm11 = vcmp.ge.f32.partialorder %v1456_v38, 0.0 }
 0x489   :  { %1801 = vmatmul.f32.gmra.mxu2 %v7450_v40  ;;  %v8217_v61 = vsel %vm2026_vm6, %v1752_v16, %v2218_v19  ;;  %v7064_v16 = vmov 0  }
 0x48a   :  { %11824 = vst [vmem:[#allocation149_spill] sm:$0xff] %v8217_v61  ;;  %v2609_v51 = vmul.f32 %v8042_v15, %v8217_v61  ;;  %6657 = vset.pattern.permute.xlu1 %v7064_v16  ;;  %6656 = vset.pattern.permute.xlu0 %v7064_v16  ;;  %v11849_v61 = vld [vmem:[#allocation18_spill] sm:$0xff] }
 0x48b   :  { %6658 = vset.pattern.permute.xlu2 %v7064_v16  ;;  %v1468_v26 = vadd.f32 %v11849_v61, %v8030_v30 }
 0x48c   :  { %v1754_v5 = vpop.f32.mrf.mxu2  ;;  %v2814_v34 = vadd.f32 %v2609_v51, %v2608_v4  ;;  %v2610_v4 = vmul.f32 %v8040_v20, %v8226_v24 }
 0x48d   :  { %v1755_v31 = vadd.f32 %v1754_v5, %v8037_v42  ;;  %v2221_v5 = vmul.f32 0.01, %v1453_v29  ;;  %vm2039_vm7 = vcmp.ge.f32.partialorder %v1468_v26, 0.0 }
 0x48e   :  { %2815 = vadd.xlane.f32.xlu2 %v2814_v34 }
 0x48f   :  { %vm2028_vm8 = vcmp.ge.f32.partialorder %v1755_v31, 0.0  ;;  %v2220_v40 = vmul.f32 0.01, %v1755_v31 }
 0x491   :  { %1804 = vmatmul.f32.gmra.mxu2 %v7460_v58  ;;  %v8229_v19 = vsel %vm2028_vm8, %v1755_v31, %v2220_v40  ;;  %v8238_v31 = vsel %vm2029_vm9, %v1453_v29, %v2221_v5  ;;  %v8241_v40 = vperm.slane %v8027_v25, 3  ;;  %v8243_v16 = vpop.xlane.xlu0 %2773 }
 0x492   :  { %11826 = vst [vmem:[#allocation151_spill] sm:$0xff] %v8229_v19  ;;  %v2611_v51 = vmul.f32 %v8042_v15, %v8229_v19 }
 0x493   :  { %11827 = vst [vmem:[#allocation152_spill] sm:$0xff] %v8238_v31 }
 0x494   :  { %v1757_v53 = vpop.f32.mrf.mxu2  ;;  %v2817_v34 = vadd.f32 %v2611_v51, %v2610_v4  ;;  %v2223_v4 = vmul.f32 0.01, %v1456_v38  ;;  %v2612_v51 = vmul.f32 %v8040_v20, %v8238_v31  ;;  %v11831_v31 = vld [vmem:[#allocation13_spill] sm:$0xff] }
 0x495   :  { %v1758_v44 = vadd.f32 %v1757_v53, %v8037_v42 }
 0x496   :  { %2818 = vadd.xlane.f32.xlu0 %v2817_v34  ;;  %v8254_v34 = vsel %vm2031_vm11, %v1456_v38, %v2223_v4 }
 0x497   :  { %vm2030_vm10 = vcmp.ge.f32.partialorder %v1758_v44, 0.0  ;;  %v2222_v58 = vmul.f32 0.01, %v1758_v44  ;;  %11829 = vst [vmem:[#allocation154_spill] sm:$0xff] %v8254_v34 }
 0x499   :  { %1807 = vmatmul.f32.gmra.mxu2 %v7470_v23  ;;  %v2777_v24 = vpop.xlane.xlu1 %2776  ;;  %v8246_v28 = vsel %vm2030_vm10, %v1758_v44, %v2222_v58  ;;  %v11830_v23 = vld [vmem:[#allocation12_spill] sm:$0xff] }
 0x49a   :  { %11828 = vst [vmem:[#allocation153_spill] sm:$0xff] %v8246_v28  ;;  %v2613_v12 = vmul.f32 %v8042_v15, %v8246_v28  ;;  %v3062_v29 = vadd.f32 %v8241_v40, %v2777_v24  ;;  %v1459_v44 = vadd.f32 %v11830_v23, %v8030_v30 }
 0x49c   :  { %v1760_v5 = vpop.f32.mrf.mxu2  ;;  %v2820_v25 = vadd.f32 %v2613_v12, %v2612_v51  ;;  %v3254_v58 = vmul.f32 0.01, %v3062_v29  ;;  %vm3158_vm13 = vcmp.ge.f32.partialorder %v3062_v29, 0.0  ;;  %v2614_v51 = vmul.f32 %v8040_v20, %v8254_v34  ;;  %v11834_v34 = vld [vmem:[#allocation15_spill] sm:$0xff] }
 0x49d   :  { %v1761_v53 = vadd.f32 %v1760_v5, %v8037_v42  ;;  %v2225_v4 = vmul.f32 0.01, %v1459_v44  ;;  %vm2033_vm14 = vcmp.ge.f32.partialorder %v1459_v44, 0.0 }
 0x49e   :  { %2821 = vadd.xlane.f32.xlu0 %v2820_v25  ;;  %v3350_v12 = vsel %vm3158_vm13, %v3062_v29, %v3254_v58 }
 0x49f   :  { %vm2032_vm12 = vcmp.ge.f32.partialorder %v1761_v53, 0.0  ;;  %v2224_v2 = vmul.f32 0.01, %v1761_v53  ;;  %v3447_v63 = vmul.f32 1.442695, %v3350_v12  ;;  %v8267_v14 = vsel %vm2033_vm14, %v1459_v44, %v2225_v4 }
 0x4a0   :  { %11833 = vst [vmem:[#allocation13_spill] sm:$0xff] %v8267_v14  ;;  %v2616_v29 = vmul.f32 %v8040_v20, %v8267_v14 }
 0x4a1   :  { %1810 = vmatmul.f32.gmra.mxu2 %v11831_v31  ;;  %v2780_v56 = vpop.xlane.xlu0 %2779  ;;  %v8259_v46 = vsel %vm2032_vm12, %v1761_v53, %v2224_v2 }
 0x4a2   :  { %11832 = vst [vmem:[#allocation12_spill] sm:$0xff] %v8259_v46  ;;  %v3063_v24 = vadd.f32 %v8241_v40, %v2780_v56  ;;  %v2615_v38 = vmul.f32 %v8042_v15, %v8259_v46 }
 0x4a4   :  { %vm3159_vm15 = vcmp.ge.f32.partialorder %v3063_v24, 0.0  ;;  %v3255_v5 = vmul.f32 0.01, %v3063_v24  ;;  %v1763_v25 = vpop.f32.mrf.mxu2  ;;  %v2823_v23 = vadd.f32 %v2615_v38, %v2614_v51 }
 0x4a5   :  { %v1764_v31 = vadd.f32 %v1763_v25, %v8037_v42 }
 0x4a6   :  { %v3351_v2 = vsel %vm3159_vm15, %v3063_v24, %v3255_v5  ;;  %2824 = vadd.xlane.f32.xlu2 %v2823_v23  ;;  %v11839_v5 = vld [vmem:[#allocation19_spill] sm:$0xff]  ;;  %v11840_v23 = vld [vmem:[#allocation20_spill] sm:$0xff] }
 0x4a7   :  { %v3449_v53 = vmul.f32 1.442695, %v3351_v2  ;;  %vm2034_vm1 = vcmp.ge.f32.partialorder %v1764_v31, 0.0  ;;  %v2226_v56 = vmul.f32 0.01, %v1764_v31 }
 0x4a9   :  { %6659 = vpow2.f32 %v3449_v53  ;;  %1813 = vmatmul.f32.gmra.mxu2 %v11834_v34  ;;  %v8270_v21 = vsel %vm2034_vm1, %v1764_v31, %v2226_v56  ;;  %v8278_v12 = vpop.xlane.xlu0 %2782  ;;  %v11838_v34 = vld [vmem:[#allocation17_spill] sm:$0xff]  ;;  %v11841_v56 = vld [vmem:[#allocation22_spill] sm:$0xff] }
 0x4aa   :  { %11835 = vst [vmem:[#allocation15_spill] sm:$0xff] %v8270_v21  ;;  %v2617_v58 = vmul.f32 %v8042_v15, %v8270_v21  ;;  %6661 = vpow2.f32 %v3447_v63  ;;  %v11843_v21 = vld [vmem:[#allocation16_spill] sm:$0xff] }
 0x4ab   :  { %11836 = vst [vmem:[#allocation155_spill] sm:$0xff] %v8278_v12 }
 0x4ac   :  { %v1766_v51 = vpop.f32.mrf.mxu2  ;;  %v2826_v24 = vadd.f32 %v2617_v58, %v2616_v29  ;;  %v11842_v29 = vld [vmem:[#allocation14_spill] sm:$0xff] }
 0x4ad   :  { %v1767_v53 = vadd.f32 %v1766_v51, %v8037_v42  ;;  %v1462_v58 = vadd.f32 %v11842_v29, %v8030_v30 }
 0x4ae   :  { %2827 = vadd.xlane.f32.xlu2 %v2826_v24 }
 0x4af   :  { %v8276_v38 = vpop.eup %6659  ;;  %v2228_v14 = vmul.f32 0.01, %v1767_v53  ;;  %vm2036_vm2 = vcmp.ge.f32.partialorder %v1767_v53, 0.0  ;;  %vm2035_vm3 = vcmp.ge.f32.partialorder %v1462_v58, 0.0 }
 0x4b0   :  { %3649 = vperm.xlu1 %6657, %v8276_v38   ;;  %v8281_v44 = vpop.eup %6661 }
 0x4b1   :  { %11837 = vst [vmem:[#allocation156_spill] sm:$0xff] %v8281_v44  ;;  %1816 = vmatmul.f32.gmra.mxu2 %v11838_v34  ;;  %v8286_v25 = vpop.xlane.xlu0 %2785 }
 0x4b2   :  { %3644 = vperm.xlu0 %6656, %v8281_v44  }
 0x4b4   :  { %v1769_v4 = vpop.f32.mrf.mxu2 }
 0x4b5   :  { %v1770_v24 = vadd.f32 %v1769_v4, %v8037_v42 }
 0x4b7   :  { %v2230_v28 = vmul.f32 0.01, %v1770_v24  ;;  %vm2038_vm4 = vcmp.ge.f32.partialorder %v1770_v24, 0.0 }
 0x4b9   :  { %1819 = vmatmul.f32.gmra.mxu2 %v11839_v5  ;;  %v2789_v31 = vpop.xlane.xlu0 %2788  ;;  %v1465_v5 = vadd.f32 %v11843_v21, %v8030_v30  ;;  %v8304_v19 = vsel %vm2038_vm4, %v1770_v24, %v2230_v28  ;;  %v2231_v24 = vmul.f32 0.01, %v1468_v26 }
 0x4ba   :  { %11848 = vst [vmem:[#allocation22_spill] sm:$0xff] %v8304_v19 }
 0x4bb   :  { %v2229_v51 = vmul.f32 0.01, %v1465_v5  ;;  %vm2037_vm5 = vcmp.ge.f32.partialorder %v1465_v5, 0.0 }
 0x4bc   :  { %v1772_v63 = vpop.f32.mrf.mxu2 }
 0x4bd   :  { %v1773_v4 = vadd.f32 %v1772_v63, %v8037_v42  ;;  %v8312_v55 = vsel %vm2037_vm5, %v1465_v5, %v2229_v51 }
 0x4be   :  { %11850 = vst [vmem:[#allocation14_spill] sm:$0xff] %v8312_v55 }
 0x4bf   :  { %v2232_v63 = vmul.f32 0.01, %v1773_v4  ;;  %vm2040_vm6 = vcmp.ge.f32.partialorder %v1773_v4, 0.0 }
 0x4c1   :  { %1822 = vmatmul.f32.gmra.mxu2 %v11840_v23  ;;  %v8296_v46 = vpop.xlane.xlu0 %2791  ;;  %v2227_v23 = vmul.f32 0.01, %v1462_v58  ;;  %v8324_v51 = vsel %vm2040_vm6, %v1773_v4, %v2232_v63  ;;  %v11857_v63 = vld [vmem:[#allocation28_spill] sm:$0xff] }
 0x4c2   :  { %11844 = vst [vmem:[#allocation17_spill] sm:$0xff] %v8296_v46 }
 0x4c3   :  { %v8302_v29 = vsel %vm2035_vm3, %v1462_v58, %v2227_v23  ;;  %v2620_v58 = vmul.f32 %v8040_v20, %v8312_v55  ;;  %v11852_v23 = vld [vmem:[#allocation26_spill] sm:$0xff]  ;;  %11853 = vst [vmem:[#allocation24_spill] sm:$0xff] %v8324_v51 }
 0x4c4   :  { %v1775_v2 = vpop.f32.mrf.mxu2  ;;  %11847 = vst [vmem:[#allocation20_spill] sm:$0xff] %v8302_v29 }
 0x4c5   :  { %v1776_v5 = vadd.f32 %v1775_v2, %v8037_v42 }
 0x4c7   :  { %vm2042_vm8 = vcmp.ge.f32.partialorder %v1776_v5, 0.0 }
 0x4c9   :  { %1825 = vmatmul.f32.gmra.mxu2 %v11841_v56  ;;  %v8299_v56 = vsel %vm2036_vm2, %v1767_v53, %v2228_v14  ;;  %v2618_v14 = vmul.f32 %v8040_v20, %v8302_v29  ;;  %v8318_v28 = vpop.xlane.xlu0 %2794  ;;  %v11854_v29 = vld [vmem:[#allocation21_spill] sm:$0xff] }
 0x4ca   :  { %11846 = vst [vmem:[#allocation19_spill] sm:$0xff] %v8299_v56  ;;  %v2619_v48 = vmul.f32 %v8042_v15, %v8299_v56 }
 0x4cb   :  { %11851 = vst [vmem:[#allocation16_spill] sm:$0xff] %v8318_v28 }
 0x4cc   :  { %v1778_v34 = vpop.f32.mrf.mxu2  ;;  %v2829_v53 = vadd.f32 %v2619_v48, %v2618_v14  ;;  %v3066_v48 = vadd.f32 %v8241_v40, %v2789_v31  ;;  %v8331_v14 = vsel %vm2039_vm7, %v1468_v26, %v2231_v24 }
 0x4cd   :  { %11855 = vst [vmem:[#allocation18_spill] sm:$0xff] %v8331_v14  ;;  %v2622_v4 = vmul.f32 %v8040_v20, %v8331_v14  ;;  %v1474_v14 = vadd.f32 %v11860_v22, %v8030_v30 }
 0x4ce   :  { %vm3162_vm10 = vcmp.ge.f32.partialorder %v3066_v48, 0.0 }
 0x4cf   :  { %vm2043_vm14 = vcmp.ge.f32.partialorder %v1474_v14, 0.0  ;;  %v2235_v22 = vmul.f32 0.01, %v1474_v14 }
 0x4d1   :  { %1828 = vmatmul.f32.gmra.mxu2 %v11845_v47  ;;  %v2621_v47 = vmul.f32 %v8042_v15, %v8304_v19  ;;  %v1471_v19 = vadd.f32 %v11854_v29, %v8030_v30  ;;  %v3258_v29 = vmul.f32 0.01, %v3066_v48  ;;  %v2798_v31 = vpop.xlane.xlu0 %2797 }
 0x4d2   :  { %v3069_v59 = vadd.f32 %v8241_v40, %v2798_v31 }
 0x4d3   :  { %v2832_v61 = vadd.f32 %v2621_v47, %v2620_v58  ;;  %v2234_v58 = vmul.f32 0.01, %v1776_v5  ;;  %v2233_v2 = vmul.f32 0.01, %v1471_v19  ;;  %vm2041_vm9 = vcmp.ge.f32.partialorder %v1471_v19, 0.0 }
 0x4d4   :  { %v8306_v21 = vpop.f32.mrf.mxu2  ;;  %v3354_v36 = vsel %vm3162_vm10, %v3066_v48, %v3258_v29  ;;  %v3261_v48 = vmul.f32 0.01, %v3069_v59  ;;  %vm3165_vm15 = vcmp.ge.f32.partialorder %v3069_v59, 0.0 }
 0x4d5   :  { %v8341_v55 = vsel %vm2042_vm8, %v1776_v5, %v2234_v58  ;;  %v3455_v58 = vmul.f32 1.442695, %v3354_v36 }
 0x4d6   :  { %11858 = vst [vmem:[#allocation26_spill] sm:$0xff] %v8341_v55 }
 0x4d7   :  { %6663 = vpow2.f32 %v3455_v58 }
 0x4d9   :  { %1831 = vmatmul.f32.gmra.mxu2 %v11852_v23  ;;  %v2623_v23 = vmul.f32 %v8042_v15, %v8324_v51  ;;  %v8343_v51 = vsel %vm2041_vm9, %v1471_v19, %v2233_v2  ;;  %v11862_v2 = vld [vmem:[#allocation29_spill] sm:$0xff]  ;;  %v2801_v31 = vpop.xlane.xlu2 %2800 }
 0x4da   :  { %2830 = vadd.xlane.f32.xlu1 %v2829_v53  ;;  %v11856_v53 = vld [vmem:[#allocation30_spill] sm:$0xff]  ;;  %11859 = vst [vmem:[#allocation21_spill] sm:$0xff] %v8343_v51  ;;  %v2624_v19 = vmul.f32 %v8040_v20, %v8343_v51 }
 0x4db   :  { %v1483_v47 = vadd.f32 %v11856_v53, %v8030_v30  ;;  %v2835_v26 = vadd.f32 %v2623_v23, %v2622_v4  ;;  %v2625_v23 = vmul.f32 %v8042_v15, %v8341_v55 }
 0x4dc   :  { %v8328_v56 = vpop.f32.mrf.mxu2  ;;  %2833 = vadd.xlane.f32.xlu0 %v2832_v61  ;;  %v1779_v61 = vadd.f32 %v1778_v34, %v8037_v42 }
 0x4dd   :  { %v2241_v24 = vmul.f32 0.01, %v1483_v47  ;;  %vm2049_vm11 = vcmp.ge.f32.partialorder %v1483_v47, 0.0 }
 0x4de   :  { %v2236_v4 = vmul.f32 0.01, %v1779_v61  ;;  %vm2044_vm13 = vcmp.ge.f32.partialorder %v1779_v61, 0.0 }
 0x4df   :  { %v8351_v5 = vsel %vm2049_vm11, %v1483_v47, %v2241_v24  ;;  %v1782_v47 = vadd.f32 %v8306_v21, %v8037_v42 }
 0x4e0   :  { %11861 = vst [vmem:[#allocation30_spill] sm:$0xff] %v8351_v5  ;;  %v8364_v24 = vsel %vm2044_vm13, %v1779_v61, %v2236_v4 }
 0x4e1   :  { %1834 = vmatmul.f32.gmra.mxu2 %v11857_v63  ;;  %11864 = vst [vmem:[#allocation23_spill] sm:$0xff] %v8364_v24  ;;  %v2627_v21 = vmul.f32 %v8042_v15, %v8364_v24  ;;  %v2238_v61 = vmul.f32 0.01, %v1782_v47  ;;  %vm2046_vm1 = vcmp.ge.f32.partialorder %v1782_v47, 0.0  ;;  %v11883_v24 = vld [vmem:[#allocation40_spill] sm:$0xff] }
 0x4e4   :  { %v1787_v53 = vpop.f32.mrf.mxu2  ;;  %2836 = vadd.xlane.f32.xlu0 %v2835_v26  ;;  %v2838_v26 = vadd.f32 %v2625_v23, %v2624_v19  ;;  %v3357_v23 = vsel %vm3165_vm15, %v3069_v59, %v3261_v48  ;;  %v3070_v19 = vadd.f32 %v8241_v40, %v2801_v31  ;;  %v8379_v59 = vpop.eup %6663  ;;  %v8384_v48 = vsel %vm2046_vm1, %v1782_v47, %v2238_v61  ;;  %v11872_v61 = vld [vmem:[#allocation33_spill] sm:$0xff] }
 0x4e5   :  { %v1788_v63 = vadd.f32 %v1787_v53, %v8037_v42  ;;  %v2632_v53 = vmul.f32 %v8040_v20, %v8351_v5  ;;  %v8372_v5 = vsel %vm2043_vm14, %v1474_v14, %v2235_v22  ;;  %v3461_v4 = vmul.f32 1.442695, %v3357_v23 }
 0x4e6   :  { %11866 = vst [vmem:[#allocation29_spill] sm:$0xff] %v8372_v5  ;;  %v2626_v58 = vmul.f32 %v8040_v20, %v8372_v5  ;;  %vm3166_vm3 = vcmp.ge.f32.partialorder %v3070_v19, 0.0  ;;  %v1785_v22 = vadd.f32 %v8328_v56, %v8037_v42 }
 0x4e7   :  { %vm2050_vm12 = vcmp.ge.f32.partialorder %v1788_v63, 0.0  ;;  %v2242_v34 = vmul.f32 0.01, %v1788_v63  ;;  %6665 = vpow2.f32 %v3461_v4 }
 0x4e8   :  { %v2841_v14 = vadd.f32 %v2627_v21, %v2626_v58  ;;  %v2629_v21 = vmul.f32 %v8042_v15, %v8384_v48  ;;  %v2240_v58 = vmul.f32 0.01, %v1785_v22  ;;  %vm2048_vm4 = vcmp.ge.f32.partialorder %v1785_v22, 0.0 }
 0x4e9   :  { %1837 = vmatmul.f32.gmra.mxu2 %v11862_v2  ;;  %v8356_v29 = vsel %vm2050_vm12, %v1788_v63, %v2242_v34  ;;  %v11865_v34 = vld [vmem:[#allocation25_spill] sm:$0xff] }
 0x4ea   :  { %11863 = vst [vmem:[#allocation28_spill] sm:$0xff] %v8356_v29  ;;  %v2633_v36 = vmul.f32 %v8042_v15, %v8356_v29  ;;  %v1477_v2 = vadd.f32 %v11865_v34, %v8030_v30 }
 0x4eb   :  { %11868 = vst [vmem:[#allocation25_spill] sm:$0xff] %v8379_v59 }
 0x4ec   :  { %v8366_v51 = vpop.f32.mrf.mxu2  ;;  %2839 = vadd.xlane.f32.xlu0 %v2838_v26  ;;  %v2850_v63 = vadd.f32 %v2633_v36, %v2632_v53  ;;  %v2237_v26 = vmul.f32 0.01, %v1477_v2  ;;  %v3262_v53 = vmul.f32 0.01, %v3070_v19  ;;  %v11867_v36 = vld [vmem:[#allocation31_spill] sm:$0xff]  ;;  %vm2045_vm2 = vcmp.ge.f32.partialorder %v1477_v2, 0.0 }
 0x4ed   :  { %11869 = vst [vmem:[#allocation31_spill] sm:$0xff] %v8384_v48  ;;  %v8397_v4 = vpop.eup %6665 }
 0x4ee   :  { %2851 = vadd.xlane.f32.xlu2 %v2850_v63  ;;  %v11870_v63 = vld [vmem:[#allocation27_spill] sm:$0xff]  ;;  %v3358_v23 = vsel %vm3166_vm3, %v3070_v19, %v3262_v53  ;;  %11873 = vst [vmem:[#allocation33_spill] sm:$0xff] %v8397_v4 }
 0x4ef   :  { %v1480_v34 = vadd.f32 %v11870_v63, %v8030_v30  ;;  %v3463_v5 = vmul.f32 1.442695, %v3358_v23  ;;  %v11876_v23 = vld [vmem:[#allocation35_spill] sm:$0xff] }
 0x4f1   :  { %1840 = vmatmul.f32.gmra.mxu2 %v11867_v36  ;;  %v8390_v36 = vsel %vm2045_vm2, %v1477_v2, %v2237_v26  ;;  %v2239_v47 = vmul.f32 0.01, %v1480_v34  ;;  %vm2047_vm5 = vcmp.ge.f32.partialorder %v1480_v34, 0.0  ;;  %v8400_v2 = vsel %vm2048_vm4, %v1785_v22, %v2240_v58  ;;  %v11878_v58 = vld [vmem:[#allocation37_spill] sm:$0xff] }
 0x4f2   :  { %11871 = vst [vmem:[#allocation27_spill] sm:$0xff] %v8390_v36  ;;  %v2628_v56 = vmul.f32 %v8040_v20, %v8390_v36  ;;  %6667 = vpow2.f32 %v3463_v5  ;;  %v2631_v53 = vmul.f32 %v8042_v15, %v8400_v2  ;;  %v2807_v5 = vpop.xlane.xlu0 %2806 }
 0x4f3   :  { %3664 = vperm.xlu1 %6657, %v8379_v59   ;;  %11874 = vst [vmem:[#allocation157_spill] sm:$0xff] %v8400_v2  ;;  %v8404_v26 = vsel %vm2047_vm5, %v1480_v34, %v2239_v47  ;;  %v11880_v2 = vld [vmem:[#allocation38_spill] sm:$0xff] }
 0x4f4   :  { %v8386_v31 = vpop.f32.mrf.mxu2  ;;  %2842 = vadd.xlane.f32.xlu0 %v2841_v14  ;;  %v2844_v14 = vadd.f32 %v2629_v21, %v2628_v56  ;;  %11875 = vst [vmem:[#allocation158_spill] sm:$0xff] %v8404_v26  ;;  %v2630_v63 = vmul.f32 %v8040_v20, %v8404_v26  ;;  %v11879_v56 = vld [vmem:[#allocation43_spill] sm:$0xff]  ;;  %v11881_v26 = vld [vmem:[#allocation45_spill] sm:$0xff] }
 0x4f5   :  { %v1501_v47 = vadd.f32 %v11879_v56, %v8030_v30 }
 0x4f6   :  { %v2847_v21 = vadd.f32 %v2631_v53, %v2630_v63 }
 0x4f7   :  { %vm2061_vm6 = vcmp.ge.f32.partialorder %v1501_v47, 0.0 }
 0x4f9   :  { %1843 = vmatmul.f32.gmra.mxu2 %v11872_v61  ;;  %v8411_v61 = vpop.eup %6667 }
 0x4fa   :  { %11877 = vst [vmem:[#allocation35_spill] sm:$0xff] %v8411_v61 }
 0x4fb   :  { %3679 = vperm.xlu1 %6657, %v8397_v4  }
 0x4fc   :  { %v8402_v19 = vpop.f32.mrf.mxu2  ;;  %2845 = vadd.xlane.f32.xlu0 %v2844_v14 }
 0x501   :  { %1846 = vmatmul.f32.gmra.mxu2 %v11876_v23  ;;  %v2253_v23 = vmul.f32 0.01, %v1501_v47 }
 0x503   :  { %3684 = vperm.xlu1 %6657, %v8411_v61   ;;  %v11927_v61 = vld [vmem:[#allocation67_spill] sm:$0xff] }
 0x504   :  { %v8414_v22 = vpop.f32.mrf.mxu2  ;;  %2848 = vadd.xlane.f32.xlu0 %v2847_v21  ;;  %v1504_v21 = vadd.f32 %v11881_v26, %v8030_v30  ;;  %v1791_v26 = vadd.f32 %v8366_v51, %v8037_v42 }
 0x506   :  { %v2255_v55 = vmul.f32 0.01, %v1504_v21  ;;  %vm2063_vm8 = vcmp.ge.f32.partialorder %v1504_v21, 0.0  ;;  %v2244_v9 = vmul.f32 0.01, %v1791_v26  ;;  %vm2052_vm10 = vcmp.ge.f32.partialorder %v1791_v26, 0.0 }
 0x508   :  { %v8442_v59 = vsel %vm2063_vm8, %v1504_v21, %v2255_v55  ;;  %v8453_v21 = vsel %vm2052_vm10, %v1791_v26, %v2244_v9  ;;  %v3072_v9 = vadd.f32 %v8241_v40, %v2807_v5  ;;  %v11895_v5 = vld [vmem:[#allocation49_spill] sm:$0xff] }
 0x509   :  { %1849 = vmatmul.f32.gmra.mxu2 %v11878_v58  ;;  %v8421_v14 = vpop.xlane.xlu0 %2818  ;;  %v8427_v58 = vsel %vm2061_vm6, %v1501_v47, %v2253_v23  ;;  %11886 = vst [vmem:[#allocation38_spill] sm:$0xff] %v8442_v59 }
 0x50a   :  { %11882 = vst [vmem:[#allocation37_spill] sm:$0xff] %v8427_v58  ;;  %vm3168_vm13 = vcmp.ge.f32.partialorder %v3072_v9, 0.0 }
 0x50b   :  { %11889 = vst [vmem:[#allocation40_spill] sm:$0xff] %v8453_v21 }
 0x50c   :  { %v8417_v34 = vpop.f32.mrf.mxu2 }
 0x511   :  { %1852 = vmatmul.f32.gmra.mxu2 %v11880_v2  ;;  %v2822_v29 = vpop.xlane.xlu0 %2821  ;;  %v2644_v2 = vmul.f32 %v8040_v20, %v8427_v58 }
 0x514   :  { %v1805_v53 = vpop.f32.mrf.mxu2 }
 0x515   :  { %v1806_v63 = vadd.f32 %v1805_v53, %v8037_v42  ;;  %v3077_v53 = vadd.f32 %v8241_v40, %v2822_v29 }
 0x517   :  { %vm2062_vm7 = vcmp.ge.f32.partialorder %v1806_v63, 0.0  ;;  %v2254_v36 = vmul.f32 0.01, %v1806_v63  ;;  %v3269_v37 = vmul.f32 0.01, %v3077_v53  ;;  %vm3173_vm11 = vcmp.ge.f32.partialorder %v3077_v53, 0.0 }
 0x519   :  { %1855 = vmatmul.f32.gmra.mxu2 %v11883_v24  ;;  %v8430_v56 = vsel %vm2062_vm7, %v1806_v63, %v2254_v36  ;;  %v11885_v24 = vld [vmem:[#allocation32_spill] sm:$0xff] }
 0x51a   :  { %11884 = vst [vmem:[#allocation43_spill] sm:$0xff] %v8430_v56  ;;  %v2645_v48 = vmul.f32 %v8042_v15, %v8430_v56  ;;  %v1486_v36 = vadd.f32 %v11885_v24, %v8030_v30  ;;  %v11931_v56 = vld [vmem:[#allocation69_spill] sm:$0xff] }
 0x51c   :  { %v1808_v47 = vpop.f32.mrf.mxu2  ;;  %v2868_v23 = vadd.f32 %v2645_v48, %v2644_v2  ;;  %v2243_v29 = vmul.f32 0.01, %v1486_v36  ;;  %v2646_v48 = vmul.f32 %v8040_v20, %v8442_v59  ;;  %vm2051_vm12 = vcmp.ge.f32.partialorder %v1486_v36, 0.0 }
 0x51d   :  { %v1809_v32 = vadd.f32 %v1808_v47, %v8037_v42  ;;  %v3365_v47 = vsel %vm3173_vm11, %v3077_v53, %v3269_v37  ;;  %v11893_v53 = vld [vmem:[#allocation46_spill] sm:$0xff] }
 0x51e   :  { %2869 = vadd.xlane.f32.xlu0 %v2868_v23  ;;  %v8455_v24 = vsel %vm2051_vm12, %v1486_v36, %v2243_v29  ;;  %v8469_v36 = vpop.xlane.xlu1 %2809  ;;  %v3264_v29 = vmul.f32 0.01, %v3072_v9 }
 0x51f   :  { %vm2064_vm9 = vcmp.ge.f32.partialorder %v1809_v32, 0.0  ;;  %v2256_v63 = vmul.f32 0.01, %v1809_v32  ;;  %11890 = vst [vmem:[#allocation32_spill] sm:$0xff] %v8455_v24  ;;  %v2634_v52 = vmul.f32 %v8040_v20, %v8455_v24 }
 0x521   :  { %1858 = vmatmul.f32.gmra.mxu2 %v11887_v41  ;;  %v8445_v51 = vsel %vm2064_vm9, %v1809_v32, %v2256_v63  ;;  %v3477_v41 = vmul.f32 1.442695, %v3365_v47  ;;  %v2635_v32 = vmul.f32 %v8042_v15, %v8453_v21  ;;  %v11891_v63 = vld [vmem:[#allocation44_spill] sm:$0xff]  ;;  %v11894_v47 = vld [vmem:[#allocation47_spill] sm:$0xff]  ;;  %v11900_v21 = vld [vmem:[#allocation53_spill] sm:$0xff] }
 0x522   :  { %11888 = vst [vmem:[#allocation45_spill] sm:$0xff] %v8445_v51  ;;  %v2647_v2 = vmul.f32 %v8042_v15, %v8445_v51 }
 0x523   :  { %6669 = vpow2.f32 %v3477_v41  ;;  %v2853_v10 = vadd.f32 %v2635_v32, %v2634_v52 }
 0x524   :  { %v8451_v23 = vpop.f32.mrf.mxu2  ;;  %v2871_v55 = vadd.f32 %v2647_v2, %v2646_v48  ;;  %v3360_v2 = vsel %vm3168_vm13, %v3072_v9, %v3264_v29  ;;  %v11899_v9 = vld [vmem:[#allocation51_spill] sm:$0xff] }
 0x525   :  { %v3467_v52 = vmul.f32 1.442695, %v3360_v2 }
 0x526   :  { %2872 = vadd.xlane.f32.xlu2 %v2871_v55 }
 0x527   :  { %6671 = vpow2.f32 %v3467_v52 }
 0x529   :  { %1861 = vmatmul.f32.gmra.mxu2 %v11891_v63  ;;  %v8465_v26 = vpop.eup %6669 }
 0x52a   :  { %11892 = vst [vmem:[#allocation42_spill] sm:$0xff] %v8465_v26 }
 0x52c   :  { %v8462_v37 = vpop.f32.mrf.mxu2 }
 0x52d   :  { %2854 = vadd.xlane.f32.xlu1 %v2853_v10  ;;  %v8476_v10 = vpop.xlane.xlu1 %2812  ;;  %v8481_v32 = vpop.eup %6671 }
 0x52e   :  { %11896 = vst [vmem:[#allocation44_spill] sm:$0xff] %v8481_v32 }
 0x531   :  { %1864 = vmatmul.f32.gmra.mxu2 %v11893_v53  ;;  %v8486_v53 = vpop.permute.xlu0 %3644 }
 0x532   :  { %3719 = vperm.xlu0 %6656, %v8465_v26   ;;  %11898 = vst [vmem:[#allocation47_spill] sm:$0xff] %v8486_v53 }
 0x534   :  { %v8471_v48 = vpop.f32.mrf.mxu2 }
 0x535   :  { %v8483_v63 = vpop.permute.xlu1 %3649 }
 0x536   :  { %11897 = vst [vmem:[#allocation46_spill] sm:$0xff] %v8483_v63 }
 0x539   :  { %1867 = vmatmul.f32.gmra.mxu2 %v11894_v47 }
 0x53c   :  { %v8474_v55 = vpop.f32.mrf.mxu2 }
 0x541   :  { %1870 = vmatmul.f32.gmra.mxu2 %v11895_v5 }
 0x544   :  { %v8479_v41 = vpop.f32.mrf.mxu2 }
 0x546   :  { %3694 = vperm.xlu1 %6657, %v8481_v32  }
 0x549   :  { %1873 = vmatmul.f32.gmra.mxu2 %v11899_v9 }
 0x54c   :  { %v8489_v29 = vpop.f32.mrf.mxu2 }
 0x54d   :  { %v2831_v2 = vpop.xlane.xlu1 %2830 }
 0x54e   :  { %v3080_v47 = vadd.f32 %v8241_v40, %v2831_v2  ;;  %v11901_v2 = vld [vmem:[#allocation55_spill] sm:$0xff] }
 0x54f   :  { %v2834_v52 = vpop.xlane.xlu0 %2833 }
 0x550   :  { %vm3176_vm14 = vcmp.ge.f32.partialorder %v3080_v47, 0.0  ;;  %v3272_v5 = vmul.f32 0.01, %v3080_v47  ;;  %v3081_v24 = vadd.f32 %v8241_v40, %v2834_v52 }
 0x551   :  { %1876 = vmatmul.f32.gmra.mxu2 %v11900_v21 }
 0x552   :  { %v3368_v26 = vsel %vm3176_vm14, %v3080_v47, %v3272_v5  ;;  %v3273_v6 = vmul.f32 0.01, %v3081_v24  ;;  %vm3177_vm15 = vcmp.ge.f32.partialorder %v3081_v24, 0.0 }
 0x553   :  { %v3483_v51 = vmul.f32 1.442695, %v3368_v26 }
 0x554   :  { %v8494_v59 = vpop.f32.mrf.mxu2  ;;  %v3369_v9 = vsel %vm3177_vm15, %v3081_v24, %v3273_v6  ;;  %v11903_v6 = vld [vmem:[#allocation34_spill] sm:$0xff] }
 0x555   :  { %6673 = vpow2.f32 %v3483_v51  ;;  %v3485_v13 = vmul.f32 1.442695, %v3369_v9  ;;  %v1794_v51 = vadd.f32 %v8386_v31, %v8037_v42  ;;  %v1489_v24 = vadd.f32 %v11903_v6, %v8030_v30 }
 0x557   :  { %v2837_v53 = vpop.xlane.xlu0 %2836  ;;  %6675 = vpow2.f32 %v3485_v13  ;;  %v2246_v5 = vmul.f32 0.01, %v1794_v51  ;;  %vm2054_vm2 = vcmp.ge.f32.partialorder %v1794_v51, 0.0  ;;  %vm2053_vm3 = vcmp.ge.f32.partialorder %v1489_v24, 0.0  ;;  %v11907_v13 = vld [vmem:[#allocation58_spill] sm:$0xff] }
 0x558   :  { %v3082_v43 = vadd.f32 %v8241_v40, %v2837_v53  ;;  %v11904_v53 = vld [vmem:[#allocation56_spill] sm:$0xff] }
 0x559   :  { %1879 = vmatmul.f32.gmra.mxu2 %v11901_v2  ;;  %v2245_v2 = vmul.f32 0.01, %v1489_v24 }
 0x55a   :  { %v3274_v33 = vmul.f32 0.01, %v3082_v43  ;;  %vm3178_vm1 = vcmp.ge.f32.partialorder %v3082_v43, 0.0 }
 0x55b   :  { %v8498_v18 = vpop.eup %6673 }
 0x55c   :  { %11902 = vst [vmem:[#allocation49_spill] sm:$0xff] %v8498_v18  ;;  %v8500_v52 = vpop.f32.mrf.mxu2  ;;  %3734 = vperm.xlu0 %6656, %v8498_v18   ;;  %v3370_v21 = vsel %vm3178_vm1, %v3082_v43, %v3274_v33  ;;  %v8511_v33 = vsel %vm2054_vm2, %v1794_v51, %v2246_v5  ;;  %v8514_v43 = vsel %vm2053_vm3, %v1489_v24, %v2245_v2  ;;  %v11910_v51 = vld [vmem:[#allocation60_spill] sm:$0xff]  ;;  %v11913_v18 = vld [vmem:[#allocation62_spill] sm:$0xff] }
 0x55d   :  { %v3487_v26 = vmul.f32 1.442695, %v3370_v21  ;;  %v8508_v47 = vpop.eup %6675  ;;  %11906 = vst [vmem:[#allocation53_spill] sm:$0xff] %v8511_v33  ;;  %v2637_v31 = vmul.f32 %v8042_v15, %v8511_v33  ;;  %v3073_v24 = vadd.f32 %v8241_v40, %v8469_v36 }
 0x55e   :  { %11905 = vst [vmem:[#allocation51_spill] sm:$0xff] %v8508_v47 }
 0x55f   :  { %6677 = vpow2.f32 %v3487_v26  ;;  %11908 = vst [vmem:[#allocation55_spill] sm:$0xff] %v8514_v43  ;;  %v8528_v5 = vpop.xlane.xlu0 %2839  ;;  %vm3169_vm4 = vcmp.ge.f32.partialorder %v3073_v24, 0.0 }
 0x560   :  { %11911 = vst [vmem:[#allocation56_spill] sm:$0xff] %v8528_v5  ;;  %v11916_v5 = vld [vmem:[#allocation64_spill] sm:$0xff] }
 0x561   :  { %1882 = vmatmul.f32.gmra.mxu2 %v11904_v53  ;;  %v2636_v53 = vmul.f32 %v8040_v20, %v8514_v43 }
 0x563   :  { %v2856_v26 = vadd.f32 %v2637_v31, %v2636_v53 }
 0x564   :  { %v1835_v9 = vpop.f32.mrf.mxu2  ;;  %3739 = vperm.xlu0 %6656, %v8508_v47   ;;  %v3265_v47 = vmul.f32 0.01, %v3073_v24 }
 0x565   :  { %v8518_v21 = vpop.eup %6677 }
 0x566   :  { %11909 = vst [vmem:[#allocation34_spill] sm:$0xff] %v8518_v21  ;;  %v3361_v32 = vsel %vm3169_vm4, %v3073_v24, %v3265_v47 }
 0x567   :  { %v8533_v53 = vpop.xlane.xlu0 %2842 }
 0x568   :  { %11914 = vst [vmem:[#allocation58_spill] sm:$0xff] %v8533_v53 }
 0x569   :  { %1885 = vmatmul.f32.gmra.mxu2 %v11907_v13  ;;  %v11912_v13 = vld [vmem:[#allocation72_spill] sm:$0xff] }
 0x56a   :  { %v1540_v33 = vadd.f32 %v11912_v13, %v8030_v30 }
 0x56c   :  { %v8520_v6 = vpop.f32.mrf.mxu2  ;;  %3744 = vperm.xlu0 %6656, %v8518_v21   ;;  %v2279_v21 = vmul.f32 0.01, %v1540_v33  ;;  %vm2087_vm5 = vcmp.ge.f32.partialorder %v1540_v33, 0.0 }
 0x56e   :  { %v8536_v43 = vsel %vm2087_vm5, %v1540_v33, %v2279_v21  ;;  %v11918_v33 = vld [vmem:[#allocation66_spill] sm:$0xff] }
 0x56f   :  { %11915 = vst [vmem:[#allocation60_spill] sm:$0xff] %v8536_v43  ;;  %v1531_v21 = vadd.f32 %v11918_v33, %v8030_v30  ;;  %v11924_v33 = vld [vmem:[#allocation79_spill] sm:$0xff] }
 0x570   :  { %2857 = vadd.xlane.f32.xlu1 %v2856_v26 }
 0x571   :  { %1888 = vmatmul.f32.gmra.mxu2 %v11910_v51  ;;  %v3469_v51 = vmul.f32 1.442695, %v3361_v32  ;;  %v1836_v32 = vadd.f32 %v1835_v9, %v8037_v42  ;;  %vm2081_vm8 = vcmp.ge.f32.partialorder %v1531_v21, 0.0 }
 0x573   :  { %6679 = vpow2.f32 %v3469_v51  ;;  %v11921_v51 = vld [vmem:[#allocation65_spill] sm:$0xff]  ;;  %vm2082_vm7 = vcmp.ge.f32.partialorder %v1836_v32, 0.0 }
 0x574   :  { %v1841_v2 = vpop.f32.mrf.mxu2 }
 0x575   :  { %v1842_v9 = vadd.f32 %v1841_v2, %v8037_v42 }
 0x577   :  { %vm2086_vm9 = vcmp.ge.f32.partialorder %v1842_v9, 0.0 }
 0x579   :  { %1891 = vmatmul.f32.gmra.mxu2 %v11913_v18  ;;  %v2670_v18 = vmul.f32 %v8040_v20, %v8536_v43 }
 0x57c   :  { %v1844_v31 = vpop.f32.mrf.mxu2 }
 0x57d   :  { %v1845_v26 = vadd.f32 %v1844_v31, %v8037_v42  ;;  %v8550_v31 = vpop.xlane.xlu0 %2845 }
 0x57e   :  { %11919 = vst [vmem:[#allocation62_spill] sm:$0xff] %v8550_v31 }
 0x57f   :  { %vm2088_vm6 = vcmp.ge.f32.partialorder %v1845_v26, 0.0  ;;  %v2280_v36 = vmul.f32 0.01, %v1845_v26 }
 0x581   :  { %1894 = vmatmul.f32.gmra.mxu2 %v11916_v5  ;;  %v8539_v13 = vsel %vm2088_vm6, %v1845_v26, %v2280_v36  ;;  %v8552_v5 = vpop.eup %6679  ;;  %v2274_v26 = vmul.f32 0.01, %v1836_v32  ;;  %v2273_v36 = vmul.f32 0.01, %v1531_v21 }
 0x582   :  { %11917 = vst [vmem:[#allocation72_spill] sm:$0xff] %v8539_v13  ;;  %v2671_v47 = vmul.f32 %v8042_v15, %v8539_v13  ;;  %v1549_v13 = vadd.f32 %v11924_v33, %v8030_v30 }
 0x583   :  { %11920 = vst [vmem:[#allocation64_spill] sm:$0xff] %v8552_v5  ;;  %v8565_v31 = vsel %vm2081_vm8, %v1531_v21, %v2273_v36  ;;  %v8574_v21 = vpop.f32.mrf.mxu1 }
 0x584   :  { %v8545_v24 = vpop.f32.mrf.mxu2  ;;  %v2907_v53 = vadd.f32 %v2671_v47, %v2670_v18  ;;  %v11923_v18 = vld [vmem:[#allocation70_spill] sm:$0xff]  ;;  %11925 = vst [vmem:[#allocation65_spill] sm:$0xff] %v8565_v31  ;;  %v2664_v2 = vmul.f32 %v8040_v20, %v8565_v31  ;;  %vm2093_vm11 = vcmp.ge.f32.partialorder %v1549_v13, 0.0 }
 0x585   :  { %v1537_v47 = vadd.f32 %v11923_v18, %v8030_v30  ;;  %v8569_v11 = vpop.xlane.xlu0 %2848 }
 0x586   :  { %2908 = vadd.xlane.f32.xlu2 %v2907_v53  ;;  %v8559_v53 = vsel %vm2082_vm7, %v1836_v32, %v2274_v26  ;;  %11926 = vst [vmem:[#allocation70_spill] sm:$0xff] %v8569_v11  ;;  %v2285_v26 = vmul.f32 0.01, %v1549_v13 }
 0x587   :  { %11922 = vst [vmem:[#allocation66_spill] sm:$0xff] %v8559_v53  ;;  %v2277_v32 = vmul.f32 0.01, %v1537_v47  ;;  %vm2085_vm10 = vcmp.ge.f32.partialorder %v1537_v47, 0.0 }
 0x589   :  { %1897 = vmatmul.f32.gmra.mxu2 %v11921_v51  ;;  %3699 = vperm.xlu1 %6657, %v8552_v5   ;;  %v2665_v51 = vmul.f32 %v8042_v15, %v8559_v53  ;;  %v2278_v5 = vmul.f32 0.01, %v1842_v9  ;;  %v8581_v63 = vsel %vm2085_vm10, %v1537_v47, %v2277_v32 }
 0x58a   :  { %11930 = vst [vmem:[#allocation159_spill] sm:$0xff] %v8581_v63 }
 0x58b   :  { %v2898_v33 = vadd.f32 %v2665_v51, %v2664_v2  ;;  %v8577_v53 = vsel %vm2086_vm9, %v1842_v9, %v2278_v5 }
 0x58c   :  { %v8556_v43 = vpop.f32.mrf.mxu2  ;;  %11928 = vst [vmem:[#allocation79_spill] sm:$0xff] %v8577_v53  ;;  %v2669_v31 = vmul.f32 %v8042_v15, %v8577_v53 }
 0x591   :  { %1900 = vmatmul.f32.gmra.mxu2 %v11927_v61  ;;  %v8579_v61 = vsel %vm2093_vm11, %v1549_v13, %v2285_v26  ;;  %v2870_v3 = vpop.xlane.xlu0 %2869  ;;  %v2668_v13 = vmul.f32 %v8040_v20, %v8581_v63 }
 0x592   :  { %11929 = vst [vmem:[#allocation67_spill] sm:$0xff] %v8579_v61  ;;  %v2676_v2 = vmul.f32 %v8040_v20, %v8579_v61  ;;  %v3093_v9 = vadd.f32 %v8241_v40, %v2870_v3 }
 0x593   :  { %v2904_v26 = vadd.f32 %v2669_v31, %v2668_v13  ;;  %v11935_v31 = vld [vmem:[#allocation86_spill] sm:$0xff] }
 0x594   :  { %v1853_v18 = vpop.f32.mrf.mxu2  ;;  %vm3189_vm13 = vcmp.ge.f32.partialorder %v3093_v9, 0.0 }
 0x595   :  { %v1854_v36 = vadd.f32 %v1853_v18, %v8037_v42  ;;  %v11933_v18 = vld [vmem:[#allocation71_spill] sm:$0xff] }
 0x596   :  { %2899 = vadd.xlane.f32.xlu0 %v2898_v33  ;;  %v1797_v33 = vadd.f32 %v8402_v19, %v8037_v42 }
 0x597   :  { %vm2094_vm12 = vcmp.ge.f32.partialorder %v1854_v36, 0.0  ;;  %v2286_v11 = vmul.f32 0.01, %v1854_v36 }
 0x598   :  { %vm2056_vm14 = vcmp.ge.f32.partialorder %v1797_v33, 0.0 }
 0x599   :  { %1903 = vmatmul.f32.gmra.mxu2 %v11931_v56  ;;  %v8586_v51 = vsel %vm2094_vm12, %v1854_v36, %v2286_v11  ;;  %v8597_v56 = vpop.f32.mrf.mxu1  ;;  %v3285_v11 = vmul.f32 0.01, %v3093_v9  ;;  %v11934_v36 = vld [vmem:[#allocation36_spill] sm:$0xff] }
 0x59a   :  { %11932 = vst [vmem:[#allocation69_spill] sm:$0xff] %v8586_v51  ;;  %v2677_v5 = vmul.f32 %v8042_v15, %v8586_v51  ;;  %v1492_v61 = vadd.f32 %v11934_v36, %v8030_v30  ;;  %v2248_v51 = vmul.f32 0.01, %v1797_v33 }
 0x59b   :  { %v3381_v63 = vsel %vm3189_vm13, %v3093_v9, %v3285_v11  ;;  %v8615_v11 = vpop.xlane.xlu2 %2803 }
 0x59c   :  { %v8595_v47 = vpop.f32.mrf.mxu2  ;;  %v2916_v32 = vadd.f32 %v2677_v5, %v2676_v2  ;;  %v2247_v2 = vmul.f32 0.01, %v1492_v61  ;;  %v1558_v5 = vadd.f32 %v11935_v31, %v8030_v30  ;;  %v3509_v13 = vmul.f32 1.442695, %v3381_v63  ;;  %11939 = vst [vmem:[#allocation86_spill] sm:$0xff] %v8615_v11 }
 0x59d   :  { %vm2055_vm15 = vcmp.ge.f32.partialorder %v1492_v61, 0.0 }
 0x59e   :  { %2917 = vadd.xlane.f32.xlu2 %v2916_v32  ;;  %2905 = vadd.xlane.f32.xlu0 %v2904_v26  ;;  %v11936_v26 = vld [vmem:[#allocation73_spill] sm:$0xff]  ;;  %v2291_v19 = vmul.f32 0.01, %v1558_v5  ;;  %6681 = vpow2.f32 %v3509_v13  ;;  %v8613_v36 = vsel %vm2055_vm15, %v1492_v61, %v2247_v2  ;;  %vm2099_vm1 = vcmp.ge.f32.partialorder %v1558_v5, 0.0  ;;  %v11942_v2 = vld [vmem:[#allocation74_spill] sm:$0xff] }
 0x59f   :  { %11938 = vst [vmem:[#allocation36_spill] sm:$0xff] %v8613_v36  ;;  %v2638_v31 = vmul.f32 %v8040_v20, %v8613_v36 }
 0x5a0   :  { %v8624_v13 = vsel %vm2099_vm1, %v1558_v5, %v2291_v19 }
 0x5a1   :  { %1906 = vmatmul.f32.gmra.mxu2 %v11933_v18  ;;  %v8608_v32 = vpop.f32.mrf.mxu1  ;;  %v8611_v18 = vsel %vm2056_vm14, %v1797_v33, %v2248_v51  ;;  %11941 = vst [vmem:[#allocation73_spill] sm:$0xff] %v8624_v13 }
 0x5a2   :  { %11937 = vst [vmem:[#allocation71_spill] sm:$0xff] %v8611_v18  ;;  %v2639_v63 = vmul.f32 %v8042_v15, %v8611_v18 }
 0x5a3   :  { %v8638_v60 = vpop.xlane.xlu2 %2815 }
 0x5a4   :  { %v8604_v3 = vpop.f32.mrf.mxu2  ;;  %v8626_v61 = vpop.eup %6681  ;;  %v2859_v58 = vadd.f32 %v2639_v63, %v2638_v31  ;;  %v3074_v63 = vadd.f32 %v8241_v40, %v8476_v10  ;;  %v11944_v31 = vld [vmem:[#allocation90_spill] sm:$0xff] }
 0x5a6   :  { %vm3170_vm5 = vcmp.ge.f32.partialorder %v3074_v63, 0.0 }
 0x5a9   :  { %1909 = vmatmul.f32.gmra.mxu2 %v11936_v26  ;;  %v11940_v26 = vld [vmem:[#allocation88_spill] sm:$0xff]  ;;  %v8636_v36 = vpop.f32.mrf.mxu1 }
 0x5aa   :  { %v1561_v51 = vadd.f32 %v11940_v26, %v8030_v30 }
 0x5ac   :  { %v1862_v9 = vpop.f32.mrf.mxu2  ;;  %v2293_v26 = vmul.f32 0.01, %v1561_v51  ;;  %vm2101_vm3 = vcmp.ge.f32.partialorder %v1561_v51, 0.0 }
 0x5ad   :  { %v1863_v53 = vadd.f32 %v1862_v9, %v8037_v42  ;;  %v2682_v9 = vmul.f32 %v8040_v20, %v8624_v13 }
 0x5ae   :  { %v8645_v13 = vsel %vm2101_vm3, %v1561_v51, %v2293_v26  ;;  %v8656_v51 = vpop.xlane.xlu2 %2824 }
 0x5af   :  { %vm2100_vm2 = vcmp.ge.f32.partialorder %v1863_v53, 0.0  ;;  %v2292_v33 = vmul.f32 0.01, %v1863_v53  ;;  %11945 = vst [vmem:[#allocation74_spill] sm:$0xff] %v8645_v13 }
 0x5b1   :  { %1912 = vmatmul.f32.gmra.mxu2 %v11942_v2  ;;  %v8629_v62 = vsel %vm2100_vm2, %v1863_v53, %v2292_v33  ;;  %v1564_v33 = vadd.f32 %v11944_v31, %v8030_v30  ;;  %v8654_v4 = vpop.f32.mrf.mxu1 }
 0x5b2   :  { %11943 = vst [vmem:[#allocation88_spill] sm:$0xff] %v8629_v62  ;;  %3799 = vperm.xlu0 %6656, %v8626_v61   ;;  %v2683_v18 = vmul.f32 %v8042_v15, %v8629_v62  ;;  %v11946_v62 = vld [vmem:[#allocation76_spill] sm:$0xff] }
 0x5b3   :  { %2860 = vadd.xlane.f32.xlu1 %v2859_v58  ;;  %v2295_v10 = vmul.f32 0.01, %v1564_v33  ;;  %vm2103_vm6 = vcmp.ge.f32.partialorder %v1564_v33, 0.0 }
 0x5b4   :  { %v1865_v5 = vpop.f32.mrf.mxu2  ;;  %v2925_v19 = vadd.f32 %v2683_v18, %v2682_v9  ;;  %v3266_v18 = vmul.f32 0.01, %v3074_v63  ;;  %v2684_v9 = vmul.f32 %v8040_v20, %v8645_v13 }
 0x5b5   :  { %v1866_v53 = vadd.f32 %v1865_v5, %v8037_v42  ;;  %v8661_v0 = vsel %vm2103_vm6, %v1564_v33, %v2295_v10  ;;  %v1570_v33 = vadd.f32 %v8574_v21, %v8030_v30 }
 0x5b6   :  { %2926 = vadd.xlane.f32.xlu2 %v2925_v19  ;;  %v3362_v26 = vsel %vm3170_vm5, %v3074_v63, %v3266_v18  ;;  %11949 = vst [vmem:[#allocation76_spill] sm:$0xff] %v8661_v0 }
 0x5b7   :  { %vm2102_vm4 = vcmp.ge.f32.partialorder %v1866_v53, 0.0  ;;  %v2294_v2 = vmul.f32 0.01, %v1866_v53  ;;  %v2299_v21 = vmul.f32 0.01, %v1570_v33  ;;  %vm2107_vm10 = vcmp.ge.f32.partialorder %v1570_v33, 0.0 }
 0x5b9   :  { %1915 = vmatmul.f32.gmra.mxu2 %v11946_v62  ;;  %v8648_v58 = vsel %vm2102_vm4, %v1866_v53, %v2294_v2  ;;  %v11948_v53 = vld [vmem:[#allocation93_spill] sm:$0xff] }
 0x5ba   :  { %11947 = vst [vmem:[#allocation90_spill] sm:$0xff] %v8648_v58  ;;  %v2685_v5 = vmul.f32 %v8042_v15, %v8648_v58  ;;  %v1567_v2 = vadd.f32 %v11948_v53, %v8030_v30  ;;  %v3471_v58 = vmul.f32 1.442695, %v3362_v26  ;;  %v11954_v26 = vld [vmem:[#allocation80_spill] sm:$0xff] }
 0x5bc   :  { %v1868_v19 = vpop.f32.mrf.mxu2  ;;  %v2928_v31 = vadd.f32 %v2685_v5, %v2684_v9  ;;  %v2686_v9 = vmul.f32 %v8040_v20, %v8661_v0  ;;  %v2297_v63 = vmul.f32 0.01, %v1567_v2  ;;  %vm2105_vm8 = vcmp.ge.f32.partialorder %v1567_v2, 0.0 }
 0x5bd   :  { %v1869_v62 = vadd.f32 %v1868_v19, %v8037_v42  ;;  %6683 = vpow2.f32 %v3471_v58 }
 0x5be   :  { %2929 = vadd.xlane.f32.xlu2 %v2928_v31 }
 0x5bf   :  { %vm2104_vm7 = vcmp.ge.f32.partialorder %v1869_v62, 0.0  ;;  %v2296_v13 = vmul.f32 0.01, %v1869_v62 }
 0x5c1   :  { %1918 = vmatmul.f32.gmra.mxu2 %v11950_v39  ;;  %v8664_v8 = vsel %vm2104_vm7, %v1869_v62, %v2296_v13  ;;  %v8673_v39 = vpop.f32.mrf.mxu1  ;;  %v8675_v13 = vpop.xlane.xlu2 %2827  ;;  %v8677_v62 = vsel %vm2105_vm8, %v1567_v2, %v2297_v63  ;;  %v11957_v63 = vld [vmem:[#allocation81_spill] sm:$0xff] }
 0x5c2   :  { %11951 = vst [vmem:[#allocation93_spill] sm:$0xff] %v8664_v8  ;;  %v2687_v5 = vmul.f32 %v8042_v15, %v8664_v8  ;;  %v2688_v58 = vmul.f32 %v8040_v20, %v8677_v62  ;;  %v8696_v8 = vsel %vm2107_vm10, %v1570_v33, %v2299_v21 }
 0x5c3   :  { %11952 = vst [vmem:[#allocation78_spill] sm:$0xff] %v8675_v13  ;;  %v11960_v13 = vld [vmem:[#allocation82_spill] sm:$0xff] }
 0x5c4   :  { %v1871_v18 = vpop.f32.mrf.mxu2  ;;  %v2931_v19 = vadd.f32 %v2687_v5, %v2686_v9  ;;  %11953 = vst [vmem:[#allocation160_spill] sm:$0xff] %v8677_v62  ;;  %v8686_v5 = vpop.eup %6683 }
 0x5c5   :  { %v1872_v31 = vadd.f32 %v1871_v18, %v8037_v42  ;;  %11956 = vst [vmem:[#allocation161_spill] sm:$0xff] %v8686_v5  ;;  %v1857_v18 = vadd.f32 %v8595_v47, %v8037_v42 }
 0x5c6   :  { %2932 = vadd.xlane.f32.xlu2 %v2931_v19  ;;  %11959 = vst [vmem:[#allocation162_spill] sm:$0xff] %v8696_v8 }
 0x5c7   :  { %vm2106_vm9 = vcmp.ge.f32.partialorder %v1872_v31, 0.0  ;;  %v2298_v10 = vmul.f32 0.01, %v1872_v31  ;;  %v2288_v62 = vmul.f32 0.01, %v1857_v18  ;;  %vm2096_vm12 = vcmp.ge.f32.partialorder %v1857_v18, 0.0 }
 0x5c9   :  { %1921 = vmatmul.f32.gmra.mxu2 %v11954_v26  ;;  %v8680_v53 = vsel %vm2106_vm9, %v1872_v31, %v2298_v10  ;;  %v1552_v31 = vadd.f32 %v11957_v63, %v8030_v30  ;;  %v8694_v26 = vpop.xlane.xlu2 %2851 }
 0x5ca   :  { %11955 = vst [vmem:[#allocation80_spill] sm:$0xff] %v8680_v53  ;;  %v2689_v9 = vmul.f32 %v8042_v15, %v8680_v53  ;;  %v8698_v53 = vpop.f32.mrf.mxu1 }
 0x5cb   :  { %11958 = vst [vmem:[#allocation81_spill] sm:$0xff] %v8694_v26  ;;  %v2287_v47 = vmul.f32 0.01, %v1552_v31  ;;  %vm2095_vm13 = vcmp.ge.f32.partialorder %v1552_v31, 0.0  ;;  %v11964_v26 = vld [vmem:[#allocation83_spill] sm:$0xff] }
 0x5cc   :  { %v1874_v19 = vpop.f32.mrf.mxu2  ;;  %3704 = vperm.xlu1 %6657, %v8686_v5   ;;  %v2934_v2 = vadd.f32 %v2689_v9, %v2688_v58  ;;  %v2690_v9 = vmul.f32 %v8040_v20, %v8696_v8 }
 0x5cd   :  { %v1875_v10 = vadd.f32 %v1874_v19, %v8037_v42  ;;  %v8711_v21 = vsel %vm2095_vm13, %v1552_v31, %v2287_v47  ;;  %v11965_v47 = vld [vmem:[#allocation85_spill] sm:$0xff] }
 0x5ce   :  { %2935 = vadd.xlane.f32.xlu2 %v2934_v2  ;;  %v8707_v2 = vsel %vm2096_vm12, %v1857_v18, %v2288_v62  ;;  %11963 = vst [vmem:[#allocation164_spill] sm:$0xff] %v8711_v21 }
 0x5cf   :  { %vm2108_vm11 = vcmp.ge.f32.partialorder %v1875_v10, 0.0  ;;  %v2300_v0 = vmul.f32 0.01, %v1875_v10  ;;  %11962 = vst [vmem:[#allocation163_spill] sm:$0xff] %v8707_v2 }
 0x5d1   :  { %1924 = vmatmul.f32.gmra.mxu2 %v11960_v13  ;;  %v8701_v58 = vsel %vm2108_vm11, %v1875_v10, %v2300_v0  ;;  %v2679_v13 = vmul.f32 %v8042_v15, %v8707_v2  ;;  %v2873_v0 = vpop.xlane.xlu2 %2872  ;;  %v2678_v10 = vmul.f32 %v8040_v20, %v8711_v21  ;;  %v11968_v2 = vld [vmem:[#allocation87_spill] sm:$0xff] }
 0x5d2   :  { %11961 = vst [vmem:[#allocation82_spill] sm:$0xff] %v8701_v58  ;;  %v2691_v19 = vmul.f32 %v8042_v15, %v8701_v58  ;;  %v3094_v8 = vadd.f32 %v8241_v40, %v2873_v0  ;;  %v8719_v62 = vpop.f32.mrf.mxu1 }
 0x5d3   :  { %v2919_v58 = vadd.f32 %v2679_v13, %v2678_v10  ;;  %v11967_v13 = vld [vmem:[#allocation39_spill] sm:$0xff]  ;;  %v1582_v10 = vadd.f32 %v8654_v4, %v8030_v30 }
 0x5d4   :  { %v8709_v63 = vpop.f32.mrf.mxu2  ;;  %v2937_v33 = vadd.f32 %v2691_v19, %v2690_v9  ;;  %v3286_v31 = vmul.f32 0.01, %v3094_v8  ;;  %vm3190_vm14 = vcmp.ge.f32.partialorder %v3094_v8, 0.0  ;;  %v1495_v0 = vadd.f32 %v11967_v13, %v8030_v30 }
 0x5d5   :  { %vm2115_vm2 = vcmp.ge.f32.partialorder %v1582_v10, 0.0 }
 0x5d6   :  { %2938 = vadd.xlane.f32.xlu2 %v2937_v33  ;;  %v3382_v9 = vsel %vm3190_vm14, %v3094_v8, %v3286_v31  ;;  %v2249_v8 = vmul.f32 0.01, %v1495_v0  ;;  %v2307_v31 = vmul.f32 0.01, %v1582_v10  ;;  %vm2057_vm1 = vcmp.ge.f32.partialorder %v1495_v0, 0.0 }
 0x5d7   :  { %v3511_v21 = vmul.f32 1.442695, %v3382_v9 }
 0x5d9   :  { %1927 = vmatmul.f32.gmra.mxu2 %v11964_v26  ;;  %v1800_v26 = vadd.f32 %v8414_v22, %v8037_v42  ;;  %6685 = vpow2.f32 %v3511_v21  ;;  %v8744_v21 = vsel %vm2057_vm1, %v1495_v0, %v2249_v8 }
 0x5da   :  { %v8726_v33 = vpop.f32.mrf.mxu1  ;;  %11972 = vst [vmem:[#allocation165_spill] sm:$0xff] %v8744_v21  ;;  %v2640_v0 = vmul.f32 %v8040_v20, %v8744_v21  ;;  %v3075_v21 = vadd.f32 %v8241_v40, %v8638_v60 }
 0x5db   :  { %11966 = vst [vmem:[#allocation83_spill] sm:$0xff] %v8726_v33  ;;  %vm2058_vm15 = vcmp.ge.f32.partialorder %v1800_v26, 0.0  ;;  %v8742_v33 = vsel %vm2115_vm2, %v1582_v10, %v2307_v31 }
 0x5dc   :  { %v8721_v18 = vpop.f32.mrf.mxu2  ;;  %2920 = vadd.xlane.f32.xlu0 %v2919_v58  ;;  %v2250_v58 = vmul.f32 0.01, %v1800_v26  ;;  %11971 = vst [vmem:[#allocation87_spill] sm:$0xff] %v8742_v33  ;;  %v2698_v11 = vmul.f32 %v8040_v20, %v8742_v33  ;;  %vm3171_vm7 = vcmp.ge.f32.partialorder %v3075_v21, 0.0 }
 0x5de   :  { %v8736_v22 = vsel %vm2058_vm15, %v1800_v26, %v2250_v58  ;;  %v11973_v26 = vld [vmem:[#allocation89_spill] sm:$0xff] }
 0x5df   :  { %11969 = vst [vmem:[#allocation85_spill] sm:$0xff] %v8736_v22  ;;  %v8738_v9 = vpop.eup %6685 }
 0x5e0   :  { %11970 = vst [vmem:[#allocation39_spill] sm:$0xff] %v8738_v9 }
 0x5e1   :  { %1930 = vmatmul.f32.gmra.mxu2 %v11965_v47 }
 0x5e2   :  { %v8740_v13 = vpop.f32.mrf.mxu1 }
 0x5e4   :  { %v8724_v19 = vpop.f32.mrf.mxu2 }
 0x5e9   :  { %1933 = vmatmul.f32.gmra.mxu2 %v11968_v2  ;;  %v1585_v2 = vadd.f32 %v8673_v39, %v8030_v30 }
 0x5ea   :  { %v1599_v33 = vpop.f32.mrf.mxu1 }
 0x5eb   :  { %v2309_v8 = vmul.f32 0.01, %v1585_v2  ;;  %vm2117_vm4 = vcmp.ge.f32.partialorder %v1585_v2, 0.0 }
 0x5ec   :  { %v1886_v47 = vpop.f32.mrf.mxu2 }
 0x5ed   :  { %v1887_v5 = vadd.f32 %v1886_v47, %v8037_v42  ;;  %v2641_v47 = vmul.f32 %v8042_v15, %v8736_v22 }
 0x5ef   :  { %vm2116_vm3 = vcmp.ge.f32.partialorder %v1887_v5, 0.0  ;;  %v2308_v4 = vmul.f32 0.01, %v1887_v5  ;;  %v2862_v28 = vadd.f32 %v2641_v47, %v2640_v0  ;;  %v3267_v0 = vmul.f32 0.01, %v3075_v21 }
 0x5f0   :  { %3804 = vperm.xlu0 %6656, %v8738_v9  }
 0x5f1   :  { %1936 = vmatmul.f32.gmra.mxu2 %v11973_v26  ;;  %v8752_v58 = vsel %vm2116_vm3, %v1887_v5, %v2308_v4  ;;  %v1588_v5 = vadd.f32 %v8698_v53, %v8030_v30  ;;  %v8763_v26 = vsel %vm2117_vm4, %v1585_v2, %v2309_v8 }
 0x5f2   :  { %11974 = vst [vmem:[#allocation89_spill] sm:$0xff] %v8752_v58  ;;  %v2699_v10 = vmul.f32 %v8042_v15, %v8752_v58  ;;  %v11976_v58 = vld [vmem:[#allocation91_spill] sm:$0xff] }
 0x5f3   :  { %11975 = vst [vmem:[#allocation166_spill] sm:$0xff] %v8763_v26  ;;  %vm2119_vm6 = vcmp.ge.f32.partialorder %v1588_v5, 0.0 }
 0x5f4   :  { %v1889_v39 = vpop.f32.mrf.mxu2  ;;  %v2949_v31 = vadd.f32 %v2699_v10, %v2698_v11  ;;  %v2311_v10 = vmul.f32 0.01, %v1588_v5 }
 0x5f5   :  { %v1890_v22 = vadd.f32 %v1889_v39, %v8037_v42  ;;  %v3076_v39 = vadd.f32 %v8241_v40, %v8421_v14 }
 0x5f6   :  { %2950 = vadd.xlane.f32.xlu2 %v2949_v31  ;;  %2863 = vadd.xlane.f32.xlu1 %v2862_v28  ;;  %v2700_v28 = vmul.f32 %v8040_v20, %v8763_v26  ;;  %v11979_v31 = vld [vmem:[#allocation92_spill] sm:$0xff] }
 0x5f7   :  { %vm2118_vm5 = vcmp.ge.f32.partialorder %v1890_v22, 0.0  ;;  %v2310_v4 = vmul.f32 0.01, %v1890_v22  ;;  %vm3172_vm9 = vcmp.ge.f32.partialorder %v3076_v39, 0.0 }
 0x5f9   :  { %1939 = vmatmul.f32.gmra.mxu2 %v11976_v58  ;;  %v8768_v11 = vsel %vm2118_vm5, %v1890_v22, %v2310_v4  ;;  %v8775_v58 = vsel %vm2119_vm6, %v1588_v5, %v2311_v10  ;;  %v3363_v22 = vsel %vm3171_vm7, %v3075_v21, %v3267_v0  ;;  %v3268_v10 = vmul.f32 0.01, %v3076_v39  ;;  %v11981_v0 = vld [vmem:[#allocation94_spill] sm:$0xff] }
 0x5fa   :  { %11977 = vst [vmem:[#allocation91_spill] sm:$0xff] %v8768_v11  ;;  %v2701_v47 = vmul.f32 %v8042_v15, %v8768_v11  ;;  %v2702_v26 = vmul.f32 %v8040_v20, %v8775_v58  ;;  %v3078_v21 = vadd.f32 %v8241_v40, %v8656_v51 }
 0x5fb   :  { %11978 = vst [vmem:[#allocation167_spill] sm:$0xff] %v8775_v58  ;;  %v3364_v14 = vsel %vm3172_vm9, %v3076_v39, %v3268_v10  ;;  %v11985_v10 = vld [vmem:[#allocation96_spill] sm:$0xff]  ;;  %v11987_v58 = vld [vmem:[#allocation97_spill] sm:$0xff] }
 0x5fc   :  { %v1892_v53 = vpop.f32.mrf.mxu2  ;;  %v2952_v8 = vadd.f32 %v2701_v47, %v2700_v28  ;;  %v1602_v28 = vpop.f32.mrf.mxu1  ;;  %vm3174_vm10 = vcmp.ge.f32.partialorder %v3078_v21, 0.0 }
 0x5fd   :  { %v1893_v2 = vadd.f32 %v1892_v53, %v8037_v42  ;;  %v3473_v53 = vmul.f32 1.442695, %v3363_v22  ;;  %v11984_v22 = vld [vmem:[#allocation95_spill] sm:$0xff] }
 0x5fe   :  { %2953 = vadd.xlane.f32.xlu2 %v2952_v8 }
 0x5ff   :  { %vm2120_vm8 = vcmp.ge.f32.partialorder %v1893_v2, 0.0  ;;  %v2312_v60 = vmul.f32 0.01, %v1893_v2  ;;  %6687 = vpow2.f32 %v3473_v53  ;;  %v1600_v53 = vadd.f32 %v1599_v33, %v8030_v30 }
 0x601   :  { %1942 = vmatmul.f32.gmra.mxu2 %v11979_v31  ;;  %v8780_v4 = vsel %vm2120_vm8, %v1893_v2, %v2312_v60  ;;  %v3475_v2 = vmul.f32 1.442695, %v3364_v14  ;;  %v3270_v31 = vmul.f32 0.01, %v3078_v21  ;;  %v2319_v14 = vmul.f32 0.01, %v1600_v53 }
 0x602   :  { %11980 = vst [vmem:[#allocation92_spill] sm:$0xff] %v8780_v4  ;;  %v2703_v47 = vmul.f32 %v8042_v15, %v8780_v4  ;;  %vm2127_vm11 = vcmp.ge.f32.partialorder %v1600_v53, 0.0 }
 0x603   :  { %6689 = vpow2.f32 %v3475_v2  ;;  %v8809_v33 = vsel %vm2127_vm11, %v1600_v53, %v2319_v14 }
 0x604   :  { %v8786_v11 = vpop.f32.mrf.mxu2  ;;  %v2955_v5 = vadd.f32 %v2703_v47, %v2702_v26  ;;  %v1605_v60 = vpop.f32.mrf.mxu1  ;;  %v3366_v26 = vsel %vm3174_vm10, %v3078_v21, %v3270_v31  ;;  %v1603_v31 = vadd.f32 %v1602_v28, %v8030_v30  ;;  %11986 = vst [vmem:[#allocation95_spill] sm:$0xff] %v8809_v33 }
 0x605   :  { %v8793_v4 = vpop.eup %6687  ;;  %v3479_v39 = vmul.f32 1.442695, %v3366_v26  ;;  %v1606_v53 = vadd.f32 %v1605_v60, %v8030_v30 }
 0x606   :  { %2956 = vadd.xlane.f32.xlu2 %v2955_v5  ;;  %11983 = vst [vmem:[#allocation168_spill] sm:$0xff] %v8793_v4  ;;  %vm2129_vm13 = vcmp.ge.f32.partialorder %v1603_v31, 0.0 }
 0x607   :  { %6691 = vpow2.f32 %v3479_v39  ;;  %vm2131_vm15 = vcmp.ge.f32.partialorder %v1606_v53, 0.0 }
 0x609   :  { %1945 = vmatmul.f32.gmra.mxu2 %v11981_v0  ;;  %v8799_v51 = vpop.eup %6689 }
 0x60c   :  { %v8791_v8 = vpop.f32.mrf.mxu2  ;;  %v1608_v5 = vpop.f32.mrf.mxu1 }
 0x60d   :  { %11982 = vst [vmem:[#allocation94_spill] sm:$0xff] %v8791_v8  ;;  %v8805_v2 = vpop.eup %6691 }
 0x60f   :  { %3709 = vperm.xlu1 %6657, %v8793_v4   ;;  %v2321_v4 = vmul.f32 0.01, %v1603_v31 }
 0x611   :  { %1948 = vmatmul.f32.gmra.mxu2 %v11984_v22 }
 0x614   :  { %v8797_v47 = vpop.f32.mrf.mxu2  ;;  %v1611_v22 = vpop.f32.mrf.mxu1 }
 0x617   :  { %3714 = vperm.xlu1 %6657, %v8799_v51  }
 0x619   :  { %1951 = vmatmul.f32.gmra.mxu2 %v11985_v10  ;;  %v2710_v10 = vmul.f32 %v8040_v20, %v8809_v33 }
 0x61c   :  { %v1904_v0 = vpop.f32.mrf.mxu2 }
 0x61d   :  { %v1905_v21 = vadd.f32 %v1904_v0, %v8037_v42 }
 0x61f   :  { %vm2128_vm12 = vcmp.ge.f32.partialorder %v1905_v21, 0.0  ;;  %v2320_v26 = vmul.f32 0.01, %v1905_v21  ;;  %3724 = vperm.xlu1 %6657, %v8805_v2  }
 0x621   :  { %1954 = vmatmul.f32.gmra.mxu2 %v11987_v58  ;;  %v8812_v39 = vsel %vm2128_vm12, %v1905_v21, %v2320_v26  ;;  %v8820_v58 = vsel %vm2129_vm13, %v1603_v31, %v2321_v4  ;;  %v11990_v21 = vld [vmem:[#allocation98_spill] sm:$0xff]  ;;  %v1609_v4 = vadd.f32 %v1608_v5, %v8030_v30 }
 0x622   :  { %11988 = vst [vmem:[#allocation96_spill] sm:$0xff] %v8812_v39  ;;  %v2711_v0 = vmul.f32 %v8042_v15, %v8812_v39  ;;  %v2712_v39 = vmul.f32 %v8040_v20, %v8820_v58 }
 0x623   :  { %11989 = vst [vmem:[#allocation97_spill] sm:$0xff] %v8820_v58  ;;  %vm2133_vm2 = vcmp.ge.f32.partialorder %v1609_v4, 0.0 }
 0x624   :  { %v1907_v28 = vpop.f32.mrf.mxu2  ;;  %v2967_v8 = vadd.f32 %v2711_v0, %v2710_v10  ;;  %v2323_v10 = vmul.f32 0.01, %v1606_v53  ;;  %v1614_v0 = vpop.f32.mrf.mxu1 }
 0x625   :  { %v1908_v46 = vadd.f32 %v1907_v28, %v8037_v42 }
 0x626   :  { %2968 = vadd.xlane.f32.xlu2 %v2967_v8 }
 0x627   :  { %vm2130_vm14 = vcmp.ge.f32.partialorder %v1908_v46, 0.0  ;;  %v2322_v14 = vmul.f32 0.01, %v1908_v46 }
 0x629   :  { %1957 = vmatmul.f32.gmra.mxu2 %v11990_v21  ;;  %v8823_v26 = vsel %vm2130_vm14, %v1908_v46, %v2322_v14  ;;  %v8831_v46 = vsel %vm2131_vm15, %v1606_v53, %v2323_v10  ;;  %v11993_v14 = vld [vmem:[#allocation99_spill] sm:$0xff]  ;;  %v1612_v53 = vadd.f32 %v1611_v22, %v8030_v30 }
 0x62a   :  { %11991 = vst [vmem:[#allocation98_spill] sm:$0xff] %v8823_v26  ;;  %v2713_v33 = vmul.f32 %v8042_v15, %v8823_v26  ;;  %v2714_v58 = vmul.f32 %v8040_v20, %v8831_v46 }
 0x62b   :  { %11992 = vst [vmem:[#allocation169_spill] sm:$0xff] %v8831_v46  ;;  %vm2135_vm4 = vcmp.ge.f32.partialorder %v1612_v53, 0.0 }
 0x62c   :  { %v1910_v8 = vpop.f32.mrf.mxu2  ;;  %v2970_v28 = vadd.f32 %v2713_v33, %v2712_v39  ;;  %v2325_v33 = vmul.f32 0.01, %v1609_v4 }
 0x62d   :  { %v1911_v60 = vadd.f32 %v1910_v8, %v8037_v42 }
 0x62e   :  { %2971 = vadd.xlane.f32.xlu2 %v2970_v28  ;;  %v1617_v28 = vpop.f32.mrf.mxu1 }
 0x62f   :  { %vm2132_vm1 = vcmp.ge.f32.partialorder %v1911_v60, 0.0  ;;  %v2324_v31 = vmul.f32 0.01, %v1911_v60 }
 0x631   :  { %1960 = vmatmul.f32.gmra.mxu2 %v11993_v14  ;;  %v8834_v21 = vsel %vm2132_vm1, %v1911_v60, %v2324_v31  ;;  %v8842_v60 = vsel %vm2133_vm2, %v1609_v4, %v2325_v33  ;;  %v1812_v31 = vadd.f32 %v8451_v23, %v8037_v42  ;;  %v11996_v14 = vld [vmem:[#allocation48_spill] sm:$0xff] }
 0x632   :  { %11994 = vst [vmem:[#allocation99_spill] sm:$0xff] %v8834_v21  ;;  %v2715_v26 = vmul.f32 %v8042_v15, %v8834_v21  ;;  %v1507_v46 = vadd.f32 %v11996_v14, %v8030_v30  ;;  %v11997_v21 = vld [vmem:[#allocation100_spill] sm:$0xff] }
 0x633   :  { %11995 = vst [vmem:[#allocation170_spill] sm:$0xff] %v8842_v60  ;;  %v2258_v4 = vmul.f32 0.01, %v1812_v31  ;;  %vm2066_vm5 = vcmp.ge.f32.partialorder %v1812_v31, 0.0 }
 0x634   :  { %v1913_v39 = vpop.f32.mrf.mxu2  ;;  %v2973_v8 = vadd.f32 %v2715_v26, %v2714_v58  ;;  %v2716_v58 = vmul.f32 %v8040_v20, %v8842_v60  ;;  %v2327_v26 = vmul.f32 0.01, %v1612_v53  ;;  %vm2065_vm6 = vcmp.ge.f32.partialorder %v1507_v46, 0.0 }
 0x635   :  { %v1914_v5 = vadd.f32 %v1913_v39, %v8037_v42  ;;  %v1815_v60 = vadd.f32 %v8462_v37, %v8037_v42 }
 0x636   :  { %2974 = vadd.xlane.f32.xlu2 %v2973_v8  ;;  %v2257_v8 = vmul.f32 0.01, %v1507_v46  ;;  %v8859_v14 = vsel %vm2135_vm4, %v1612_v53, %v2327_v26 }
 0x637   :  { %vm2134_vm3 = vcmp.ge.f32.partialorder %v1914_v5, 0.0  ;;  %v2326_v10 = vmul.f32 0.01, %v1914_v5  ;;  %11999 = vst [vmem:[#allocation100_spill] sm:$0xff] %v8859_v14  ;;  %v2718_v50 = vmul.f32 %v8040_v20, %v8859_v14  ;;  %vm2068_vm9 = vcmp.ge.f32.partialorder %v1815_v60, 0.0 }
 0x638   :  { %v1818_v14 = vadd.f32 %v8471_v48, %v8037_v42 }
 0x639   :  { %1963 = vmatmul.f32.gmra.mxu2 %v11997_v21  ;;  %v8849_v9 = vsel %vm2134_vm3, %v1914_v5, %v2326_v10  ;;  %v1615_v21 = vadd.f32 %v1614_v0, %v8030_v30  ;;  %v8857_v5 = vpop.f32.mrf.mxu1  ;;  %v12004_v0 = vld [vmem:[#allocation50_spill] sm:$0xff] }
 0x63a   :  { %11998 = vst [vmem:[#allocation48_spill] sm:$0xff] %v8849_v9  ;;  %v2717_v22 = vmul.f32 %v8042_v15, %v8849_v9  ;;  %v8863_v9 = vsel %vm2066_vm5, %v1812_v31, %v2258_v4  ;;  %v2260_v31 = vmul.f32 0.01, %v1815_v60  ;;  %vm2070_vm13 = vcmp.ge.f32.partialorder %v1818_v14, 0.0 }
 0x63b   :  { %12000 = vst [vmem:[#allocation171_spill] sm:$0xff] %v8863_v9  ;;  %v2329_v44 = vmul.f32 0.01, %v1615_v21  ;;  %vm2137_vm8 = vcmp.ge.f32.partialorder %v1615_v21, 0.0  ;;  %v2649_v37 = vmul.f32 %v8042_v15, %v8863_v9 }
 0x63c   :  { %v1916_v33 = vpop.f32.mrf.mxu2  ;;  %v2976_v39 = vadd.f32 %v2717_v22, %v2716_v58  ;;  %v12001_v58 = vld [vmem:[#allocation101_spill] sm:$0xff] }
 0x63d   :  { %v1917_v23 = vadd.f32 %v1916_v33, %v8037_v42  ;;  %v8868_v33 = vsel %vm2065_vm6, %v1507_v46, %v2257_v8 }
 0x63e   :  { %2977 = vadd.xlane.f32.xlu2 %v2976_v39  ;;  %12003 = vst [vmem:[#allocation172_spill] sm:$0xff] %v8868_v33  ;;  %v1510_v39 = vadd.f32 %v12004_v0, %v8030_v30  ;;  %v2648_v8 = vmul.f32 %v8040_v20, %v8868_v33 }
 0x63f   :  { %vm2136_vm7 = vcmp.ge.f32.partialorder %v1917_v23, 0.0  ;;  %v2328_v10 = vmul.f32 0.01, %v1917_v23 }
 0x640   :  { %vm2067_vm10 = vcmp.ge.f32.partialorder %v1510_v39, 0.0 }
 0x641   :  { %1966 = vmatmul.f32.gmra.mxu2 %v12001_v58  ;;  %v8866_v22 = vsel %vm2136_vm7, %v1917_v23, %v2328_v10  ;;  %v2259_v23 = vmul.f32 0.01, %v1510_v39  ;;  %v8881_v10 = vsel %vm2137_vm8, %v1615_v21, %v2329_v44  ;;  %v1618_v58 = vadd.f32 %v1617_v28, %v8030_v30  ;;  %v12009_v44 = vld [vmem:[#allocation52_spill] sm:$0xff] }
 0x642   :  { %12002 = vst [vmem:[#allocation101_spill] sm:$0xff] %v8866_v22  ;;  %v2719_v53 = vmul.f32 %v8042_v15, %v8866_v22  ;;  %v2874_v22 = vadd.f32 %v2649_v37, %v2648_v8  ;;  %v1513_v21 = vadd.f32 %v12009_v44, %v8030_v30  ;;  %v2720_v28 = vmul.f32 %v8040_v20, %v8881_v10 }
 0x643   :  { %12005 = vst [vmem:[#allocation50_spill] sm:$0xff] %v8881_v10  ;;  %v8900_v48 = vsel %vm2067_vm10, %v1510_v39, %v2259_v23  ;;  %vm2139_vm12 = vcmp.ge.f32.partialorder %v1618_v58, 0.0 }
 0x644   :  { %v1919_v26 = vpop.f32.mrf.mxu2  ;;  %v2979_v4 = vadd.f32 %v2719_v53, %v2718_v50  ;;  %v8886_v50 = vsel %vm2068_vm9, %v1815_v60, %v2260_v31  ;;  %v8888_v53 = vpop.f32.mrf.mxu1  ;;  %12010 = vst [vmem:[#allocation52_spill] sm:$0xff] %v8900_v48  ;;  %v2331_v60 = vmul.f32 0.01, %v1618_v58  ;;  %vm2069_vm14 = vcmp.ge.f32.partialorder %v1513_v21, 0.0 }
 0x645   :  { %v1920_v46 = vadd.f32 %v1919_v26, %v8037_v42  ;;  %12006 = vst [vmem:[#allocation173_spill] sm:$0xff] %v8886_v50  ;;  %v12007_v26 = vld [vmem:[#allocation102_spill] sm:$0xff]  ;;  %v2651_v31 = vmul.f32 %v8042_v15, %v8886_v50  ;;  %v2261_v44 = vmul.f32 0.01, %v1513_v21 }
 0x646   :  { %2980 = vadd.xlane.f32.xlu2 %v2979_v4  ;;  %v8904_v4 = vpop.permute.xlu1 %3664  ;;  %v8909_v10 = vsel %vm2139_vm12, %v1618_v58, %v2331_v60 }
 0x647   :  { %vm2138_vm11 = vcmp.ge.f32.partialorder %v1920_v46, 0.0  ;;  %v2330_v0 = vmul.f32 0.01, %v1920_v46  ;;  %12011 = vst [vmem:[#allocation174_spill] sm:$0xff] %v8904_v4  ;;  %v8924_v60 = vsel %vm2069_vm14, %v1513_v21, %v2261_v44  ;;  %v1824_v44 = vadd.f32 %v8479_v41, %v8037_v42 }
 0x648   :  { %12012 = vst [vmem:[#allocation175_spill] sm:$0xff] %v8909_v10 }
 0x649   :  { %1969 = vmatmul.f32.gmra.mxu2 %v12007_v26  ;;  %2875 = vadd.xlane.f32.xlu1 %v2874_v22  ;;  %v8891_v33 = vsel %vm2138_vm11, %v1920_v46, %v2330_v0  ;;  %v2262_v22 = vmul.f32 0.01, %v1818_v14  ;;  %v2650_v26 = vmul.f32 %v8040_v20, %v8900_v48  ;;  %vm2074_vm3 = vcmp.ge.f32.partialorder %v1824_v44, 0.0 }
 0x64a   :  { %12008 = vst [vmem:[#allocation102_spill] sm:$0xff] %v8891_v33  ;;  %v2721_v37 = vmul.f32 %v8042_v15, %v8891_v33  ;;  %v1821_v33 = vadd.f32 %v8474_v55, %v8037_v42 }
 0x64b   :  { %v2877_v23 = vadd.f32 %v2651_v31, %v2650_v26  ;;  %v8913_v4 = vsel %vm2070_vm13, %v1818_v14, %v2262_v22  ;;  %v2652_v26 = vmul.f32 %v8040_v20, %v8924_v60 }
 0x64c   :  { %v1922_v46 = vpop.f32.mrf.mxu2  ;;  %v2982_v8 = vadd.f32 %v2721_v37, %v2720_v28  ;;  %12013 = vst [vmem:[#allocation176_spill] sm:$0xff] %v8913_v4  ;;  %v12014_v28 = vld [vmem:[#allocation103_spill] sm:$0xff]  ;;  %v8926_v31 = vpop.f32.mrf.mxu1  ;;  %v2653_v55 = vmul.f32 %v8042_v15, %v8913_v4  ;;  %v2264_v14 = vmul.f32 0.01, %v1821_v33  ;;  %vm2072_vm1 = vcmp.ge.f32.partialorder %v1821_v33, 0.0 }
 0x64d   :  { %v1923_v0 = vadd.f32 %v1922_v46, %v8037_v42  ;;  %v12016_v46 = vld [vmem:[#allocation54_spill] sm:$0xff] }
 0x64e   :  { %2983 = vadd.xlane.f32.xlu2 %v2982_v8  ;;  %v1516_v48 = vadd.f32 %v12016_v46, %v8030_v30  ;;  %v2722_v8 = vmul.f32 %v8040_v20, %v8909_v10  ;;  %12017 = vst [vmem:[#allocation54_spill] sm:$0xff] %v8924_v60  ;;  %v2880_v21 = vadd.f32 %v2653_v55, %v2652_v26  ;;  %v8940_v46 = vpop.xlane.xlu2 %2908  ;;  %v12020_v10 = vld [vmem:[#allocation104_spill] sm:$0xff] }
 0x64f   :  { %vm2140_vm15 = vcmp.ge.f32.partialorder %v1923_v0, 0.0  ;;  %v2332_v39 = vmul.f32 0.01, %v1923_v0 }
 0x650   :  { %vm2071_vm2 = vcmp.ge.f32.partialorder %v1516_v48, 0.0 }
 0x651   :  { %1972 = vmatmul.f32.gmra.mxu2 %v12014_v28  ;;  %2878 = vadd.xlane.f32.xlu1 %v2877_v23  ;;  %v8916_v37 = vsel %vm2140_vm15, %v1923_v0, %v2332_v39  ;;  %v2263_v39 = vmul.f32 0.01, %v1516_v48  ;;  %v8934_v23 = vpop.permute.xlu1 %3679  ;;  %v8938_v28 = vsel %vm2072_vm1, %v1821_v33, %v2264_v14  ;;  %v1827_v14 = vadd.f32 %v8489_v29, %v8037_v42 }
 0x652   :  { %12015 = vst [vmem:[#allocation103_spill] sm:$0xff] %v8916_v37  ;;  %v2723_v58 = vmul.f32 %v8042_v15, %v8916_v37 }
 0x653   :  { %12018 = vst [vmem:[#allocation177_spill] sm:$0xff] %v8934_v23  ;;  %v8945_v60 = vsel %vm2071_vm2, %v1516_v48, %v2263_v39  ;;  %v2266_v23 = vmul.f32 0.01, %v1824_v44  ;;  %vm2076_vm5 = vcmp.ge.f32.partialorder %v1827_v14, 0.0 }
 0x654   :  { %v8930_v22 = vpop.f32.mrf.mxu2  ;;  %v2985_v0 = vadd.f32 %v2723_v58, %v2722_v8  ;;  %12019 = vst [vmem:[#allocation178_spill] sm:$0xff] %v8938_v28  ;;  %v12021_v8 = vld [vmem:[#allocation57_spill] sm:$0xff]  ;;  %v1629_v26 = vpop.f32.mrf.mxu1  ;;  %v2654_v41 = vmul.f32 %v8040_v20, %v8945_v60 }
 0x655   :  { %v1519_v58 = vadd.f32 %v12021_v8, %v8030_v30  ;;  %12022 = vst [vmem:[#allocation104_spill] sm:$0xff] %v8945_v60  ;;  %v8957_v48 = vsel %vm2074_vm3, %v1824_v44, %v2266_v23  ;;  %v12026_v8 = vld [vmem:[#allocation105_spill] sm:$0xff] }
 0x656   :  { %2986 = vadd.xlane.f32.xlu2 %v2985_v0  ;;  %v2655_v0 = vmul.f32 %v8042_v15, %v8938_v28  ;;  %12024 = vst [vmem:[#allocation179_spill] sm:$0xff] %v8957_v48  ;;  %v8959_v39 = vpop.xlane.xlu2 %2917  ;;  %v12027_v28 = vld [vmem:[#allocation59_spill] sm:$0xff] }
 0x657   :  { %v2265_v33 = vmul.f32 0.01, %v1519_v58  ;;  %vm2073_vm4 = vcmp.ge.f32.partialorder %v1519_v58, 0.0  ;;  %12025 = vst [vmem:[#allocation180_spill] sm:$0xff] %v8959_v39  ;;  %v1522_v37 = vadd.f32 %v12027_v28, %v8030_v30  ;;  %v1830_v28 = vadd.f32 %v8494_v59, %v8037_v42 }
 0x659   :  { %1975 = vmatmul.f32.gmra.mxu2 %v12020_v10  ;;  %2881 = vadd.xlane.f32.xlu1 %v2880_v21  ;;  %v2883_v10 = vadd.f32 %v2655_v0, %v2654_v41  ;;  %v8955_v21 = vpop.permute.xlu1 %3684  ;;  %v8964_v4 = vsel %vm2073_vm4, %v1519_v58, %v2265_v33  ;;  %v2657_v0 = vmul.f32 %v8042_v15, %v8957_v48  ;;  %v2268_v41 = vmul.f32 0.01, %v1827_v14  ;;  %v12031_v48 = vld [vmem:[#allocation106_spill] sm:$0xff] }
 0x65a   :  { %12023 = vst [vmem:[#allocation57_spill] sm:$0xff] %v8955_v21  ;;  %v2656_v29 = vmul.f32 %v8040_v20, %v8964_v4  ;;  %v2267_v23 = vmul.f32 0.01, %v1522_v37  ;;  %vm2075_vm6 = vcmp.ge.f32.partialorder %v1522_v37, 0.0  ;;  %vm2078_vm8 = vcmp.ge.f32.partialorder %v1830_v28, 0.0 }
 0x65b   :  { %12028 = vst [vmem:[#allocation105_spill] sm:$0xff] %v8964_v4  ;;  %v8979_v33 = vsel %vm2076_vm5, %v1827_v14, %v2268_v41  ;;  %v12032_v4 = vld [vmem:[#allocation61_spill] sm:$0xff] }
 0x65c   :  { %v8949_v55 = vpop.f32.mrf.mxu2  ;;  %v8972_v44 = vpop.f32.mrf.mxu1  ;;  %12030 = vst [vmem:[#allocation181_spill] sm:$0xff] %v8979_v33  ;;  %v1525_v50 = vadd.f32 %v12032_v4, %v8030_v30  ;;  %v8986_v9 = vsel %vm2075_vm6, %v1522_v37, %v2267_v23  ;;  %v1833_v4 = vadd.f32 %v8500_v52, %v8037_v42 }
 0x65d   :  { %12033 = vst [vmem:[#allocation106_spill] sm:$0xff] %v8986_v9  ;;  %v2658_v41 = vmul.f32 %v8040_v20, %v8986_v9  ;;  %v12038_v9 = vld [vmem:[#allocation63_spill] sm:$0xff] }
 0x65e   :  { %v8981_v21 = vpop.xlane.xlu2 %2926  ;;  %vm2077_vm9 = vcmp.ge.f32.partialorder %v1525_v50, 0.0  ;;  %v1528_v49 = vadd.f32 %v12038_v9, %v8030_v30  ;;  %vm2080_vm11 = vcmp.ge.f32.partialorder %v1833_v4, 0.0 }
 0x660   :  { %vm2079_vm12 = vcmp.ge.f32.partialorder %v1528_v49, 0.0 }
 0x661   :  { %1978 = vmatmul.f32.gmra.mxu2 %v12026_v8  ;;  %2884 = vadd.xlane.f32.xlu1 %v2883_v10  ;;  %v2886_v10 = vadd.f32 %v2657_v0, %v2656_v29  ;;  %v1630_v8 = vadd.f32 %v1629_v26, %v8030_v30  ;;  %v8977_v58 = vpop.xlane.xlu1 %2854  ;;  %v2659_v26 = vmul.f32 %v8042_v15, %v8979_v33  ;;  %v2270_v29 = vmul.f32 0.01, %v1830_v28 }
 0x662   :  { %12029 = vst [vmem:[#allocation59_spill] sm:$0xff] %v8977_v58 }
 0x663   :  { %v2339_v0 = vmul.f32 0.01, %v1630_v8  ;;  %vm2147_vm7 = vcmp.ge.f32.partialorder %v1630_v8, 0.0  ;;  %v8999_v33 = vsel %vm2078_vm8, %v1830_v28, %v2270_v29  ;;  %v2272_v29 = vmul.f32 0.01, %v1833_v4 }
 0x664   :  { %v8968_v60 = vpop.f32.mrf.mxu2  ;;  %12036 = vst [vmem:[#allocation183_spill] sm:$0xff] %v8999_v33  ;;  %v9001_v39 = vpop.f32.mrf.mxu1 }
 0x665   :  { %v8997_v58 = vsel %vm2147_vm7, %v1630_v8, %v2339_v0  ;;  %v2661_v0 = vmul.f32 %v8042_v15, %v8999_v33 }
 0x666   :  { %12035 = vst [vmem:[#allocation182_spill] sm:$0xff] %v8997_v58  ;;  %v9010_v52 = vpop.xlane.xlu2 %2929  ;;  %v2730_v8 = vmul.f32 %v8040_v20, %v8997_v58  ;;  %v12043_v58 = vld [vmem:[#allocation68_spill] sm:$0xff] }
 0x669   :  { %1981 = vmatmul.f32.gmra.mxu2 %v12031_v48  ;;  %2887 = vadd.xlane.f32.xlu1 %v2886_v10  ;;  %v2269_v48 = vmul.f32 0.01, %v1525_v50  ;;  %v2889_v10 = vadd.f32 %v2659_v26, %v2658_v41  ;;  %v8995_v37 = vpop.permute.xlu1 %3694 }
 0x66a   :  { %12034 = vst [vmem:[#allocation61_spill] sm:$0xff] %v8995_v37  ;;  %v1851_v37 = vadd.f32 %v8556_v43, %v8037_v42 }
 0x66b   :  { %v9008_v26 = vsel %vm2077_vm9, %v1525_v50, %v2269_v48 }
 0x66c   :  { %v1934_v59 = vpop.f32.mrf.mxu2  ;;  %12040 = vst [vmem:[#allocation63_spill] sm:$0xff] %v9008_v26  ;;  %v2660_v50 = vmul.f32 %v8040_v20, %v9008_v26  ;;  %v1638_v26 = vpop.f32.mrf.mxu1  ;;  %vm2092_vm5 = vcmp.ge.f32.partialorder %v1851_v37, 0.0 }
 0x66d   :  { %v1935_v14 = vadd.f32 %v1934_v59, %v8037_v42  ;;  %v12037_v59 = vld [vmem:[#allocation107_spill] sm:$0xff] }
 0x66e   :  { %v2892_v48 = vadd.f32 %v2661_v0, %v2660_v50 }
 0x66f   :  { %vm2148_vm10 = vcmp.ge.f32.partialorder %v1935_v14, 0.0  ;;  %v2340_v23 = vmul.f32 0.01, %v1935_v14 }
 0x671   :  { %1984 = vmatmul.f32.gmra.mxu2 %v12037_v59  ;;  %2890 = vadd.xlane.f32.xlu1 %v2889_v10  ;;  %v9006_v12 = vsel %vm2148_vm10, %v1935_v14, %v2340_v23  ;;  %v2271_v14 = vmul.f32 0.01, %v1528_v49  ;;  %v1839_v10 = vadd.f32 %v8520_v6, %v8037_v42  ;;  %v9024_v23 = vpop.xlane.xlu1 %2857  ;;  %v9026_v59 = vsel %vm2080_vm11, %v1833_v4, %v2272_v29  ;;  %v9037_v6 = vpop.xlane.xlu2 %2932 }
 0x672   :  { %12039 = vst [vmem:[#allocation107_spill] sm:$0xff] %v9006_v12  ;;  %v2731_v28 = vmul.f32 %v8042_v15, %v9006_v12  ;;  %v1639_v29 = vadd.f32 %v1638_v26, %v8030_v30 }
 0x673   :  { %12041 = vst [vmem:[#allocation184_spill] sm:$0xff] %v9024_v23  ;;  %v2276_v0 = vmul.f32 0.01, %v1839_v10  ;;  %vm2084_vm13 = vcmp.ge.f32.partialorder %v1839_v10, 0.0 }
 0x674   :  { %v9018_v41 = vpop.f32.mrf.mxu2  ;;  %v2997_v9 = vadd.f32 %v2731_v28, %v2730_v8  ;;  %12042 = vst [vmem:[#allocation185_spill] sm:$0xff] %v9026_v59  ;;  %v1534_v8 = vadd.f32 %v12043_v58, %v8030_v30  ;;  %v9031_v28 = vsel %vm2079_vm12, %v1528_v49, %v2271_v14  ;;  %v1848_v49 = vadd.f32 %v8545_v24, %v8037_v42 }
 0x675   :  { %12044 = vst [vmem:[#allocation68_spill] sm:$0xff] %v9031_v28  ;;  %v2662_v4 = vmul.f32 %v8040_v20, %v9031_v28  ;;  %v2345_v12 = vmul.f32 0.01, %v1639_v29  ;;  %vm2153_vm15 = vcmp.ge.f32.partialorder %v1639_v29, 0.0 }
 0x676   :  { %2998 = vadd.xlane.f32.xlu2 %v2997_v9  ;;  %v2663_v9 = vmul.f32 %v8042_v15, %v9026_v59  ;;  %vm2083_vm14 = vcmp.ge.f32.partialorder %v1534_v8, 0.0  ;;  %v12047_v59 = vld [vmem:[#allocation75_spill] sm:$0xff]  ;;  %vm2090_vm1 = vcmp.ge.f32.partialorder %v1848_v49, 0.0 }
 0x677   :  { %v1543_v23 = vadd.f32 %v12047_v59, %v8030_v30  ;;  %v1642_v59 = vadd.f32 %v7979_v1, %v8030_v30 }
 0x678   :  { %v2895_v58 = vadd.f32 %v2663_v9, %v2662_v4  ;;  %v2282_v9 = vmul.f32 0.01, %v1848_v49 }
 0x679   :  { %1987 = vmatmul.f32.gmra.mxu2 %v7968_v35  ;;  %2893 = vadd.xlane.f32.xlu1 %v2892_v48  ;;  %v2275_v35 = vmul.f32 0.01, %v1534_v8  ;;  %v9044_v14 = vpop.permute.xlu1 %3699  ;;  %v9046_v48 = vsel %vm2084_vm13, %v1839_v10, %v2276_v0  ;;  %vm2089_vm2 = vcmp.ge.f32.partialorder %v1543_v23, 0.0  ;;  %v9058_v0 = vsel %vm2153_vm15, %v1639_v29, %v2345_v12  ;;  %v12054_v29 = vld [vmem:[#allocation77_spill] sm:$0xff] }
 0x67a   :  { %12045 = vst [vmem:[#allocation186_spill] sm:$0xff] %v9044_v14  ;;  %v2667_v26 = vmul.f32 %v8042_v15, %v9046_v48  ;;  %v1546_v1 = vadd.f32 %v12054_v29, %v8030_v30  ;;  %vm2155_vm4 = vcmp.ge.f32.partialorder %v1642_v59, 0.0 }
 0x67b   :  { %12046 = vst [vmem:[#allocation187_spill] sm:$0xff] %v9046_v48  ;;  %v9051_v28 = vsel %vm2083_vm14, %v1534_v8, %v2275_v35  ;;  %v9062_v8 = vpop.xlane.xlu2 %2935 }
 0x67c   :  { %v9035_v50 = vpop.f32.mrf.mxu2  ;;  %12048 = vst [vmem:[#allocation75_spill] sm:$0xff] %v9051_v28  ;;  %v2666_v10 = vmul.f32 %v8040_v20, %v9051_v28  ;;  %v2736_v28 = vmul.f32 %v8040_v20, %v9058_v0  ;;  %vm2091_vm6 = vcmp.ge.f32.partialorder %v1546_v1, 0.0  ;;  %v2283_v29 = vmul.f32 0.01, %v1546_v1 }
 0x67d   :  { %12049 = vst [vmem:[#allocation188_spill] sm:$0xff] %v9058_v0 }
 0x67e   :  { %12050 = vst [vmem:[#allocation189_spill] sm:$0xff] %v9062_v8 }
 0x681   :  { %1990 = vmatmul.f32.gmra.mxu2 %v7972_v7  ;;  %2896 = vadd.xlane.f32.xlu1 %v2895_v58  ;;  %v2281_v7 = vmul.f32 0.01, %v1543_v23  ;;  %v2901_v58 = vadd.f32 %v2667_v26, %v2666_v10  ;;  %v9066_v48 = vpop.xlane.xlu1 %2860  ;;  %v2347_v10 = vmul.f32 0.01, %v1642_v59 }
 0x682   :  { %12051 = vst [vmem:[#allocation190_spill] sm:$0xff] %v9066_v48  ;;  %v1860_v48 = vadd.f32 %v8604_v3, %v8037_v42  ;;  %v9106_v3 = vsel %vm2091_vm6, %v1546_v1, %v2283_v29 }
 0x683   :  { %v9080_v43 = vsel %vm2089_vm2, %v1543_v23, %v2281_v7  ;;  %v9087_v0 = vsel %vm2155_vm4, %v1642_v59, %v2347_v10 }
 0x684   :  { %v1943_v4 = vpop.f32.mrf.mxu2  ;;  %12055 = vst [vmem:[#allocation77_spill] sm:$0xff] %v9080_v43  ;;  %v2290_v10 = vmul.f32 0.01, %v1860_v48  ;;  %vm2098_vm8 = vcmp.ge.f32.partialorder %v1860_v48, 0.0 }
 0x685   :  { %v1944_v24 = vadd.f32 %v1943_v4, %v8037_v42  ;;  %v9068_v4 = vsel %vm2090_vm1, %v1848_v49, %v2282_v9  ;;  %12056 = vst [vmem:[#allocation193_spill] sm:$0xff] %v9087_v0 }
 0x686   :  { %12052 = vst [vmem:[#allocation191_spill] sm:$0xff] %v9068_v4  ;;  %v2673_v49 = vmul.f32 %v8042_v15, %v9068_v4  ;;  %v9118_v29 = vsel %vm2098_vm8, %v1860_v48, %v2290_v10 }
 0x687   :  { %vm2154_vm3 = vcmp.ge.f32.partialorder %v1944_v24, 0.0  ;;  %v2346_v35 = vmul.f32 0.01, %v1944_v24  ;;  %12064 = vst [vmem:[#allocation199_spill] sm:$0xff] %v9118_v29 }
 0x689   :  { %1993 = vmatmul.f32.gmra.mxu2 %v7976_v27  ;;  %2902 = vadd.xlane.f32.xlu1 %v2901_v58  ;;  %v9071_v12 = vsel %vm2154_vm3, %v1944_v24, %v2346_v35  ;;  %v2284_v27 = vmul.f32 0.01, %v1851_v37  ;;  %v2672_v58 = vmul.f32 %v8040_v20, %v9080_v43  ;;  %v12061_v43 = vld [vmem:[#allocation84_spill] sm:$0xff] }
 0x68a   :  { %12053 = vst [vmem:[#allocation192_spill] sm:$0xff] %v9071_v12  ;;  %v2737_v26 = vmul.f32 %v8042_v15, %v9071_v12  ;;  %v9091_v12 = vpop.permute.xlu1 %3704 }
 0x68b   :  { %v2910_v7 = vadd.f32 %v2673_v49, %v2672_v58  ;;  %12057 = vst [vmem:[#allocation194_spill] sm:$0xff] %v9091_v12  ;;  %v2738_v49 = vmul.f32 %v8040_v20, %v9087_v0 }
 0x68c   :  { %v1946_v9 = vpop.f32.mrf.mxu2  ;;  %v3006_v24 = vadd.f32 %v2737_v26, %v2736_v28  ;;  %v9093_v28 = vsel %vm2092_vm5, %v1851_v37, %v2284_v27  ;;  %v9095_v26 = vpop.xlane.xlu2 %2938  ;;  %12062 = vst [vmem:[#allocation84_spill] sm:$0xff] %v9106_v3 }
 0x68d   :  { %v1947_v35 = vadd.f32 %v1946_v9, %v8037_v42  ;;  %12058 = vst [vmem:[#allocation195_spill] sm:$0xff] %v9093_v28  ;;  %v2675_v37 = vmul.f32 %v8042_v15, %v9093_v28 }
 0x68e   :  { %3007 = vadd.xlane.f32.xlu2 %v3006_v24  ;;  %12059 = vst [vmem:[#allocation196_spill] sm:$0xff] %v9095_v26  ;;  %v1555_v24 = vadd.f32 %v12061_v43, %v8030_v30  ;;  %v2674_v43 = vmul.f32 %v8040_v20, %v9106_v3  ;;  %v1896_v26 = vadd.f32 %v8786_v11, %v8037_v42 }
 0x68f   :  { %vm2156_vm7 = vcmp.ge.f32.partialorder %v1947_v35, 0.0  ;;  %v2348_v23 = vmul.f32 0.01, %v1947_v35 }
 0x690   :  { %v2289_v58 = vmul.f32 0.01, %v1555_v24  ;;  %vm2097_vm9 = vcmp.ge.f32.partialorder %v1555_v24, 0.0  ;;  %vm2122_vm2 = vcmp.ge.f32.partialorder %v1896_v26, 0.0 }
 0x691   :  { %2911 = vadd.xlane.f32.xlu1 %v2910_v7  ;;  %v9097_v9 = vsel %vm2156_vm7, %v1947_v35, %v2348_v23  ;;  %v1648_v23 = vadd.f32 %v7985_v45, %v8030_v30  ;;  %v2913_v7 = vadd.f32 %v2675_v37, %v2674_v43 }
 0x692   :  { %12060 = vst [vmem:[#allocation197_spill] sm:$0xff] %v9097_v9  ;;  %v2739_v59 = vmul.f32 %v8042_v15, %v9097_v9  ;;  %v9116_v1 = vpop.xlane.xlu1 %2863  ;;  %v9122_v9 = vsel %vm2097_vm9, %v1555_v24, %v2289_v58 }
 0x693   :  { %12063 = vst [vmem:[#allocation198_spill] sm:$0xff] %v9116_v1  ;;  %vm2159_vm10 = vcmp.ge.f32.partialorder %v1648_v23, 0.0  ;;  %v2680_v45 = vmul.f32 %v8040_v20, %v9122_v9 }
 0x694   :  { %v9110_v27 = vpop.f32.mrf.mxu2  ;;  %v3009_v35 = vadd.f32 %v2739_v59, %v2738_v49  ;;  %v9120_v0 = vpop.xlane.xlu2 %2950  ;;  %12066 = vst [vmem:[#allocation201_spill] sm:$0xff] %v9122_v9  ;;  %v2351_v49 = vmul.f32 0.01, %v1648_v23  ;;  %v2681_v59 = vmul.f32 %v8042_v15, %v9118_v29 }
 0x695   :  { %12065 = vst [vmem:[#allocation200_spill] sm:$0xff] %v9120_v0 }
 0x696   :  { %3010 = vadd.xlane.f32.xlu2 %v3009_v35  ;;  %v2922_v48 = vadd.f32 %v2681_v59, %v2680_v45  ;;  %v9129_v10 = vsel %vm2159_vm10, %v1648_v23, %v2351_v49 }
 0x697   :  { %12067 = vst [vmem:[#allocation202_spill] sm:$0xff] %v9129_v10  ;;  %v2742_v58 = vmul.f32 %v8040_v20, %v9129_v10 }
 0x699   :  { %2914 = vadd.xlane.f32.xlu1 %v2913_v7 }
 0x69a   :  { %v9131_v43 = vpop.permute.xlu1 %3709 }
 0x69b   :  { %12068 = vst [vmem:[#allocation203_spill] sm:$0xff] %v9131_v43 }
 0x69c   :  { %v1952_v35 = vpop.f32.mrf.mxu2 }
 0x69d   :  { %v1953_v3 = vadd.f32 %v1952_v35, %v8037_v42  ;;  %v9139_v35 = vpop.xlane.xlu2 %2953 }
 0x69e   :  { %12070 = vst [vmem:[#allocation205_spill] sm:$0xff] %v9139_v35 }
 0x69f   :  { %vm2160_vm11 = vcmp.ge.f32.partialorder %v1953_v3, 0.0  ;;  %v2352_v37 = vmul.f32 0.01, %v1953_v3 }
 0x6a1   :  { %2923 = vadd.xlane.f32.xlu1 %v2922_v48  ;;  %v9133_v24 = vsel %vm2160_vm11, %v1953_v3, %v2352_v37 }
 0x6a2   :  { %12069 = vst [vmem:[#allocation204_spill] sm:$0xff] %v9133_v24  ;;  %v2743_v7 = vmul.f32 %v8042_v15, %v9133_v24  ;;  %v9143_v59 = vpop.permute.xlu1 %3714 }
 0x6a3   :  { %12071 = vst [vmem:[#allocation206_spill] sm:$0xff] %v9143_v59 }
 0x6a4   :  { %v9141_v1 = vpop.f32.mrf.mxu2  ;;  %v3015_v29 = vadd.f32 %v2743_v7, %v2742_v58 }
 0x6a5   :  { %v9147_v49 = vpop.xlane.xlu2 %2956 }
 0x6a6   :  { %3016 = vadd.xlane.f32.xlu2 %v3015_v29  ;;  %12073 = vst [vmem:[#allocation208_spill] sm:$0xff] %v9147_v49 }
 0x6aa   :  { %v9149_v3 = vpop.permute.xlu1 %3724 }
 0x6ab   :  { %12074 = vst [vmem:[#allocation209_spill] sm:$0xff] %v9149_v3 }
 0x6ac   :  { %v9145_v23 = vpop.f32.mrf.mxu2 }
 0x6ad   :  { %12072 = vst [vmem:[#allocation207_spill] sm:$0xff] %v9145_v23  ;;  %v9153_v37 = vpop.xlane.xlu2 %2968 }
 0x6b4   :  { %v9151_v45 = vpop.f32.mrf.mxu2 }
 0x6b5   :  { %12075 = vst [vmem:[#allocation210_spill] sm:$0xff] %v9151_v45  ;;  %v9158_v35 = vpop.xlane.xlu2 %2971 }
 0x6bc   :  { %v9155_v48 = vpop.f32.mrf.mxu2  ;;  %v2876_v10 = vpop.xlane.xlu1 %2875 }
 0x6bd   :  { %12076 = vst [vmem:[#allocation211_spill] sm:$0xff] %v9155_v48  ;;  %v3095_v9 = vadd.f32 %v8241_v40, %v2876_v10  ;;  %v9163_v59 = vpop.xlane.xlu2 %2974 }
 0x6bf   :  { %vm3191_vm12 = vcmp.ge.f32.partialorder %v3095_v9, 0.0  ;;  %v3287_v29 = vmul.f32 0.01, %v3095_v9 }
 0x6c1   :  { %v3383_v58 = vsel %vm3191_vm12, %v3095_v9, %v3287_v29  ;;  %v9172_v29 = vpop.permute.xlu0 %3719 }
 0x6c2   :  { %v3513_v7 = vmul.f32 1.442695, %v3383_v58  ;;  %12078 = vst [vmem:[#allocation213_spill] sm:$0xff] %v9172_v29 }
 0x6c4   :  { %v9160_v24 = vpop.f32.mrf.mxu2  ;;  %v2879_v49 = vpop.xlane.xlu1 %2878  ;;  %6693 = vpow2.f32 %v3513_v7 }
 0x6c5   :  { %12077 = vst [vmem:[#allocation212_spill] sm:$0xff] %v9160_v24  ;;  %v3096_v3 = vadd.f32 %v8241_v40, %v2879_v49  ;;  %v1669_v49 = vadd.f32 %v8006_v54, %v8030_v30  ;;  %v1591_v54 = vadd.f32 %v8719_v62, %v8030_v30  ;;  %v2314_v24 = vmul.f32 0.01, %v1896_v26 }
 0x6c7   :  { %vm3192_vm13 = vcmp.ge.f32.partialorder %v3096_v3, 0.0  ;;  %v3288_v12 = vmul.f32 0.01, %v3096_v3  ;;  %v2365_v58 = vmul.f32 0.01, %v1669_v49  ;;  %vm2173_vm14 = vcmp.ge.f32.partialorder %v1669_v49, 0.0 }
 0x6c8   :  { %vm2121_vm3 = vcmp.ge.f32.partialorder %v1591_v54, 0.0 }
 0x6c9   :  { %v3384_v28 = vsel %vm3192_vm13, %v3096_v3, %v3288_v12  ;;  %v9178_v12 = vpop.xlane.xlu2 %2977  ;;  %v9181_v0 = vpop.permute.xlu0 %3734  ;;  %v9189_v8 = vsel %vm2173_vm14, %v1669_v49, %v2365_v58  ;;  %v1803_v58 = vadd.f32 %v8417_v34, %v8037_v42 }
 0x6ca   :  { %v9165_v43 = vpop.eup %6693  ;;  %v3515_v10 = vmul.f32 1.442695, %v3384_v28  ;;  %12080 = vst [vmem:[#allocation215_spill] sm:$0xff] %v9181_v0  ;;  %v2756_v11 = vmul.f32 %v8040_v20, %v9189_v8 }
 0x6cb   :  { %3809 = vperm.xlu0 %6656, %v9165_v43   ;;  %12081 = vst [vmem:[#allocation216_spill] sm:$0xff] %v9189_v8  ;;  %v2252_v34 = vmul.f32 0.01, %v1803_v58  ;;  %vm2060_vm5 = vcmp.ge.f32.partialorder %v1803_v58, 0.0 }
 0x6cc   :  { %v9168_v4 = vpop.f32.mrf.mxu2  ;;  %v9170_v9 = vpop.xlane.xlu1 %2881  ;;  %6695 = vpow2.f32 %v3515_v10 }
 0x6d1   :  { %v9199_v45 = vpop.xlane.xlu2 %2980 }
 0x6d2   :  { %v9176_v7 = vpop.eup %6695  ;;  %12083 = vst [vmem:[#allocation218_spill] sm:$0xff] %v9199_v45 }
 0x6d3   :  { %12079 = vst [vmem:[#allocation214_spill] sm:$0xff] %v9176_v7  ;;  %3814 = vperm.xlu1 %6657, %v9176_v7  }
 0x6d4   :  { %v1973_v28 = vpop.f32.mrf.mxu2  ;;  %v2885_v3 = vpop.xlane.xlu1 %2884 }
 0x6d5   :  { %v1974_v10 = vadd.f32 %v1973_v28, %v8037_v42  ;;  %v3098_v29 = vadd.f32 %v8241_v40, %v2885_v3  ;;  %v2313_v3 = vmul.f32 0.01, %v1591_v54 }
 0x6d7   :  { %vm2174_vm15 = vcmp.ge.f32.partialorder %v1974_v10, 0.0  ;;  %v2366_v14 = vmul.f32 0.01, %v1974_v10  ;;  %vm3194_vm1 = vcmp.ge.f32.partialorder %v3098_v29, 0.0  ;;  %v3290_v33 = vmul.f32 0.01, %v3098_v29 }
 0x6d9   :  { %v3386_v7 = vsel %vm3194_vm1, %v3098_v29, %v3290_v33  ;;  %v9191_v48 = vsel %vm2174_vm15, %v1974_v10, %v2366_v14  ;;  %v9202_v14 = vsel %vm2122_vm2, %v1896_v26, %v2314_v24  ;;  %v12085_v29 = vld [vmem:[#allocation41_spill] sm:$0xff]  ;;  %v9206_v10 = vpop.permute.xlu0 %3739 }
 0x6da   :  { %12082 = vst [vmem:[#allocation217_spill] sm:$0xff] %v9191_v48  ;;  %v3519_v0 = vmul.f32 1.442695, %v3386_v7  ;;  %v2757_v28 = vmul.f32 %v8042_v15, %v9191_v48  ;;  %v1498_v7 = vadd.f32 %v12085_v29, %v8030_v30  ;;  %v9218_v29 = vsel %vm2060_vm5, %v1803_v58, %v2252_v34 }
 0x6db   :  { %12084 = vst [vmem:[#allocation219_spill] sm:$0xff] %v9202_v14 }
 0x6dc   :  { %6697 = vpow2.f32 %v3519_v0  ;;  %v2888_v62 = vpop.xlane.xlu1 %2887  ;;  %v3036_v49 = vadd.f32 %v2757_v28, %v2756_v11  ;;  %12086 = vst [vmem:[#allocation41_spill] sm:$0xff] %v9206_v10  ;;  %v9208_v0 = vsel %vm2121_vm3, %v1591_v54, %v2313_v3  ;;  %v2705_v11 = vmul.f32 %v8042_v15, %v9202_v14 }
 0x6dd   :  { %v3099_v33 = vadd.f32 %v8241_v40, %v2888_v62  ;;  %12087 = vst [vmem:[#allocation220_spill] sm:$0xff] %v9208_v0  ;;  %v2704_v24 = vmul.f32 %v8040_v20, %v9208_v0  ;;  %v2251_v62 = vmul.f32 0.01, %v1498_v7  ;;  %vm2059_vm6 = vcmp.ge.f32.partialorder %v1498_v7, 0.0 }
 0x6de   :  { %3037 = vadd.xlane.f32.xlu2 %v3036_v49  ;;  %12089 = vst [vmem:[#allocation222_spill] sm:$0xff] %v9218_v29  ;;  %v2643_v14 = vmul.f32 %v8042_v15, %v9218_v29 }
 0x6df   :  { %vm3195_vm4 = vcmp.ge.f32.partialorder %v3099_v33, 0.0  ;;  %v3291_v8 = vmul.f32 0.01, %v3099_v33  ;;  %v2958_v54 = vadd.f32 %v2705_v11, %v2704_v24 }
 0x6e1   :  { %v3387_v28 = vsel %vm3195_vm4, %v3099_v33, %v3291_v8  ;;  %v9220_v8 = vpop.xlane.xlu2 %2983  ;;  %v9226_v0 = vpop.permute.xlu0 %3744 }
 0x6e2   :  { %v9212_v48 = vpop.eup %6697  ;;  %v3521_v26 = vmul.f32 1.442695, %v3387_v28  ;;  %v9222_v28 = vsel %vm2059_vm6, %v1498_v7, %v2251_v62  ;;  %12091 = vst [vmem:[#allocation224_spill] sm:$0xff] %v9226_v0  ;;  %v1878_v7 = vadd.f32 %v8709_v63, %v8037_v42  ;;  %v1573_v62 = vadd.f32 %v8597_v56, %v8030_v30 }
 0x6e3   :  { %12088 = vst [vmem:[#allocation221_spill] sm:$0xff] %v9212_v48  ;;  %3824 = vperm.xlu0 %6656, %v9212_v48   ;;  %v2642_v58 = vmul.f32 %v8040_v20, %v9222_v28  ;;  %v1881_v56 = vadd.f32 %v8721_v18, %v8037_v42 }
 0x6e4   :  { %6699 = vpow2.f32 %v3521_v26  ;;  %v2891_v49 = vpop.xlane.xlu1 %2890  ;;  %12090 = vst [vmem:[#allocation223_spill] sm:$0xff] %v9222_v28  ;;  %vm2110_vm8 = vcmp.ge.f32.partialorder %v1878_v7, 0.0  ;;  %vm2109_vm9 = vcmp.ge.f32.partialorder %v1573_v62, 0.0 }
 0x6e5   :  { %v3100_v3 = vadd.f32 %v8241_v40, %v2891_v49  ;;  %v2865_v24 = vadd.f32 %v2643_v14, %v2642_v58  ;;  %v3061_v49 = vadd.f32 %v8241_v40, %v8243_v16  ;;  %v1576_v16 = vadd.f32 %v8608_v32, %v8030_v30 }
 0x6e6   :  { %2959 = vadd.xlane.f32.xlu2 %v2958_v54  ;;  %v2304_v0 = vmul.f32 0.01, %v1881_v56  ;;  %vm2112_vm11 = vcmp.ge.f32.partialorder %v1881_v56, 0.0 }
 0x6e7   :  { %vm3196_vm7 = vcmp.ge.f32.partialorder %v3100_v3, 0.0  ;;  %v3292_v33 = vmul.f32 0.01, %v3100_v3  ;;  %v3253_v63 = vmul.f32 0.01, %v3061_v49  ;;  %vm3157_vm10 = vcmp.ge.f32.partialorder %v3061_v49, 0.0 }
 0x6e8   :  { %v2303_v48 = vmul.f32 0.01, %v1576_v16  ;;  %vm2111_vm12 = vcmp.ge.f32.partialorder %v1576_v16, 0.0 }
 0x6e9   :  { %v3388_v10 = vsel %vm3196_vm7, %v3100_v3, %v3292_v33  ;;  %v9241_v54 = vpop.xlane.xlu0 %2899  ;;  %v9243_v3 = vpop.xlane.xlu2 %2986  ;;  %v3349_v29 = vsel %vm3157_vm10, %v3061_v49, %v3253_v63 }
 0x6ea   :  { %v9228_v26 = vpop.eup %6699  ;;  %v3523_v11 = vmul.f32 1.442695, %v3388_v10  ;;  %v2302_v10 = vmul.f32 0.01, %v1878_v7  ;;  %12094 = vst [vmem:[#allocation227_spill] sm:$0xff] %v9243_v3  ;;  %v9268_v49 = vsel %vm2111_vm12, %v1576_v16, %v2303_v48  ;;  %v1884_v16 = vadd.f32 %v8724_v19, %v8037_v42 }
 0x6eb   :  { %12092 = vst [vmem:[#allocation225_spill] sm:$0xff] %v9228_v26  ;;  %3829 = vperm.xlu0 %6656, %v9228_v26   ;;  %v3445_v18 = vmul.f32 1.442695, %v3349_v29  ;;  %v2694_v29 = vmul.f32 %v8040_v20, %v9268_v49 }
 0x6ec   :  { %6701 = vpow2.f32 %v3523_v11  ;;  %v9233_v34 = vpop.xlane.xlu1 %2893  ;;  %v2301_v11 = vmul.f32 0.01, %v1573_v62  ;;  %v9250_v58 = vsel %vm2110_vm8, %v1878_v7, %v2302_v10  ;;  %12100 = vst [vmem:[#allocation233_spill] sm:$0xff] %v9268_v49  ;;  %vm2114_vm1 = vcmp.ge.f32.partialorder %v1884_v16, 0.0 }
 0x6ed   :  { %12093 = vst [vmem:[#allocation226_spill] sm:$0xff] %v9233_v34  ;;  %v2693_v28 = vmul.f32 %v8042_v15, %v9250_v58  ;;  %6703 = vpow2.f32 %v3445_v18 }
 0x6ee   :  { %2866 = vadd.xlane.f32.xlu2 %v2865_v24  ;;  %12096 = vst [vmem:[#allocation229_spill] sm:$0xff] %v9250_v58  ;;  %v9254_v24 = vsel %vm2109_vm9, %v1573_v62, %v2301_v11  ;;  %v9266_v62 = vsel %vm2112_vm11, %v1881_v56, %v2304_v0 }
 0x6ef   :  { %12097 = vst [vmem:[#allocation230_spill] sm:$0xff] %v9254_v24  ;;  %v2692_v26 = vmul.f32 %v8040_v20, %v9254_v24  ;;  %v2695_v11 = vmul.f32 %v8042_v15, %v9266_v62 }
 0x6f0   :  { %12099 = vst [vmem:[#allocation232_spill] sm:$0xff] %v9266_v62 }
 0x6f1   :  { %v9262_v7 = vpop.xlane.xlu0 %2905  ;;  %v2940_v32 = vadd.f32 %v2693_v28, %v2692_v26  ;;  %v2943_v45 = vadd.f32 %v2695_v11, %v2694_v29 }
 0x6f2   :  { %v9245_v33 = vpop.eup %6701 }
 0x6f3   :  { %12095 = vst [vmem:[#allocation228_spill] sm:$0xff] %v9245_v33  ;;  %3834 = vperm.xlu0 %6656, %v9245_v33   ;;  %v9258_v33 = vpop.xlane.xlu2 %2998  ;;  %v9280_v28 = vpop.eup %6703 }
 0x6f4   :  { %v2897_v14 = vpop.xlane.xlu1 %2896  ;;  %12098 = vst [vmem:[#allocation231_spill] sm:$0xff] %v9258_v33 }
 0x6f5   :  { %v3102_v48 = vadd.f32 %v8241_v40, %v2897_v14  ;;  %v2306_v14 = vmul.f32 0.01, %v1884_v16 }
 0x6f7   :  { %v3294_v62 = vmul.f32 0.01, %v3102_v48  ;;  %vm3198_vm14 = vcmp.ge.f32.partialorder %v3102_v48, 0.0  ;;  %v9291_v23 = vsel %vm2114_vm1, %v1884_v16, %v2306_v14 }
 0x6f8   :  { %12103 = vst [vmem:[#allocation236_spill] sm:$0xff] %v9291_v23 }
 0x6f9   :  { %v9276_v24 = vpop.permute.xlu0 %3799 }
 0x6fa   :  { %12102 = vst [vmem:[#allocation235_spill] sm:$0xff] %v9276_v24 }
 0x6fc   :  { %v9264_v10 = vpop.xlane.xlu1 %2902 }
 0x6fd   :  { %2941 = vadd.xlane.f32.xlu1 %v2940_v32 }
 0x701   :  { %v9272_v63 = vpop.xlane.xlu2 %3007  ;;  %v2921_v56 = vpop.xlane.xlu0 %2920 }
 0x702   :  { %12101 = vst [vmem:[#allocation234_spill] sm:$0xff] %v9272_v63  ;;  %v3110_v29 = vadd.f32 %v8241_v40, %v2921_v56  ;;  %v3390_v63 = vsel %vm3198_vm14, %v3102_v48, %v3294_v62 }
 0x704   :  { %v9278_v58 = vpop.xlane.xlu1 %2911  ;;  %v3302_v19 = vmul.f32 0.01, %v3110_v29  ;;  %vm3206_vm3 = vcmp.ge.f32.partialorder %v3110_v29, 0.0 }
 0x705   :  { %2944 = vadd.xlane.f32.xlu1 %v2943_v45  ;;  %v1579_v45 = vadd.f32 %v8636_v36, %v8030_v30 }
 0x706   :  { %3639 = vperm.xlu2 %6658, %v9280_v28   ;;  %v3398_v36 = vsel %vm3206_vm3, %v3110_v29, %v3302_v19  ;;  %v3104_v19 = vadd.f32 %v8241_v40, %v9264_v10 }
 0x707   :  { %v2305_v33 = vmul.f32 0.01, %v1579_v45  ;;  %vm2113_vm2 = vcmp.ge.f32.partialorder %v1579_v45, 0.0  ;;  %v3543_v62 = vmul.f32 1.442695, %v3398_v36 }
 0x708   :  { %vm3200_vm6 = vcmp.ge.f32.partialorder %v3104_v19, 0.0 }
 0x709   :  { %v3011_v0 = vpop.xlane.xlu2 %3010  ;;  %v9293_v56 = vsel %vm2113_vm2, %v1579_v45, %v2305_v33 }
 0x70a   :  { %v3140_v26 = vadd.f32 %v8241_v40, %v3011_v0  ;;  %12104 = vst [vmem:[#allocation237_spill] sm:$0xff] %v9293_v56 }
 0x70c   :  { %v3332_v18 = vmul.f32 0.01, %v3140_v26  ;;  %v2915_v32 = vpop.xlane.xlu1 %2914  ;;  %vm3236_vm13 = vcmp.ge.f32.partialorder %v3140_v26, 0.0 }
 0x70d   :  { %v3108_v11 = vadd.f32 %v8241_v40, %v2915_v32  ;;  %v3527_v32 = vmul.f32 1.442695, %v3390_v63  ;;  %v3103_v63 = vadd.f32 %v8241_v40, %v9241_v54 }
 0x70e   :  { %v3428_v49 = vsel %vm3236_vm13, %v3140_v26, %v3332_v18  ;;  %v2697_v26 = vmul.f32 %v8042_v15, %v9291_v23  ;;  %v2696_v18 = vmul.f32 %v8040_v20, %v9293_v56 }
 0x70f   :  { %vm3204_vm15 = vcmp.ge.f32.partialorder %v3108_v11, 0.0  ;;  %v3300_v0 = vmul.f32 0.01, %v3108_v11  ;;  %v3603_v34 = vmul.f32 1.442695, %v3428_v49  ;;  %vm3199_vm5 = vcmp.ge.f32.partialorder %v3103_v63, 0.0 }
 0x710   :  { %v3295_v14 = vmul.f32 0.01, %v3103_v63 }
 0x711   :  { %v3396_v24 = vsel %vm3204_vm15, %v3108_v11, %v3300_v0 }
 0x712   :  { %v3539_v3 = vmul.f32 1.442695, %v3396_v24 }
 0x714   :  { %6705 = vpow2.f32 %v3539_v3  ;;  %v2946_v3 = vadd.f32 %v2697_v26, %v2696_v18  ;;  %v3105_v18 = vadd.f32 %v8241_v40, %v9262_v7 }
 0x715   :  { %6707 = vpow2.f32 %v3603_v34 }
 0x716   :  { %6709 = vpow2.f32 %v3527_v32  ;;  %vm3201_vm7 = vcmp.ge.f32.partialorder %v3105_v18, 0.0 }
 0x717   :  { %6711 = vpow2.f32 %v3543_v62  ;;  %v3296_v62 = vmul.f32 0.01, %v3104_v19 }
 0x719   :  { %v3017_v48 = vpop.xlane.xlu2 %3016 }
 0x71a   :  { %v3142_v49 = vadd.f32 %v8241_v40, %v3017_v48  ;;  %v6706_v24 = vpop.eup %6705 }
 0x71b   :  { %v4324_v33 = vadd.f32 %v6706_v24, %v8799_v51  ;;  %v9303_v16 = vpop.eup %6707  ;;  %v3391_v51 = vsel %vm3199_vm5, %v3103_v63, %v3295_v14  ;;  %v3107_v14 = vadd.f32 %v8241_v40, %v9278_v58 }
 0x71c   :  { %vm3238_vm4 = vcmp.ge.f32.partialorder %v3142_v49, 0.0  ;;  %v3334_v34 = vmul.f32 0.01, %v3142_v49  ;;  %12105 = vst [vmem:[#allocation238_spill] sm:$0xff] %v9303_v16  ;;  %v9305_v11 = vpop.eup %6709  ;;  %v3529_v32 = vmul.f32 1.442695, %v3391_v51 }
 0x71d   :  { %2947 = vadd.xlane.f32.xlu0 %v2946_v3  ;;  %v9308_v29 = vadd.f32 %v9303_v16, %v4324_v33  ;;  %v9311_v54 = vpop.eup %6711  ;;  %v3297_v3 = vmul.f32 0.01, %v3105_v18  ;;  %v3299_v51 = vmul.f32 0.01, %v3107_v14  ;;  %vm3203_vm9 = vcmp.ge.f32.partialorder %v3107_v14, 0.0 }
 0x71e   :  { %v3430_v45 = vsel %vm3238_vm4, %v3142_v49, %v3334_v34  ;;  %3844 = vperm.xlu1 %6657, %v9305_v11   ;;  %v4326_v36 = vadd.f32 %v9311_v54, %v8805_v2  ;;  %v3392_v49 = vsel %vm3200_vm6, %v3104_v19, %v3296_v62  ;;  %v3106_v2 = vadd.f32 %v8241_v40, %v8940_v46 }
 0x71f   :  { %12106 = vst [vmem:[#allocation239_spill] sm:$0xff] %v9308_v29  ;;  %v3607_v0 = vmul.f32 1.442695, %v3430_v45  ;;  %v3531_v63 = vmul.f32 1.442695, %v3392_v49  ;;  %v1902_v46 = vadd.f32 %v8797_v47, %v8037_v42  ;;  %v3395_v62 = vsel %vm3203_vm9, %v3107_v14, %v3299_v51 }
 0x720   :  { %v3298_v34 = vmul.f32 0.01, %v3106_v2  ;;  %vm3202_vm8 = vcmp.ge.f32.partialorder %v3106_v2, 0.0  ;;  %v3537_v49 = vmul.f32 1.442695, %v3395_v62  ;;  %v1926_v47 = vadd.f32 %v8930_v22, %v8037_v42 }
 0x721   :  { %6713 = vpow2.f32 %v3607_v0  ;;  %vm2126_vm10 = vcmp.ge.f32.partialorder %v1902_v46, 0.0 }
 0x722   :  { %6715 = vpow2.f32 %v3529_v32  ;;  %v3394_v7 = vsel %vm3202_vm8, %v3106_v2, %v3298_v34  ;;  %v1597_v32 = vadd.f32 %v8740_v13, %v8030_v30  ;;  %v1621_v13 = vadd.f32 %v8857_v5, %v8030_v30 }
 0x723   :  { %6717 = vpow2.f32 %v3531_v63  ;;  %v3535_v0 = vmul.f32 1.442695, %v3394_v7  ;;  %v2334_v7 = vmul.f32 0.01, %v1926_v47  ;;  %vm2142_vm13 = vcmp.ge.f32.partialorder %v1926_v47, 0.0 }
 0x724   :  { %v2317_v58 = vmul.f32 0.01, %v1597_v32  ;;  %vm2125_vm11 = vcmp.ge.f32.partialorder %v1597_v32, 0.0  ;;  %v2333_v14 = vmul.f32 0.01, %v1621_v13  ;;  %vm2141_vm14 = vcmp.ge.f32.partialorder %v1621_v13, 0.0 }
 0x726   :  { %3874 = vperm.xlu1 %6657, %v6706_v24   ;;  %v3393_v24 = vsel %vm3201_vm7, %v3105_v18, %v3297_v3  ;;  %v2318_v18 = vmul.f32 0.01, %v1902_v46  ;;  %v9369_v62 = vsel %vm2141_vm14, %v1621_v13, %v2333_v14  ;;  %v1938_v13 = vadd.f32 %v9018_v41, %v8037_v42 }
 0x727   :  { %v9317_v26 = vpop.eup %6713  ;;  %v3533_v33 = vmul.f32 1.442695, %v3393_v24  ;;  %12108 = vst [vmem:[#allocation241_spill] sm:$0xff] %v9369_v62 }
 0x728   :  { %12107 = vst [vmem:[#allocation240_spill] sm:$0xff] %v9317_v26  ;;  %v9320_v48 = vadd.f32 %v9317_v26, %v4326_v36  ;;  %v9324_v10 = vpop.eup %6715  ;;  %v3112_v36 = vadd.f32 %v8241_v40, %v8981_v21  ;;  %v9347_v2 = vsel %vm2126_vm10, %v1902_v46, %v2318_v18  ;;  %v9352_v21 = vsel %vm2125_vm11, %v1597_v32, %v2317_v58 }
 0x729   :  { %v9329_v45 = vpop.eup %6717  ;;  %6719 = vpow2.f32 %v3533_v33  ;;  %v3113_v33 = vadd.f32 %v8241_v40, %v9010_v52  ;;  %v2709_v34 = vmul.f32 %v8042_v15, %v9347_v2  ;;  %v2708_v22 = vmul.f32 %v8040_v20, %v9352_v21 }
 0x72a   :  { %6721 = vpow2.f32 %v3535_v0  ;;  %v3304_v63 = vmul.f32 0.01, %v3112_v36  ;;  %vm3208_vm12 = vcmp.ge.f32.partialorder %v3112_v36, 0.0  ;;  %v1932_v32 = vadd.f32 %v8968_v60, %v8037_v42 }
 0x72b   :  { %6723 = vpow2.f32 %v3537_v49  ;;  %v3305_v51 = vmul.f32 0.01, %v3113_v33  ;;  %v2964_v5 = vadd.f32 %v2709_v34, %v2708_v22  ;;  %vm3209_vm15 = vcmp.ge.f32.partialorder %v3113_v33, 0.0 }
 0x72c   :  { %v3400_v24 = vsel %vm3208_vm12, %v3112_v36, %v3304_v63  ;;  %v9364_v52 = vsel %vm2142_vm13, %v1926_v47, %v2334_v7  ;;  %v1627_v36 = vadd.f32 %v8926_v31, %v8030_v30  ;;  %v3114_v58 = vadd.f32 %v8241_v40, %v9037_v6 }
 0x72d   :  { %v3547_v0 = vmul.f32 1.442695, %v3400_v24  ;;  %v3401_v18 = vsel %vm3209_vm15, %v3113_v33, %v3305_v51  ;;  %v2725_v49 = vmul.f32 %v8042_v15, %v9364_v52  ;;  %v2338_v63 = vmul.f32 0.01, %v1932_v32 }
 0x72e   :  { %vm2146_vm1 = vcmp.ge.f32.partialorder %v1932_v32, 0.0  ;;  %v2724_v60 = vmul.f32 %v8040_v20, %v9369_v62  ;;  %v2337_v47 = vmul.f32 0.01, %v1627_v36  ;;  %v3549_v24 = vmul.f32 1.442695, %v3401_v18  ;;  %v4858_v62 = vld [vmem:[#allocation2 + $0x180] sm:$0xff] }
 0x72f   :  { %v9334_v19 = vpop.eup %6719  ;;  %6725 = vpow2.f32 %v3547_v0  ;;  %vm2145_vm2 = vcmp.ge.f32.partialorder %v1627_v36, 0.0  ;;  %v3306_v34 = vmul.f32 0.01, %v3114_v58  ;;  %vm3210_vm3 = vcmp.ge.f32.partialorder %v3114_v58, 0.0 }
 0x730   :  { %v9343_v3 = vpop.eup %6721  ;;  %v2988_v31 = vadd.f32 %v2725_v49, %v2724_v60  ;;  %v9381_v6 = vsel %vm2146_vm1, %v1932_v32, %v2338_v63  ;;  %v1633_v33 = vadd.f32 %v8972_v44, %v8030_v30  ;;  %6727 = vpow2.f32 %v3549_v24 }
 0x731   :  { %3849 = vperm.xlu0 %6656, %v9324_v10   ;;  %v9360_v46 = vpop.eup %6723  ;;  %v9386_v22 = vsel %vm2145_vm2, %v1627_v36, %v2337_v47  ;;  %v3402_v14 = vsel %vm3210_vm3, %v3114_v58, %v3306_v34  ;;  %v2729_v0 = vmul.f32 %v8042_v15, %v9381_v6  ;;  %v2342_v51 = vmul.f32 0.01, %v1938_v13 }
 0x732   :  { %12110 = vst [vmem:[#allocation243_spill] sm:$0xff] %v9386_v22  ;;  %vm2150_vm4 = vcmp.ge.f32.partialorder %v1938_v13, 0.0  ;;  %v2728_v41 = vmul.f32 %v8040_v20, %v9386_v22  ;;  %v3551_v32 = vmul.f32 1.442695, %v3402_v14  ;;  %vm2149_vm5 = vcmp.ge.f32.partialorder %v1633_v33, 0.0 }
 0x733   :  { %v1950_v44 = vadd.f32 %v9110_v27, %v8037_v42  ;;  %v9396_v36 = vsel %vm2150_vm4, %v1938_v13, %v2342_v51  ;;  %v1645_v58 = vadd.f32 %v7982_v57, %v8030_v30  ;;  %v1929_v51 = vadd.f32 %v8949_v55, %v8037_v42 }
 0x734   :  { %v2994_v18 = vadd.f32 %v2729_v0, %v2728_v41  ;;  %12112 = vst [vmem:[#allocation245_spill] sm:$0xff] %v9396_v36  ;;  %6729 = vpow2.f32 %v3551_v32  ;;  %v2733_v60 = vmul.f32 %v8042_v15, %v9396_v36  ;;  %v1624_v41 = vadd.f32 %v8888_v53, %v8030_v30 }
 0x735   :  { %v9377_v7 = vpop.eup %6725  ;;  %v2350_v47 = vmul.f32 0.01, %v1950_v44  ;;  %vm2158_vm6 = vcmp.ge.f32.partialorder %v1950_v44, 0.0  ;;  %v2349_v27 = vmul.f32 0.01, %v1645_v58  ;;  %vm2157_vm7 = vcmp.ge.f32.partialorder %v1645_v58, 0.0 }
 0x736   :  { %12109 = vst [vmem:[#allocation242_spill] sm:$0xff] %v9377_v7  ;;  %v9392_v49 = vpop.eup %6727  ;;  %vm2144_vm8 = vcmp.ge.f32.partialorder %v1929_v51, 0.0  ;;  %v2335_v32 = vmul.f32 0.01, %v1624_v41  ;;  %vm2143_vm9 = vcmp.ge.f32.partialorder %v1624_v41, 0.0 }
 0x737   :  { %12111 = vst [vmem:[#allocation244_spill] sm:$0xff] %v9392_v49  ;;  %v9409_v13 = vsel %vm2158_vm6, %v1950_v44, %v2350_v47  ;;  %v9412_v57 = vsel %vm2157_vm7, %v1645_v58, %v2349_v27  ;;  %v1636_v58 = vadd.f32 %v9001_v39, %v8030_v30  ;;  %v9434_v27 = vpop.xlane.xlu1 %2923  ;;  %v1651_v39 = vadd.f32 %v7988_v17, %v8030_v30 }
 0x738   :  { %12115 = vst [vmem:[#allocation248_spill] sm:$0xff] %v9409_v13  ;;  %v2740_v14 = vmul.f32 %v8040_v20, %v9412_v57 }
 0x739   :  { %3854 = vperm.xlu0 %6656, %v9329_v45   ;;  %12116 = vst [vmem:[#allocation249_spill] sm:$0xff] %v9412_v57  ;;  %vm2151_vm11 = vcmp.ge.f32.partialorder %v1636_v58, 0.0  ;;  %vm2161_vm13 = vcmp.ge.f32.partialorder %v1651_v39, 0.0 }
 0x741   :  { %3859 = vperm.xlu0 %6656, %v9334_v19  }
 0x749   :  { %3864 = vperm.xlu0 %6656, %v9343_v3  }
 0x750   :  { %2965 = vadd.xlane.f32.xlu1 %v2964_v5  ;;  %v2341_v5 = vmul.f32 0.01, %v1633_v33 }
 0x751   :  { %3869 = vperm.xlu0 %6656, %v9360_v46  }
 0x752   :  { %v9401_v63 = vsel %vm2149_vm5, %v1633_v33, %v2341_v5  ;;  %v2741_v33 = vmul.f32 %v8042_v15, %v9409_v13  ;;  %v2336_v5 = vmul.f32 0.01, %v1929_v51 }
 0x753   :  { %12113 = vst [vmem:[#allocation246_spill] sm:$0xff] %v9401_v63  ;;  %v2732_v24 = vmul.f32 %v8040_v20, %v9401_v63 }
 0x754   :  { %v3012_v0 = vadd.f32 %v2741_v33, %v2740_v14  ;;  %v9424_v44 = vsel %vm2144_vm8, %v1929_v51, %v2336_v5  ;;  %v3097_v14 = vadd.f32 %v8241_v40, %v9170_v9 }
 0x755   :  { %v3000_v34 = vadd.f32 %v2733_v60, %v2732_v24  ;;  %12117 = vst [vmem:[#allocation250_spill] sm:$0xff] %v9424_v44  ;;  %v9428_v60 = vsel %vm2143_vm9, %v1624_v41, %v2335_v32  ;;  %v2727_v55 = vmul.f32 %v8042_v15, %v9424_v44  ;;  %v2343_v24 = vmul.f32 0.01, %v1636_v58 }
 0x756   :  { %12118 = vst [vmem:[#allocation251_spill] sm:$0xff] %v9428_v60  ;;  %v2726_v53 = vmul.f32 %v8040_v20, %v9428_v60  ;;  %v3065_v41 = vadd.f32 %v8241_v40, %v8286_v25  ;;  %v2353_v32 = vmul.f32 0.01, %v1651_v39  ;;  %vm3193_vm14 = vcmp.ge.f32.partialorder %v3097_v14, 0.0 }
 0x758   :  { %2989 = vadd.xlane.f32.xlu1 %v2988_v31  ;;  %v9407_v31 = vpop.eup %6729  ;;  %v3257_v9 = vmul.f32 0.01, %v3065_v41  ;;  %vm3161_vm15 = vcmp.ge.f32.partialorder %v3065_v41, 0.0 }
 0x759   :  { %3894 = vperm.xlu0 %6656, %v9377_v7   ;;  %12114 = vst [vmem:[#allocation247_spill] sm:$0xff] %v9407_v31 }
 0x760   :  { %2995 = vadd.xlane.f32.xlu1 %v2994_v18  ;;  %v1941_v18 = vadd.f32 %v9035_v50, %v8037_v42  ;;  %v2991_v50 = vadd.f32 %v2727_v55, %v2726_v53  ;;  %v9452_v55 = vpop.permute.xlu1 %3814  ;;  %v9458_v53 = vsel %vm2161_vm13, %v1651_v39, %v2353_v32 }
 0x761   :  { %3899 = vperm.xlu0 %6656, %v9392_v49   ;;  %12122 = vst [vmem:[#allocation255_spill] sm:$0xff] %v9458_v53 }
 0x762   :  { %v2344_v47 = vmul.f32 0.01, %v1941_v18  ;;  %vm2152_vm10 = vcmp.ge.f32.partialorder %v1941_v18, 0.0 }
 0x764   :  { %v9438_v33 = vsel %vm2152_vm10, %v1941_v18, %v2344_v47  ;;  %v3289_v18 = vmul.f32 0.01, %v3097_v14 }
 0x765   :  { %12119 = vst [vmem:[#allocation252_spill] sm:$0xff] %v9438_v33  ;;  %v2735_v51 = vmul.f32 %v8042_v15, %v9438_v33 }
 0x766   :  { %v3385_v25 = vsel %vm3193_vm14, %v3097_v14, %v3289_v18 }
 0x767   :  { %v3517_v23 = vmul.f32 1.442695, %v3385_v25 }
 0x768   :  { %3001 = vadd.xlane.f32.xlu1 %v3000_v34  ;;  %v1956_v34 = vadd.f32 %v9141_v1, %v8037_v42 }
 0x769   :  { %3904 = vperm.xlu0 %6656, %v9407_v31   ;;  %6731 = vpow2.f32 %v3517_v23 }
 0x76a   :  { %v2354_v5 = vmul.f32 0.01, %v1956_v34  ;;  %vm2162_vm12 = vcmp.ge.f32.partialorder %v1956_v34, 0.0 }
 0x76c   :  { %v9456_v47 = vsel %vm2162_vm12, %v1956_v34, %v2354_v5  ;;  %v3127_v34 = vadd.f32 %v8241_v40, %v9158_v35 }
 0x76d   :  { %12121 = vst [vmem:[#allocation254_spill] sm:$0xff] %v9456_v47 }
 0x76e   :  { %v3319_v39 = vmul.f32 0.01, %v3127_v34  ;;  %vm3223_vm2 = vcmp.ge.f32.partialorder %v3127_v34, 0.0 }
 0x76f   :  { %v9470_v18 = vpop.eup %6731 }
 0x770   :  { %3013 = vadd.xlane.f32.xlu1 %v3012_v0  ;;  %v9444_v0 = vsel %vm2151_vm11, %v1636_v58, %v2343_v24  ;;  %v3129_v58 = vadd.f32 %v8241_v40, %v9178_v12  ;;  %v2745_v24 = vmul.f32 %v8042_v15, %v9456_v47 }
 0x771   :  { %12120 = vst [vmem:[#allocation253_spill] sm:$0xff] %v9444_v0  ;;  %v2734_v1 = vmul.f32 %v8040_v20, %v9444_v0  ;;  %v6458_v0 = vld [vmem:[%s11362_s0 + $0x398] sm:$0xff] }
 0x772   :  { %v3321_v56 = vmul.f32 0.01, %v3129_v58  ;;  %vm3225_vm1 = vcmp.ge.f32.partialorder %v3129_v58, 0.0 }
 0x773   :  { %v3003_v17 = vadd.f32 %v2735_v51, %v2734_v1  ;;  %v2744_v51 = vmul.f32 %v8040_v20, %v9458_v53  ;;  %v9464_v1 = vpop.xlane.xlu1 %2941 }
 0x774   :  { %12123 = vst [vmem:[#allocation256_spill] sm:$0xff] %v9464_v1  ;;  %v3417_v14 = vsel %vm3225_vm1, %v3129_v58, %v3321_v56 }
 0x775   :  { %v3018_v5 = vadd.f32 %v2745_v24, %v2744_v51  ;;  %v3581_v32 = vmul.f32 1.442695, %v3417_v14 }
 0x77b   :  { %v9474_v25 = vpop.xlane.xlu1 %2944 }
 0x77c   :  { %12124 = vst [vmem:[#allocation257_spill] sm:$0xff] %v9474_v25 }
 0x793   :  { %2992 = vadd.xlane.f32.xlu0 %v2991_v50  ;;  %v3353_v50 = vsel %vm3161_vm15, %v3065_v41, %v3257_v9  ;;  %v9468_v41 = vpop.permute.xlu0 %3804  ;;  %v3128_v9 = vadd.f32 %v8241_v40, %v9163_v59  ;;  %v9485_v59 = vpop.permute.xlu1 %3844 }
 0x794   :  { %v3453_v12 = vmul.f32 1.442695, %v3353_v50  ;;  %12125 = vst [vmem:[#allocation258_spill] sm:$0xff] %v9485_v59 }
 0x795   :  { %v3320_v58 = vmul.f32 0.01, %v3128_v9  ;;  %vm3224_vm3 = vcmp.ge.f32.partialorder %v3128_v9, 0.0 }
 0x796   :  { %6733 = vpow2.f32 %v3453_v12 }
 0x797   :  { %6735 = vpow2.f32 %v3581_v32  ;;  %v3416_v12 = vsel %vm3224_vm3, %v3128_v9, %v3320_v58 }
 0x79b   :  { %3004 = vadd.xlane.f32.xlu0 %v3003_v17  ;;  %v3415_v17 = vsel %vm3223_vm2, %v3127_v34, %v3319_v39  ;;  %v9480_v24 = vpop.permute.xlu0 %3809  ;;  %v3579_v34 = vmul.f32 1.442695, %v3416_v12  ;;  %v3131_v39 = vadd.f32 %v8241_v40, %v9220_v8 }
 0x79c   :  { %v9476_v35 = vpop.eup %6733  ;;  %v3577_v56 = vmul.f32 1.442695, %v3415_v17  ;;  %v9491_v17 = vpop.permute.xlu1 %3874 }
 0x79d   :  { %v4313_v23 = vadd.f32 %v9476_v35, %v9470_v18  ;;  %v9482_v50 = vpop.eup %6735  ;;  %12127 = vst [vmem:[#allocation260_spill] sm:$0xff] %v9491_v17  ;;  %v3323_v9 = vmul.f32 0.01, %v3131_v39  ;;  %vm3227_vm4 = vcmp.ge.f32.partialorder %v3131_v39, 0.0 }
 0x79e   :  { %6737 = vpow2.f32 %v3577_v56  ;;  %v6457_v56 = vld [vmem:[%s11362_s0 + $0x390] sm:$0xff] }
 0x79f   :  { %v4409_v51 = vadd.f32 %v9482_v50, %v4313_v23  ;;  %6585 = vmatmul.msk.f32.vlgmr.msra.gmra.mxu3 %vm183_vm0, %v6457_v56 }
 0x7a1   :  { %6739 = vrcp.f32 %v4409_v51 }
 0x7a2   :  { %6741 = vpow2.f32 %v3579_v34  ;;  %v3419_v34 = vsel %vm3227_vm4, %v3131_v39, %v3323_v9  ;;  %v6459_v9 = vld [vmem:[%s11362_s0 + $0x3a0] sm:$0xff] }
 0x7a3   :  { %3019 = vadd.xlane.f32.xlu0 %v3018_v5  ;;  %v9487_v14 = vpop.permute.xlu0 %3824  ;;  %v3585_v53 = vmul.f32 1.442695, %v3419_v34  ;;  %v4311_v34 = vadd.f32 %v9165_v43, %v8276_v38  ;;  %v6462_v38 = vld [vmem:[%s11362_s0 + $0x3b8] sm:$0xff]  ;;  %v12130_v43 = vld [vmem:[#allocation155_spill] sm:$0xff] }
 0x7a4   :  { %v6738_v5 = vpop.eup %6737  ;;  %12126 = vst [vmem:[#allocation259_spill] sm:$0xff] %v9487_v14 }
 0x7a5   :  { %6743 = vpow2.f32 %v3585_v53 }
 0x7a7   :  { %v6740_v32 = vpop.eup %6739  ;;  %6586 = vmatmul.msk.f32.gmra.mxu3 %vm183_vm0, %v6458_v0 }
 0x7a8   :  { %v4537_v23 = vmul.f32 %v6740_v32, %v4409_v51  ;;  %v9497_v58 = vpop.eup %6741 }
 0x7aa   :  { %v4569_v8 = vsub.f32 2.0, %v4537_v23 }
 0x7ab   :  { %v9500_v12 = vpop.permute.xlu0 %3829  ;;  %v9513_v23 = vpop.eup %6743 }
 0x7ac   :  { %12128 = vst [vmem:[#allocation261_spill] sm:$0xff] %v9500_v12  ;;  %v4601_v51 = vmul.f32 %v6740_v32, %v4569_v8  ;;  %v3126_v32 = vadd.f32 %v8241_v40, %v9153_v37 }
 0x7ae   :  { %v3318_v8 = vmul.f32 0.01, %v3126_v32  ;;  %vm3222_vm6 = vcmp.ge.f32.partialorder %v3126_v32, 0.0 }
 0x7af   :  { %6587 = vmatmul.msk.f32.gmra.mxu3 %vm183_vm0, %v6459_v9 }
 0x7b3   :  { %v9507_v22 = vpop.permute.xlu0 %3834 }
 0x7b7   :  { %3969 = vperm.xlu0 %6656, %v6738_v5  }
 0x7bb   :  { %v9518_v53 = vpop.xlane.xlu0 %2947 }
 0x7bc   :  { %12129 = vst [vmem:[#allocation262_spill] sm:$0xff] %v9518_v53 }
 0x7bf   :  { %3974 = vperm.xlu0 %6656, %v9497_v58  }
 0x7c3   :  { %v2966_v57 = vpop.xlane.xlu1 %2965 }
 0x7c4   :  { %v3125_v63 = vadd.f32 %v8241_v40, %v2966_v57  ;;  %v4309_v57 = vadd.f32 %v9280_v28, %v8626_v61  ;;  %v9528_v61 = vpop.permute.xlu0 %3849  ;;  %v6461_v28 = vld [vmem:[%s11362_s0 + $0x3b0] sm:$0xff] }
 0x7c6   :  { %vm3221_vm5 = vcmp.ge.f32.partialorder %v3125_v63, 0.0  ;;  %v3317_v56 = vmul.f32 0.01, %v3125_v63 }
 0x7c7   :  { %4651 = vperm.xlu0 %6656, %v4601_v51  }
 0x7c8   :  { %v3413_v47 = vsel %vm3221_vm5, %v3125_v63, %v3317_v56  ;;  %v6460_v63 = vld [vmem:[%s11362_s0 + $0x3a8] sm:$0xff]  ;;  %v4407_v56 = vadd.f32 %v6738_v5, %v4311_v34 }
 0x7c9   :  { %v3573_v39 = vmul.f32 1.442695, %v3413_v47  ;;  %6588 = vmatmul.msk.f32.gmra.mxu3 %vm183_vm0, %v6460_v63  ;;  %v3064_v63 = vadd.f32 %v8241_v40, %v12130_v43 }
 0x7cb   :  { %6745 = vpow2.f32 %v3573_v39  ;;  %v3414_v39 = vsel %vm3222_vm6, %v3126_v32, %v3318_v8  ;;  %v1971_v32 = vadd.f32 %v9168_v4, %v8037_v42  ;;  %vm3160_vm7 = vcmp.ge.f32.partialorder %v3064_v63, 0.0  ;;  %v12134_v4 = vld [vmem:[#allocation108_spill] sm:$0xff] }
 0x7cc   :  { %v9539_v44 = vpop.permute.xlu0 %3854 }
 0x7cd   :  { %12131 = vst [vmem:[#allocation155_spill] sm:$0xff] %v9539_v44  ;;  %vm2172_vm8 = vcmp.ge.f32.partialorder %v1971_v32, 0.0 }
 0x7cf   :  { %3989 = vperm.xlu0 %6656, %v9513_v23  }
 0x7d1   :  { %v6746_v0 = vpop.eup %6745  ;;  %6589 = vmatmul.msk.f32.gmra.mxu3 %vm183_vm0, %v6461_v28  ;;  %v12132_v28 = vld [vmem:[#allocation112_spill] sm:$0xff] }
 0x7d2   :  { %3959 = vperm.xlu1 %6657, %v6746_v0   ;;  %v4405_v47 = vadd.f32 %v6746_v0, %v4309_v57  ;;  %v3575_v57 = vmul.f32 1.442695, %v3414_v39 }
 0x7d4   :  { %6747 = vrcp.f32 %v4405_v47  ;;  %v9554_v60 = vpop.permute.xlu0 %3859 }
 0x7d5   :  { %6749 = vrcp.f32 %v4407_v56  ;;  %12135 = vst [vmem:[#allocation112_spill] sm:$0xff] %v9554_v60 }
 0x7d6   :  { %6751 = vpow2.f32 %v3575_v57  ;;  %v2364_v57 = vmul.f32 0.01, %v1971_v32 }
 0x7d9   :  { %6590 = vmatmul.msk.f32.gmra.mxu3 %vm183_vm0, %v6462_v38  ;;  %v6463_v38 = vld [vmem:[%s11362_s0 + $0x3c0] sm:$0xff] }
 0x7da   :  { %v6748_v51 = vpop.eup %6747 }
 0x7db   :  { %v4533_v9 = vmul.f32 %v6748_v51, %v4405_v47  ;;  %v6750_v5 = vpop.eup %6749  ;;  %v3256_v47 = vmul.f32 0.01, %v3064_v63 }
 0x7dc   :  { %v4535_v34 = vmul.f32 %v6750_v5, %v4407_v56  ;;  %v6752_v8 = vpop.eup %6751  ;;  %v1654_v56 = vadd.f32 %v12134_v4, %v8030_v30 }
 0x7dd   :  { %v4565_v37 = vsub.f32 2.0, %v4533_v9  ;;  %v3352_v39 = vsel %vm3160_vm7, %v3064_v63, %v3256_v47  ;;  %v12133_v9 = vld [vmem:[#allocation207_spill] sm:$0xff] }
 0x7de   :  { %v3451_v63 = vmul.f32 1.442695, %v3352_v39  ;;  %vm2163_vm11 = vcmp.ge.f32.partialorder %v1654_v56, 0.0  ;;  %v6464_v39 = vld [vmem:[%s11362_s0 + $0x3c8] sm:$0xff] }
 0x7df   :  { %v4597_v0 = vmul.f32 %v6748_v51, %v4565_v37  ;;  %v1666_v51 = vadd.f32 %v12132_v28, %v8030_v30  ;;  %v1959_v37 = vadd.f32 %v12133_v9, %v8037_v42  ;;  %v9556_v9 = vsel %vm2172_vm8, %v1971_v32, %v2364_v57 }
 0x7e0   :  { %12136 = vst [vmem:[#allocation207_spill] sm:$0xff] %v9556_v9  ;;  %6753 = vpow2.f32 %v3451_v63 }
 0x7e1   :  { %4631 = vperm.xlu2 %6658, %v4597_v0   ;;  %v4567_v0 = vsub.f32 2.0, %v4535_v34  ;;  %6591 = vmatmul.msk.f32.gmra.mxu3 %vm183_vm0, %v6463_v38  ;;  %v2363_v43 = vmul.f32 0.01, %v1666_v51  ;;  %vm2171_vm9 = vcmp.ge.f32.partialorder %v1666_v51, 0.0  ;;  %v2356_v47 = vmul.f32 0.01, %v1959_v37 }
 0x7e2   :  { %vm2164_vm10 = vcmp.ge.f32.partialorder %v1959_v37, 0.0  ;;  %v2355_v34 = vmul.f32 0.01, %v1654_v56  ;;  %v2755_v38 = vmul.f32 %v8042_v15, %v9556_v9 }
 0x7e3   :  { %v4599_v28 = vmul.f32 %v6750_v5, %v4567_v0  ;;  %v9558_v59 = vsel %vm2171_vm9, %v1666_v51, %v2363_v43  ;;  %v9562_v4 = vsel %vm2164_vm10, %v1959_v37, %v2356_v47  ;;  %v12140_v51 = vld [vmem:[#allocation227_spill] sm:$0xff]  ;;  %v9576_v37 = vpop.permute.xlu0 %3864 }
 0x7e4   :  { %12137 = vst [vmem:[#allocation108_spill] sm:$0xff] %v9558_v59  ;;  %v2754_v5 = vmul.f32 %v8040_v20, %v9558_v59  ;;  %v9570_v32 = vsel %vm2163_vm11, %v1654_v56, %v2355_v34  ;;  %v3132_v57 = vadd.f32 %v8241_v40, %v12140_v51  ;;  %v2747_v43 = vmul.f32 %v8042_v15, %v9562_v4  ;;  %v2990_v34 = vpop.xlane.xlu1 %2989 }
 0x7e5   :  { %12138 = vst [vmem:[#allocation263_spill] sm:$0xff] %v9562_v4  ;;  %v2746_v47 = vmul.f32 %v8040_v20, %v9570_v32  ;;  %v3133_v59 = vadd.f32 %v8241_v40, %v2990_v34 }
 0x7e6   :  { %12139 = vst [vmem:[#allocation264_spill] sm:$0xff] %v9570_v32  ;;  %v3033_v0 = vadd.f32 %v2755_v38, %v2754_v5  ;;  %v9578_v63 = vpop.eup %6753  ;;  %vm3228_vm12 = vcmp.ge.f32.partialorder %v3132_v57, 0.0  ;;  %v6465_v38 = vld [vmem:[%s11362_s0 + $0x3d0] sm:$0xff]  ;;  %v12143_v5 = vld [vmem:[#allocation39_spill] sm:$0xff] }
 0x7e7   :  { %12141 = vst [vmem:[#allocation227_spill] sm:$0xff] %v9576_v37  ;;  %v3021_v56 = vadd.f32 %v2747_v43, %v2746_v47  ;;  %v6466_v43 = vld [vmem:[%s11362_s0 + $0x3d8] sm:$0xff]  ;;  %v3325_v47 = vmul.f32 0.01, %v3133_v59  ;;  %vm3229_vm13 = vcmp.ge.f32.partialorder %v3133_v59, 0.0 }
 0x7e9   :  { %3964 = vperm.xlu2 %6658, %v6752_v8   ;;  %6592 = vmatmul.msk.f32.gmra.mxu3 %vm183_vm0, %v6464_v39  ;;  %v12142_v39 = vld [vmem:[#allocation156_spill] sm:$0xff] }
 0x7ea   :  { %v4310_v51 = vadd.f32 %v12143_v5, %v12142_v39  ;;  %v4867_v5 = vld [vmem:[#allocation2 + $0x210] sm:$0xff] }
 0x7eb   :  { %v9590_v4 = vpop.permute.xlu0 %3869 }
 0x7ec   :  { %v4406_v32 = vadd.f32 %v6752_v8, %v4310_v51  ;;  %12144 = vst [vmem:[#allocation156_spill] sm:$0xff] %v9590_v4  ;;  %v2996_v13 = vpop.xlane.xlu1 %2995  ;;  %v12162_v4 = vld [vmem:[#allocation210_spill] sm:$0xff] }
 0x7ee   :  { %6755 = vrcp.f32 %v4406_v32 }
 0x7f1   :  { %4641 = vperm.xlu2 %6658, %v4599_v28   ;;  %v3324_v28 = vmul.f32 0.01, %v3132_v57  ;;  %6593 = vmatmul.msk.f32.gmra.mxu3 %vm183_vm0, %v6465_v38  ;;  %v4868_v38 = vld [vmem:[#allocation2 + $0x220] sm:$0xff] }
 0x7f2   :  { %4886 = vmatpush.msrb.mxu3 %v4868_v38 }
 0x7f4   :  { %4887 = vmatpush.msrb.mxu3 %v4867_v5 }
 0x7f9   :  { %3034 = vadd.xlane.f32.xlu0 %v3033_v0  ;;  %3654 = vperm.xlu2 %6658, %v9578_v63   ;;  %v3420_v0 = vsel %vm3228_vm12, %v3132_v57, %v3324_v28  ;;  %v3421_v57 = vsel %vm3229_vm13, %v3133_v59, %v3325_v47  ;;  %v6756_v28 = vpop.eup %6755  ;;  %v9607_v59 = vpop.permute.xlu0 %3894 }
 0x7fa   :  { %v3587_v9 = vmul.f32 1.442695, %v3420_v0  ;;  %6594 = vmatmul.msk.f32.gmra.mxu3 %vm183_vm0, %v6466_v43  ;;  %v3589_v34 = vmul.f32 1.442695, %v3421_v57  ;;  %v4534_v43 = vmul.f32 %v6756_v28, %v4406_v32  ;;  %v4864_v32 = vld [vmem:[#allocation2 + $0x1e0] sm:$0xff] }
 0x7fc   :  { %3022 = vadd.xlane.f32.xlu1 %v3021_v56  ;;  %v12145_v56 = vld [vmem:[#allocation17_spill] sm:$0xff]  ;;  %6757 = vpow2.f32 %v3587_v9  ;;  %v4566_v38 = vsub.f32 2.0, %v4534_v43  ;;  %v9621_v43 = vpop.xlane.xlu2 %3037 }
 0x7fd   :  { %v3067_v39 = vadd.f32 %v8241_v40, %v12145_v56  ;;  %v12147_v56 = vld [vmem:[#allocation16_spill] sm:$0xff]  ;;  %12148 = vst [vmem:[#allocation17_spill] sm:$0xff] %v9607_v59  ;;  %6759 = vpow2.f32 %v3589_v34  ;;  %v12149_v34 = vld [vmem:[#allocation226_spill] sm:$0xff] }
 0x7fe   :  { %v3068_v9 = vadd.f32 %v8241_v40, %v12147_v56  ;;  %v3101_v5 = vadd.f32 %v8241_v40, %v12149_v34  ;;  %12150 = vst [vmem:[#allocation16_spill] sm:$0xff] %v9621_v43  ;;  %v4859_v34 = vld [vmem:[#allocation2 + $0x190] sm:$0xff] }
 0x7ff   :  { %v3259_v8 = vmul.f32 0.01, %v3067_v39  ;;  %vm3163_vm14 = vcmp.ge.f32.partialorder %v3067_v39, 0.0 }
 0x800   :  { %v3260_v57 = vmul.f32 0.01, %v3068_v9  ;;  %vm3164_vm15 = vcmp.ge.f32.partialorder %v3068_v9, 0.0  ;;  %v3293_v59 = vmul.f32 0.01, %v3101_v5  ;;  %vm3197_vm1 = vcmp.ge.f32.partialorder %v3101_v5, 0.0 }
 0x801   :  { %3659 = vperm.xlu2 %6658, %v9476_v35   ;;  %v6467_v35 = vld [vmem:[%s11362_s0 + $0x3e0] sm:$0xff]  ;;  %v3355_v0 = vsel %vm3163_vm14, %v3067_v39, %v3259_v8  ;;  %v4865_v39 = vld [vmem:[#allocation2 + $0x1f0] sm:$0xff]  ;;  %v6468_v8 = vld [vmem:[%s11362_s0 + $0x3e8] sm:$0xff] }
 0x802   :  { %v9603_v51 = vpop.eup %6757  ;;  %6595 = vmatmul.msk.f32.gmra.mxu3 %vm183_vm0, %v6467_v35  ;;  %v3457_v47 = vmul.f32 1.442695, %v3355_v0  ;;  %v3356_v35 = vsel %vm3164_vm15, %v3068_v9, %v3260_v57  ;;  %v4598_v0 = vmul.f32 %v6756_v28, %v4566_v38  ;;  %v4861_v28 = vld [vmem:[#allocation2 + $0x1b0] sm:$0xff]  ;;  %v12152_v38 = vld [vmem:[#allocation86_spill] sm:$0xff] }
 0x803   :  { %12146 = vst [vmem:[#allocation39_spill] sm:$0xff] %v9603_v51  ;;  %v9615_v56 = vpop.eup %6759  ;;  %v6469_v57 = vld [vmem:[%s11362_s0 + $0x3f0] sm:$0xff] }
 0x804   :  { %6761 = vpow2.f32 %v3457_v47  ;;  %v3459_v47 = vmul.f32 1.442695, %v3356_v35  ;;  %v4860_v35 = vld [vmem:[#allocation2 + $0x1a0] sm:$0xff] }
 0x806   :  { %6763 = vpow2.f32 %v3459_v47 }
 0x809   :  { %3819 = vperm.xlu2 %6658, %v9470_v18   ;;  %v4866_v18 = vld [vmem:[#allocation2 + $0x200] sm:$0xff] }
 0x80a   :  { %4888 = vmatpush.msrb.mxu3 %v4866_v18  ;;  %v9623_v18 = vpop.permute.xlu0 %3899  ;;  %v9625_v9 = vpop.eup %6761 }
 0x80b   :  { %6596 = vmatmul.msk.f32.gmra.mxu3 %vm183_vm0, %v6468_v8  ;;  %12151 = vst [vmem:[#allocation226_spill] sm:$0xff] %v9623_v18  ;;  %v3071_v8 = vadd.f32 %v8241_v40, %v12152_v38  ;;  %v9634_v18 = vpop.xlane.xlu2 %2959  ;;  %v4856_v38 = vld [vmem:[#allocation2 + $0x160] sm:$0xff] }
 0x80c   :  { %4889 = vmatpush.msrb.mxu3 %v4865_v39  ;;  %v4862_v39 = vld [vmem:[#allocation2 + $0x1c0] sm:$0xff]  ;;  %12153 = vst [vmem:[#allocation86_spill] sm:$0xff] %v9634_v18  ;;  %v9638_v25 = vpop.eup %6763 }
 0x80d   :  { %3994 = vperm.xlu0 %6656, %v9603_v51   ;;  %12155 = vst [vmem:[#allocation266_spill] sm:$0xff] %v9638_v25  ;;  %vm3167_vm2 = vcmp.ge.f32.partialorder %v3071_v8, 0.0 }
 0x80e   :  { %4890 = vmatpush.msrb.mxu3 %v4864_v32  ;;  %v3389_v32 = vsel %vm3197_vm1, %v3101_v5, %v3293_v59  ;;  %v4857_v59 = vld [vmem:[#allocation2 + $0x170] sm:$0xff]  ;;  %v6470_v5 = vld [vmem:[%s11362_s0 + $0x3f8] sm:$0xff] }
 0x811   :  { %3979 = vperm.xlu2 %6658, %v9482_v50   ;;  %v4863_v50 = vld [vmem:[#allocation2 + $0x1d0] sm:$0xff] }
 0x812   :  { %4891 = vmatpush.msrb.mxu3 %v4863_v50  ;;  %v3263_v50 = vmul.f32 0.01, %v3071_v8 }
 0x813   :  { %6597 = vmatmul.msk.f32.gmra.mxu3 %vm183_vm0, %v6469_v57 }
 0x814   :  { %4892 = vmatpush.msrb.mxu3 %v4862_v39  ;;  %v9636_v39 = vpop.permute.xlu0 %3904  ;;  %v3359_v47 = vsel %vm3167_vm2, %v3071_v8, %v3263_v50  ;;  %v12158_v8 = vld [vmem:[#allocation83_spill] sm:$0xff] }
 0x815   :  { %3999 = vperm.xlu0 %6656, %v9615_v56   ;;  %4636 = vperm.xlu1 %6657, %v4598_v0   ;;  %v3525_v0 = vmul.f32 1.442695, %v3389_v32  ;;  %12154 = vst [vmem:[#allocation265_spill] sm:$0xff] %v9636_v39  ;;  %v9647_v32 = vpop.f32.mrf.mxu2  ;;  %v1594_v50 = vadd.f32 %v12158_v8, %v8030_v30  ;;  %v1962_v8 = vadd.f32 %v12162_v4, %v8037_v42  ;;  %v9669_v4 = vpop.xlane.xlu1 %3001 }
 0x816   :  { %4893 = vmatpush.msrb.mxu3 %v4861_v28  ;;  %v12156_v28 = vld [vmem:[#allocation180_spill] sm:$0xff] }
 0x817   :  { %6765 = vpow2.f32 %v3525_v0  ;;  %v3109_v57 = vadd.f32 %v8241_v40, %v12156_v28  ;;  %12157 = vst [vmem:[#allocation180_spill] sm:$0xff] %v9647_v32  ;;  %v4854_v0 = vld [vmem:[#allocation2 + $0x140] sm:$0xff]  ;;  %v9651_v28 = vpop.xlane.xlu2 %2866  ;;  %vm2123_vm4 = vcmp.ge.f32.partialorder %v1594_v50, 0.0  ;;  %vm2166_vm7 = vcmp.ge.f32.partialorder %v1962_v8, 0.0 }
 0x818   :  { %4894 = vmatpush.msrb.mxu3 %v4860_v35  ;;  %v3465_v35 = vmul.f32 1.442695, %v3359_v47  ;;  %12159 = vst [vmem:[#allocation83_spill] sm:$0xff] %v9651_v28  ;;  %v2315_v47 = vmul.f32 0.01, %v1594_v50 }
 0x819   :  { %3669 = vperm.xlu2 %6658, %v9625_v9   ;;  %vm3205_vm3 = vcmp.ge.f32.partialorder %v3109_v57, 0.0 }
 0x81a   :  { %4895 = vmatpush.msrb.mxu3 %v4859_v34  ;;  %v4855_v34 = vld [vmem:[#allocation2 + $0x150] sm:$0xff]  ;;  %6767 = vpow2.f32 %v3465_v35 }
 0x81b   :  { %6598 = vmatmul.msk.f32.gmra.mxu3 %vm183_vm0, %v6470_v5 }
 0x81c   :  { %4896 = vmatpush.msrb.mxu3 %v4858_v62  ;;  %v3301_v62 = vmul.f32 0.01, %v3109_v57  ;;  %v2993_v39 = vpop.xlane.xlu0 %2992 }
 0x81d   :  { %v6766_v18 = vpop.eup %6765  ;;  %v1979_v14 = vpop.f32.mrf.mxu2  ;;  %v3134_v53 = vadd.f32 %v8241_v40, %v2993_v39  ;;  %v12169_v39 = vld [vmem:[#allocation114_spill] sm:$0xff] }
 0x81e   :  { %4897 = vmatpush.msrb.mxu3 %v4857_v59  ;;  %v4853_v59 = vld [vmem:[#allocation2 + $0x130] sm:$0xff]  ;;  %v3397_v5 = vsel %vm3205_vm3, %v3109_v57, %v3301_v62  ;;  %v3111_v62 = vadd.f32 %v8241_v40, %v9434_v27  ;;  %v12165_v27 = vld [vmem:[#allocation211_spill] sm:$0xff]  ;;  %v1675_v1 = vadd.f32 %v12169_v39, %v8030_v30  ;;  %v9704_v16 = vpop.xlane.xlu1 %3013 }
 0x81f   :  { %v3541_v17 = vmul.f32 1.442695, %v3397_v5  ;;  %v2358_v5 = vmul.f32 0.01, %v1962_v8  ;;  %v1965_v43 = vadd.f32 %v12165_v27, %v8037_v42  ;;  %v3326_v27 = vmul.f32 0.01, %v3134_v53 }
 0x820   :  { %4898 = vmatpush.msrb.mxu3 %v4856_v38  ;;  %v12160_v38 = vld [vmem:[#allocation109_spill] sm:$0xff]  ;;  %v9659_v28 = vpop.eup %6767  ;;  %v3303_v31 = vmul.f32 0.01, %v3111_v62  ;;  %vm3207_vm8 = vcmp.ge.f32.partialorder %v3111_v62, 0.0  ;;  %vm3230_vm10 = vcmp.ge.f32.partialorder %v3134_v53, 0.0  ;;  %vm2177_vm14 = vcmp.ge.f32.partialorder %v1675_v1, 0.0 }
 0x821   :  { %3674 = vperm.xlu2 %6658, %v9638_v25   ;;  %v1657_v33 = vadd.f32 %v12160_v38, %v8030_v30  ;;  %6769 = vpow2.f32 %v3541_v17  ;;  %v3135_v38 = vadd.f32 %v8241_v40, %v2996_v13  ;;  %v1980_v17 = vadd.f32 %v1979_v14, %v8037_v42 }
 0x822   :  { %4899 = vmatpush.msrb.mxu3 %v4855_v34  ;;  %v12161_v34 = vld [vmem:[#allocation94_spill] sm:$0xff]  ;;  %vm2168_vm11 = vcmp.ge.f32.partialorder %v1965_v43, 0.0  ;;  %v2369_v49 = vmul.f32 0.01, %v1675_v1 }
 0x823   :  { %v1899_v37 = vadd.f32 %v12161_v34, %v8037_v42  ;;  %v2357_v35 = vmul.f32 0.01, %v1657_v33  ;;  %vm2165_vm6 = vcmp.ge.f32.partialorder %v1657_v33, 0.0  ;;  %v3640_v34 = vpop.permute.xlu2 %3639  ;;  %v3327_v51 = vmul.f32 0.01, %v3135_v38 }
 0x824   :  { %4900 = vmatpush.msrb.mxu3 %v4854_v0  ;;  %v9661_v0 = vsel %vm2123_vm4, %v1594_v50, %v2315_v47  ;;  %v12164_v50 = vld [vmem:[#allocation110_spill] sm:$0xff]  ;;  %vm3231_vm9 = vcmp.ge.f32.partialorder %v3135_v38, 0.0  ;;  %vm2178_vm13 = vcmp.ge.f32.partialorder %v1980_v17, 0.0 }
 0x825   :  { %12163 = vst [vmem:[#allocation109_spill] sm:$0xff] %v9661_v0  ;;  %v2316_v57 = vmul.f32 0.01, %v1899_v37  ;;  %vm2124_vm5 = vcmp.ge.f32.partialorder %v1899_v37, 0.0  ;;  %v1660_v47 = vadd.f32 %v12164_v50, %v8030_v30  ;;  %v2706_v13 = vmul.f32 %v8040_v20, %v9661_v0  ;;  %v12170_v0 = vld [vmem:[#allocation33_spill] sm:$0xff] }
 0x826   :  { %4901 = vmatpush.msrb.mxu3 %v4853_v59  ;;  %v9665_v59 = vpop.xlane.xlu0 %3004  ;;  %v9681_v25 = vsel %vm2165_vm6, %v1657_v33, %v2357_v35  ;;  %v9683_v50 = vsel %vm2166_vm7, %v1962_v8, %v2358_v5  ;;  %v4317_v26 = vadd.f32 %v6766_v18, %v12170_v0  ;;  %v2370_v33 = vmul.f32 0.01, %v1980_v17  ;;  %v1982_v35 = vpop.f32.mrf.mxu2 }
 0x827   :  { %v9676_v29 = vsel %vm2124_vm5, %v1899_v37, %v2316_v57  ;;  %12167 = vst [vmem:[#allocation210_spill] sm:$0xff] %v9681_v25  ;;  %v2359_v44 = vmul.f32 0.01, %v1660_v47  ;;  %v9687_v37 = vpop.eup %6769  ;;  %v2360_v57 = vmul.f32 0.01, %v1965_v43  ;;  %v3399_v8 = vsel %vm3207_vm8, %v3111_v62, %v3303_v31 }
 0x828   :  { %12166 = vst [vmem:[#allocation94_spill] sm:$0xff] %v9676_v29  ;;  %v2707_v14 = vmul.f32 %v8042_v15, %v9676_v29  ;;  %v2749_v5 = vmul.f32 %v8042_v15, %v9683_v50  ;;  %vm2167_vm12 = vcmp.ge.f32.partialorder %v1660_v47, 0.0  ;;  %v3423_v39 = vsel %vm3231_vm9, %v3135_v38, %v3327_v51 }
 0x829   :  { %3839 = vperm.xlu2 %6658, %v6766_v18   ;;  %12168 = vst [vmem:[#allocation110_spill] sm:$0xff] %v9683_v50  ;;  %v4413_v32 = vadd.f32 %v9615_v56, %v4317_v26  ;;  %v3422_v29 = vsel %vm3230_vm10, %v3134_v53, %v3326_v27  ;;  %v2748_v31 = vmul.f32 %v8040_v20, %v9681_v25  ;;  %v3545_v62 = vmul.f32 1.442695, %v3399_v8  ;;  %v12174_v27 = vld [vmem:[#allocation115_spill] sm:$0xff] }
 0x82a   :  { %v1983_v0 = vadd.f32 %v1982_v35, %v8037_v42  ;;  %v2961_v50 = vadd.f32 %v2707_v14, %v2706_v13  ;;  %v9707_v51 = vsel %vm2168_vm11, %v1965_v43, %v2360_v57  ;;  %v9709_v26 = vsel %vm2178_vm13, %v1980_v17, %v2370_v33  ;;  %v12178_v14 = vld [vmem:[#allocation37_spill] sm:$0xff]  ;;  %v12179_v33 = vld [vmem:[#allocation235_spill] sm:$0xff] }
 0x82b   :  { %12171 = vst [vmem:[#allocation211_spill] sm:$0xff] %v9707_v51  ;;  %v3593_v56 = vmul.f32 1.442695, %v3423_v39  ;;  %v3024_v53 = vadd.f32 %v2749_v5, %v2748_v31  ;;  %v9712_v38 = vsel %vm2167_vm12, %v1660_v47, %v2359_v44  ;;  %v1678_v7 = vadd.f32 %v12174_v27, %v8030_v30  ;;  %v12176_v47 = vld [vmem:[#allocation120_spill] sm:$0xff]  ;;  %v12180_v5 = vld [vmem:[#allocation43_spill] sm:$0xff] }
 0x82c   :  { %12172 = vst [vmem:[#allocation114_spill] sm:$0xff] %v9709_v26  ;;  %v3591_v25 = vmul.f32 1.442695, %v3422_v29  ;;  %6771 = vrcp.f32 %v4413_v32  ;;  %v9717_v35 = vsel %vm2177_vm14, %v1675_v1, %v2369_v49  ;;  %v2751_v43 = vmul.f32 %v8042_v15, %v9707_v51  ;;  %v12182_v27 = vld [vmem:[#allocation231_spill] sm:$0xff] }
 0x82d   :  { %12173 = vst [vmem:[#allocation33_spill] sm:$0xff] %v9712_v38  ;;  %v2372_v17 = vmul.f32 0.01, %v1983_v0  ;;  %6773 = vpow2.f32 %v3545_v62  ;;  %v2750_v13 = vmul.f32 %v8040_v20, %v9712_v38  ;;  %v2761_v44 = vmul.f32 %v8042_v15, %v9709_v26 }
 0x82e   :  { %v9697_v36 = vpop.xlane.xlu0 %3019  ;;  %12175 = vst [vmem:[#allocation115_spill] sm:$0xff] %v9717_v35  ;;  %vm2180_vm15 = vcmp.ge.f32.partialorder %v1983_v0, 0.0  ;;  %v4117_v29 = vmul.f32 %v3640_v34, %v12176_v47  ;;  %6775 = vpow2.f32 %v3593_v56  ;;  %vm2179_vm1 = vcmp.ge.f32.partialorder %v1678_v7, 0.0  ;;  %v12181_v56 = vld [vmem:[#allocation214_spill] sm:$0xff] }
 0x82f   :  { %v2371_v49 = vmul.f32 0.01, %v1678_v7  ;;  %6777 = vpow2.f32 %v3591_v25  ;;  %v2760_v1 = vmul.f32 %v8040_v20, %v9717_v35  ;;  %v4181_v8 = vmul.f32 %v12179_v33, %v12178_v14 }
 0x830   :  { %v4182_v39 = vmul.f32 %v12179_v33, %v12180_v5  ;;  %v3136_v25 = vadd.f32 %v8241_v40, %v12182_v27  ;;  %v9743_v47 = vsel %vm2180_vm15, %v1983_v0, %v2372_v17  ;;  %v12187_v27 = vld [vmem:[#allocation46_spill] sm:$0xff] }
 0x831   :  { %3689 = vperm.xlu2 %6658, %v9659_v28   ;;  %12183 = vst [vmem:[#allocation120_spill] sm:$0xff] %v9743_v47  ;;  %v3042_v33 = vadd.f32 %v2761_v44, %v2760_v1  ;;  %v4341_v5 = vadd.f32 %v4181_v8, %v4117_v29  ;;  %v12188_v17 = vld [vmem:[#allocation98_spill] sm:$0xff]  ;;  %v12190_v8 = vld [vmem:[#allocation35_spill] sm:$0xff] }
 0x832   :  { %vm3232_vm2 = vcmp.ge.f32.partialorder %v3136_v25, 0.0 }
 0x836   :  { %v9734_v31 = vpop.permute.xlu0 %3969 }
 0x837   :  { %v4250_v51 = vmul.f32 %v9734_v31, %v12188_v17 }
 0x839   :  { %3879 = vperm.xlu2 %6658, %v9687_v37  }
 0x83b   :  { %v9699_v18 = vpop.permute.xlu2 %4631 }
 0x83f   :  { %2962 = vadd.xlane.f32.xlu0 %v2961_v50  ;;  %3025 = vadd.xlane.f32.xlu1 %v3024_v53  ;;  %v12177_v50 = vld [vmem:[#allocation121_spill] sm:$0xff]  ;;  %v6772_v53 = vpop.eup %6771 }
 0x840   :  { %v4118_v57 = vmul.f32 %v3640_v34, %v12177_v50  ;;  %v3027_v34 = vadd.f32 %v2751_v43, %v2750_v13  ;;  %v12184_v50 = vld [vmem:[#allocation171_spill] sm:$0xff]  ;;  %v9749_v13 = vpop.eup %6773 }
 0x841   :  { %3884 = vperm.xlu2 %6658, %v9311_v54   ;;  %v4312_v54 = vadd.f32 %v9578_v63, %v12181_v56  ;;  %v4186_v14 = vmul.f32 %v9480_v24, %v12184_v50  ;;  %v9752_v63 = vsel %vm2179_vm1, %v1678_v7, %v2371_v49  ;;  %v12186_v56 = vld [vmem:[#allocation125_spill] sm:$0xff]  ;;  %v6776_v50 = vpop.eup %6775  ;;  %v2763_v49 = vmul.f32 %v8042_v15, %v9743_v47  ;;  %v12224_v47 = vld [vmem:[#allocation95_spill] sm:$0xff] }
 0x842   :  { %v4342_v38 = vadd.f32 %v4182_v39, %v4118_v57  ;;  %12185 = vst [vmem:[#allocation121_spill] sm:$0xff] %v9752_v63  ;;  %v4122_v0 = vmul.f32 %v12187_v27, %v12186_v56  ;;  %v4541_v57 = vmul.f32 %v6772_v53, %v4413_v32  ;;  %v4318_v39 = vadd.f32 %v9305_v11, %v12190_v8 }
 0x843   :  { %v9736_v62 = vpop.permute.xlu2 %3964  ;;  %v4408_v1 = vadd.f32 %v9497_v58, %v4312_v54 }
 0x844   :  { %v3960_v35 = vpop.permute.xlu1 %3959  ;;  %v4346_v7 = vadd.f32 %v4186_v14, %v4122_v0  ;;  %v4573_v58 = vsub.f32 2.0, %v4541_v57  ;;  %v3137_v0 = vadd.f32 %v8241_v40, %v9669_v4 }
 0x845   :  { %v4245_v26 = vmul.f32 %v3960_v35, %v9352_v21  ;;  %v4246_v43 = vmul.f32 %v3960_v35, %v9347_v2  ;;  %v4319_v2 = vadd.f32 %v9659_v28, %v9324_v10  ;;  %v9760_v21 = vpop.eup %6777  ;;  %v3328_v35 = vmul.f32 0.01, %v3136_v25 }
 0x846   :  { %12189 = vst [vmem:[#allocation37_spill] sm:$0xff] %v9760_v21  ;;  %v4442_v32 = vadd.f32 %v4346_v7, %v4250_v51  ;;  %v2762_v28 = vmul.f32 %v8040_v20, %v9752_v63  ;;  %v4414_v54 = vadd.f32 %v9760_v21, %v4318_v39  ;;  %6779 = vrcp.f32 %v4408_v1  ;;  %v12197_v39 = vld [vmem:[#allocation99_spill] sm:$0xff] }
 0x847   :  { %3043 = vadd.xlane.f32.xlu0 %v3042_v33  ;;  %v4437_v44 = vadd.f32 %v4341_v5, %v4245_v26  ;;  %v4438_v29 = vadd.f32 %v4342_v38, %v4246_v43  ;;  %3028 = vadd.xlane.f32.xlu1 %v3027_v34  ;;  %v4415_v38 = vadd.f32 %v6776_v50, %v4319_v2  ;;  %v12193_v5 = vld [vmem:[#allocation218_spill] sm:$0xff]  ;;  %v12195_v2 = vld [vmem:[#allocation127_spill] sm:$0xff]  ;;  %vm3233_vm4 = vcmp.ge.f32.partialorder %v3137_v0, 0.0 }
 0x848   :  { %v3424_v14 = vsel %vm3232_vm2, %v3136_v25, %v3328_v35  ;;  %v3045_v33 = vadd.f32 %v2763_v49, %v2762_v28  ;;  %v4605_v51 = vmul.f32 %v6772_v53, %v4573_v58  ;;  %v3130_v43 = vadd.f32 %v8241_v40, %v12193_v5  ;;  %v9784_v25 = vpop.permute.xlu0 %3974  ;;  %v12196_v49 = vld [vmem:[#allocation44_spill] sm:$0xff]  ;;  %v12223_v63 = vld [vmem:[#allocation123_spill] sm:$0xff] }
 0x849   :  { %v9768_v26 = vmul.f32 %v9699_v18, %v4438_v29  ;;  %3889 = vperm.xlu2 %6658, %v9749_v13   ;;  %v4789_v10 = vmul.f32 %v9699_v18, %v4437_v44  ;;  %6781 = vrcp.f32 %v4415_v38  ;;  %v3595_v18 = vmul.f32 1.442695, %v3424_v14  ;;  %v12194_v29 = vld [vmem:[#allocation173_spill] sm:$0xff] }
 0x84a   :  { %6783 = vrcp.f32 %v4414_v54  ;;  %v4188_v57 = vmul.f32 %v9452_v55, %v12194_v29  ;;  %v3322_v7 = vmul.f32 0.01, %v3130_v43  ;;  %v4320_v8 = vadd.f32 %v9329_v45, %v12196_v49 }
 0x84b   :  { %12191 = vst [vmem:[#allocation235_spill] sm:$0xff] %v9768_v26  ;;  %v9774_v34 = vpop.permute.xlu2 %4641  ;;  %4902 = vmatmul.f32.vlgmr.msrb.gmra.mxu3 %v4789_v10  ;;  %6785 = vpow2.f32 %v3595_v18  ;;  %v4252_v10 = vmul.f32 %v9784_v25, %v12197_v39  ;;  %vm3226_vm3 = vcmp.ge.f32.partialorder %v3130_v43, 0.0  ;;  %v3329_v28 = vmul.f32 0.01, %v3137_v0  ;;  %v12222_v26 = vld [vmem:[#allocation47_spill] sm:$0xff] }
 0x84c   :  { %v9778_v11 = vmul.f32 %v9774_v34, %v4442_v32  ;;  %v6780_v56 = vpop.eup %6779 }
 0x84d   :  { %v4536_v32 = vmul.f32 %v6780_v56, %v4408_v1 }
 0x84e   :  { %12192 = vst [vmem:[#allocation43_spill] sm:$0xff] %v9778_v11 }
 0x84f   :  { %3046 = vadd.xlane.f32.xlu0 %v3045_v33  ;;  %v6782_v44 = vpop.eup %6781  ;;  %v4568_v5 = vsub.f32 2.0, %v4536_v32 }
 0x850   :  { %v6784_v35 = vpop.eup %6783  ;;  %v4543_v58 = vmul.f32 %v6782_v44, %v4415_v38 }
 0x851   :  { %4671 = vperm.xlu2 %6658, %v4605_v51   ;;  %v4542_v14 = vmul.f32 %v6784_v35, %v4414_v54  ;;  %v6786_v18 = vpop.eup %6785  ;;  %v3418_v51 = vsel %vm3226_vm3, %v3130_v43, %v3322_v7  ;;  %v4600_v1 = vmul.f32 %v6780_v56, %v4568_v5  ;;  %v12198_v7 = vld [vmem:[#allocation129_spill] sm:$0xff]  ;;  %v12199_v56 = vld [vmem:[#allocation176_spill] sm:$0xff] }
 0x852   :  { %v4416_v29 = vadd.f32 %v6786_v18, %v4320_v8  ;;  %v4575_v45 = vsub.f32 2.0, %v4543_v58  ;;  %v3583_v39 = vmul.f32 1.442695, %v3418_v51  ;;  %v12200_v51 = vld [vmem:[#allocation48_spill] sm:$0xff] }
 0x853   :  { %v9786_v17 = vpop.permute.xlu2 %3654  ;;  %v4574_v49 = vsub.f32 2.0, %v4542_v14 }
 0x854   :  { %v4124_v53 = vmul.f32 %v9786_v17, %v12195_v2  ;;  %v3425_v2 = vsel %vm3233_vm4, %v3137_v0, %v3329_v28  ;;  %6787 = vrcp.f32 %v4416_v29  ;;  %v9804_v0 = vpop.permute.xlu0 %4651 }
 0x855   :  { %v4606_v38 = vmul.f32 %v6784_v35, %v4574_v49  ;;  %6789 = vpow2.f32 %v3583_v39 }
 0x856   :  { %v4348_v4 = vadd.f32 %v4188_v57, %v4124_v53  ;;  %v3597_v57 = vmul.f32 1.442695, %v3425_v2  ;;  %v4607_v53 = vmul.f32 %v6782_v44, %v4575_v45 }
 0x858   :  { %v9796_v33 = vadd.f32 %v4348_v4, %v4252_v10  ;;  %6791 = vpow2.f32 %v3597_v57 }
 0x859   :  { %4009 = vperm.xlu2 %6658, %v6776_v50   ;;  %v3138_v50 = vadd.f32 %v8241_v40, %v9665_v59 }
 0x85a   :  { %v6788_v43 = vpop.eup %6787 }
 0x85b   :  { %v9798_v11 = vpop.permute.xlu2 %3659  ;;  %v9810_v35 = vpop.eup %6789  ;;  %v3330_v4 = vmul.f32 0.01, %v3138_v50  ;;  %v4544_v32 = vmul.f32 %v6788_v43, %v4416_v29  ;;  %vm3234_vm5 = vcmp.ge.f32.partialorder %v3138_v50, 0.0 }
 0x85c   :  { %v4126_v8 = vmul.f32 %v9798_v11, %v12198_v7  ;;  %v9820_v45 = vpop.permute.xlu0 %3989 }
 0x85d   :  { %v3426_v59 = vsel %vm3234_vm5, %v3138_v50, %v3330_v4  ;;  %v4576_v14 = vsub.f32 2.0, %v4544_v32  ;;  %12201 = vst [vmem:[#allocation214_spill] sm:$0xff] %v9820_v45  ;;  %v12206_v50 = vld [vmem:[#allocation102_spill] sm:$0xff] }
 0x85e   :  { %v9812_v28 = vpop.eup %6791  ;;  %v3599_v2 = vmul.f32 1.442695, %v3426_v59  ;;  %v4258_v7 = vmul.f32 %v9820_v45, %v12206_v50  ;;  %v12208_v32 = vld [vmem:[#allocation106_spill] sm:$0xff]  ;;  %v12214_v50 = vld [vmem:[#allocation103_spill] sm:$0xff] }
 0x85f   :  { %v4608_v29 = vmul.f32 %v6788_v43, %v4576_v14  ;;  %v4195_v59 = vmul.f32 %v9507_v22, %v12208_v32  ;;  %v12209_v14 = vld [vmem:[#allocation181_spill] sm:$0xff] }
 0x860   :  { %4646 = vperm.xlu1 %6657, %v4600_v1   ;;  %6793 = vpow2.f32 %v3599_v2 }
 0x861   :  { %4681 = vperm.xlu2 %6658, %v4607_v53   ;;  %v12205_v53 = vld [vmem:[#allocation133_spill] sm:$0xff] }
 0x863   :  { %4676 = vperm.xlu0 %6656, %v4606_v38   ;;  %v9802_v54 = vpop.permute.xlu2 %3819 }
 0x864   :  { %v4190_v44 = vmul.f32 %v9802_v54, %v12199_v56 }
 0x866   :  { %v4350_v10 = vadd.f32 %v4190_v44, %v4126_v8  ;;  %v9835_v43 = vpop.eup %6793 }
 0x868   :  { %3984 = vperm.xlu1 %6657, %v9810_v35  }
 0x869   :  { %4019 = vperm.xlu2 %6658, %v9812_v28  }
 0x86b   :  { %4014 = vperm.xlu0 %6656, %v6786_v18   ;;  %v9816_v58 = vpop.permute.xlu2 %3979  ;;  %v12204_v18 = vld [vmem:[#allocation179_spill] sm:$0xff] }
 0x86c   :  { %v4254_v5 = vmul.f32 %v9816_v58, %v12200_v51  ;;  %v4194_v1 = vmul.f32 %v9500_v12, %v12204_v18  ;;  %v9833_v8 = vpop.xlane.xlu0 %3034  ;;  %v4196_v51 = vmul.f32 %v9507_v22, %v12209_v14  ;;  %v12217_v14 = vld [vmem:[#allocation212_spill] sm:$0xff] }
 0x86e   :  { %v4446_v49 = vadd.f32 %v4350_v10, %v4254_v5  ;;  %v1985_v10 = vpop.f32.mrf.mxu2  ;;  %v12210_v5 = vld [vmem:[#allocation134_spill] sm:$0xff] }
 0x870   :  { %v9823_v39 = vmul.f32 %v9804_v0, %v4446_v49  ;;  %v12211_v49 = vld [vmem:[#allocation135_spill] sm:$0xff] }
 0x871   :  { %4686 = vperm.xlu2 %6658, %v4608_v29  }
 0x872   :  { %12202 = vst [vmem:[#allocation231_spill] sm:$0xff] %v9823_v39  ;;  %v12216_v39 = vld [vmem:[#allocation45_spill] sm:$0xff] }
 0x873   :  { %v9825_v57 = vpop.permute.xlu2 %3669  ;;  %v4184_v22 = vmul.f32 %v9468_v41, %v12216_v39  ;;  %v12225_v39 = vld [vmem:[#allocation96_spill] sm:$0xff] }
 0x874   :  { %12203 = vst [vmem:[#allocation171_spill] sm:$0xff] %v9825_v57  ;;  %v4130_v38 = vmul.f32 %v9825_v57, %v12205_v53 }
 0x876   :  { %v4354_v56 = vadd.f32 %v4194_v1, %v4130_v38  ;;  %v9850_v38 = vpop.xlane.xlu1 %3022 }
 0x878   :  { %v9837_v44 = vadd.f32 %v4354_v56, %v4258_v7  ;;  %v12215_v56 = vld [vmem:[#allocation38_spill] sm:$0xff] }
 0x879   :  { %4024 = vperm.xlu2 %6658, %v9835_v43   ;;  %v4183_v32 = vmul.f32 %v9468_v41, %v12215_v56  ;;  %v4120_v56 = vmul.f32 %v12222_v26, %v12223_v63  ;;  %v4247_v41 = vmul.f32 %v9736_v62, %v12224_v47  ;;  %v12228_v63 = vld [vmem:[#allocation137_spill] sm:$0xff] }
 0x87a   :  { %12207 = vst [vmem:[#allocation125_spill] sm:$0xff] %v9837_v44 }
 0x87b   :  { %v3675_v4 = vpop.permute.xlu2 %3674 }
 0x87c   :  { %v4131_v2 = vmul.f32 %v3675_v4, %v12210_v5  ;;  %v4132_v29 = vmul.f32 %v3675_v4, %v12211_v49  ;;  %v1968_v5 = vadd.f32 %v12217_v14, %v8037_v42  ;;  %v12218_v4 = vld [vmem:[#allocation111_spill] sm:$0xff]  ;;  %v4248_v14 = vmul.f32 %v9736_v62, %v12225_v39 }
 0x87e   :  { %v9846_v18 = vadd.f32 %v4195_v59, %v4131_v2  ;;  %v4356_v1 = vadd.f32 %v4196_v51, %v4132_v29  ;;  %v1663_v59 = vadd.f32 %v12218_v4, %v8030_v30  ;;  %v12219_v51 = vld [vmem:[#allocation116_spill] sm:$0xff]  ;;  %v12221_v29 = vld [vmem:[#allocation122_spill] sm:$0xff]  ;;  %vm2170_vm7 = vcmp.ge.f32.partialorder %v1968_v5, 0.0 }
 0x87f   :  { %v9848_v53 = vpop.permute.xlu0 %3994  ;;  %v1681_v2 = vadd.f32 %v12219_v51, %v8030_v30  ;;  %v2362_v51 = vmul.f32 0.01, %v1968_v5 }
 0x880   :  { %12212 = vst [vmem:[#allocation46_spill] sm:$0xff] %v9846_v18  ;;  %v4260_v7 = vmul.f32 %v9848_v53, %v12214_v50  ;;  %v4119_v50 = vmul.f32 %v12222_v26, %v12221_v29  ;;  %v1986_v18 = vadd.f32 %v1985_v10, %v8037_v42  ;;  %vm2169_vm6 = vcmp.ge.f32.partialorder %v1663_v59, 0.0  ;;  %v12229_v26 = vld [vmem:[#allocation177_spill] sm:$0xff] }
 0x881   :  { %12213 = vst [vmem:[#allocation98_spill] sm:$0xff] %v9848_v53  ;;  %v4344_v53 = vadd.f32 %v4184_v22, %v4120_v56  ;;  %v2361_v44 = vmul.f32 0.01, %v1663_v59  ;;  %v4134_v45 = vmul.f32 %v12229_v26, %v12228_v63  ;;  %vm2181_vm8 = vcmp.ge.f32.partialorder %v1681_v2, 0.0  ;;  %v12230_v22 = vld [vmem:[#allocation172_spill] sm:$0xff] }
 0x882   :  { %v9864_v49 = vadd.f32 %v4356_v1, %v4260_v7  ;;  %v1988_v1 = vpop.f32.mrf.mxu2  ;;  %v12227_v7 = vld [vmem:[#allocation183_spill] sm:$0xff]  ;;  %v4343_v29 = vadd.f32 %v4183_v32, %v4119_v50  ;;  %v2373_v47 = vmul.f32 0.01, %v1681_v2  ;;  %v2374_v12 = vmul.f32 0.01, %v1986_v18 }
 0x883   :  { %v9875_v4 = vpop.permute.xlu2 %3839  ;;  %v4440_v62 = vadd.f32 %v4344_v53, %v4248_v14  ;;  %v4185_v56 = vmul.f32 %v9480_v24, %v12230_v22  ;;  %vm2182_vm9 = vcmp.ge.f32.partialorder %v1986_v18, 0.0  ;;  %v9889_v63 = vsel %vm2170_vm7, %v1968_v5, %v2362_v51  ;;  %v12235_v24 = vld [vmem:[#allocation117_spill] sm:$0xff] }
 0x884   :  { %12220 = vst [vmem:[#allocation35_spill] sm:$0xff] %v9864_v49  ;;  %v4198_v49 = vmul.f32 %v9875_v4, %v12227_v7  ;;  %v4439_v10 = vadd.f32 %v4343_v29, %v4247_v41  ;;  %v9896_v41 = vsel %vm2181_vm8, %v1681_v2, %v2373_v47  ;;  %v9903_v29 = vsel %vm2169_vm6, %v1663_v59, %v2361_v44  ;;  %v12240_v47 = vld [vmem:[#allocation66_spill] sm:$0xff]  ;;  %v12242_v22 = vld [vmem:[#allocation141_spill] sm:$0xff] }
 0x885   :  { %12226 = vst [vmem:[#allocation218_spill] sm:$0xff] %v9875_v4  ;;  %v12233_v4 = vld [vmem:[#allocation124_spill] sm:$0xff]  ;;  %v1989_v5 = vadd.f32 %v1988_v1, %v8037_v42 }
 0x886   :  { %v4358_v57 = vadd.f32 %v4198_v49, %v4134_v45  ;;  %12232 = vst [vmem:[#allocation127_spill] sm:$0xff] %v9889_v63  ;;  %v4121_v53 = vmul.f32 %v12187_v27, %v12233_v4  ;;  %v1684_v45 = vadd.f32 %v12235_v24, %v8030_v30  ;;  %v12236_v49 = vld [vmem:[#allocation97_spill] sm:$0xff] }
 0x887   :  { %v9881_v39 = vpop.permute.xlu0 %3999  ;;  %v4637_v21 = vpop.permute.xlu1 %4636  ;;  %12234 = vst [vmem:[#allocation44_spill] sm:$0xff] %v9896_v41  ;;  %v12239_v4 = vld [vmem:[#allocation65_spill] sm:$0xff]  ;;  %vm2184_vm10 = vcmp.ge.f32.partialorder %v1989_v5, 0.0 }
 0x888   :  { %v4262_v32 = vmul.f32 %v9881_v39, %v9364_v52  ;;  %v9887_v50 = vmul.f32 %v4637_v21, %v4440_v62  ;;  %v4791_v7 = vmul.f32 %v4637_v21, %v4439_v10  ;;  %v4249_v52 = vmul.f32 %v9734_v31, %v12236_v49  ;;  %12237 = vst [vmem:[#allocation99_spill] sm:$0xff] %v9903_v29  ;;  %v12241_v31 = vld [vmem:[#allocation140_spill] sm:$0xff] }
 0x889   :  { %v9905_v21 = vsel %vm2182_vm9, %v1986_v18, %v2374_v12  ;;  %v4345_v2 = vadd.f32 %v4185_v56, %v4121_v53  ;;  %v4201_v51 = vmul.f32 %v9528_v61, %v12239_v4  ;;  %v4202_v62 = vmul.f32 %v9528_v61, %v12240_v47  ;;  %v12244_v4 = vld [vmem:[#allocation221_spill] sm:$0xff] }
 0x88a   :  { %12231 = vst [vmem:[#allocation173_spill] sm:$0xff] %v9887_v50  ;;  %v9893_v14 = vadd.f32 %v4358_v57, %v4262_v32  ;;  %4905 = vmatmul.f32.gmra.mxu3 %v4791_v7  ;;  %v2753_v57 = vmul.f32 %v8042_v15, %v9889_v63  ;;  %v2752_v12 = vmul.f32 %v8040_v20, %v9903_v29  ;;  %v1991_v18 = vpop.f32.mrf.mxu2  ;;  %v2375_v7 = vmul.f32 0.01, %v1684_v45  ;;  %v12318_v63 = vld [vmem:[#allocation156_spill] sm:$0xff] }
 0x88b   :  { %12238 = vst [vmem:[#allocation129_spill] sm:$0xff] %v9905_v21  ;;  %v3690_v27 = vpop.permute.xlu2 %3689  ;;  %v4441_v32 = vadd.f32 %v4345_v2, %v4249_v52  ;;  %v2765_v56 = vmul.f32 %v8042_v15, %v9905_v21  ;;  %v2376_v53 = vmul.f32 0.01, %v1989_v5  ;;  %v2764_v61 = vmul.f32 %v8040_v20, %v9896_v41  ;;  %v12245_v2 = vld [vmem:[#allocation118_spill] sm:$0xff] }
 0x88c   :  { %v4137_v10 = vmul.f32 %v3690_v27, %v12241_v31  ;;  %v4138_v44 = vmul.f32 %v3690_v27, %v12242_v22  ;;  %v3030_v24 = vadd.f32 %v2753_v57, %v2752_v12  ;;  %v12243_v27 = vld [vmem:[#allocation25_spill] sm:$0xff]  ;;  %vm2183_vm11 = vcmp.ge.f32.partialorder %v1684_v45, 0.0 }
 0x88d   :  { %v4793_v49 = vmul.f32 %v9774_v34, %v4441_v32  ;;  %v4314_v47 = vadd.f32 %v12244_v4, %v12243_v27  ;;  %v3048_v52 = vadd.f32 %v2765_v56, %v2764_v61  ;;  %v9932_v31 = vsel %vm2184_vm10, %v1989_v5, %v2376_v53  ;;  %v12250_v53 = vld [vmem:[#allocation64_spill] sm:$0xff] }
 0x88e   :  { %v9918_v59 = vadd.f32 %v4201_v51, %v4137_v10  ;;  %v9920_v1 = vadd.f32 %v4202_v62, %v4138_v44  ;;  %v1992_v51 = vadd.f32 %v1991_v18, %v8037_v42  ;;  %v1687_v62 = vadd.f32 %v12245_v2, %v8030_v30  ;;  %12246 = vst [vmem:[#allocation176_spill] sm:$0xff] %v9932_v31  ;;  %v12247_v10 = vld [vmem:[#allocation234_spill] sm:$0xff] }
 0x88f   :  { %v3139_v22 = vadd.f32 %v8241_v40, %v12247_v10  ;;  %v9938_v34 = vsel %vm2183_vm11, %v1684_v45, %v2375_v7  ;;  %v4410_v44 = vadd.f32 %v9810_v35, %v4314_v47  ;;  %v2767_v18 = vmul.f32 %v8042_v15, %v9932_v31  ;;  %v12255_v10 = vld [vmem:[#allocation161_spill] sm:$0xff] }
 0x890   :  { %12249 = vst [vmem:[#allocation179_spill] sm:$0xff] %v9938_v34  ;;  %v2378_v12 = vmul.f32 0.01, %v1992_v51  ;;  %vm2186_vm12 = vcmp.ge.f32.partialorder %v1992_v51, 0.0  ;;  %v2377_v32 = vmul.f32 0.01, %v1687_v62  ;;  %v2766_v5 = vmul.f32 %v8040_v20, %v9938_v34 }
 0x891   :  { %v3331_v56 = vmul.f32 0.01, %v3139_v22  ;;  %v4321_v61 = vadd.f32 %v9334_v19, %v12250_v53  ;;  %vm2185_vm13 = vcmp.ge.f32.partialorder %v1687_v62, 0.0  ;;  %vm3235_vm14 = vcmp.ge.f32.partialorder %v3139_v22, 0.0 }
 0x892   :  { %3031 = vadd.xlane.f32.xlu1 %v3030_v24  ;;  %4908 = vmatmul.f32.gmra.mxu3 %v4793_v49  ;;  %v12251_v24 = vld [vmem:[#allocation225_spill] sm:$0xff]  ;;  %6795 = vrcp.f32 %v4410_v44  ;;  %v9949_v35 = vsel %vm2186_vm12, %v1992_v51, %v2378_v12  ;;  %v3051_v49 = vadd.f32 %v2767_v18, %v2766_v5  ;;  %v9952_v27 = vsel %vm2185_vm13, %v1687_v62, %v2377_v32 }
 0x893   :  { %v9936_v57 = vpop.permute.xlu2 %3879  ;;  %v4315_v45 = vadd.f32 %v9625_v9, %v12251_v24  ;;  %12252 = vst [vmem:[#allocation133_spill] sm:$0xff] %v9949_v35  ;;  %v4417_v7 = vadd.f32 %v9812_v28, %v4321_v61  ;;  %v3427_v4 = vsel %vm3235_vm14, %v3139_v22, %v3331_v56  ;;  %v2769_v19 = vmul.f32 %v8042_v15, %v9949_v35 }
 0x894   :  { %12248 = vst [vmem:[#allocation48_spill] sm:$0xff] %v9936_v57  ;;  %v3601_v2 = vmul.f32 1.442695, %v3427_v4  ;;  %v2768_v51 = vmul.f32 %v8040_v20, %v9952_v27  ;;  %v4322_v28 = vadd.f32 %v9343_v3, %v12255_v10  ;;  %v3141_v3 = vadd.f32 %v8241_v40, %v9704_v16 }
 0x895   :  { %3049 = vadd.xlane.f32.xlu0 %v3048_v52  ;;  %12253 = vst [vmem:[#allocation102_spill] sm:$0xff] %v9952_v27  ;;  %v4411_v52 = vadd.f32 %v9513_v23, %v4315_v45  ;;  %6797 = vrcp.f32 %v4417_v7  ;;  %v12256_v23 = vld [vmem:[#allocation168_spill] sm:$0xff] }
 0x896   :  { %v3054_v62 = vadd.f32 %v2769_v19, %v2768_v51  ;;  %v4418_v12 = vadd.f32 %v9835_v43, %v4322_v28  ;;  %v4323_v56 = vadd.f32 %v9360_v46, %v12256_v23  ;;  %v3144_v19 = vadd.f32 %v8241_v40, %v9850_v38 }
 0x897   :  { %6799 = vrcp.f32 %v4411_v52  ;;  %vm3237_vm15 = vcmp.ge.f32.partialorder %v3141_v3, 0.0 }
 0x898   :  { %v6796_v9 = vpop.eup %6795  ;;  %6801 = vpow2.f32 %v3601_v2  ;;  %vm3240_vm1 = vcmp.ge.f32.partialorder %v3144_v19, 0.0 }
 0x899   :  { %v4538_v22 = vmul.f32 %v6796_v9, %v4410_v44  ;;  %6803 = vrcp.f32 %v4418_v12 }
 0x89b   :  { %v9954_v47 = vpop.permute.xlu2 %3884  ;;  %v6798_v18 = vpop.eup %6797  ;;  %v4570_v5 = vsub.f32 2.0, %v4538_v22 }
 0x89c   :  { %12254 = vst [vmem:[#allocation106_spill] sm:$0xff] %v9954_v47  ;;  %v4545_v61 = vmul.f32 %v6798_v18, %v4417_v7  ;;  %v3333_v7 = vmul.f32 0.01, %v3141_v3 }
 0x89d   :  { %3052 = vadd.xlane.f32.xlu0 %v3051_v49  ;;  %v6800_v53 = vpop.eup %6799  ;;  %v4602_v45 = vmul.f32 %v6796_v9, %v4570_v5 }
 0x89e   :  { %v6802_v24 = vpop.eup %6801  ;;  %v4539_v44 = vmul.f32 %v6800_v53, %v4411_v52  ;;  %v4577_v43 = vsub.f32 2.0, %v4545_v61  ;;  %v3336_v52 = vmul.f32 0.01, %v3144_v19  ;;  %v3429_v10 = vsel %vm3237_vm15, %v3141_v3, %v3333_v7  ;;  %v12258_v3 = vld [vmem:[#allocation78_spill] sm:$0xff] }
 0x89f   :  { %v4419_v49 = vadd.f32 %v6802_v24, %v4323_v56  ;;  %v6804_v4 = vpop.eup %6803  ;;  %v3605_v5 = vmul.f32 1.442695, %v3429_v10  ;;  %v3143_v7 = vadd.f32 %v8241_v40, %v9697_v36 }
 0x8a0   :  { %v4571_v51 = vsub.f32 2.0, %v4539_v44  ;;  %v4609_v16 = vmul.f32 %v6798_v18, %v4577_v43  ;;  %v4546_v9 = vmul.f32 %v6804_v4, %v4418_v12  ;;  %v3432_v23 = vsel %vm3240_vm1, %v3144_v19, %v3336_v52 }
 0x8a1   :  { %6805 = vrcp.f32 %v4419_v49  ;;  %v3611_v18 = vmul.f32 1.442695, %v3432_v23  ;;  %v3335_v10 = vmul.f32 0.01, %v3143_v7  ;;  %vm3239_vm4 = vcmp.ge.f32.partialorder %v3143_v7, 0.0  ;;  %v12262_v23 = vld [vmem:[#allocation42_spill] sm:$0xff] }
 0x8a2   :  { %3055 = vadd.xlane.f32.xlu2 %v3054_v62  ;;  %v4603_v28 = vmul.f32 %v6800_v53, %v4571_v51  ;;  %v4578_v38 = vsub.f32 2.0, %v4546_v9  ;;  %v3079_v53 = vadd.f32 %v8241_v40, %v12258_v3  ;;  %6807 = vrcp.f32 %v9320_v48  ;;  %v12264_v3 = vld [vmem:[#allocation49_spill] sm:$0xff] }
 0x8a3   :  { %v9964_v32 = vpop.permute.xlu2 %3889  ;;  %6809 = vpow2.f32 %v3605_v5  ;;  %v4325_v5 = vadd.f32 %v9687_v37, %v12262_v23 }
 0x8a4   :  { %v4610_v12 = vmul.f32 %v6804_v4, %v4578_v38  ;;  %6811 = vpow2.f32 %v3611_v18  ;;  %v3271_v4 = vmul.f32 0.01, %v3079_v53  ;;  %vm3175_vm3 = vcmp.ge.f32.partialorder %v3079_v53, 0.0 }
 0x8a6   :  { %v3367_v38 = vsel %vm3175_vm3, %v3079_v53, %v3271_v4  ;;  %v12266_v53 = vld [vmem:[#allocation145_spill] sm:$0xff] }
 0x8a7   :  { %v6806_v22 = vpop.eup %6805 }
 0x8a8   :  { %v4547_v44 = vmul.f32 %v6806_v22, %v4419_v49  ;;  %v6808_v52 = vpop.eup %6807 }
 0x8ab   :  { %4656 = vperm.xlu1 %6657, %v4602_v45   ;;  %v9972_v2 = vpop.permute.xlu2 %4671 }
 0x8ac   :  { %v9976_v46 = vmul.f32 %v9972_v2, %v9893_v14 }
 0x8ae   :  { %12257 = vst [vmem:[#allocation181_spill] sm:$0xff] %v9976_v46 }
 0x8b1   :  { %4691 = vperm.xlu0 %6656, %v4609_v16  }
 0x8b2   :  { %v3026_v62 = vpop.xlane.xlu1 %3025  ;;  %v9987_v19 = vpop.xlane.xlu0 %2962 }
 0x8b3   :  { %v3145_v56 = vadd.f32 %v8241_v40, %v3026_v62  ;;  %4661 = vperm.xlu1 %6657, %v4603_v28   ;;  %v9979_v14 = vpop.permute.xlu2 %4009  ;;  %12259 = vst [vmem:[#allocation134_spill] sm:$0xff] %v9987_v19  ;;  %v6810_v28 = vpop.eup %6809 }
 0x8b4   :  { %v4266_v61 = vmul.f32 %v9979_v14, %v9381_v6  ;;  %v4579_v6 = vsub.f32 2.0, %v4547_v44  ;;  %v4421_v44 = vadd.f32 %v6810_v28, %v4325_v5 }
 0x8b5   :  { %v3337_v43 = vmul.f32 0.01, %v3145_v56  ;;  %vm3241_vm2 = vcmp.ge.f32.partialorder %v3145_v56, 0.0 }
 0x8b6   :  { %v4458_v45 = vadd.f32 %v9920_v1, %v4266_v61  ;;  %v12260_v1 = vld [vmem:[#allocation58_spill] sm:$0xff]  ;;  %v4611_v36 = vmul.f32 %v6806_v22, %v4579_v6  ;;  %v10000_v61 = vpop.eup %6811  ;;  %v3481_v22 = vmul.f32 1.442695, %v3367_v38 }
 0x8b7   :  { %v3084_v49 = vadd.f32 %v8241_v40, %v12260_v1  ;;  %v3433_v51 = vsel %vm3241_vm2, %v3145_v56, %v3337_v43  ;;  %v12263_v56 = vld [vmem:[#allocation79_spill] sm:$0xff]  ;;  %v12265_v43 = vld [vmem:[#allocation242_spill] sm:$0xff] }
 0x8b8   :  { %v3613_v62 = vmul.f32 1.442695, %v3433_v51  ;;  %v4206_v18 = vmul.f32 %v9554_v60, %v12263_v56  ;;  %v4328_v1 = vadd.f32 %v12265_v43, %v12264_v3  ;;  %v12267_v6 = vld [vmem:[#allocation186_spill] sm:$0xff] }
 0x8b9   :  { %4696 = vperm.xlu0 %6656, %v4610_v12   ;;  %vm3180_vm5 = vcmp.ge.f32.partialorder %v3084_v49, 0.0  ;;  %v4550_v12 = vmul.f32 %v6808_v52, %v9320_v48  ;;  %v4142_v4 = vmul.f32 %v12267_v6, %v12266_v53  ;;  %v12268_v51 = vld [vmem:[#allocation238_spill] sm:$0xff] }
 0x8ba   :  { %4029 = vperm.xlu2 %6658, %v6802_v24   ;;  %v3276_v24 = vmul.f32 0.01, %v3084_v49  ;;  %6813 = vpow2.f32 %v3613_v62  ;;  %v10009_v37 = vpop.xlane.xlu0 %3043  ;;  %v12271_v43 = vld [vmem:[#allocation126_spill] sm:$0xff] }
 0x8bb   :  { %v9993_v16 = vpop.permute.xlu2 %4681  ;;  %v4366_v48 = vadd.f32 %v4206_v18, %v4142_v4  ;;  %v4582_v56 = vsub.f32 2.0, %v4550_v12  ;;  %6815 = vrcp.f32 %v4421_v44  ;;  %v4123_v18 = vmul.f32 %v9786_v17, %v12271_v43  ;;  %v12274_v4 = vld [vmem:[#allocation56_spill] sm:$0xff]  ;;  %v12276_v17 = vld [vmem:[#allocation113_spill] sm:$0xff] }
 0x8bc   :  { %v9996_v9 = vmul.f32 %v9993_v16, %v4458_v45  ;;  %v3431_v45 = vsel %vm3239_vm4, %v3143_v7, %v3335_v10  ;;  %v3372_v23 = vsel %vm3180_vm5, %v3084_v49, %v3276_v24  ;;  %v12270_v10 = vld [vmem:[#allocation245_spill] sm:$0xff]  ;;  %6817 = vpow2.f32 %v3481_v22  ;;  %v3029_v49 = vpop.xlane.xlu1 %3028 }
 0x8bd   :  { %v3609_v7 = vmul.f32 1.442695, %v3431_v45  ;;  %v3491_v62 = vmul.f32 1.442695, %v3372_v23  ;;  %v4614_v24 = vmul.f32 %v6808_v52, %v4582_v56  ;;  %v12272_v45 = vld [vmem:[#allocation51_spill] sm:$0xff]  ;;  %v3083_v12 = vadd.f32 %v8241_v40, %v12274_v4 }
 0x8be   :  { %12261 = vst [vmem:[#allocation135_spill] sm:$0xff] %v9996_v9 }
 0x8bf   :  { %vm3179_vm6 = vcmp.ge.f32.partialorder %v3083_v12, 0.0 }
 0x8c0   :  { %v10019_v3 = vpop.eup %6813 }
 0x8c1   :  { %4701 = vperm.xlu0 %6656, %v4611_v36   ;;  %v4424_v36 = vadd.f32 %v10000_v61, %v4328_v1  ;;  %v12273_v1 = vld [vmem:[#allocation244_spill] sm:$0xff]  ;;  %v6816_v22 = vpop.eup %6815 }
 0x8c2   :  { %4034 = vperm.xlu2 %6658, %v12268_v51   ;;  %v4329_v53 = vadd.f32 %v12273_v1, %v12272_v45  ;;  %v12275_v51 = vld [vmem:[#allocation52_spill] sm:$0xff]  ;;  %v10031_v52 = vpop.eup %6817  ;;  %v10037_v56 = vpop.xlane.xlu0 %3046  ;;  %v4549_v45 = vmul.f32 %v6816_v22, %v4421_v44  ;;  %v12278_v1 = vld [vmem:[#allocation169_spill] sm:$0xff] }
 0x8c3   :  { %v10012_v9 = vpop.permute.xlu2 %4019  ;;  %6819 = vrcp.f32 %v4424_v36  ;;  %v4187_v23 = vmul.f32 %v9452_v55, %v12275_v51  ;;  %v3275_v55 = vmul.f32 0.01, %v3083_v12 }
 0x8c4   :  { %12269 = vst [vmem:[#allocation103_spill] sm:$0xff] %v10012_v9  ;;  %v4270_v5 = vmul.f32 %v10012_v9, %v12270_v10  ;;  %6821 = vpow2.f32 %v3609_v7  ;;  %v1672_v7 = vadd.f32 %v12276_v17, %v8030_v30  ;;  %v12277_v10 = vld [vmem:[#allocation180_spill] sm:$0xff]  ;;  %v12320_v9 = vld [vmem:[#allocation203_spill] sm:$0xff] }
 0x8c5   :  { %6823 = vpow2.f32 %v3491_v62  ;;  %v4347_v43 = vadd.f32 %v4187_v23, %v4123_v18  ;;  %v12279_v17 = vld [vmem:[#allocation240_spill] sm:$0xff]  ;;  %v12280_v23 = vld [vmem:[#allocation54_spill] sm:$0xff] }
 0x8c6   :  { %v10017_v38 = vadd.f32 %v4366_v48, %v4270_v5  ;;  %v3146_v48 = vadd.f32 %v8241_v40, %v3029_v49  ;;  %v1977_v5 = vadd.f32 %v12277_v10, %v8037_v42  ;;  %v4327_v49 = vadd.f32 %v10031_v52, %v9749_v13 }
 0x8c7   :  { %vm2175_vm7 = vcmp.ge.f32.partialorder %v1672_v7, 0.0  ;;  %v4189_v44 = vmul.f32 %v9802_v54, %v12280_v23  ;;  %v2367_v50 = vmul.f32 0.01, %v1672_v7 }
 0x8c8   :  { %v3338_v4 = vmul.f32 0.01, %v3146_v48  ;;  %v2368_v51 = vmul.f32 0.01, %v1977_v5  ;;  %vm3242_vm8 = vcmp.ge.f32.partialorder %v3146_v48, 0.0  ;;  %vm2176_vm9 = vcmp.ge.f32.partialorder %v1977_v5, 0.0 }
 0x8c9   :  { %4039 = vperm.xlu0 %6656, %v6810_v28   ;;  %v4425_v28 = vadd.f32 %v10019_v3, %v4329_v53  ;;  %v4251_v53 = vmul.f32 %v9784_v25, %v12278_v1  ;;  %v3371_v25 = vsel %vm3179_vm6, %v3083_v12, %v3275_v55  ;;  %v12281_v1 = vld [vmem:[#allocation128_spill] sm:$0xff] }
 0x8ca   :  { %4716 = vperm.xlu2 %6658, %v4614_v24   ;;  %v6820_v24 = vpop.eup %6819  ;;  %v4125_v27 = vmul.f32 %v9798_v11, %v12281_v1  ;;  %v3434_v31 = vsel %vm3242_vm8, %v3146_v48, %v3338_v4  ;;  %v3489_v23 = vmul.f32 1.442695, %v3371_v25 }
 0x8cb   :  { %v10039_v62 = vpop.eup %6821  ;;  %6825 = vrcp.f32 %v4425_v28  ;;  %v4552_v10 = vmul.f32 %v6820_v24, %v4424_v36  ;;  %v4443_v46 = vadd.f32 %v4347_v43, %v4251_v53  ;;  %v12282_v36 = vld [vmem:[#allocation170_spill] sm:$0xff]  ;;  %v10060_v43 = vsel %vm2176_vm9, %v1977_v5, %v2368_v51  ;;  %v12287_v51 = vld [vmem:[#allocation187_spill] sm:$0xff] }
 0x8cc   :  { %v10046_v18 = vpop.eup %6823  ;;  %v4423_v13 = vadd.f32 %v10039_v62, %v4327_v49  ;;  %v4253_v34 = vmul.f32 %v9816_v58, %v12282_v36  ;;  %12284 = vst [vmem:[#allocation45_spill] sm:$0xff] %v10060_v43  ;;  %v12285_v49 = vld [vmem:[#allocation256_spill] sm:$0xff]  ;;  %v4349_v1 = vadd.f32 %v4189_v44, %v4125_v27  ;;  %v10067_v58 = vsel %vm2175_vm7, %v1672_v7, %v2367_v50  ;;  %v12289_v50 = vld [vmem:[#allocation189_spill] sm:$0xff]  ;;  %v12291_v7 = vld [vmem:[#allocation266_spill] sm:$0xff] }
 0x8cd   :  { %v3117_v12 = vadd.f32 %v8241_v40, %v12285_v49  ;;  %v4584_v11 = vsub.f32 2.0, %v4552_v10  ;;  %12286 = vst [vmem:[#allocation212_spill] sm:$0xff] %v10067_v58  ;;  %v3615_v48 = vmul.f32 1.442695, %v3434_v31  ;;  %v12288_v10 = vld [vmem:[#allocation155_spill] sm:$0xff]  ;;  %v2758_v44 = vmul.f32 %v8040_v20, %v10067_v58  ;;  %v12294_v49 = vld [vmem:[#allocation81_spill] sm:$0xff] }
 0x8ce   :  { %6827 = vrcp.f32 %v4423_v13  ;;  %v4204_v27 = vmul.f32 %v12288_v10, %v12287_v51  ;;  %v3115_v31 = vadd.f32 %v8241_v40, %v12289_v50  ;;  %v12295_v50 = vld [vmem:[#allocation107_spill] sm:$0xff] }
 0x8cf   :  { %v3309_v5 = vmul.f32 0.01, %v3117_v12  ;;  %6829 = vpow2.f32 %v3489_v23  ;;  %vm3213_vm10 = vcmp.ge.f32.partialorder %v3117_v12, 0.0 }
 0x8d0   :  { %6831 = vpow2.f32 %v3615_v48  ;;  %vm3211_vm11 = vcmp.ge.f32.partialorder %v3115_v31, 0.0 }
 0x8d1   :  { %4044 = vperm.xlu0 %6656, %v12279_v17   ;;  %v4581_v17 = vsub.f32 2.0, %v4549_v45  ;;  %v6826_v53 = vpop.eup %6825  ;;  %v4616_v45 = vmul.f32 %v6820_v24, %v4584_v11  ;;  %v12293_v24 = vld [vmem:[#allocation61_spill] sm:$0xff]  ;;  %v3087_v11 = vadd.f32 %v8241_v40, %v12294_v49  ;;  %v3405_v23 = vsel %vm3213_vm10, %v3117_v12, %v3309_v5  ;;  %v10093_v5 = vpop.permute.xlu2 %4686 }
 0x8d2   :  { %v4647_v35 = vpop.permute.xlu1 %4646  ;;  %3754 = vperm.xlu2 %6658, %v10046_v18   ;;  %v4553_v4 = vmul.f32 %v6826_v53, %v4425_v28  ;;  %12297 = vst [vmem:[#allocation111_spill] sm:$0xff] %v10093_v5 }
 0x8d3   :  { %v10058_v41 = vmul.f32 %v4647_v35, %v9796_v33  ;;  %v4795_v54 = vmul.f32 %v4647_v35, %v4443_v46  ;;  %v4613_v33 = vmul.f32 %v6816_v22, %v4581_v17  ;;  %v2759_v35 = vmul.f32 %v8042_v15, %v10060_v43  ;;  %v12290_v22 = vld [vmem:[#allocation228_spill] sm:$0xff]  ;;  %v12292_v17 = vld [vmem:[#allocation143_spill] sm:$0xff] }
 0x8d4   :  { %v4445_v46 = vadd.f32 %v4349_v1, %v4253_v34  ;;  %v4316_v25 = vadd.f32 %v12291_v7, %v12290_v22  ;;  %v6828_v34 = vpop.eup %6827  ;;  %v4140_v28 = vmul.f32 %v12293_v24, %v12292_v17  ;;  %v12296_v7 = vld [vmem:[#allocation39_spill] sm:$0xff]  ;;  %v3279_v12 = vmul.f32 0.01, %v3087_v11 }
 0x8d5   :  { %12283 = vst [vmem:[#allocation38_spill] sm:$0xff] %v10058_v41  ;;  %v10064_v55 = vpop.permute.xlu0 %4676  ;;  %4911 = vmatmul.f32.gmra.mxu3 %v4795_v54  ;;  %v3039_v36 = vadd.f32 %v2759_v35, %v2758_v44  ;;  %v4551_v22 = vmul.f32 %v6828_v34, %v4423_v13  ;;  %v10089_v35 = vpop.eup %6829  ;;  %vm3183_vm12 = vcmp.ge.f32.partialorder %v3087_v11, 0.0 }
 0x8d6   :  { %v4797_v54 = vmul.f32 %v9804_v0, %v4445_v46  ;;  %v4364_v51 = vadd.f32 %v4204_v27, %v4140_v28  ;;  %v4412_v17 = vadd.f32 %v12296_v7, %v4316_v25  ;;  %v3557_v0 = vmul.f32 1.442695, %v3405_v23  ;;  %v10091_v44 = vpop.eup %6831  ;;  %v12298_v27 = vld [vmem:[#allocation34_spill] sm:$0xff]  ;;  %v12299_v28 = vld [vmem:[#allocation247_spill] sm:$0xff] }
 0x8d7   :  { %v12301_v25 = vld [vmem:[#allocation62_spill] sm:$0xff]  ;;  %v4583_v23 = vsub.f32 2.0, %v4551_v22 }
 0x8d8   :  { %6833 = vrcp.f32 %v4412_v17  ;;  %v12303_v22 = vld [vmem:[#allocation70_spill] sm:$0xff] }
 0x8d9   :  { %4711 = vperm.xlu0 %6656, %v4613_v33   ;;  %v4585_v33 = vsub.f32 2.0, %v4553_v4  ;;  %6835 = vpow2.f32 %v3557_v0  ;;  %v3086_v0 = vadd.f32 %v8241_v40, %v12303_v22 }
 0x8da   :  { %4726 = vperm.xlu2 %6658, %v4616_v45   ;;  %v3307_v45 = vmul.f32 0.01, %v3115_v31 }
 0x8db   :  { %v4617_v4 = vmul.f32 %v6826_v53, %v4585_v33  ;;  %v4615_v33 = vmul.f32 %v6828_v34, %v4583_v23  ;;  %v3148_v34 = vadd.f32 %v8241_v40, %v9833_v8  ;;  %vm3182_vm15 = vcmp.ge.f32.partialorder %v3086_v0, 0.0 }
 0x8dc   :  { %v3403_v49 = vsel %vm3211_vm11, %v3115_v31, %v3307_v45 }
 0x8dd   :  { %v10084_v1 = vpop.permute.xlu0 %4014  ;;  %3040 = vadd.xlane.f32.xlu1 %v3039_v36  ;;  %4914 = vmatmul.f32.gmra.mxu3 %v4797_v54  ;;  %v4330_v36 = vadd.f32 %v12299_v28, %v12298_v27  ;;  %v3085_v54 = vadd.f32 %v8241_v40, %v12301_v25  ;;  %v12302_v28 = vld [vmem:[#allocation196_spill] sm:$0xff]  ;;  %v3278_v25 = vmul.f32 0.01, %v3086_v0  ;;  %v3340_v23 = vmul.f32 0.01, %v3148_v34 }
 0x8de   :  { %v4268_v48 = vmul.f32 %v10084_v1, %v12295_v50  ;;  %v3375_v50 = vsel %vm3183_vm12, %v3087_v11, %v3279_v12  ;;  %v6834_v27 = vpop.eup %6833  ;;  %v3116_v31 = vadd.f32 %v8241_v40, %v12302_v28  ;;  %vm3244_vm1 = vcmp.ge.f32.partialorder %v3148_v34, 0.0 }
 0x8df   :  { %v3277_v53 = vmul.f32 0.01, %v3085_v54  ;;  %v3497_v7 = vmul.f32 1.442695, %v3375_v50  ;;  %vm3181_vm13 = vcmp.ge.f32.partialorder %v3085_v54, 0.0  ;;  %v4540_v11 = vmul.f32 %v6834_v27, %v4412_v17 }
 0x8e0   :  { %v4460_v46 = vadd.f32 %v4364_v51, %v4268_v48  ;;  %v4426_v51 = vadd.f32 %v10091_v44, %v4330_v36  ;;  %v3553_v48 = vmul.f32 1.442695, %v3403_v49  ;;  %v3308_v36 = vmul.f32 0.01, %v3116_v31 }
 0x8e1   :  { %3749 = vperm.xlu0 %6656, %v10089_v35   ;;  %v3373_v45 = vsel %vm3181_vm13, %v3085_v54, %v3277_v53  ;;  %vm3212_vm14 = vcmp.ge.f32.partialorder %v3116_v31, 0.0  ;;  %v4572_v54 = vsub.f32 2.0, %v4540_v11  ;;  %v3374_v8 = vsel %vm3182_vm15, %v3086_v0, %v3278_v25  ;;  %v12305_v0 = vld [vmem:[#allocation239_spill] sm:$0xff]  ;;  %v12306_v11 = vld [vmem:[#allocation16_spill] sm:$0xff] }
 0x8e2   :  { %v10099_v13 = vmul.f32 %v10093_v5, %v4460_v46  ;;  %4731 = vperm.xlu2 %6658, %v4617_v4   ;;  %6837 = vrcp.f32 %v4426_v51  ;;  %v10104_v46 = vpop.eup %6835  ;;  %v3493_v4 = vmul.f32 1.442695, %v3373_v45  ;;  %v3404_v53 = vsel %vm3212_vm14, %v3116_v31, %v3308_v36 }
 0x8e3   :  { %6839 = vpow2.f32 %v3553_v48  ;;  %v3436_v17 = vsel %vm3244_vm1, %v3148_v34, %v3340_v23  ;;  %v4604_v45 = vmul.f32 %v6834_v27, %v4572_v54  ;;  %v3149_v27 = vadd.f32 %v8241_v40, %v12306_v11 }
 0x8e4   :  { %12300 = vst [vmem:[#allocation116_spill] sm:$0xff] %v10099_v13  ;;  %6841 = vpow2.f32 %v3497_v7  ;;  %v12304_v7 = vld [vmem:[#allocation200_spill] sm:$0xff]  ;;  %v3495_v13 = vmul.f32 1.442695, %v3374_v8  ;;  %v3619_v41 = vmul.f32 1.442695, %v3436_v17 }
 0x8e5   :  { %6843 = vpow2.f32 %v3493_v4  ;;  %v3120_v28 = vadd.f32 %v8241_v40, %v12304_v7  ;;  %v3985_v4 = vpop.permute.xlu1 %3984  ;;  %vm3245_vm3 = vcmp.ge.f32.partialorder %v3149_v27, 0.0 }
 0x8e7   :  { %vm3216_vm2 = vcmp.ge.f32.partialorder %v3120_v28, 0.0 }
 0x8e8   :  { %v6838_v12 = vpop.eup %6837 }
 0x8e9   :  { %4721 = vperm.xlu0 %6656, %v4615_v33   ;;  %v10113_v49 = vpop.eup %6839  ;;  %v4554_v50 = vmul.f32 %v6838_v12, %v4426_v51  ;;  %v3555_v33 = vmul.f32 1.442695, %v3404_v53  ;;  %v3312_v51 = vmul.f32 0.01, %v3120_v28 }
 0x8ea   :  { %3919 = vperm.xlu2 %6658, %v10104_v46   ;;  %v10116_v48 = vpop.eup %6841 }
 0x8eb   :  { %v4586_v22 = vsub.f32 2.0, %v4554_v50  ;;  %v10121_v21 = vpop.eup %6843  ;;  %6845 = vpow2.f32 %v3555_v33  ;;  %v3408_v34 = vsel %vm3216_vm2, %v3120_v28, %v3312_v51  ;;  %v12307_v33 = vld [vmem:[#allocation37_spill] sm:$0xff] }
 0x8ec   :  { %6847 = vpow2.f32 %v3495_v13  ;;  %v3563_v23 = vmul.f32 1.442695, %v3408_v34 }
 0x8ed   :  { %v4618_v31 = vmul.f32 %v6838_v12, %v4586_v22  ;;  %6849 = vpow2.f32 %v3619_v41  ;;  %v3341_v12 = vmul.f32 0.01, %v3149_v27 }
 0x8ee   :  { %6851 = vrcp.f32 %v12305_v0 }
 0x8ef   :  { %6853 = vpow2.f32 %v3563_v23  ;;  %v3437_v53 = vsel %vm3245_vm3, %v3149_v27, %v3341_v12 }
 0x8f0   :  { %v3621_v7 = vmul.f32 1.442695, %v3437_v53  ;;  %v12308_v53 = vld [vmem:[#allocation262_spill] sm:$0xff] }
 0x8f1   :  { %3909 = vperm.xlu0 %6656, %v10113_v49   ;;  %v10127_v36 = vpop.eup %6845 }
 0x8f2   :  { %3769 = vperm.xlu2 %6658, %v10116_v48   ;;  %v10130_v25 = vpop.eup %6847  ;;  %v4332_v13 = vadd.f32 %v10127_v36, %v10046_v18 }
 0x8f3   :  { %v6850_v54 = vpop.eup %6849 }
 0x8f4   :  { %v6852_v41 = vpop.eup %6851  ;;  %v4428_v50 = vadd.f32 %v6850_v54, %v4332_v13 }
 0x8f5   :  { %v4548_v8 = vmul.f32 %v6852_v41, %v12305_v0  ;;  %v10138_v22 = vpop.eup %6853  ;;  %v10141_v0 = vpop.permute.xlu2 %4024 }
 0x8f6   :  { %4666 = vperm.xlu1 %6657, %v4604_v45   ;;  %6855 = vrcp.f32 %v4428_v50 }
 0x8f7   :  { %v4580_v45 = vsub.f32 2.0, %v4548_v8  ;;  %6857 = vpow2.f32 %v3621_v7  ;;  %v3119_v8 = vadd.f32 %v8241_v40, %v12308_v53  ;;  %v12311_v7 = vld [vmem:[#allocation178_spill] sm:$0xff] }
 0x8f9   :  { %3759 = vperm.xlu0 %6656, %v10121_v21   ;;  %v3311_v43 = vmul.f32 0.01, %v3119_v8  ;;  %vm3215_vm5 = vcmp.ge.f32.partialorder %v3119_v8, 0.0 }
 0x8fa   :  { %4736 = vperm.xlu2 %6658, %v4618_v31   ;;  %v4612_v31 = vmul.f32 %v6852_v41, %v4580_v45 }
 0x8fc   :  { %v6856_v34 = vpop.eup %6855 }
 0x8fd   :  { %v4556_v27 = vmul.f32 %v6856_v34, %v4428_v50  ;;  %v10145_v23 = vpop.eup %6857 }
 0x8fe   :  { %3729 = vperm.xlu1 %6657, %v10031_v52  }
 0x8ff   :  { %v4588_v13 = vsub.f32 2.0, %v4556_v27 }
 0x901   :  { %3764 = vperm.xlu0 %6656, %v10130_v25   ;;  %v4620_v58 = vmul.f32 %v6856_v34, %v4588_v13  ;;  %v12323_v34 = vld [vmem:[#allocation105_spill] sm:$0xff] }
 0x902   :  { %4074 = vperm.xlu2 %6658, %v6850_v54   ;;  %v4331_v54 = vadd.f32 %v10113_v49, %v10089_v35  ;;  %v12312_v35 = vld [vmem:[#allocation130_spill] sm:$0xff]  ;;  %v12324_v13 = vld [vmem:[#allocation261_spill] sm:$0xff] }
 0x903   :  { %v12313_v49 = vld [vmem:[#allocation174_spill] sm:$0xff] }
 0x904   :  { %v4127_v45 = vmul.f32 %v12313_v49, %v12312_v35  ;;  %v12319_v35 = vld [vmem:[#allocation149_spill] sm:$0xff] }
 0x905   :  { %v3032_v17 = vpop.xlane.xlu1 %3031  ;;  %v4146_v6 = vmul.f32 %v12320_v9, %v12319_v35 }
 0x906   :  { %v3147_v52 = vadd.f32 %v8241_v40, %v3032_v17  ;;  %4004 = vperm.xlu1 %6657, %v12307_v33   ;;  %v12310_v33 = vld [vmem:[#allocation259_spill] sm:$0xff] }
 0x908   :  { %vm3243_vm4 = vcmp.ge.f32.partialorder %v3147_v52, 0.0  ;;  %v3339_v28 = vmul.f32 0.01, %v3147_v52  ;;  %v10143_v11 = vpop.xlane.xlu0 %3049 }
 0x90a   :  { %v3435_v51 = vsel %vm3243_vm4, %v3147_v52, %v3339_v28  ;;  %3934 = vperm.xlu2 %6658, %v10138_v22   ;;  %v12309_v52 = vld [vmem:[#allocation104_spill] sm:$0xff]  ;;  %v4192_v28 = vmul.f32 %v12310_v33, %v12311_v7 }
 0x90b   :  { %v3617_v18 = vmul.f32 1.442695, %v3435_v51  ;;  %v4191_v50 = vmul.f32 %v12310_v33, %v12309_v52  ;;  %v12314_v51 = vld [vmem:[#allocation131_spill] sm:$0xff] }
 0x90c   :  { %v12317_v52 = vld [vmem:[#allocation191_spill] sm:$0xff] }
 0x90d   :  { %6859 = vpow2.f32 %v3617_v18  ;;  %v4128_v18 = vmul.f32 %v12313_v49, %v12314_v51  ;;  %v4210_v33 = vmul.f32 %v12318_v63, %v12317_v52  ;;  %v12321_v49 = vld [vmem:[#allocation132_spill] sm:$0xff]  ;;  %v12322_v51 = vld [vmem:[#allocation171_spill] sm:$0xff] }
 0x90e   :  { %4706 = vperm.xlu1 %6657, %v4612_v31   ;;  %v12315_v31 = vld [vmem:[#allocation100_spill] sm:$0xff] }
 0x90f   :  { %v4255_v27 = vmul.f32 %v3985_v4, %v12315_v31  ;;  %v4352_v29 = vadd.f32 %v4192_v28, %v4128_v18  ;;  %v4129_v31 = vmul.f32 %v12322_v51, %v12321_v49  ;;  %v4193_v28 = vmul.f32 %v12324_v13, %v12323_v34  ;;  %v12329_v34 = vld [vmem:[#allocation50_spill] sm:$0xff]  ;;  %v12332_v13 = vld [vmem:[#allocation227_spill] sm:$0xff] }
 0x910   :  { %v10170_v7 = vpop.xlane.xlu0 %3052  ;;  %v3407_v18 = vsel %vm3215_vm5, %v3119_v8, %v3311_v43  ;;  %v4370_v63 = vadd.f32 %v4210_v33, %v4146_v6  ;;  %v12327_v43 = vld [vmem:[#allocation195_spill] sm:$0xff]  ;;  %v12328_v8 = vld [vmem:[#allocation260_spill] sm:$0xff] }
 0x911   :  { %v4212_v51 = vmul.f32 %v12328_v8, %v12327_v43  ;;  %v12331_v33 = vld [vmem:[#allocation72_spill] sm:$0xff] }
 0x912   :  { %4079 = vperm.xlu2 %6658, %v10145_v23  }
 0x913   :  { %v10150_v12 = vpop.eup %6859 }
 0x914   :  { %v4427_v41 = vadd.f32 %v10150_v12, %v4331_v54  ;;  %v12316_v54 = vld [vmem:[#allocation101_spill] sm:$0xff] }
 0x915   :  { %v10155_v17 = vpop.xlane.xlu2 %3055  ;;  %v4256_v53 = vmul.f32 %v3985_v4, %v12316_v54 }
 0x916   :  { %4049 = vperm.xlu1 %6657, %v10039_v62   ;;  %6861 = vrcp.f32 %v4427_v41  ;;  %v4351_v62 = vadd.f32 %v4191_v50, %v4127_v45  ;;  %v12326_v50 = vld [vmem:[#allocation192_spill] sm:$0xff] }
 0x917   :  { %v4448_v5 = vadd.f32 %v4352_v29, %v4256_v53  ;;  %v3561_v29 = vmul.f32 1.442695, %v3407_v18  ;;  %v12337_v18 = vld [vmem:[#allocation194_spill] sm:$0xff] }
 0x918   :  { %v4447_v4 = vadd.f32 %v4351_v62, %v4255_v27  ;;  %v4353_v27 = vadd.f32 %v4193_v28, %v4129_v31  ;;  %v12334_v31 = vld [vmem:[#allocation151_spill] sm:$0xff] }
 0x919   :  { %6863 = vpow2.f32 %v3561_v29  ;;  %v12336_v28 = vld [vmem:[#allocation147_spill] sm:$0xff] }
 0x91a   :  { %4746 = vperm.xlu2 %6658, %v4620_v58  }
 0x91c   :  { %v6862_v19 = vpop.eup %6861 }
 0x91d   :  { %v4657_v54 = vpop.permute.xlu1 %4656  ;;  %v10178_v60 = vpop.permute.xlu2 %4029  ;;  %v4555_v52 = vmul.f32 %v6862_v19, %v4427_v41  ;;  %v12330_v41 = vld [vmem:[#allocation214_spill] sm:$0xff] }
 0x91e   :  { %v10180_v58 = vmul.f32 %v4657_v54, %v4448_v5  ;;  %v4274_v45 = vmul.f32 %v10178_v60, %v12326_v50  ;;  %4054 = vperm.xlu1 %6657, %v10000_v61   ;;  %v4799_v35 = vmul.f32 %v4657_v54, %v4447_v4  ;;  %v4257_v6 = vmul.f32 %v12330_v41, %v12329_v34  ;;  %v12335_v4 = vld [vmem:[#allocation206_spill] sm:$0xff] }
 0x91f   :  { %v4587_v49 = vsub.f32 2.0, %v4555_v52  ;;  %v4208_v50 = vmul.f32 %v12332_v13, %v12331_v33  ;;  %v4144_v54 = vmul.f32 %v12337_v18, %v12336_v28  ;;  %v12338_v52 = vld [vmem:[#allocation252_spill] sm:$0xff] }
 0x920   :  { %12325 = vst [vmem:[#allocation122_spill] sm:$0xff] %v10180_v58  ;;  %4917 = vmatmul.f32.gmra.mxu3 %v4799_v35  ;;  %v4466_v53 = vadd.f32 %v4370_v63, %v4274_v45  ;;  %v4148_v63 = vmul.f32 %v12335_v4, %v12334_v31  ;;  %v4272_v45 = vmul.f32 %v10141_v0, %v12338_v52  ;;  %v10213_v31 = vpop.eup %6863  ;;  %v12347_v52 = vld [vmem:[#allocation69_spill] sm:$0xff]  ;;  %v5482_v58 = vld [vmem:[#allocation2 + $0x520] sm:$0xff] }
 0x921   :  { %v4619_v62 = vmul.f32 %v6862_v19, %v4587_v49  ;;  %v4449_v19 = vadd.f32 %v4353_v27, %v4257_v6  ;;  %v4368_v27 = vadd.f32 %v4208_v50, %v4144_v54  ;;  %5613 = vmatpush.msra.mxu2 %v5482_v58 }
 0x922   :  { %v4372_v43 = vadd.f32 %v4212_v51, %v4148_v63 }
 0x923   :  { %v10189_v5 = vpop.permute.xlu0 %4691  ;;  %4741 = vperm.xlu0 %6656, %v4619_v62   ;;  %v12340_v62 = vld [vmem:[#allocation125_spill] sm:$0xff]  ;;  %v4464_v33 = vadd.f32 %v4368_v27, %v4272_v45  ;;  %v4214_v45 = vmul.f32 %v9936_v57, %v12347_v52  ;;  %v12355_v52 = vld [vmem:[#allocation12_spill] sm:$0xff]  ;;  %v12375_v57 = vld [vmem:[#allocation98_spill] sm:$0xff] }
 0x924   :  { %v10195_v61 = vmul.f32 %v10189_v5, %v10017_v38  ;;  %v12342_v38 = vld [vmem:[#allocation197_spill] sm:$0xff] }
 0x925   :  { %v4662_v35 = vpop.permute.xlu1 %4661  ;;  %v10203_v49 = vpop.permute.xlu2 %4034 }
 0x926   :  { %12333 = vst [vmem:[#allocation47_spill] sm:$0xff] %v10195_v61  ;;  %v10206_v34 = vmul.f32 %v4662_v35, %v12340_v62  ;;  %v4276_v41 = vmul.f32 %v10203_v49, %v12342_v38  ;;  %3914 = vperm.xlu1 %6657, %v10127_v36   ;;  %v4801_v29 = vmul.f32 %v4662_v35, %v4449_v19  ;;  %v10224_v36 = vpop.f32.mrf.mxu3  ;;  %v12348_v35 = vld [vmem:[#allocation153_spill] sm:$0xff]  ;;  %v12358_v61 = vld [vmem:[#allocation204_spill] sm:$0xff] }
 0x927   :  { %12339 = vst [vmem:[#allocation123_spill] sm:$0xff] %v10203_v49 }
 0x928   :  { %12341 = vst [vmem:[#allocation95_spill] sm:$0xff] %v10206_v34  ;;  %4920 = vmatmul.f32.gmra.mxu3 %v4801_v29  ;;  %v10211_v6 = vadd.f32 %v4372_v43, %v4276_v41  ;;  %v12349_v43 = vld [vmem:[#allocation213_spill] sm:$0xff]  ;;  %v12352_v29 = vld [vmem:[#allocation248_spill] sm:$0xff] }
 0x929   :  { %12345 = vst [vmem:[#allocation137_spill] sm:$0xff] %v10224_v36  ;;  %v4150_v62 = vmul.f32 %v12349_v43, %v12348_v35 }
 0x92b   :  { %v10215_v28 = vpop.permute.xlu0 %4696  ;;  %3929 = vperm.xlu0 %6656, %v10213_v31   ;;  %v4374_v41 = vadd.f32 %v4214_v45, %v4150_v62  ;;  %v12359_v62 = vld [vmem:[#allocation257_spill] sm:$0xff] }
 0x92c   :  { %v10219_v51 = vmul.f32 %v10215_v28, %v4464_v33 }
 0x92d   :  { %v10221_v63 = vpop.permute.xlu2 %4716 }
 0x92e   :  { %12343 = vst [vmem:[#allocation96_spill] sm:$0xff] %v10219_v51  ;;  %4059 = vperm.xlu1 %6657, %v10019_v3   ;;  %v10238_v38 = vpop.f32.mrf.mxu3 }
 0x92f   :  { %12344 = vst [vmem:[#allocation183_spill] sm:$0xff] %v10221_v63 }
 0x930   :  { %12350 = vst [vmem:[#allocation172_spill] sm:$0xff] %v10238_v38 }
 0x933   :  { %v10226_v50 = vpop.permute.xlu0 %4701 }
 0x934   :  { %v10229_v19 = vmul.f32 %v10226_v50, %v4466_v53 }
 0x935   :  { %v10231_v54 = vpop.permute.xlu2 %3754 }
 0x936   :  { %12346 = vst [vmem:[#allocation177_spill] sm:$0xff] %v10229_v19  ;;  %4064 = vperm.xlu1 %6657, %v10091_v44   ;;  %v12354_v44 = vld [vmem:[#allocation163_spill] sm:$0xff]  ;;  %v12356_v19 = vld [vmem:[#allocation209_spill] sm:$0xff]  ;;  %v10257_v34 = vpop.f32.mrf.mxu3 }
 0x937   :  { %v4216_v36 = vmul.f32 %v9954_v47, %v12354_v44  ;;  %v4152_v51 = vmul.f32 %v12356_v19, %v12355_v52  ;;  %12360 = vst [vmem:[#allocation65_spill] sm:$0xff] %v10257_v34  ;;  %v3151_v34 = vadd.f32 %v8241_v40, %v10009_v37  ;;  %v3152_v19 = vadd.f32 %v8241_v40, %v10037_v56 }
 0x939   :  { %v4376_v38 = vadd.f32 %v4216_v36, %v4152_v51  ;;  %v4884_v36 = vld [vmem:[#allocation2 + $0x320] sm:$0xff]  ;;  %vm3247_vm8 = vcmp.ge.f32.partialorder %v3151_v34, 0.0  ;;  %v3344_v56 = vmul.f32 0.01, %v3152_v19  ;;  %vm3248_vm14 = vcmp.ge.f32.partialorder %v3152_v19, 0.0 }
 0x93a   :  { %4999 = vmatpush.msra.mxu3 %v4884_v36  ;;  %v12367_v36 = vld [vmem:[#allocation205_spill] sm:$0xff] }
 0x93b   :  { %v10240_v3 = vpop.permute.xlu0 %4039  ;;  %v3121_v37 = vadd.f32 %v8241_v40, %v12367_v36 }
 0x93c   :  { %12351 = vst [vmem:[#allocation124_spill] sm:$0xff] %v10240_v3  ;;  %v4278_v27 = vmul.f32 %v10240_v3, %v12352_v29  ;;  %v3118_v29 = vadd.f32 %v8241_v40, %v12359_v62 }
 0x93d   :  { %v10244_v53 = vpop.permute.xlu2 %4726  ;;  %v3313_v36 = vmul.f32 0.01, %v3121_v37  ;;  %vm3217_vm9 = vcmp.ge.f32.partialorder %v3121_v37, 0.0 }
 0x93e   :  { %12353 = vst [vmem:[#allocation117_spill] sm:$0xff] %v10244_v53  ;;  %v4470_v33 = vadd.f32 %v4374_v41, %v4278_v27  ;;  %4069 = vperm.xlu1 %6657, %v10150_v12   ;;  %v5950_v12 = vld [vmem:[#allocation2 + $0x720] sm:$0xff]  ;;  %v3310_v52 = vmul.f32 0.01, %v3118_v29  ;;  %vm3214_vm6 = vcmp.ge.f32.partialorder %v3118_v29, 0.0  ;;  %v3153_v53 = vadd.f32 %v8241_v40, %v10143_v11 }
 0x93f   :  { %5952 = vmatpush.msrb.mxu0 %v5950_v12  ;;  %v10273_v12 = vpop.f32.mrf.mxu3 }
 0x940   :  { %12365 = vst [vmem:[#allocation221_spill] sm:$0xff] %v10273_v12  ;;  %v12368_v12 = vld [vmem:[#allocation184_spill] sm:$0xff]  ;;  %vm3249_vm12 = vcmp.ge.f32.partialorder %v3153_v53, 0.0 }
 0x943   :  { %v10251_v35 = vpop.permute.xlu0 %4044 }
 0x944   :  { %12357 = vst [vmem:[#allocation97_spill] sm:$0xff] %v10251_v35  ;;  %v4280_v45 = vmul.f32 %v10251_v35, %v12358_v61 }
 0x945   :  { %v10259_v27 = vpop.permute.xlu2 %4731 }
 0x946   :  { %v4472_v41 = vadd.f32 %v4376_v38, %v4280_v45  ;;  %12361 = vst [vmem:[#allocation66_spill] sm:$0xff] %v10259_v27  ;;  %v4333_v38 = vadd.f32 %v10121_v21, %v10104_v46  ;;  %v3406_v45 = vsel %vm3214_vm6, %v3118_v29, %v3310_v52  ;;  %v3343_v27 = vmul.f32 0.01, %v3151_v34  ;;  %v1994_v46 = vpop.f32.mrf.mxu2 }
 0x948   :  { %v10262_v44 = vmul.f32 %v10221_v63, %v4472_v41  ;;  %v3559_v41 = vmul.f32 1.442695, %v3406_v45  ;;  %v4429_v58 = vadd.f32 %v10145_v23, %v4333_v38  ;;  %v3089_v23 = vadd.f32 %v8241_v40, %v12368_v12 }
 0x949   :  { %v3439_v38 = vsel %vm3247_vm8, %v3151_v34, %v3343_v27  ;;  %v4883_v34 = vld [vmem:[#allocation2 + $0x310] sm:$0xff]  ;;  %v3345_v27 = vmul.f32 0.01, %v3153_v53 }
 0x94a   :  { %12362 = vst [vmem:[#allocation140_spill] sm:$0xff] %v10262_v44  ;;  %6865 = vpow2.f32 %v3559_v41  ;;  %v10288_v41 = vpop.f32.mrf.mxu3  ;;  %v3281_v12 = vmul.f32 0.01, %v3089_v23  ;;  %vm3185_vm10 = vcmp.ge.f32.partialorder %v3089_v23, 0.0  ;;  %5000 = vmatpush.msra.mxu3 %v4883_v34 }
 0x94b   :  { %v10264_v51 = vpop.permute.xlu0 %4711  ;;  %6867 = vrcp.f32 %v4429_v58  ;;  %12369 = vst [vmem:[#allocation234_spill] sm:$0xff] %v10288_v41  ;;  %v3441_v47 = vsel %vm3249_vm12, %v3153_v53, %v3345_v27 }
 0x94c   :  { %12363 = vst [vmem:[#allocation141_spill] sm:$0xff] %v10264_v51  ;;  %v10267_v61 = vmul.f32 %v10264_v51, %v4470_v33  ;;  %v3377_v41 = vsel %vm3185_vm10, %v3089_v23, %v3281_v12 }
 0x94d   :  { %v10271_v62 = vpop.permute.xlu2 %3919 }
 0x94e   :  { %12364 = vst [vmem:[#allocation25_spill] sm:$0xff] %v10267_v61 }
 0x950   :  { %v3041_v44 = vpop.xlane.xlu1 %3040  ;;  %v10292_v63 = vpop.eup %6865 }
 0x951   :  { %v3150_v33 = vadd.f32 %v8241_v40, %v3041_v44  ;;  %v1995_v44 = vadd.f32 %v1994_v46, %v8037_v42  ;;  %v4334_v46 = vadd.f32 %v10292_v63, %v10130_v25 }
 0x953   :  { %v10279_v61 = vpop.permute.xlu0 %3749  ;;  %vm3246_vm7 = vcmp.ge.f32.partialorder %v3150_v33, 0.0  ;;  %v3342_v21 = vmul.f32 0.01, %v3150_v33  ;;  %v2380_v42 = vmul.f32 0.01, %v1995_v44  ;;  %vm2188_vm11 = vcmp.ge.f32.partialorder %v1995_v44, 0.0 }
 0x955   :  { %v3438_v29 = vsel %vm3246_vm7, %v3150_v33, %v3342_v21  ;;  %v10281_v52 = vpop.permute.xlu2 %3769  ;;  %v12370_v33 = vld [vmem:[#allocation119_spill] sm:$0xff]  ;;  %v10302_v35 = vsel %vm2188_vm11, %v1995_v44, %v2380_v42 }
 0x956   :  { %12366 = vst [vmem:[#allocation118_spill] sm:$0xff] %v10281_v52  ;;  %v3623_v45 = vmul.f32 1.442695, %v3438_v29  ;;  %v1690_v21 = vadd.f32 %v12370_v33, %v8030_v30  ;;  %v6868_v52 = vpop.eup %6867  ;;  %v3625_v29 = vmul.f32 1.442695, %v3439_v38  ;;  %v3409_v38 = vsel %vm3217_vm9, %v3121_v37, %v3313_v36  ;;  %v10310_v37 = vpop.f32.mrf.mxu3 }
 0x957   :  { %v4557_v30 = vmul.f32 %v6868_v52, %v4429_v58  ;;  %12372 = vst [vmem:[#allocation225_spill] sm:$0xff] %v10302_v35  ;;  %v3565_v25 = vmul.f32 1.442695, %v3409_v38  ;;  %v12374_v58 = vld [vmem:[#allocation175_spill] sm:$0xff]  ;;  %v2771_v44 = vmul.f32 %v8042_v15, %v10302_v35  ;;  %v3629_v36 = vmul.f32 1.442695, %v3441_v47 }
 0x958   :  { %6869 = vpow2.f32 %v3623_v45  ;;  %v2379_v11 = vmul.f32 0.01, %v1690_v21  ;;  %vm2187_vm13 = vcmp.ge.f32.partialorder %v1690_v21, 0.0  ;;  %v4259_v49 = vmul.f32 %v12375_v57, %v12374_v58  ;;  %12376 = vst [vmem:[#allocation168_spill] sm:$0xff] %v10310_v37  ;;  %v12380_v57 = vld [vmem:[#allocation208_spill] sm:$0xff] }
 0x959   :  { %6871 = vpow2.f32 %v3625_v29  ;;  %v4589_v43 = vsub.f32 2.0, %v4557_v30  ;;  %v12377_v29 = vld [vmem:[#allocation26_spill] sm:$0xff]  ;;  %v4335_v15 = vadd.f32 %v10213_v31, %v10116_v48  ;;  %v12381_v38 = vld [vmem:[#allocation136_spill] sm:$0xff]  ;;  %v3440_v37 = vsel %vm3248_vm14, %v3152_v19, %v3344_v56  ;;  %v12383_v31 = vld [vmem:[#allocation59_spill] sm:$0xff] }
 0x95a   :  { %v10306_v3 = vsel %vm2187_vm13, %v1690_v21, %v2379_v11  ;;  %v4162_v53 = vmul.f32 %v10279_v61, %v12377_v29  ;;  %v12378_v21 = vld [vmem:[#allocation80_spill] sm:$0xff]  ;;  %v3122_v11 = vadd.f32 %v8241_v40, %v12380_v57  ;;  %v4133_v58 = vmul.f32 %v12229_v26, %v12381_v38 }
 0x95b   :  { %v10296_v51 = vpop.permute.xlu0 %4721  ;;  %12373 = vst [vmem:[#allocation161_spill] sm:$0xff] %v10306_v3 }
 0x95c   :  { %vm3218_vm15 = vcmp.ge.f32.partialorder %v3122_v11, 0.0 }
 0x95d   :  { %v10300_v45 = vpop.permute.xlu2 %4736 }
 0x95e   :  { %12371 = vst [vmem:[#allocation64_spill] sm:$0xff] %v10300_v45  ;;  %v6870_v33 = vpop.eup %6869  ;;  %v3501_v45 = vmul.f32 1.442695, %v3377_v41  ;;  %v12379_v41 = vld [vmem:[#allocation190_spill] sm:$0xff] }
 0x95f   :  { %4084 = vperm.xlu2 %6658, %v6870_v33   ;;  %v4430_v34 = vadd.f32 %v6870_v33, %v4334_v46  ;;  %v6872_v42 = vpop.eup %6871  ;;  %v3090_v27 = vadd.f32 %v8241_v40, %v12379_v41  ;;  %v2770_v46 = vmul.f32 %v8040_v20, %v10306_v3  ;;  %v4621_v33 = vmul.f32 %v6868_v52, %v4589_v43 }
 0x960   :  { %v3154_v20 = vadd.f32 %v8241_v40, %v10170_v7  ;;  %v4431_v48 = vadd.f32 %v6872_v42, %v4335_v15  ;;  %v3314_v43 = vmul.f32 0.01, %v3122_v11  ;;  %v12388_v7 = vld [vmem:[#allocation241_spill] sm:$0xff] }
 0x961   :  { %6873 = vrcp.f32 %v4430_v34  ;;  %v3057_v29 = vadd.f32 %v2771_v44, %v2770_v46  ;;  %v12385_v44 = vld [vmem:[#allocation218_spill] sm:$0xff]  ;;  %vm3186_vm1 = vcmp.ge.f32.partialorder %v3090_v27, 0.0  ;;  %v3627_v46 = vmul.f32 1.442695, %v3440_v37  ;;  %v10355_v37 = vpop.f32.mrf.mxu3 }
 0x962   :  { %6875 = vpow2.f32 %v3565_v25  ;;  %v3088_v25 = vadd.f32 %v8241_v40, %v12383_v31  ;;  %v12390_v31 = vld [vmem:[#allocation31_spill] sm:$0xff]  ;;  %12391 = vst [vmem:[#allocation58_spill] sm:$0xff] %v10355_v37  ;;  %vm3250_vm2 = vcmp.ge.f32.partialorder %v3154_v20, 0.0 }
 0x963   :  { %v10312_v23 = vpop.permute.xlu0 %3909  ;;  %6877 = vpow2.f32 %v3501_v45  ;;  %v12384_v45 = vld [vmem:[#allocation63_spill] sm:$0xff] }
 0x964   :  { %v4226_v12 = vmul.f32 %v10312_v23, %v12378_v21  ;;  %v12382_v21 = vld [vmem:[#allocation46_spill] sm:$0xff]  ;;  %6879 = vpow2.f32 %v3629_v36  ;;  %v4261_v36 = vmul.f32 %v9881_v39, %v12388_v7  ;;  %v3410_v39 = vsel %vm3218_vm15, %v3122_v11, %v3314_v43 }
 0x965   :  { %v10330_v30 = vpop.permute.xlu2 %4074  ;;  %v4451_v41 = vadd.f32 %v12382_v21, %v4259_v49  ;;  %v4197_v49 = vmul.f32 %v12385_v44, %v12384_v45  ;;  %6881 = vrcp.f32 %v4431_v48  ;;  %v3280_v44 = vmul.f32 0.01, %v3088_v25 }
 0x966   :  { %v10328_v47 = vadd.f32 %v4226_v12, %v4162_v53  ;;  %v3282_v53 = vmul.f32 0.01, %v3090_v27  ;;  %v12386_v12 = vld [vmem:[#allocation35_spill] sm:$0xff]  ;;  %vm3184_vm3 = vcmp.ge.f32.partialorder %v3088_v25, 0.0  ;;  %v3567_v35 = vmul.f32 1.442695, %v3410_v39 }
 0x967   :  { %v6874_v57 = vpop.eup %6873  ;;  %4751 = vperm.xlu2 %6658, %v4621_v33   ;;  %6883 = vpow2.f32 %v3627_v46  ;;  %v3376_v37 = vsel %vm3184_vm3, %v3088_v25, %v3280_v44 }
 0x968   :  { %v4667_v52 = vpop.permute.xlu1 %4666  ;;  %3058 = vadd.xlane.f32.xlu1 %v3057_v29  ;;  %v4558_v26 = vmul.f32 %v6874_v57, %v4430_v34  ;;  %v10348_v38 = vpop.eup %6875  ;;  %v3346_v29 = vmul.f32 0.01, %v3154_v20  ;;  %v12389_v34 = vld [vmem:[#allocation229_spill] sm:$0xff]  ;;  %v3378_v7 = vsel %vm3186_vm1, %v3090_v27, %v3282_v53  ;;  %v12393_v53 = vld [vmem:[#allocation199_spill] sm:$0xff]  ;;  %6885 = vpow2.f32 %v3567_v35 }
 0x969   :  { %v10342_v19 = vmul.f32 %v4667_v52, %v12386_v12  ;;  %v4803_v56 = vmul.f32 %v4667_v52, %v4451_v41  ;;  %v4230_v21 = vmul.f32 %v10271_v62, %v12389_v34  ;;  %v4882_v41 = vld [vmem:[#allocation2 + $0x300] sm:$0xff]  ;;  %v6878_v52 = vpop.eup %6877  ;;  %v3499_v46 = vmul.f32 1.442695, %v3376_v37  ;;  %v12400_v35 = vld [vmem:[#allocation217_spill] sm:$0xff]  ;;  %v12401_v37 = vld [vmem:[#allocation138_spill] sm:$0xff] }
 0x96a   :  { %v4590_v33 = vsub.f32 2.0, %v4558_v26  ;;  %5001 = vmatpush.msra.mxu3 %v4882_v41  ;;  %v10357_v12 = vpop.eup %6879  ;;  %v3442_v11 = vsel %vm3250_vm2, %v3154_v20, %v3346_v29 }
 0x96b   :  { %12387 = vst [vmem:[#allocation78_spill] sm:$0xff] %v10342_v19  ;;  %v10346_v15 = vpop.permute.xlu0 %3759  ;;  %4923 = vmatmul.f32.gmra.mxu3 %v4803_v56  ;;  %v4357_v56 = vadd.f32 %v4197_v49, %v4133_v58  ;;  %v6882_v58 = vpop.eup %6881  ;;  %v4218_v49 = vmul.f32 %v9964_v32, %v12393_v53  ;;  %v12404_v53 = vld [vmem:[#allocation86_spill] sm:$0xff] }
 0x96c   :  { %v4166_v45 = vmul.f32 %v10346_v15, %v12390_v31  ;;  %v4622_v26 = vmul.f32 %v6874_v57, %v4590_v33  ;;  %v4337_v31 = vadd.f32 %v6878_v52, %v10348_v38  ;;  %v3503_v57 = vmul.f32 1.442695, %v3378_v7  ;;  %v12392_v33 = vld [vmem:[#allocation201_spill] sm:$0xff]  ;;  %v12396_v7 = vld [vmem:[#allocation68_spill] sm:$0xff] }
 0x96d   :  { %v10360_v19 = vpop.permute.xlu2 %3934  ;;  %v4453_v43 = vadd.f32 %v4357_v56, %v4261_v36  ;;  %v4217_v41 = vmul.f32 %v9964_v32, %v12392_v33  ;;  %v4559_v29 = vmul.f32 %v6882_v58, %v4431_v48  ;;  %v6884_v44 = vpop.eup %6883  ;;  %v12397_v32 = vld [vmem:[#allocation258_spill] sm:$0xff]  ;;  %v12402_v48 = vld [vmem:[#allocation57_spill] sm:$0xff] }
 0x96e   :  { %v4390_v34 = vadd.f32 %v4230_v21, %v4166_v45  ;;  %4756 = vperm.xlu0 %6656, %v4622_v26   ;;  %v4433_v27 = vadd.f32 %v10357_v12, %v4337_v31  ;;  %v12394_v21 = vld [vmem:[#allocation13_spill] sm:$0xff]  ;;  %v12395_v26 = vld [vmem:[#allocation15_spill] sm:$0xff]  ;;  %v4199_v56 = vmul.f32 %v12397_v32, %v12396_v7 }
 0x96f   :  { %4089 = vperm.xlu2 %6658, %v6872_v42   ;;  %v4805_v20 = vmul.f32 %v9972_v2, %v4453_v43  ;;  %v3631_v42 = vmul.f32 1.442695, %v3442_v11  ;;  %v12398_v31 = vld [vmem:[#allocation185_spill] sm:$0xff]  ;;  %v10381_v2 = vpop.f32.mrf.mxu3  ;;  %v4135_v43 = vmul.f32 %v12402_v48, %v12401_v37  ;;  %v12405_v7 = vld [vmem:[#allocation251_spill] sm:$0xff] }
 0x970   :  { %v3730_v3 = vpop.permute.xlu1 %3729  ;;  %6887 = vrcp.f32 %v4433_v27  ;;  %12399 = vst [vmem:[#allocation42_spill] sm:$0xff] %v10381_v2 }
 0x971   :  { %v4153_v45 = vmul.f32 %v3730_v3, %v12394_v21  ;;  %v4154_v39 = vmul.f32 %v3730_v3, %v12395_v26  ;;  %6889 = vpow2.f32 %v3503_v57  ;;  %v4200_v3 = vmul.f32 %v12397_v32, %v12398_v31  ;;  %v12406_v31 = vld [vmem:[#allocation250_spill] sm:$0xff] }
 0x972   :  { %6891 = vpow2.f32 %v3631_v42 }
 0x973   :  { %v10371_v25 = vadd.f32 %v4217_v41, %v4153_v45  ;;  %v10373_v36 = vadd.f32 %v4218_v49, %v4154_v39  ;;  %4926 = vmatmul.f32.gmra.mxu3 %v4805_v20  ;;  %v12403_v41 = vld [vmem:[#allocation139_spill] sm:$0xff]  ;;  %6893 = vpow2.f32 %v3499_v46  ;;  %v3123_v49 = vadd.f32 %v8241_v40, %v12404_v53  ;;  %v10393_v39 = vpop.eup %6885 }
 0x974   :  { %v4136_v57 = vmul.f32 %v12402_v48, %v12403_v41  ;;  %v4591_v45 = vsub.f32 2.0, %v4559_v29  ;;  %v4359_v20 = vadd.f32 %v4199_v56, %v4135_v43  ;;  %v5949_v43 = vld [vmem:[#allocation2 + $0x710] sm:$0xff] }
 0x975   :  { %v10379_v33 = vpop.permute.xlu2 %4079  ;;  %v3315_v53 = vmul.f32 0.01, %v3123_v49  ;;  %vm3219_vm4 = vcmp.ge.f32.partialorder %v3123_v49, 0.0  ;;  %5953 = vmatpush.msrb.mxu0 %v5949_v43 }
 0x976   :  { %v4294_v11 = vmul.f32 %v10379_v33, %v12400_v35  ;;  %4094 = vperm.xlu0 %6656, %v6884_v44   ;;  %v4360_v42 = vadd.f32 %v4200_v3, %v4136_v57  ;;  %v6888_v37 = vpop.eup %6887  ;;  %v4623_v41 = vmul.f32 %v6882_v58, %v4591_v45  ;;  %v5481_v3 = vld [vmem:[#allocation2 + $0x510] sm:$0xff]  ;;  %v12408_v45 = vld [vmem:[#allocation198_spill] sm:$0xff] }
 0x977   :  { %3779 = vperm.xlu2 %6658, %v6878_v52   ;;  %v10397_v2 = vpop.eup %6889  ;;  %v4561_v29 = vmul.f32 %v6888_v37, %v4433_v27  ;;  %5614 = vmatpush.msra.mxu2 %v5481_v3  ;;  %v10408_v27 = vpop.f32.mrf.mxu3 }
 0x978   :  { %v4005_v21 = vpop.permute.xlu1 %4004  ;;  %v10391_v26 = vadd.f32 %v4390_v34, %v4294_v11  ;;  %v6892_v48 = vpop.eup %6891  ;;  %v4338_v56 = vadd.f32 %v10397_v2, %v10393_v39  ;;  %v4881_v11 = vld [vmem:[#allocation2 + $0x2f0] sm:$0xff] }
 0x979   :  { %v4263_v32 = vmul.f32 %v4005_v21, %v12405_v7  ;;  %v4264_v35 = vmul.f32 %v4005_v21, %v12406_v31  ;;  %v6894_v57 = vpop.eup %6893  ;;  %v12407_v21 = vld [vmem:[#allocation243_spill] sm:$0xff]  ;;  %5002 = vmatpush.msra.mxu3 %v4881_v11  ;;  %v3411_v31 = vsel %vm3219_vm4, %v3123_v49, %v3315_v53  ;;  %v12411_v49 = vld [vmem:[#allocation142_spill] sm:$0xff] }
 0x97a   :  { %v4434_v58 = vadd.f32 %v6892_v48, %v4338_v56  ;;  %v12410_v56 = vld [vmem:[#allocation75_spill] sm:$0xff]  ;;  %v4139_v53 = vmul.f32 %v12293_v24, %v12411_v49 }
 0x97b   :  { %v10399_v52 = vadd.f32 %v4360_v42, %v4264_v35  ;;  %v4455_v46 = vadd.f32 %v4359_v20, %v4263_v32  ;;  %v4265_v42 = vmul.f32 %v9979_v14, %v12407_v21  ;;  %v3091_v20 = vadd.f32 %v8241_v40, %v12408_v45  ;;  %v12409_v35 = vld [vmem:[#allocation83_spill] sm:$0xff] }
 0x97c   :  { %v4336_v32 = vadd.f32 %v6894_v57, %v10138_v22  ;;  %v4203_v22 = vmul.f32 %v12288_v10, %v12410_v56  ;;  %6895 = vrcp.f32 %v4434_v58 }
 0x97d   :  { %v4807_v34 = vmul.f32 %v10064_v55, %v4455_v46  ;;  %v3092_v46 = vadd.f32 %v8241_v40, %v12409_v35  ;;  %v4457_v3 = vadd.f32 %v9918_v59, %v4265_v42  ;;  %vm3187_vm5 = vcmp.ge.f32.partialorder %v3091_v20, 0.0 }
 0x97e   :  { %4761 = vperm.xlu0 %6656, %v4623_v41   ;;  %v3155_v41 = vadd.f32 %v8241_v40, %v10155_v17  ;;  %v3283_v11 = vmul.f32 0.01, %v3091_v20  ;;  %v4363_v59 = vadd.f32 %v4203_v22, %v4139_v53  ;;  %v12414_v22 = vld [vmem:[#allocation159_spill] sm:$0xff] }
 0x97f   :  { %4929 = vmatmul.f32.gmra.mxu3 %v4807_v34  ;;  %4104 = vperm.xlu2 %6658, %v6892_v48   ;;  %v4593_v48 = vsub.f32 2.0, %v4561_v29  ;;  %v4432_v34 = vadd.f32 %v6884_v44, %v4336_v32  ;;  %v3284_v43 = vmul.f32 0.01, %v3092_v46  ;;  %v12412_v29 = vld [vmem:[#allocation182_spill] sm:$0xff]  ;;  %vm3188_vm6 = vcmp.ge.f32.partialorder %v3092_v46, 0.0  ;;  %v4880_v53 = vld [vmem:[#allocation2 + $0x2e0] sm:$0xff] }
 0x980   :  { %v10410_v7 = vpop.permute.xlu1 %4706  ;;  %v4267_v21 = vmul.f32 %v10084_v1, %v12412_v29  ;;  %v3347_v44 = vmul.f32 0.01, %v3155_v41  ;;  %vm3251_vm7 = vcmp.ge.f32.partialorder %v3155_v41, 0.0  ;;  %v3379_v10 = vsel %vm3187_vm5, %v3091_v20, %v3283_v11  ;;  %v12413_v32 = vld [vmem:[#allocation254_spill] sm:$0xff]  ;;  %v12415_v20 = vld [vmem:[#allocation112_spill] sm:$0xff]  ;;  %5003 = vmatpush.msra.mxu3 %v4880_v53 }
 0x981   :  { %v10417_v14 = vmul.f32 %v10410_v7, %v10211_v6  ;;  %3924 = vperm.xlu1 %6657, %v10292_v63   ;;  %v3569_v6 = vmul.f32 1.442695, %v3411_v31  ;;  %v4809_v63 = vmul.f32 %v9993_v16, %v4457_v3  ;;  %v4625_v17 = vmul.f32 %v6888_v37, %v4593_v48  ;;  %v10435_v37 = vpop.f32.mrf.mxu3  ;;  %v12416_v11 = vld [vmem:[#allocation88_spill] sm:$0xff] }
 0x982   :  { %6897 = vrcp.f32 %v4432_v34  ;;  %v6896_v42 = vpop.eup %6895  ;;  %v3380_v45 = vsel %vm3188_vm6, %v3092_v46, %v3284_v43  ;;  %v4459_v16 = vadd.f32 %v4363_v59, %v4267_v21  ;;  %v3443_v31 = vsel %vm3251_vm7, %v3155_v41, %v3347_v44  ;;  %v12417_v46 = vld [vmem:[#allocation17_spill] sm:$0xff]  ;;  %v12419_v21 = vld [vmem:[#allocation19_spill] sm:$0xff]  ;;  %v12421_v44 = vld [vmem:[#allocation144_spill] sm:$0xff] }
 0x983   :  { %6899 = vpow2.f32 %v3569_v6  ;;  %v3507_v56 = vmul.f32 1.442695, %v3380_v45  ;;  %v4205_v3 = vmul.f32 %v12415_v20, %v12414_v22  ;;  %v4562_v49 = vmul.f32 %v6896_v42, %v4434_v58  ;;  %v12422_v59 = vld [vmem:[#allocation186_spill] sm:$0xff]  ;;  %v12424_v45 = vld [vmem:[#allocation103_spill] sm:$0xff] }
 0x984   :  { %v4220_v6 = vmul.f32 %v12417_v46, %v12416_v11  ;;  %v3633_v43 = vmul.f32 1.442695, %v3443_v31  ;;  %v4141_v58 = vmul.f32 %v12422_v59, %v12421_v44  ;;  %v12427_v59 = vld [vmem:[#allocation60_spill] sm:$0xff] }
 0x985   :  { %v4594_v22 = vsub.f32 2.0, %v4562_v49 }
 0x986   :  { %3939 = vperm.xlu0 %6656, %v10348_v38   ;;  %v3505_v38 = vmul.f32 1.442695, %v3379_v10  ;;  %v12423_v10 = vld [vmem:[#allocation246_spill] sm:$0xff]  ;;  %v4365_v20 = vadd.f32 %v4205_v3, %v4141_v58  ;;  %v4207_v3 = vmul.f32 %v12332_v13, %v12427_v59  ;;  %v12429_v58 = vld [vmem:[#allocation253_spill] sm:$0xff] }
 0x987   :  { %4932 = vmatmul.f32.gmra.mxu3 %v4809_v63  ;;  %4771 = vperm.xlu2 %6658, %v4625_v17   ;;  %v12418_v63 = vld [vmem:[#allocation111_spill] sm:$0xff] }
 0x988   :  { %v10431_v24 = vpop.permute.xlu1 %4049  ;;  %v6898_v48 = vpop.eup %6897  ;;  %v4811_v29 = vmul.f32 %v12418_v63, %v4459_v16  ;;  %6901 = vpow2.f32 %v3505_v38 }
 0x989   :  { %v4282_v1 = vmul.f32 %v10431_v24, %v12413_v32  ;;  %3774 = vperm.xlu1 %6657, %v6894_v57   ;;  %v6900_v41 = vpop.eup %6899  ;;  %v4269_v32 = vmul.f32 %v12424_v45, %v12423_v10  ;;  %v4560_v16 = vmul.f32 %v6898_v48, %v4432_v34  ;;  %6903 = vpow2.f32 %v3507_v56  ;;  %v10462_v34 = vpop.f32.mrf.mxu3 }
 0x98a   :  { %6905 = vpow2.f32 %v3633_v43  ;;  %v12428_v43 = vld [vmem:[#allocation146_spill] sm:$0xff]  ;;  %v4271_v10 = vmul.f32 %v10141_v0, %v12429_v58 }
 0x98b   :  { %v4474_v35 = vadd.f32 %v10373_v36, %v4282_v1  ;;  %v12420_v36 = vld [vmem:[#allocation215_spill] sm:$0xff]  ;;  %v12425_v1 = vld [vmem:[#allocation134_spill] sm:$0xff]  ;;  %v4461_v38 = vadd.f32 %v4365_v20, %v4269_v32 }
 0x98c   :  { %v4156_v17 = vmul.f32 %v12420_v36, %v12419_v21  ;;  %v3124_v31 = vadd.f32 %v8241_v40, %v12425_v1  ;;  %v4626_v21 = vmul.f32 %v6896_v42, %v4594_v22  ;;  %v12431_v22 = vld [vmem:[#allocation82_spill] sm:$0xff] }
 0x98d   :  { %v10444_v57 = vmul.f32 %v10296_v51, %v4474_v35  ;;  %v4813_v49 = vmul.f32 %v10189_v5, %v4461_v38 }
 0x98e   :  { %3784 = vperm.xlu0 %6656, %v10397_v2   ;;  %v4380_v53 = vadd.f32 %v4220_v6, %v4156_v17  ;;  %v12426_v2 = vld [vmem:[#allocation263_spill] sm:$0xff]  ;;  %v3316_v56 = vmul.f32 0.01, %v3124_v31  ;;  %v10464_v44 = vpop.eup %6901  ;;  %vm3220_vm8 = vcmp.ge.f32.partialorder %v3124_v31, 0.0  ;;  %v4143_v17 = vmul.f32 %v12337_v18, %v12428_v43  ;;  %v12437_v43 = vld [vmem:[#allocation22_spill] sm:$0xff] }
 0x98f   :  { %4935 = vmatmul.f32.gmra.mxu3 %v4811_v29  ;;  %3949 = vperm.xlu2 %6658, %v6900_v41   ;;  %v4592_v29 = vsub.f32 2.0, %v4560_v16  ;;  %v10469_v6 = vpop.eup %6903  ;;  %v4339_v45 = vadd.f32 %v10464_v44, %v6900_v41  ;;  %v12430_v16 = vld [vmem:[#allocation23_spill] sm:$0xff]  ;;  %v12433_v41 = vld [vmem:[#allocation77_spill] sm:$0xff] }
 0x990   :  { %v10455_v35 = vpop.permute.xlu1 %4054  ;;  %v3412_v13 = vsel %vm3220_vm8, %v3124_v31, %v3316_v56  ;;  %v4367_v5 = vadd.f32 %v4207_v3, %v4143_v17  ;;  %v4164_v1 = vmul.f32 %v10231_v54, %v12430_v16  ;;  %v12434_v31 = vld [vmem:[#allocation156_spill] sm:$0xff]  ;;  %v12435_v56 = vld [vmem:[#allocation90_spill] sm:$0xff]  ;;  %v12438_v17 = vld [vmem:[#allocation41_spill] sm:$0xff] }
 0x991   :  { %v4284_v11 = vmul.f32 %v10455_v35, %v12426_v2  ;;  %4099 = vperm.xlu1 %6657, %v10357_v12   ;;  %v6906_v12 = vpop.eup %6905  ;;  %v4624_v42 = vmul.f32 %v6898_v48, %v4592_v29  ;;  %v3571_v0 = vmul.f32 1.442695, %v3412_v13  ;;  %v4209_v29 = vmul.f32 %v12434_v31, %v12433_v41  ;;  %v12445_v41 = vld [vmem:[#allocation265_spill] sm:$0xff] }
 0x992   :  { %v4435_v18 = vadd.f32 %v6906_v12, %v4339_v45  ;;  %v4463_v2 = vadd.f32 %v4367_v5, %v4271_v10  ;;  %v4158_v58 = vmul.f32 %v12438_v17, %v12437_v43  ;;  %v10494_v10 = vpop.permute.xlu2 %4746  ;;  %v12440_v45 = vld [vmem:[#allocation148_spill] sm:$0xff]  ;;  %v12449_v43 = vld [vmem:[#allocation193_spill] sm:$0xff] }
 0x993   :  { %v10460_v63 = vadd.f32 %v4380_v53, %v4284_v11  ;;  %v4879_v53 = vld [vmem:[#allocation2 + $0x2d0] sm:$0xff]  ;;  %v12432_v11 = vld [vmem:[#allocation207_spill] sm:$0xff]  ;;  %v4145_v13 = vmul.f32 %v12320_v9, %v12440_v45  ;;  %v12441_v5 = vld [vmem:[#allocation188_spill] sm:$0xff] }
 0x994   :  { %v4292_v48 = vmul.f32 %v10330_v30, %v12432_v11  ;;  %5004 = vmatpush.msra.mxu3 %v4879_v53  ;;  %v4815_v3 = vmul.f32 %v10215_v28, %v4463_v2  ;;  %6907 = vrcp.f32 %v4435_v18  ;;  %v4273_v16 = vmul.f32 %v10178_v60, %v12441_v5  ;;  %v12442_v53 = vld [vmem:[#allocation110_spill] sm:$0xff]  ;;  %v12443_v60 = vld [vmem:[#allocation84_spill] sm:$0xff]  ;;  %v5480_v5 = vld [vmem:[#allocation2 + $0x500] sm:$0xff] }
 0x995   :  { %6909 = vpow2.f32 %v3571_v0  ;;  %5615 = vmatpush.msra.mxu2 %v5480_v5 }
 0x996   :  { %4776 = vperm.xlu0 %6656, %v4626_v21   ;;  %v12436_v21 = vld [vmem:[#allocation226_spill] sm:$0xff] }
 0x997   :  { %3794 = vperm.xlu2 %6658, %v10469_v6   ;;  %4938 = vmatmul.f32.gmra.mxu3 %v4813_v49  ;;  %v4222_v59 = vmul.f32 %v12436_v21, %v12435_v56  ;;  %v12446_v56 = vld [vmem:[#allocation24_spill] sm:$0xff] }
 0x998   :  { %v10477_v32 = vpop.permute.xlu1 %3914 }
 0x999   :  { %v4228_v20 = vmul.f32 %v10477_v32, %v12431_v22  ;;  %4766 = vperm.xlu1 %6657, %v4624_v42   ;;  %v10492_v42 = vpop.f32.mrf.mxu3  ;;  %v4369_v22 = vadd.f32 %v4209_v29, %v4145_v13 }
 0x99a   :  { %12439 = vst [vmem:[#allocation79_spill] sm:$0xff] %v10492_v42  ;;  %v6908_v9 = vpop.eup %6907 }
 0x99b   :  { %v4388_v38 = vadd.f32 %v4228_v20, %v4164_v1  ;;  %v4382_v20 = vadd.f32 %v4222_v59, %v4158_v58  ;;  %v10510_v0 = vpop.eup %6909  ;;  %v12447_v59 = vld [vmem:[#allocation224_spill] sm:$0xff]  ;;  %v12450_v58 = vld [vmem:[#allocation123_spill] sm:$0xff]  ;;  %v4563_v13 = vmul.f32 %v6908_v9, %v4435_v18  ;;  %v10533_v18 = vpop.permute.xlu0 %3764 }
 0x99c   :  { %v4275_v45 = vmul.f32 %v12450_v58, %v12449_v43  ;;  %v12458_v43 = vld [vmem:[#allocation124_spill] sm:$0xff] }
 0x99d   :  { %v4484_v49 = vadd.f32 %v4388_v38, %v4292_v48  ;;  %v4211_v48 = vmul.f32 %v12328_v8, %v12443_v60  ;;  %v12444_v38 = vld [vmem:[#allocation93_spill] sm:$0xff]  ;;  %v4595_v60 = vsub.f32 2.0, %v4563_v13  ;;  %v12459_v13 = vld [vmem:[#allocation127_spill] sm:$0xff] }
 0x99e   :  { %4109 = vperm.xlu0 %6656, %v6906_v12   ;;  %v4465_v12 = vadd.f32 %v4369_v22, %v4273_v16  ;;  %v4224_v31 = vmul.f32 %v12445_v41, %v12444_v38  ;;  %v12453_v38 = vld [vmem:[#allocation67_spill] sm:$0xff] }
 0x99f   :  { %4941 = vmatmul.f32.gmra.mxu3 %v4815_v3  ;;  %v10501_v28 = vmul.f32 %v10494_v10, %v4484_v49  ;;  %v4160_v3 = vmul.f32 %v12447_v59, %v12446_v56 }
 0x9a0   :  { %v10503_v1 = vpop.permute.xlu1 %4059  ;;  %v4817_v29 = vmul.f32 %v10226_v50, %v4465_v12 }
 0x9a1   :  { %v4286_v2 = vmul.f32 %v10503_v1, %v12442_v53  ;;  %3944 = vperm.xlu1 %6657, %v10393_v39   ;;  %v12448_v39 = vld [vmem:[#allocation150_spill] sm:$0xff]  ;;  %v10524_v8 = vpop.f32.mrf.mxu3  ;;  %v4384_v22 = vadd.f32 %v4224_v31, %v4160_v3  ;;  %v12456_v31 = vld [vmem:[#allocation213_spill] sm:$0xff] }
 0x9a2   :  { %v4147_v49 = vmul.f32 %v12335_v4, %v12448_v39  ;;  %12451 = vst [vmem:[#allocation49_spill] sm:$0xff] %v10524_v8  ;;  %v5473_v8 = vld [vmem:[#allocation2 + $0x490] sm:$0xff] }
 0x9a3   :  { %v10508_v11 = vadd.f32 %v4382_v20, %v4286_v2  ;;  %v12452_v20 = vld [vmem:[#allocation211_spill] sm:$0xff] }
 0x9a4   :  { %v4371_v50 = vadd.f32 %v4211_v48, %v4147_v49  ;;  %v4878_v2 = vld [vmem:[#allocation2 + $0x2c0] sm:$0xff]  ;;  %v12455_v48 = vld [vmem:[#allocation152_spill] sm:$0xff]  ;;  %v12457_v49 = vld [vmem:[#allocation249_spill] sm:$0xff] }
 0x9a5   :  { %5005 = vmatpush.msra.mxu3 %v4878_v2  ;;  %v4149_v3 = vmul.f32 %v12456_v31, %v12455_v48  ;;  %v4277_v58 = vmul.f32 %v12458_v43, %v12457_v49  ;;  %v12466_v48 = vld [vmem:[#allocation97_spill] sm:$0xff] }
 0x9a6   :  { %3954 = vperm.xlu0 %6656, %v10510_v0   ;;  %v4467_v4 = vadd.f32 %v4371_v50, %v4275_v45 }
 0x9a7   :  { %4944 = vmatmul.f32.gmra.mxu3 %v4817_v29  ;;  %v12454_v29 = vld [vmem:[#allocation48_spill] sm:$0xff] }
 0x9a8   :  { %v10526_v16 = vpop.permute.xlu1 %4064  ;;  %v4213_v56 = vmul.f32 %v12454_v29, %v12453_v38  ;;  %v4819_v39 = vmul.f32 %v10410_v7, %v4467_v4  ;;  %v12462_v7 = vld [vmem:[#allocation106_spill] sm:$0xff]  ;;  %v10551_v29 = vpop.permute.xlu0 %4741 }
 0x9a9   :  { %v4288_v53 = vmul.f32 %v10526_v16, %v12452_v20  ;;  %3789 = vperm.xlu1 %6657, %v10464_v44   ;;  %v4627_v44 = vmul.f32 %v6908_v9, %v4595_v60  ;;  %v5948_v20 = vld [vmem:[#allocation2 + $0x700] sm:$0xff]  ;;  %v12463_v9 = vld [vmem:[#allocation154_spill] sm:$0xff]  ;;  %v12464_v60 = vld [vmem:[#allocation209_spill] sm:$0xff] }
 0x9aa   :  { %v4373_v5 = vadd.f32 %v4213_v56, %v4149_v3  ;;  %5954 = vmatpush.msrb.mxu0 %v5948_v20  ;;  %v12465_v56 = vld [vmem:[#allocation202_spill] sm:$0xff]  ;;  %v12467_v3 = vld [vmem:[#allocation141_spill] sm:$0xff] }
 0x9ab   :  { %v10531_v12 = vadd.f32 %v4384_v22, %v4288_v53  ;;  %v10546_v22 = vpop.f32.mrf.mxu3  ;;  %v12461_v53 = vld [vmem:[#allocation164_spill] sm:$0xff]  ;;  %v4279_v31 = vmul.f32 %v12466_v48, %v12465_v56 }
 0x9ac   :  { %12460 = vst [vmem:[#allocation242_spill] sm:$0xff] %v10546_v22  ;;  %v4215_v2 = vmul.f32 %v12462_v7, %v12461_v53  ;;  %v4469_v4 = vadd.f32 %v4373_v5, %v4277_v58  ;;  %v12469_v53 = vld [vmem:[#allocation183_spill] sm:$0xff]  ;;  %v12471_v48 = vld [vmem:[#allocation20_spill] sm:$0xff] }
 0x9ae   :  { %v4821_v49 = vmul.f32 %v12467_v3, %v4469_v4 }
 0x9af   :  { %4947 = vmatmul.f32.gmra.mxu3 %v4819_v39  ;;  %v4151_v39 = vmul.f32 %v12464_v60, %v12463_v9 }
 0x9b0   :  { %v10542_v45 = vpop.permute.xlu1 %4069 }
 0x9b1   :  { %v4290_v50 = vmul.f32 %v10542_v45, %v12459_v13  ;;  %4781 = vperm.xlu1 %6657, %v4627_v44   ;;  %v4375_v44 = vadd.f32 %v4215_v2, %v4151_v39  ;;  %v10577_v39 = vpop.permute.xlu0 %3929 }
 0x9b3   :  { %v4482_v38 = vadd.f32 %v10328_v47, %v4290_v50  ;;  %v4471_v13 = vadd.f32 %v4375_v44, %v4279_v31  ;;  %v4877_v47 = vld [vmem:[#allocation2 + $0x2b0] sm:$0xff]  ;;  %v10563_v5 = vpop.f32.mrf.mxu3  ;;  %v12468_v50 = vld [vmem:[#allocation255_spill] sm:$0xff]  ;;  %v12472_v31 = vld [vmem:[#allocation264_spill] sm:$0xff] }
 0x9b4   :  { %5006 = vmatpush.msra.mxu3 %v4877_v47  ;;  %v4281_v20 = vmul.f32 %v10431_v24, %v12468_v50  ;;  %v4155_v24 = vmul.f32 %v12420_v36, %v12471_v48  ;;  %v4283_v3 = vmul.f32 %v10455_v35, %v12472_v31  ;;  %v12475_v47 = vld [vmem:[#allocation118_spill] sm:$0xff] }
 0x9b5   :  { %v10559_v43 = vmul.f32 %v10551_v29, %v4482_v38  ;;  %v4823_v7 = vmul.f32 %v12469_v53, %v4471_v13  ;;  %v12470_v38 = vld [vmem:[#allocation73_spill] sm:$0xff]  ;;  %v12474_v13 = vld [vmem:[#allocation28_spill] sm:$0xff]  ;;  %v12477_v48 = vld [vmem:[#allocation74_spill] sm:$0xff] }
 0x9b6   :  { %v4473_v4 = vadd.f32 %v10371_v25, %v4281_v20  ;;  %v4219_v60 = vmul.f32 %v12417_v46, %v12470_v38  ;;  %v4170_v46 = vmul.f32 %v12475_v47, %v12474_v13  ;;  %v4876_v38 = vld [vmem:[#allocation2 + $0x2a0] sm:$0xff]  ;;  %v4221_v35 = vmul.f32 %v12436_v21, %v12477_v48  ;;  %v12481_v13 = vld [vmem:[#allocation76_spill] sm:$0xff]  ;;  %v12482_v21 = vld [vmem:[#allocation18_spill] sm:$0xff] }
 0x9b7   :  { %4950 = vmatmul.f32.gmra.mxu3 %v4821_v49  ;;  %v12473_v49 = vld [vmem:[#allocation236_spill] sm:$0xff] }
 0x9b8   :  { %v4825_v25 = vmul.f32 %v10296_v51, %v4473_v4  ;;  %v4234_v44 = vmul.f32 %v10577_v39, %v12473_v49  ;;  %5007 = vmatpush.msra.mxu3 %v4876_v38  ;;  %v12478_v4 = vld [vmem:[#allocation14_spill] sm:$0xff] }
 0x9b9   :  { %v10561_v58 = vpop.permute.xlu2 %4084 }
 0x9ba   :  { %v4394_v53 = vadd.f32 %v4234_v44, %v4170_v46  ;;  %v4223_v46 = vmul.f32 %v12445_v41, %v12481_v13  ;;  %v5479_v41 = vld [vmem:[#allocation2 + $0x4f0] sm:$0xff]  ;;  %v12488_v13 = vld [vmem:[#allocation64_spill] sm:$0xff] }
 0x9bb   :  { %v10579_v56 = vpop.f32.mrf.mxu3  ;;  %5616 = vmatpush.msra.mxu2 %v5479_v41  ;;  %v4340_v41 = vadd.f32 %v10510_v0, %v10469_v6  ;;  %v12494_v6 = vld [vmem:[#allocation216_spill] sm:$0xff] }
 0x9bc   :  { %v4293_v0 = vmul.f32 %v10379_v33, %v12494_v6  ;;  %v12496_v33 = vld [vmem:[#allocation157_spill] sm:$0xff] }
 0x9bf   :  { %4953 = vmatmul.f32.gmra.mxu3 %v4823_v7  ;;  %v12476_v7 = vld [vmem:[#allocation114_spill] sm:$0xff] }
 0x9c1   :  { %v10569_v9 = vpop.permute.xlu2 %4751 }
 0x9c2   :  { %v10573_v2 = vmul.f32 %v10569_v9, %v10391_v26  ;;  %v4379_v26 = vadd.f32 %v4219_v60, %v4155_v24  ;;  %v4157_v60 = vmul.f32 %v12438_v17, %v12478_v4  ;;  %v12479_v24 = vld [vmem:[#allocation210_spill] sm:$0xff] }
 0x9c3   :  { %v4285_v31 = vmul.f32 %v10503_v1, %v12479_v24  ;;  %v10603_v49 = vpop.f32.mrf.mxu3  ;;  %v12484_v17 = vld [vmem:[#allocation66_spill] sm:$0xff] }
 0x9c4   :  { %v4475_v50 = vadd.f32 %v4379_v26, %v4283_v3  ;;  %v12480_v3 = vld [vmem:[#allocation117_spill] sm:$0xff]  ;;  %v4381_v44 = vadd.f32 %v4221_v35, %v4157_v60  ;;  %v12485_v35 = vld [vmem:[#allocation160_spill] sm:$0xff] }
 0x9c5   :  { %v4225_v60 = vmul.f32 %v10312_v23, %v12485_v35 }
 0x9c6   :  { %v4477_v26 = vadd.f32 %v4381_v44, %v4285_v31  ;;  %v4875_v31 = vld [vmem:[#allocation2 + $0x290] sm:$0xff]  ;;  %v12487_v44 = vld [vmem:[#allocation99_spill] sm:$0xff] }
 0x9c7   :  { %4956 = vmatmul.f32.gmra.mxu3 %v4825_v25  ;;  %v4827_v25 = vmul.f32 %v12480_v3, %v4475_v50  ;;  %v5466_v50 = vld [vmem:[#allocation2 + $0x420] sm:$0xff] }
 0x9c8   :  { %v4829_v38 = vmul.f32 %v12484_v17, %v4477_v26  ;;  %5500 = vmatpush.msrb.mxu1 %v5466_v50  ;;  %5008 = vmatpush.msra.mxu3 %v4875_v31  ;;  %v4289_v26 = vmul.f32 %v10542_v45, %v12487_v44  ;;  %v12492_v44 = vld [vmem:[#allocation27_spill] sm:$0xff] }
 0x9c9   :  { %v10590_v20 = vpop.permute.xlu2 %4089 }
 0x9ca   :  { %v4298_v36 = vmul.f32 %v10590_v20, %v12476_v7  ;;  %v12483_v7 = vld [vmem:[#allocation33_spill] sm:$0xff] }
 0x9cb   :  { %v10612_v48 = vpop.f32.mrf.mxu3 }
 0x9cc   :  { %v10596_v51 = vadd.f32 %v4394_v53, %v4298_v36  ;;  %v4159_v53 = vmul.f32 %v12447_v59, %v12482_v21  ;;  %v4287_v36 = vmul.f32 %v10526_v16, %v12483_v7  ;;  %v12486_v16 = vld [vmem:[#allocation21_spill] sm:$0xff] }
 0x9ce   :  { %v4383_v1 = vadd.f32 %v4223_v46, %v4159_v53 }
 0x9cf   :  { %4959 = vmatmul.f32.gmra.mxu3 %v4827_v25  ;;  %v4161_v25 = vmul.f32 %v10279_v61, %v12486_v16  ;;  %v12490_v61 = vld [vmem:[#allocation29_spill] sm:$0xff] }
 0x9d0   :  { %v4479_v4 = vadd.f32 %v4383_v1, %v4287_v36  ;;  %v4163_v35 = vmul.f32 %v10231_v54, %v12490_v61  ;;  %v4874_v54 = vld [vmem:[#allocation2 + $0x280] sm:$0xff] }
 0x9d1   :  { %v4385_v53 = vadd.f32 %v4225_v60, %v4161_v25  ;;  %5009 = vmatpush.msra.mxu3 %v4874_v54 }
 0x9d2   :  { %v4831_v46 = vmul.f32 %v12488_v13, %v4479_v4 }
 0x9d3   :  { %v10622_v23 = vpop.f32.mrf.mxu3  ;;  %v4481_v1 = vadd.f32 %v4385_v53, %v4289_v26  ;;  %v12493_v26 = vld [vmem:[#allocation230_spill] sm:$0xff] }
 0x9d5   :  { %v4833_v4 = vmul.f32 %v10551_v29, %v4481_v1  ;;  %v4165_v29 = vmul.f32 %v10346_v15, %v12492_v44 }
 0x9d7   :  { %4962 = vmatmul.f32.gmra.mxu3 %v4829_v38 }
 0x9db   :  { %v3059_v24 = vpop.xlane.xlu1 %3058  ;;  %v10635_v31 = vpop.f32.mrf.mxu3 }
 0x9dc   :  { %v3156_v59 = vadd.f32 %v8241_v40, %v3059_v24  ;;  %v12489_v40 = vld [vmem:[#allocation162_spill] sm:$0xff]  ;;  %v12491_v24 = vld [vmem:[#allocation108_spill] sm:$0xff] }
 0x9dd   :  { %v4227_v38 = vmul.f32 %v10477_v32, %v12489_v40  ;;  %v4291_v60 = vmul.f32 %v10330_v30, %v12491_v24 }
 0x9de   :  { %vm3252_vm9 = vcmp.ge.f32.partialorder %v3156_v59, 0.0  ;;  %v3348_v21 = vmul.f32 0.01, %v3156_v59 }
 0x9df   :  { %4965 = vmatmul.f32.gmra.mxu3 %v4831_v46  ;;  %v4387_v45 = vadd.f32 %v4227_v38, %v4163_v35  ;;  %v4229_v46 = vmul.f32 %v10271_v62, %v12493_v26  ;;  %v12495_v62 = vld [vmem:[#allocation158_spill] sm:$0xff] }
 0x9e0   :  { %v3444_v7 = vsel %vm3252_vm9, %v3156_v59, %v3348_v21  ;;  %v10624_v36 = vpop.permute.xlu0 %4756  ;;  %v5947_v21 = vld [vmem:[#allocation2 + $0x6f0] sm:$0xff]  ;;  %v4167_v35 = vmul.f32 %v10533_v18, %v12495_v62 }
 0x9e1   :  { %v3635_v50 = vmul.f32 1.442695, %v3444_v7  ;;  %v4483_v16 = vadd.f32 %v4387_v45, %v4291_v60  ;;  %5955 = vmatpush.msrb.mxu0 %v5947_v21  ;;  %v4389_v7 = vadd.f32 %v4229_v46, %v4165_v29  ;;  %v4168_v45 = vmul.f32 %v10533_v18, %v12496_v33  ;;  %v12498_v60 = vld [vmem:[#allocation232_spill] sm:$0xff]  ;;  %v12501_v18 = vld [vmem:[#allocation53_spill] sm:$0xff] }
 0x9e2   :  { %v12504_v33 = vld [vmem:[#allocation40_spill] sm:$0xff] }
 0x9e3   :  { %6911 = vpow2.f32 %v3635_v50  ;;  %v4835_v30 = vmul.f32 %v10494_v10, %v4483_v16  ;;  %v10649_v1 = vpop.f32.mrf.mxu3  ;;  %v4485_v15 = vadd.f32 %v4389_v7, %v4293_v0  ;;  %v10651_v50 = vpop.permute.xlu2 %3779  ;;  %v12499_v16 = vld [vmem:[#allocation45_spill] sm:$0xff]  ;;  %v12502_v7 = vld [vmem:[#allocation91_spill] sm:$0xff] }
 0x9e4   :  { %v4296_v54 = vmul.f32 %v10561_v58, %v12499_v16  ;;  %v4174_v0 = vmul.f32 %v10651_v50, %v12501_v18  ;;  %v12509_v18 = vld [vmem:[#allocation32_spill] sm:$0xff] }
 0x9e7   :  { %4968 = vmatmul.f32.gmra.mxu3 %v4833_v4  ;;  %v12497_v4 = vld [vmem:[#allocation233_spill] sm:$0xff] }
 0x9e8   :  { %v10637_v59 = vpop.permute.xlu0 %4094 }
 0x9e9   :  { %v6912_v32 = vpop.eup %6911 }
 0x9ea   :  { %4114 = vperm.xlu1 %6657, %v6912_v32   ;;  %v4436_v25 = vadd.f32 %v6912_v32, %v4340_v41 }
 0x9ec   :  { %6913 = vrcp.f32 %v4436_v25 }
 0x9ef   :  { %4971 = vmatmul.f32.gmra.mxu3 %v4835_v30  ;;  %v12500_v30 = vld [vmem:[#allocation212_spill] sm:$0xff] }
 0x9f0   :  { %v4762_v53 = vpop.permute.xlu0 %4761 }
 0x9f1   :  { %v10647_v40 = vmul.f32 %v4762_v53, %v10596_v51  ;;  %v4837_v51 = vmul.f32 %v10569_v9, %v4485_v15  ;;  %v10667_v9 = vpop.f32.mrf.mxu3 }
 0x9f2   :  { %v6914_v38 = vpop.eup %6913 }
 0x9f3   :  { %v3925_v10 = vpop.permute.xlu1 %3924  ;;  %v4564_v61 = vmul.f32 %v6914_v38, %v4436_v25  ;;  %v4295_v25 = vmul.f32 %v10561_v58, %v12500_v30  ;;  %v12503_v58 = vld [vmem:[#allocation89_spill] sm:$0xff]  ;;  %v12508_v30 = vld [vmem:[#allocation115_spill] sm:$0xff] }
 0x9f4   :  { %v4231_v24 = vmul.f32 %v3925_v10, %v12497_v4  ;;  %v4232_v41 = vmul.f32 %v3925_v10, %v12498_v60  ;;  %v12505_v4 = vld [vmem:[#allocation237_spill] sm:$0xff]  ;;  %v4105_v60 = vpop.permute.xlu2 %4104 }
 0x9f5   :  { %v4596_v32 = vsub.f32 2.0, %v4564_v61 }
 0x9f6   :  { %v4391_v44 = vadd.f32 %v4231_v24, %v4167_v35  ;;  %v4392_v29 = vadd.f32 %v4232_v41, %v4168_v45  ;;  %v4873_v35 = vld [vmem:[#allocation2 + $0x270] sm:$0xff]  ;;  %v4233_v24 = vmul.f32 %v10577_v39, %v12505_v4  ;;  %v5478_v4 = vld [vmem:[#allocation2 + $0x4e0] sm:$0xff] }
 0x9f7   :  { %4974 = vmatmul.f32.gmra.mxu3 %v4837_v51  ;;  %v4628_v26 = vmul.f32 %v6914_v38, %v4596_v32  ;;  %v4236_v38 = vmul.f32 %v10360_v19, %v12503_v58  ;;  %v12506_v51 = vld [vmem:[#allocation120_spill] sm:$0xff]  ;;  %5617 = vmatpush.msra.mxu2 %v5478_v4 }
 0x9f8   :  { %v4488_v46 = vadd.f32 %v4392_v29, %v4296_v54  ;;  %v3940_v6 = vpop.permute.xlu0 %3939  ;;  %v4487_v21 = vadd.f32 %v4391_v44, %v4295_v25  ;;  %5010 = vmatpush.msra.mxu3 %v4873_v35  ;;  %v4300_v32 = vmul.f32 %v10637_v59, %v12506_v51  ;;  %v5465_v54 = vld [vmem:[#allocation2 + $0x410] sm:$0xff]  ;;  %v12507_v44 = vld [vmem:[#allocation30_spill] sm:$0xff]  ;;  %v4297_v25 = vmul.f32 %v10590_v20, %v12508_v30  ;;  %v12520_v4 = vld [vmem:[#allocation176_spill] sm:$0xff] }
 0x9f9   :  { %v4238_v10 = vmul.f32 %v3940_v6, %v12502_v7  ;;  %4786 = vperm.xlu2 %6658, %v4628_v26   ;;  %v4169_v29 = vmul.f32 %v12475_v47, %v12507_v44  ;;  %5501 = vmatpush.msrb.mxu1 %v5465_v54  ;;  %v12511_v35 = vld [vmem:[#allocation129_spill] sm:$0xff]  ;;  %v4872_v54 = vld [vmem:[#allocation2 + $0x260] sm:$0xff] }
 0x9fa   :  { %v10670_v15 = vmul.f32 %v10624_v36, %v4488_v46  ;;  %v4839_v41 = vmul.f32 %v10624_v36, %v4487_v21  ;;  %v12510_v36 = vld [vmem:[#allocation87_spill] sm:$0xff]  ;;  %5011 = vmatpush.msra.mxu3 %v4872_v54 }
 0x9fb   :  { %v4398_v61 = vadd.f32 %v4238_v10, %v4174_v0  ;;  %v3775_v62 = vpop.permute.xlu1 %3774  ;;  %v4393_v46 = vadd.f32 %v4233_v24, %v4169_v29  ;;  %v4235_v21 = vmul.f32 %v10360_v19, %v12510_v36  ;;  %v10687_v10 = vpop.f32.mrf.mxu3  ;;  %v12516_v36 = vld [vmem:[#allocation36_spill] sm:$0xff] }
 0x9fc   :  { %v4172_v45 = vmul.f32 %v3775_v62, %v12504_v33  ;;  %v4171_v39 = vmul.f32 %v3775_v62, %v12509_v18 }
 0x9fd   :  { %v4489_v0 = vadd.f32 %v4393_v46, %v4297_v25  ;;  %v12515_v25 = vld [vmem:[#allocation44_spill] sm:$0xff] }
 0x9fe   :  { %v4396_v16 = vadd.f32 %v4236_v38, %v4172_v45  ;;  %v4395_v47 = vadd.f32 %v4235_v21, %v4171_v39  ;;  %v4772_v45 = vpop.permute.xlu2 %4771  ;;  %v12517_v21 = vld [vmem:[#allocation71_spill] sm:$0xff] }
 0x9ff   :  { %4977 = vmatmul.f32.gmra.mxu3 %v4839_v41  ;;  %v4841_v38 = vmul.f32 %v4762_v53, %v4489_v0  ;;  %v12512_v41 = vld [vmem:[#allocation121_spill] sm:$0xff] }
 0xa00   :  { %v4492_v26 = vadd.f32 %v4396_v16, %v4300_v32  ;;  %v3785_v20 = vpop.permute.xlu0 %3784  ;;  %v4299_v24 = vmul.f32 %v10637_v59, %v12512_v41  ;;  %v12513_v32 = vld [vmem:[#allocation166_spill] sm:$0xff]  ;;  %v4304_v41 = vmul.f32 %v4105_v60, %v12520_v4 }
 0xa01   :  { %v4237_v19 = vmul.f32 %v3940_v6, %v12513_v32  ;;  %v4175_v6 = vmul.f32 %v3785_v20, %v12516_v36  ;;  %v12525_v36 = vld [vmem:[#allocation85_spill] sm:$0xff] }
 0xa02   :  { %v4491_v51 = vadd.f32 %v4395_v47, %v4299_v24  ;;  %v12519_v47 = vld [vmem:[#allocation92_spill] sm:$0xff] }
 0xa03   :  { %v4100_v7 = vpop.permute.xlu1 %4099  ;;  %v10695_v44 = vpop.f32.mrf.mxu3 }
 0xa04   :  { %v4302_v58 = vmul.f32 %v4100_v7, %v12511_v35  ;;  %v4301_v46 = vmul.f32 %v4100_v7, %v12515_v25  ;;  %v4176_v35 = vmul.f32 %v3785_v20, %v12517_v21  ;;  %v12522_v25 = vld [vmem:[#allocation220_spill] sm:$0xff] }
 0xa06   :  { %v4494_v33 = vadd.f32 %v4398_v61, %v4302_v58  ;;  %v12514_v61 = vld [vmem:[#allocation55_spill] sm:$0xff] }
 0xa07   :  { %4980 = vmatmul.f32.gmra.mxu3 %v4841_v38  ;;  %v4173_v30 = vmul.f32 %v10651_v50, %v12514_v61  ;;  %v12518_v58 = vld [vmem:[#allocation167_spill] sm:$0xff] }
 0xa08   :  { %v10692_v62 = vmul.f32 %v4772_v45, %v4494_v33  ;;  %v4777_v39 = vpop.permute.xlu0 %4776 }
 0xa09   :  { %v4397_v59 = vadd.f32 %v4237_v19, %v4173_v30  ;;  %v4871_v30 = vld [vmem:[#allocation2 + $0x250] sm:$0xff] }
 0xa0a   :  { %5012 = vmatpush.msra.mxu3 %v4871_v30 }
 0xa0b   :  { %v4767_v16 = vpop.permute.xlu1 %4766  ;;  %v4493_v18 = vadd.f32 %v4397_v59, %v4301_v46  ;;  %v10707_v24 = vpop.f32.mrf.mxu3 }
 0xa0c   :  { %v4843_v53 = vmul.f32 %v4767_v16, %v4491_v51  ;;  %v10697_v29 = vmul.f32 %v4767_v16, %v4492_v26  ;;  %v12521_v51 = vld [vmem:[#allocation179_spill] sm:$0xff]  ;;  %v3950_v16 = vpop.permute.xlu2 %3949 }
 0xa0d   :  { %v4845_v33 = vmul.f32 %v4772_v45, %v4493_v18  ;;  %v4303_v32 = vmul.f32 %v4105_v60, %v12521_v51  ;;  %v4241_v46 = vmul.f32 %v3950_v16, %v12522_v25  ;;  %v12523_v45 = vld [vmem:[#allocation219_spill] sm:$0xff]  ;;  %v12524_v18 = vld [vmem:[#allocation165_spill] sm:$0xff] }
 0xa0e   :  { %v4242_v59 = vmul.f32 %v3950_v16, %v12523_v45  ;;  %v12526_v60 = vld [vmem:[#allocation133_spill] sm:$0xff]  ;;  %v5946_v51 = vld [vmem:[#allocation2 + $0x6e0] sm:$0xff] }
 0xa0f   :  { %4983 = vmatmul.f32.gmra.mxu3 %v4843_v53  ;;  %5956 = vmatpush.msrb.mxu0 %v5946_v51  ;;  %v4870_v16 = vld [vmem:[#allocation2 + $0x240] sm:$0xff]  ;;  %v5463_v45 = vld [vmem:[#allocation2 + $0x3f0] sm:$0xff] }
 0xa10   :  { %v4110_v20 = vpop.permute.xlu0 %4109  ;;  %5013 = vmatpush.msra.mxu3 %v4870_v16  ;;  %v12532_v51 = vld [vmem:[#allocation161_spill] sm:$0xff] }
 0xa11   :  { %v12533_v16 = vld [vmem:[#allocation225_spill] sm:$0xff] }
 0xa13   :  { %v3945_v0 = vpop.permute.xlu1 %3944 }
 0xa14   :  { %v4239_v38 = vmul.f32 %v3945_v0, %v12518_v58  ;;  %v4240_v26 = vmul.f32 %v3945_v0, %v12519_v47  ;;  %v12527_v47 = vld [vmem:[#allocation102_spill] sm:$0xff] }
 0xa16   :  { %v4399_v50 = vadd.f32 %v4239_v38, %v4175_v6  ;;  %v4400_v7 = vadd.f32 %v4240_v26, %v4176_v35  ;;  %v4306_v35 = vmul.f32 %v4110_v20, %v12526_v60  ;;  %v4305_v26 = vmul.f32 %v4110_v20, %v12527_v47  ;;  %v4869_v20 = vld [vmem:[#allocation2 + $0x230] sm:$0xff] }
 0xa17   :  { %4986 = vmatmul.f32.gmra.mxu3 %v4845_v33  ;;  %v10718_v33 = vpop.f32.mrf.mxu3 }
 0xa18   :  { %v4496_v19 = vadd.f32 %v4400_v7, %v4304_v41  ;;  %v4495_v54 = vadd.f32 %v4399_v50, %v4303_v32  ;;  %v5464_v7 = vld [vmem:[#allocation2 + $0x400] sm:$0xff]  ;;  %5014 = vmatpush.msra.mxu3 %v4869_v20 }
 0xa19   :  { %5502 = vmatpush.msrb.mxu1 %v5464_v7 }
 0xa1a   :  { %v10710_v53 = vmul.f32 %v4777_v39, %v4496_v19  ;;  %v4847_v21 = vmul.f32 %v4777_v39, %v4495_v54  ;;  %v5477_v54 = vld [vmem:[#allocation2 + $0x4d0] sm:$0xff] }
 0xa1b   :  { %v3790_v61 = vpop.permute.xlu1 %3789  ;;  %5618 = vmatpush.msra.mxu2 %v5477_v54  ;;  %5503 = vmatpush.msrb.mxu1 %v5463_v45 }
 0xa1c   :  { %v4177_v0 = vmul.f32 %v3790_v61, %v12524_v18  ;;  %v4178_v6 = vmul.f32 %v3790_v61, %v12525_v36  ;;  %v3955_v18 = vpop.permute.xlu0 %3954  ;;  %v12528_v36 = vld [vmem:[#allocation109_spill] sm:$0xff] }
 0xa1e   :  { %v4401_v58 = vadd.f32 %v4241_v46, %v4177_v0  ;;  %v4402_v38 = vadd.f32 %v4242_v59, %v4178_v6  ;;  %v5144_v46 = vld [vmem:[#allocation2 + $0x10] sm:$0xff]  ;;  %v3795_v0 = vpop.permute.xlu2 %3794  ;;  %v4243_v6 = vmul.f32 %v3955_v18, %v12528_v36 }
 0xa1f   :  { %4989 = vmatmul.f32.gmra.mxu3 %v4847_v21  ;;  %v10722_v39 = vpop.f32.mrf.mxu3  ;;  %v12529_v21 = vld [vmem:[#allocation94_spill] sm:$0xff] }
 0xa20   :  { %v4498_v4 = vadd.f32 %v4402_v38, %v4306_v35  ;;  %v4497_v41 = vadd.f32 %v4401_v58, %v4305_v26  ;;  %5257 = vmatpush.msrb.mxu3 %v5144_v46  ;;  %v4244_v60 = vmul.f32 %v3955_v18, %v12529_v21  ;;  %v12530_v35 = vld [vmem:[#allocation223_spill] sm:$0xff]  ;;  %v12531_v38 = vld [vmem:[#allocation222_spill] sm:$0xff]  ;;  %v5945_v26 = vld [vmem:[#allocation2 + $0x6d0] sm:$0xff] }
 0xa21   :  { %v4179_v58 = vmul.f32 %v3795_v0, %v12530_v35  ;;  %v4180_v47 = vmul.f32 %v3795_v0, %v12531_v38  ;;  %5957 = vmatpush.msrb.mxu0 %v5945_v26  ;;  %v5476_v21 = vld [vmem:[#allocation2 + $0x4c0] sm:$0xff]  ;;  %v12537_v26 = vld [vmem:[#allocation38_spill] sm:$0xff] }
 0xa22   :  { %5619 = vmatpush.msra.mxu2 %v5476_v21  ;;  %v12534_v35 = vld [vmem:[#allocation235_spill] sm:$0xff]  ;;  %v12542_v21 = vld [vmem:[#allocation181_spill] sm:$0xff] }
 0xa23   :  { %v4782_v50 = vpop.permute.xlu1 %4781  ;;  %v4404_v7 = vadd.f32 %v4244_v60, %v4180_v47  ;;  %v5462_v60 = vld [vmem:[#allocation2 + $0x3e0] sm:$0xff] }
 0xa24   :  { %v4849_v32 = vmul.f32 %v4782_v50, %v4497_v41  ;;  %v10720_v19 = vmul.f32 %v4782_v50, %v4498_v4  ;;  %v4403_v50 = vadd.f32 %v4243_v6, %v4179_v58  ;;  %v12535_v6 = vld [vmem:[#allocation173_spill] sm:$0xff]  ;;  %5504 = vmatpush.msrb.mxu1 %v5462_v60  ;;  %v12536_v47 = vld [vmem:[#allocation43_spill] sm:$0xff] }
 0xa27   :  { %4992 = vmatmul.f32.gmra.mxu3 %v4849_v32  ;;  %v10724_v61 = vpop.f32.mrf.mxu3 }
 0xa2f   :  { %v10726_v30 = vpop.f32.mrf.mxu3 }
 0xa37   :  { %v10728_v25 = vpop.f32.mrf.mxu3 }
 0xa3f   :  { %v10730_v59 = vpop.f32.mrf.mxu3 }
 0xa47   :  { %v10736_v4 = vpop.f32.mrf.mxu3 }
 0xa4f   :  { %v10742_v0 = vpop.f32.mrf.mxu3 }
 0xa53   :  { %v4787_v45 = vpop.permute.xlu2 %4786 }
 0xa57   :  { %v10745_v38 = vpop.f32.mrf.mxu3 }
 0xa5c   :  { %v4115_v41 = vpop.permute.xlu1 %4114 }
 0xa5d   :  { %v4307_v32 = vmul.f32 %v4115_v41, %v12532_v51  ;;  %v4308_v54 = vmul.f32 %v4115_v41, %v12533_v16  ;;  %v12539_v51 = vld [vmem:[#allocation122_spill] sm:$0xff]  ;;  %v5944_v16 = vld [vmem:[#allocation2 + $0x6c0] sm:$0xff] }
 0xa5e   :  { %5958 = vmatpush.msrb.mxu0 %v5944_v16  ;;  %v12544_v16 = vld [vmem:[#allocation116_spill] sm:$0xff] }
 0xa5f   :  { %v4499_v20 = vadd.f32 %v4403_v50, %v4307_v32  ;;  %v4500_v46 = vadd.f32 %v4404_v7, %v4308_v54  ;;  %v10748_v58 = vpop.f32.mrf.mxu3  ;;  %v12538_v50 = vld [vmem:[#allocation231_spill] sm:$0xff]  ;;  %v5475_v32 = vld [vmem:[#allocation2 + $0x4b0] sm:$0xff] }
 0xa60   :  { %5620 = vmatpush.msra.mxu2 %v5475_v32 }
 0xa61   :  { %v4851_v36 = vmul.f32 %v4787_v45, %v4499_v20  ;;  %v10740_v18 = vmul.f32 %v4787_v45, %v4500_v46  ;;  %v12540_v20 = vld [vmem:[#allocation95_spill] sm:$0xff]  ;;  %v5461_v46 = vld [vmem:[#allocation2 + $0x3d0] sm:$0xff] }
 0xa62   :  { %5505 = vmatpush.msrb.mxu1 %v5461_v46  ;;  %v5456_v46 = vld [vmem:[#allocation2 + $0x380] sm:$0xff] }
 0xa63   :  { %4995 = vmatmul.f32.gmra.mxu3 %v4851_v36  ;;  %v12541_v36 = vld [vmem:[#allocation78_spill] sm:$0xff] }
 0xa67   :  { %v10752_v41 = vpop.f32.mrf.mxu3 }
 0xa6b   :  { %5015 = vmatmul.f32.vlgmr.msra.gmra.mxu3 %v12534_v35 }
 0xa6f   :  { %v10755_v7 = vpop.f32.mrf.mxu3 }
 0xa73   :  { %5018 = vmatmul.f32.gmra.mxu3 %v12535_v6  ;;  %v4808_v6 = vmul.f32 %v10064_v55, %v10399_v52  ;;  %v5474_v55 = vld [vmem:[#allocation2 + $0x4a0] sm:$0xff] }
 0xa74   :  { %5621 = vmatpush.msra.mxu2 %v5474_v55  ;;  %v5454_v52 = vld [vmem:[#allocation2 + $0x360] sm:$0xff] }
 0xa76   :  { %5622 = vmatpush.msra.mxu2 %v5473_v8  ;;  %v4830_v8 = vmul.f32 %v12484_v17, %v10508_v11 }
 0xa77   :  { %v10758_v54 = vpop.f32.mrf.mxu3 }
 0xa7b   :  { %5021 = vmatmul.f32.gmra.mxu3 %v12536_v47  ;;  %v12543_v47 = vld [vmem:[#allocation135_spill] sm:$0xff] }
 0xa7f   :  { %v10761_v45 = vpop.f32.mrf.mxu3 }
 0xa83   :  { %5024 = vmatmul.f32.gmra.mxu3 %v12537_v26  ;;  %v5460_v26 = vld [vmem:[#allocation2 + $0x3c0] sm:$0xff] }
 0xa84   :  { %5506 = vmatpush.msrb.mxu1 %v5460_v26  ;;  %v5452_v26 = vld [vmem:[#allocation2 + $0x340] sm:$0xff] }
 0xa87   :  { %v10765_v35 = vpop.f32.mrf.mxu3 }
 0xa8b   :  { %5027 = vmatmul.f32.gmra.mxu3 %v12538_v50  ;;  %v5459_v50 = vld [vmem:[#allocation2 + $0x3b0] sm:$0xff] }
 0xa8c   :  { %5507 = vmatpush.msrb.mxu1 %v5459_v50  ;;  %v5451_v50 = vld [vmem:[#allocation2 + $0x330] sm:$0xff] }
 0xa8f   :  { %v10769_v60 = vpop.f32.mrf.mxu3 }
 0xa93   :  { %5030 = vmatmul.f32.gmra.mxu3 %v12539_v51  ;;  %v5458_v51 = vld [vmem:[#allocation2 + $0x3a0] sm:$0xff] }
 0xa94   :  { %5508 = vmatpush.msrb.mxu1 %v5458_v51  ;;  %v12546_v51 = vld [vmem:[#allocation96_spill] sm:$0xff] }
 0xa97   :  { %v10772_v32 = vpop.f32.mrf.mxu3 }
 0xa9b   :  { %5033 = vmatmul.f32.gmra.mxu3 %v12540_v20  ;;  %v5457_v20 = vld [vmem:[#allocation2 + $0x390] sm:$0xff] }
 0xa9c   :  { %5509 = vmatpush.msrb.mxu1 %v5457_v20 }
 0xa9e   :  { %5510 = vmatpush.msrb.mxu1 %v5456_v46  ;;  %v12547_v46 = vld [vmem:[#allocation177_spill] sm:$0xff] }
 0xaa3   :  { %5036 = vmatmul.f32.gmra.mxu3 %v12541_v36  ;;  %v5455_v36 = vld [vmem:[#allocation2 + $0x370] sm:$0xff] }
 0xaa4   :  { %5511 = vmatpush.msrb.mxu1 %v5455_v36 }
 0xaa6   :  { %5512 = vmatpush.msrb.mxu1 %v5454_v52  ;;  %v10787_v52 = vld [vmem:[#allocation5] sm:$0xff] }
 0xaab   :  { %5039 = vmatmul.f32.gmra.mxu3 %v12542_v21  ;;  %v10775_v21 = vpop.f32.mrf.mxu3 }
 0xab3   :  { %5042 = vmatmul.f32.gmra.mxu3 %v4808_v6  ;;  %v12545_v6 = vld [vmem:[#allocation47_spill] sm:$0xff]  ;;  %v10779_v20 = vpop.f32.mrf.mxu3 }
 0xabb   :  { %5045 = vmatmul.f32.gmra.mxu3 %v12543_v47  ;;  %v5453_v47 = vld [vmem:[#allocation2 + $0x350] sm:$0xff]  ;;  %v10782_v55 = vpop.f32.mrf.mxu3 }
 0xabc   :  { %5513 = vmatpush.msrb.mxu1 %v5453_v47  ;;  %v12548_v47 = vld [vmem:[#allocation25_spill] sm:$0xff] }
 0xabe   :  { %5514 = vmatpush.msrb.mxu1 %v5452_v26 }
 0xac0   :  { %5515 = vmatpush.msrb.mxu1 %v5451_v50 }
 0xac3   :  { %5048 = vmatmul.f32.gmra.mxu3 %v12544_v16  ;;  %v5943_v16 = vld [vmem:[#allocation2 + $0x6b0] sm:$0xff] }
 0xac4   :  { %5959 = vmatpush.msrb.mxu0 %v5943_v16  ;;  %v12549_v16 = vld [vmem:[#allocation140_spill] sm:$0xff] }
 0xacb   :  { %5051 = vmatmul.f32.gmra.mxu3 %v12545_v6  ;;  %v10790_v6 = vperm.slane %v10787_v52, 4 }
 0xacd   :  { %v4904_v26 = vadd.f32 %v10563_v5, %v10790_v6  ;;  %v4922_v11 = vadd.f32 %v10649_v1, %v10790_v6 }
 0xad3   :  { %5054 = vmatmul.f32.gmra.mxu3 %v12546_v51 }
 0xadb   :  { %5057 = vmatmul.f32.gmra.mxu3 %v12547_v46 }
 0xae3   :  { %5060 = vmatmul.f32.gmra.mxu3 %v10417_v14  ;;  %v4907_v14 = vadd.f32 %v10579_v56, %v10790_v6  ;;  %v4913_v56 = vadd.f32 %v10612_v48, %v10790_v6 }
 0xae6   :  { %v10785_v36 = vpop.f32.mrf.mxu3 }
 0xaeb   :  { %5063 = vmatmul.f32.gmra.mxu3 %v12548_v47  ;;  %v4910_v47 = vadd.f32 %v10603_v49, %v10790_v6 }
 0xaee   :  { %v5016_v50 = vpop.f32.mrf.mxu3 }
 0xaef   :  { %v5017_v51 = vadd.f32 %v5016_v50, %v4904_v26  ;;  %v4828_v26 = vmul.f32 %v12480_v3, %v10460_v63  ;;  %v4832_v63 = vmul.f32 %v12488_v13, %v10531_v12  ;;  %v4919_v3 = vadd.f32 %v10635_v31, %v10790_v6  ;;  %v5472_v31 = vld [vmem:[#allocation2 + $0x480] sm:$0xff] }
 0xaf0   :  { %v4925_v12 = vadd.f32 %v10667_v9, %v10790_v6  ;;  %5623 = vmatpush.msra.mxu2 %v5472_v31  ;;  %v4961_v31 = vadd.f32 %v10745_v38, %v10790_v6  ;;  %v5117_v38 = vld [vmem:[%s11363_s1 + $0x28] sm:$0xff] }
 0xaf1   :  { %5516 = vmatmul.f32.vlgmr.msrb.gmra.mxu1 %v5017_v51 }
 0xaf3   :  { %5066 = vmatmul.f32.gmra.mxu3 %v12549_v16 }
 0xaf6   :  { %v5019_v46 = vpop.f32.mrf.mxu3 }
 0xaf7   :  { %v5020_v22 = vadd.f32 %v5019_v46, %v4907_v14 }
 0xaf9   :  { %5519 = vmatmul.f32.gmra.mxu1 %v5020_v22 }
 0xafb   :  { %5069 = vmatmul.f32.gmra.mxu3 %v10444_v57  ;;  %v5942_v57 = vld [vmem:[#allocation2 + $0x6a0] sm:$0xff] }
 0xafc   :  { %5960 = vmatpush.msrb.mxu0 %v5942_v57  ;;  %v5471_v57 = vld [vmem:[#allocation2 + $0x470] sm:$0xff] }
 0xafd   :  { %5624 = vmatpush.msra.mxu2 %v5471_v57 }
 0xafe   :  { %v5022_v42 = vpop.f32.mrf.mxu3 }
 0xaff   :  { %v5023_v5 = vadd.f32 %v5022_v42, %v4910_v47  ;;  %v4916_v42 = vadd.f32 %v10622_v23, %v10790_v6 }
 0xb01   :  { %5522 = vmatmul.f32.gmra.mxu1 %v5023_v5  ;;  %v4934_v5 = vadd.f32 %v10707_v24, %v10790_v6 }
 0xb03   :  { %5072 = vmatmul.f32.gmra.mxu3 %v4828_v26 }
 0xb06   :  { %v5025_v50 = vpop.f32.mrf.mxu3 }
 0xb07   :  { %v5026_v51 = vadd.f32 %v5025_v50, %v4913_v56  ;;  %v5498_v50 = vld [vmem:[#allocation2 + $0x620] sm:$0xff] }
 0xb08   :  { %5726 = vmatpush.msra.mxu3 %v5498_v50 }
 0xb09   :  { %5525 = vmatmul.f32.gmra.mxu1 %v5026_v51 }
 0xb0b   :  { %5075 = vmatmul.f32.gmra.mxu3 %v4830_v8 }
 0xb0e   :  { %v5028_v22 = vpop.f32.mrf.mxu3 }
 0xb0f   :  { %v5029_v49 = vadd.f32 %v5028_v22, %v4916_v42 }
 0xb11   :  { %5528 = vmatmul.f32.gmra.mxu1 %v5029_v49 }
 0xb13   :  { %5078 = vmatmul.f32.gmra.mxu3 %v4832_v63  ;;  %v5112_v63 = vld [vmem:[%s11363_s1] sm:$0xff] }
 0xb16   :  { %v5031_v48 = vpop.f32.mrf.mxu3 }
 0xb17   :  { %v5032_v16 = vadd.f32 %v5031_v48, %v4919_v3 }
 0xb19   :  { %5531 = vmatmul.f32.gmra.mxu1 %v5032_v16 }
 0xb1b   :  { %5081 = vmatmul.f32.gmra.mxu3 %v10559_v43  ;;  %v4928_v43 = vadd.f32 %v10687_v10, %v10790_v6  ;;  %v5941_v10 = vld [vmem:[#allocation2 + $0x690] sm:$0xff] }
 0xb1c   :  { %5961 = vmatpush.msrb.mxu0 %v5941_v10 }
 0xb1e   :  { %v5034_v17 = vpop.f32.mrf.mxu3 }
 0xb1f   :  { %v5035_v23 = vadd.f32 %v5034_v17, %v4922_v11  ;;  %v5114_v17 = vld [vmem:[%s11363_s1 + $0x10] sm:$0xff] }
 0xb21   :  { %5534 = vmatmul.f32.gmra.mxu1 %v5035_v23  ;;  %v4958_v23 = vadd.f32 %v10742_v0, %v10790_v6  ;;  %v5116_v0 = vld [vmem:[%s11363_s1 + $0x20] sm:$0xff] }
 0xb23   :  { %5084 = vmatmul.f32.gmra.mxu3 %v10501_v28  ;;  %v4931_v28 = vadd.f32 %v10695_v44, %v10790_v6 }
 0xb26   :  { %v5037_v13 = vpop.f32.mrf.mxu3 }
 0xb27   :  { %v5038_v14 = vadd.f32 %v5037_v13, %v4925_v12 }
 0xb29   :  { %5537 = vmatmul.f32.gmra.mxu1 %v5038_v14  ;;  %v5940_v14 = vld [vmem:[#allocation2 + $0x680] sm:$0xff] }
 0xb2a   :  { %5962 = vmatpush.msrb.mxu0 %v5940_v14 }
 0xb2b   :  { %5087 = vmatmul.f32.gmra.mxu3 %v10573_v2 }
 0xb2e   :  { %v5040_v46 = vpop.f32.mrf.mxu3 }
 0xb2f   :  { %v5041_v1 = vadd.f32 %v5040_v46, %v4928_v43 }
 0xb31   :  { %5540 = vmatmul.f32.gmra.mxu1 %v5041_v1  ;;  %v5470_v1 = vld [vmem:[#allocation2 + $0x460] sm:$0xff] }
 0xb32   :  { %5625 = vmatpush.msra.mxu2 %v5470_v1 }
 0xb33   :  { %5090 = vmatmul.f32.gmra.mxu3 %v10670_v15  ;;  %v4937_v15 = vadd.f32 %v10718_v33, %v10790_v6 }
 0xb36   :  { %v5043_v47 = vpop.f32.mrf.mxu3 }
 0xb37   :  { %v5044_v9 = vadd.f32 %v5043_v47, %v4931_v28  ;;  %v5494_v28 = vld [vmem:[#allocation2 + $0x5e0] sm:$0xff]  ;;  %v4964_v47 = vadd.f32 %v10748_v58, %v10790_v6  ;;  %v5493_v58 = vld [vmem:[#allocation2 + $0x5d0] sm:$0xff] }
 0xb39   :  { %5543 = vmatmul.f32.gmra.mxu1 %v5044_v9 }
 0xb3b   :  { %5093 = vmatmul.f32.gmra.mxu3 %v10647_v40  ;;  %v4940_v40 = vadd.f32 %v10722_v39, %v10790_v6  ;;  %v4946_v39 = vadd.f32 %v10726_v30, %v10790_v6  ;;  %v4952_v30 = vadd.f32 %v10730_v59, %v10790_v6  ;;  %v5495_v59 = vld [vmem:[#allocation2 + $0x5f0] sm:$0xff] }
 0xb3e   :  { %v5046_v2 = vpop.f32.mrf.mxu3 }
 0xb3f   :  { %v5047_v26 = vadd.f32 %v5046_v2, %v4934_v5  ;;  %v4967_v2 = vadd.f32 %v10752_v41, %v10790_v6  ;;  %v5119_v41 = vld [vmem:[%s11363_s1 + $0x38] sm:$0xff] }
 0xb41   :  { %5546 = vmatmul.f32.gmra.mxu1 %v5047_v26 }
 0xb43   :  { %5096 = vmatmul.f32.gmra.mxu3 %v10697_v29  ;;  %v4943_v29 = vadd.f32 %v10724_v61, %v10790_v6 }
 0xb46   :  { %v5049_v56 = vpop.f32.mrf.mxu3 }
 0xb47   :  { %v5050_v44 = vadd.f32 %v5049_v56, %v4937_v15  ;;  %v5118_v15 = vld [vmem:[%s11363_s1 + $0x30] sm:$0xff]  ;;  %v4970_v56 = vadd.f32 %v10755_v7, %v10790_v6  ;;  %v5120_v7 = vld [vmem:[%s11363_s1 + $0x40] sm:$0xff] }
 0xb49   :  { %5549 = vmatmul.f32.gmra.mxu1 %v5050_v44 }
 0xb4b   :  { %5099 = vmatmul.f32.gmra.mxu3 %v10692_v62  ;;  %v5497_v62 = vld [vmem:[#allocation2 + $0x610] sm:$0xff] }
 0xb4c   :  { %5727 = vmatpush.msra.mxu3 %v5497_v62 }
 0xb4e   :  { %v5052_v24 = vpop.f32.mrf.mxu3 }
 0xb4f   :  { %v5053_v51 = vadd.f32 %v5052_v24, %v4940_v40  ;;  %v4973_v24 = vadd.f32 %v10758_v54, %v10790_v6  ;;  %v5121_v54 = vld [vmem:[%s11363_s1 + $0x48] sm:$0xff] }
 0xb51   :  { %5552 = vmatmul.f32.gmra.mxu1 %v5053_v51 }
 0xb53   :  { %5102 = vmatmul.f32.gmra.mxu3 %v10710_v53  ;;  %v4949_v53 = vadd.f32 %v10728_v25, %v10790_v6  ;;  %v5113_v25 = vld [vmem:[%s11363_s1 + $0x8] sm:$0xff] }
 0xb56   :  { %v5055_v8 = vpop.f32.mrf.mxu3 }
 0xb57   :  { %v5056_v33 = vadd.f32 %v5055_v8, %v4943_v29  ;;  %v5492_v8 = vld [vmem:[#allocation2 + $0x5c0] sm:$0xff] }
 0xb59   :  { %5555 = vmatmul.f32.gmra.mxu1 %v5056_v33  ;;  %v4976_v33 = vadd.f32 %v10761_v45, %v10790_v6  ;;  %v5122_v45 = vld [vmem:[%s11363_s1 + $0x50] sm:$0xff] }
 0xb5b   :  { %5105 = vmatmul.f32.gmra.mxu3 %v10720_v19  ;;  %v5496_v19 = vld [vmem:[#allocation2 + $0x600] sm:$0xff] }
 0xb5c   :  { %5728 = vmatpush.msra.mxu3 %v5496_v19  ;;  %v5491_v19 = vld [vmem:[#allocation2 + $0x5b0] sm:$0xff] }
 0xb5e   :  { %v5058_v42 = vpop.f32.mrf.mxu3  ;;  %5729 = vmatpush.msra.mxu3 %v5495_v59 }
 0xb5f   :  { %v5059_v22 = vadd.f32 %v5058_v42, %v4946_v39  ;;  %v4979_v42 = vadd.f32 %v10765_v35, %v10790_v6  ;;  %v4982_v35 = vadd.f32 %v10769_v60, %v10790_v6  ;;  %v4985_v60 = vadd.f32 %v10772_v32, %v10790_v6 }
 0xb60   :  { %5730 = vmatpush.msra.mxu3 %v5494_v28  ;;  %v4988_v32 = vadd.f32 %v10775_v21, %v10790_v6  ;;  %v4991_v21 = vadd.f32 %v10779_v20, %v10790_v6  ;;  %v4994_v20 = vadd.f32 %v10782_v55, %v10790_v6  ;;  %v4997_v55 = vadd.f32 %v10785_v36, %v10790_v6  ;;  %v6444_v36 = vld [vmem:[%s11362_s0 + $0x328] sm:$0xff] }
 0xb61   :  { %5558 = vmatmul.f32.gmra.mxu1 %v5059_v22 }
 0xb62   :  { %5731 = vmatpush.msra.mxu3 %v5493_v58 }
 0xb63   :  { %5108 = vmatmul.f32.gmra.mxu3 %v10740_v18  ;;  %v4955_v18 = vadd.f32 %v10736_v4, %v10790_v6  ;;  %v5115_v4 = vld [vmem:[%s11363_s1 + $0x18] sm:$0xff] }
 0xb64   :  { %5732 = vmatpush.msra.mxu3 %v5492_v8 }
 0xb66   :  { %v5061_v61 = vpop.f32.mrf.mxu3  ;;  %5733 = vmatpush.msra.mxu3 %v5491_v19  ;;  %v5131_v19 = vld [vmem:[%s11363_s1 + $0x98] sm:$0xff] }
 0xb67   :  { %v5062_v49 = vadd.f32 %v5061_v61, %v4949_v53 }
 0xb69   :  { %5561 = vmatmul.f32.gmra.mxu1 %v5062_v49  ;;  %v5939_v49 = vld [vmem:[#allocation2 + $0x670] sm:$0xff] }
 0xb6a   :  { %5963 = vmatpush.msrb.mxu0 %v5939_v49  ;;  %v6446_v49 = vld [vmem:[%s11362_s0 + $0x338] sm:$0xff] }
 0xb6b   :  { %6599 = vmatmul.msk.f32.vlgmr.msrb.gmra.mxu3 %vm183_vm0, %v5112_v63  ;;  %v5469_v63 = vld [vmem:[#allocation2 + $0x450] sm:$0xff] }
 0xb6c   :  { %5626 = vmatpush.msra.mxu2 %v5469_v63 }
 0xb6e   :  { %v5064_v3 = vpop.f32.mrf.mxu3  ;;  %v10888_v40 = vpop.f32.mrf.mxu1 }
 0xb6f   :  { %v5065_v48 = vadd.f32 %v5064_v3, %v4952_v30 }
 0xb71   :  { %5564 = vmatmul.f32.gmra.mxu1 %v5065_v48  ;;  %v5123_v48 = vld [vmem:[%s11363_s1 + $0x58] sm:$0xff] }
 0xb73   :  { %6600 = vmatmul.msk.f32.gmra.mxu3 %vm183_vm0, %v5113_v25 }
 0xb76   :  { %v5067_v16 = vpop.f32.mrf.mxu3  ;;  %v10899_v57 = vpop.f32.mrf.mxu1 }
 0xb77   :  { %v5068_v11 = vadd.f32 %v5067_v16, %v4955_v18  ;;  %v6439_v18 = vld [vmem:[%s11362_s0 + $0x300] sm:$0xff] }
 0xb78   :  { %6567 = vmatmul.msk.f32.gmra.mxu0 %vm183_vm0, %v6439_v18 }
 0xb79   :  { %5567 = vmatmul.f32.gmra.mxu1 %v5068_v11 }
 0xb7b   :  { %6601 = vmatmul.msk.f32.gmra.mxu3 %vm183_vm0, %v5114_v17  ;;  %v5124_v17 = vld [vmem:[%s11363_s1 + $0x60] sm:$0xff] }
 0xb7e   :  { %v5070_v12 = vpop.f32.mrf.mxu3  ;;  %v10907_v53 = vpop.f32.mrf.mxu1 }
 0xb7f   :  { %v5071_v13 = vadd.f32 %v5070_v12, %v4958_v23  ;;  %v5490_v23 = vld [vmem:[#allocation2 + $0x5a0] sm:$0xff]  ;;  %v6440_v12 = vld [vmem:[%s11362_s0 + $0x308] sm:$0xff] }
 0xb80   :  { %5734 = vmatpush.msra.mxu3 %v5490_v23  ;;  %6568 = vmatmul.msk.f32.gmra.mxu0 %vm183_vm0, %v6440_v12  ;;  %v6448_v23 = vld [vmem:[%s11362_s0 + $0x348] sm:$0xff] }
 0xb81   :  { %5570 = vmatmul.f32.gmra.mxu1 %v5071_v13 }
 0xb83   :  { %6602 = vmatmul.msk.f32.gmra.mxu3 %vm183_vm0, %v5115_v4  ;;  %v5125_v4 = vld [vmem:[%s11363_s1 + $0x68] sm:$0xff] }
 0xb86   :  { %v5073_v43 = vpop.f32.mrf.mxu3  ;;  %v10918_v25 = vpop.f32.mrf.mxu1 }
 0xb87   :  { %v5074_v46 = vadd.f32 %v5073_v43, %v4961_v31  ;;  %v5468_v31 = vld [vmem:[#allocation2 + $0x440] sm:$0xff]  ;;  %v5467_v43 = vld [vmem:[#allocation2 + $0x430] sm:$0xff] }
 0xb88   :  { %5627 = vmatpush.msra.mxu2 %v5468_v31  ;;  %v6449_v31 = vld [vmem:[%s11362_s0 + $0x350] sm:$0xff] }
 0xb89   :  { %5573 = vmatmul.f32.gmra.mxu1 %v5074_v46  ;;  %v6441_v46 = vld [vmem:[%s11362_s0 + $0x310] sm:$0xff] }
 0xb8a   :  { %5628 = vmatpush.msra.mxu2 %v5467_v43  ;;  %6569 = vmatmul.msk.f32.gmra.mxu0 %vm183_vm0, %v6441_v46 }
 0xb8b   :  { %6603 = vmatmul.msk.f32.gmra.mxu3 %vm183_vm0, %v5116_v0 }
 0xb8e   :  { %v5076_v9 = vpop.f32.mrf.mxu3  ;;  %v10930_v59 = vpop.f32.mrf.mxu1 }
 0xb8f   :  { %v5077_v5 = vadd.f32 %v5076_v9, %v4964_v47  ;;  %v5126_v47 = vld [vmem:[%s11363_s1 + $0x70] sm:$0xff] }
 0xb90   :  { %v5489_v9 = vld [vmem:[#allocation2 + $0x590] sm:$0xff] }
 0xb91   :  { %5576 = vmatmul.f32.gmra.mxu1 %v5077_v5  ;;  %5735 = vmatpush.msra.mxu3 %v5489_v9  ;;  %v6442_v5 = vld [vmem:[%s11362_s0 + $0x318] sm:$0xff] }
 0xb92   :  { %6570 = vmatmul.msk.f32.gmra.mxu0 %vm183_vm0, %v6442_v5  ;;  %v6450_v9 = vld [vmem:[%s11362_s0 + $0x358] sm:$0xff] }
 0xb93   :  { %6604 = vmatmul.msk.f32.gmra.mxu3 %vm183_vm0, %v5117_v38 }
 0xb96   :  { %v5079_v26 = vpop.f32.mrf.mxu3  ;;  %v10948_v0 = vpop.f32.mrf.mxu1 }
 0xb97   :  { %v5080_v10 = vadd.f32 %v5079_v26, %v4967_v2 }
 0xb99   :  { %5579 = vmatmul.f32.gmra.mxu1 %v5080_v10  ;;  %v5127_v10 = vld [vmem:[%s11363_s1 + $0x78] sm:$0xff] }
 0xb9b   :  { %6605 = vmatmul.msk.f32.gmra.mxu3 %vm183_vm0, %v5118_v15  ;;  %v6443_v15 = vld [vmem:[%s11362_s0 + $0x320] sm:$0xff] }
 0xb9c   :  { %6571 = vmatmul.msk.f32.gmra.mxu0 %vm183_vm0, %v6443_v15  ;;  %v6451_v15 = vld [vmem:[%s11362_s0 + $0x360] sm:$0xff] }
 0xb9e   :  { %v5082_v44 = vpop.f32.mrf.mxu3  ;;  %v10961_v2 = vpop.f32.mrf.mxu1 }
 0xb9f   :  { %v5083_v50 = vadd.f32 %v5082_v44, %v4970_v56  ;;  %v5128_v44 = vld [vmem:[%s11363_s1 + $0x80] sm:$0xff] }
 0xba1   :  { %5582 = vmatmul.f32.gmra.mxu1 %v5083_v50 }
 0xba3   :  { %6606 = vmatmul.msk.f32.gmra.mxu3 %vm183_vm0, %v5119_v41  ;;  %v10980_v41 = vperm.slane %v10787_v52, 1 }
 0xba4   :  { %6572 = vmatmul.msk.f32.gmra.mxu0 %vm183_vm0, %v6444_v36 }
 0xba6   :  { %v5085_v51 = vpop.f32.mrf.mxu3  ;;  %v10976_v50 = vpop.f32.mrf.mxu1 }
 0xba7   :  { %v5086_v29 = vadd.f32 %v5085_v51, %v4973_v24  ;;  %v5488_v24 = vld [vmem:[#allocation2 + $0x580] sm:$0xff] }
 0xba8   :  { %5736 = vmatpush.msra.mxu3 %v5488_v24 }
 0xba9   :  { %5585 = vmatmul.f32.gmra.mxu1 %v5086_v29  ;;  %v5938_v29 = vld [vmem:[#allocation2 + $0x660] sm:$0xff] }
 0xbaa   :  { %5964 = vmatpush.msrb.mxu0 %v5938_v29 }
 0xbab   :  { %6607 = vmatmul.msk.f32.gmra.mxu3 %vm183_vm0, %v5120_v7  ;;  %v5129_v7 = vld [vmem:[%s11363_s1 + $0x88] sm:$0xff] }
 0xbae   :  { %v5088_v62 = vpop.f32.mrf.mxu3 }
 0xbaf   :  { %v5089_v39 = vadd.f32 %v5088_v62, %v4976_v33  ;;  %v6445_v33 = vld [vmem:[%s11362_s0 + $0x330] sm:$0xff] }
 0xbb0   :  { %6573 = vmatmul.msk.f32.gmra.mxu0 %vm183_vm0, %v6445_v33 }
 0xbb1   :  { %5588 = vmatmul.f32.gmra.mxu1 %v5089_v39 }
 0xbb3   :  { %6608 = vmatmul.msk.f32.gmra.mxu3 %vm183_vm0, %v5121_v54  ;;  %v5130_v54 = vld [vmem:[%s11363_s1 + $0x90] sm:$0xff] }
 0xbb6   :  { %v5091_v22 = vpop.f32.mrf.mxu3 }
 0xbb7   :  { %v5092_v61 = vadd.f32 %v5091_v22, %v4979_v42 }
 0xbb8   :  { %6574 = vmatmul.msk.f32.gmra.mxu0 %vm183_vm0, %v6446_v49  ;;  %v5483_v49 = vld [vmem:[#allocation2 + $0x530] sm:$0xff] }
 0xbb9   :  { %5591 = vmatmul.f32.gmra.mxu1 %v5092_v61  ;;  %v5487_v61 = vld [vmem:[#allocation2 + $0x570] sm:$0xff] }
 0xbba   :  { %5737 = vmatpush.msra.mxu3 %v5487_v61 }
 0xbbb   :  { %6609 = vmatmul.msk.f32.gmra.mxu3 %vm183_vm0, %v5122_v45 }
 0xbbe   :  { %v5094_v30 = vpop.f32.mrf.mxu3 }
 0xbbf   :  { %v5095_v3 = vadd.f32 %v5094_v30, %v4982_v35 }
 0xbc1   :  { %5594 = vmatmul.f32.gmra.mxu1 %v5095_v3  ;;  %v6447_v3 = vld [vmem:[%s11362_s0 + $0x340] sm:$0xff] }
 0xbc2   :  { %6575 = vmatmul.msk.f32.gmra.mxu0 %vm183_vm0, %v6447_v3 }
 0xbc3   :  { %6610 = vmatmul.msk.f32.gmra.mxu3 %vm183_vm0, %v5123_v48 }
 0xbc6   :  { %v5097_v16 = vpop.f32.mrf.mxu3 }
 0xbc7   :  { %v5098_v11 = vadd.f32 %v5097_v16, %v4985_v60  ;;  %v5132_v60 = vld [vmem:[%s11363_s1 + $0xa0] sm:$0xff] }
 0xbc9   :  { %5597 = vmatmul.f32.gmra.mxu1 %v5098_v11 }
 0xbca   :  { %6576 = vmatmul.msk.f32.gmra.mxu0 %vm183_vm0, %v6448_v23 }
 0xbcb   :  { %6611 = vmatmul.msk.f32.gmra.mxu3 %vm183_vm0, %v5124_v17  ;;  %v5486_v17 = vld [vmem:[#allocation2 + $0x560] sm:$0xff] }
 0xbcc   :  { %5738 = vmatpush.msra.mxu3 %v5486_v17 }
 0xbce   :  { %v5100_v13 = vpop.f32.mrf.mxu3 }
 0xbcf   :  { %v5101_v14 = vadd.f32 %v5100_v13, %v4988_v32  ;;  %v5133_v13 = vld [vmem:[%s11363_s1 + $0xa8] sm:$0xff] }
 0xbd1   :  { %5600 = vmatmul.f32.gmra.mxu1 %v5101_v14 }
 0xbd2   :  { %6577 = vmatmul.msk.f32.gmra.mxu0 %vm183_vm0, %v6449_v31 }
 0xbd3   :  { %6612 = vmatmul.msk.f32.gmra.mxu3 %vm183_vm0, %v5125_v4 }
 0xbd6   :  { %v5103_v1 = vpop.f32.mrf.mxu3 }
 0xbd7   :  { %v5104_v28 = vadd.f32 %v5103_v1, %v4991_v21  ;;  %v5134_v21 = vld [vmem:[%s11363_s1 + $0xb0] sm:$0xff] }
 0xbd9   :  { %5603 = vmatmul.f32.gmra.mxu1 %v5104_v28 }
 0xbda   :  { %6578 = vmatmul.msk.f32.gmra.mxu0 %vm183_vm0, %v6450_v9 }
 0xbdb   :  { %6613 = vmatmul.msk.f32.gmra.mxu3 %vm183_vm0, %v5126_v47  ;;  %v5485_v47 = vld [vmem:[#allocation2 + $0x550] sm:$0xff] }
 0xbdc   :  { %5739 = vmatpush.msra.mxu3 %v5485_v47  ;;  %v6176_v47 = vld [vmem:[#allocation2 + $0x820] sm:$0xff] }
 0xbdd   :  { %6178 = vmatpush.msra.mxu1 %v6176_v47 }
 0xbde   :  { %v5106_v38 = vpop.f32.mrf.mxu3 }
 0xbdf   :  { %v5107_v26 = vadd.f32 %v5106_v38, %v4994_v20  ;;  %v5135_v38 = vld [vmem:[%s11363_s1 + $0xb8] sm:$0xff] }
 0xbe1   :  { %5606 = vmatmul.f32.gmra.mxu1 %v5107_v26 }
 0xbe2   :  { %6579 = vmatmul.msk.f32.gmra.mxu0 %vm183_vm0, %v6451_v15  ;;  %v5936_v15 = vld [vmem:[#allocation2 + $0x640] sm:$0xff] }
 0xbe3   :  { %6614 = vmatmul.msk.f32.gmra.mxu3 %vm183_vm0, %v5127_v10 }
 0xbe6   :  { %v5109_v58 = vpop.f32.mrf.mxu3 }
 0xbe7   :  { %v5110_v56 = vadd.f32 %v5109_v58, %v4997_v55 }
 0xbe9   :  { %5609 = vmatmul.f32.gmra.mxu1 %v5110_v56  ;;  %v5937_v56 = vld [vmem:[#allocation2 + $0x650] sm:$0xff] }
 0xbea   :  { %5965 = vmatpush.msrb.mxu0 %v5937_v56 }
 0xbeb   :  { %6615 = vmatmul.msk.f32.gmra.mxu3 %vm183_vm0, %v5128_v44  ;;  %v5136_v44 = vld [vmem:[%s11363_s1 + $0xc0] sm:$0xff] }
 0xbec   :  { %5966 = vmatpush.msrb.mxu0 %v5936_v15 }
 0xbee   :  { %v5259_v6 = vpop.f32.mrf.mxu3 }
 0xbef   :  { %v5260_v51 = vadd.f32 %v5259_v6, %v10980_v41  ;;  %v5484_v6 = vld [vmem:[#allocation2 + $0x540] sm:$0xff] }
 0xbf0   :  { %5740 = vmatpush.msra.mxu3 %v5484_v6 }
 0xbf1   :  { %vm5355_vm10 = vcmp.ge.f32.partialorder %v5260_v51, 0.0  ;;  %v5387_v52 = vmul.f32 0.01, %v5260_v51 }
 0xbf2   :  { %5741 = vmatpush.msra.mxu3 %v5483_v49 }
 0xbf3   :  { %6616 = vmatmul.msk.f32.gmra.mxu3 %vm183_vm0, %v5129_v7  ;;  %v5419_v8 = vsel %vm5355_vm10, %v5260_v51, %v5387_v52  ;;  %v6452_v51 = vld [vmem:[%s11362_s0 + $0x368] sm:$0xff] }
 0xbf4   :  { %5629 = vmatmul.f32.vlgmr.msra.gmra.mxu2 %v5419_v8  ;;  %6580 = vmatmul.msk.f32.gmra.mxu0 %vm183_vm0, %v6452_v51  ;;  %v5137_v52 = vld [vmem:[%s11363_s1 + $0xc8] sm:$0xff] }
 0xbf5   :  { %v873_v3 = vpop.f32.mrf.mxu0 }
 0xbf6   :  { %v5262_v62 = vpop.f32.mrf.mxu3 }
 0xbf7   :  { %v5263_v39 = vadd.f32 %v5262_v62, %v10980_v41  ;;  %v6453_v62 = vld [vmem:[%s11362_s0 + $0x370] sm:$0xff] }
 0xbf9   :  { %vm5356_vm11 = vcmp.ge.f32.partialorder %v5263_v39, 0.0  ;;  %v5388_v42 = vmul.f32 0.01, %v5263_v39 }
 0xbfb   :  { %6617 = vmatmul.msk.f32.gmra.mxu3 %vm183_vm0, %v5130_v54  ;;  %v5420_v22 = vsel %vm5356_vm11, %v5263_v39, %v5388_v42  ;;  %v5138_v42 = vld [vmem:[%s11363_s1 + $0xd0] sm:$0xff] }
 0xbfc   :  { %5632 = vmatmul.f32.gmra.mxu2 %v5420_v22  ;;  %6581 = vmatmul.msk.f32.gmra.mxu0 %vm183_vm0, %v6453_v62 }
 0xbfd   :  { %v876_v23 = vpop.f32.mrf.mxu0 }
 0xbfe   :  { %v5265_v45 = vpop.f32.mrf.mxu3 }
 0xbff   :  { %v5266_v63 = vadd.f32 %v5265_v45, %v10980_v41  ;;  %v6454_v45 = vld [vmem:[%s11362_s0 + $0x378] sm:$0xff] }
 0xc01   :  { %vm5357_vm12 = vcmp.ge.f32.partialorder %v5266_v63, 0.0  ;;  %v5389_v35 = vmul.f32 0.01, %v5266_v63 }
 0xc03   :  { %6618 = vmatmul.msk.f32.gmra.mxu3 %vm183_vm0, %v5131_v19  ;;  %v5421_v30 = vsel %vm5357_vm12, %v5266_v63, %v5389_v35  ;;  %v5139_v35 = vld [vmem:[%s11363_s1 + $0xd8] sm:$0xff] }
 0xc04   :  { %5635 = vmatmul.f32.gmra.mxu2 %v5421_v30  ;;  %6582 = vmatmul.msk.f32.gmra.mxu0 %vm183_vm0, %v6454_v45 }
 0xc06   :  { %v5268_v48 = vpop.f32.mrf.mxu3 }
 0xc07   :  { %v5269_v18 = vadd.f32 %v5268_v48, %v10980_v41 }
 0xc09   :  { %vm5358_vm13 = vcmp.ge.f32.partialorder %v5269_v18, 0.0  ;;  %v5390_v16 = vmul.f32 0.01, %v5269_v18 }
 0xc0b   :  { %6619 = vmatmul.msk.f32.gmra.mxu3 %vm183_vm0, %v5132_v60  ;;  %v5422_v11 = vsel %vm5358_vm13, %v5269_v18, %v5390_v16  ;;  %v6455_v18 = vld [vmem:[%s11362_s0 + $0x380] sm:$0xff] }
 0xc0c   :  { %5638 = vmatmul.f32.gmra.mxu2 %v5422_v11  ;;  %6583 = vmatmul.msk.f32.gmra.mxu0 %vm183_vm0, %v6455_v18  ;;  %v5140_v11 = vld [vmem:[%s11363_s1 + $0xe0] sm:$0xff] }
 0xc0e   :  { %v5271_v12 = vpop.f32.mrf.mxu3 }
 0xc0f   :  { %v5272_v32 = vadd.f32 %v5271_v12, %v10980_v41 }
 0xc11   :  { %vm5359_vm14 = vcmp.ge.f32.partialorder %v5272_v32, 0.0  ;;  %v5391_v14 = vmul.f32 0.01, %v5272_v32 }
 0xc13   :  { %6620 = vmatmul.msk.f32.gmra.mxu3 %vm183_vm0, %v5133_v13  ;;  %v5423_v4 = vsel %vm5359_vm14, %v5272_v32, %v5391_v14  ;;  %v6456_v32 = vld [vmem:[%s11362_s0 + $0x388] sm:$0xff] }
 0xc14   :  { %5641 = vmatmul.f32.gmra.mxu2 %v5423_v4  ;;  %6584 = vmatmul.msk.f32.gmra.mxu0 %vm183_vm0, %v6456_v32  ;;  %v5141_v4 = vld [vmem:[%s11363_s1 + $0xe8] sm:$0xff] }
 0xc16   :  { %v5274_v43 = vpop.f32.mrf.mxu3 }
 0xc17   :  { %v5275_v46 = vadd.f32 %v5274_v43, %v10980_v41  ;;  %v879_v43 = vpop.f32.mrf.mxu0 }
 0xc19   :  { %vm5360_vm15 = vcmp.ge.f32.partialorder %v5275_v46, 0.0  ;;  %v5392_v1 = vmul.f32 0.01, %v5275_v46 }
 0xc1b   :  { %6621 = vmatmul.msk.f32.gmra.mxu3 %vm183_vm0, %v5134_v21  ;;  %v5424_v28 = vsel %vm5360_vm15, %v5275_v46, %v5392_v1 }
 0xc1c   :  { %5644 = vmatmul.f32.gmra.mxu2 %v5424_v28  ;;  %v5142_v28 = vld [vmem:[%s11363_s1 + $0xf0] sm:$0xff] }
 0xc1e   :  { %v5277_v5 = vpop.f32.mrf.mxu3 }
 0xc1f   :  { %v5278_v20 = vadd.f32 %v5277_v5, %v10980_v41 }
 0xc21   :  { %vm5361_vm1 = vcmp.ge.f32.partialorder %v5278_v20, 0.0  ;;  %v5393_v26 = vmul.f32 0.01, %v5278_v20 }
 0xc23   :  { %6622 = vmatmul.msk.f32.gmra.mxu3 %vm183_vm0, %v5135_v38  ;;  %v5425_v10 = vsel %vm5361_vm1, %v5278_v20, %v5393_v26  ;;  %v882_v20 = vpop.f32.mrf.mxu0 }
 0xc24   :  { %5647 = vmatmul.f32.gmra.mxu2 %v5425_v10  ;;  %v5143_v10 = vld [vmem:[%s11363_s1 + $0xf8] sm:$0xff]  ;;  %s7065_s1 = smov [#allocation7]  }
 0xc25   :  { %s6359_s10 = sshll.u32 %s7065_s1, 4  ;;  %s6360_s10 = int_to_ptr.vmem [resolvable:$true] %s6359_s10 }
 0xc26   :  { %v5280_v55 = vpop.f32.mrf.mxu3 }
 0xc27   :  { %v5281_v58 = vadd.f32 %v5280_v55, %v10980_v41 }
 0xc29   :  { %vm5362_vm2 = vcmp.ge.f32.partialorder %v5281_v58, 0.0  ;;  %v5394_v24 = vmul.f32 0.01, %v5281_v58 }
 0xc2b   :  { %6623 = vmatmul.msk.f32.gmra.mxu3 %vm183_vm0, %v5136_v44  ;;  %v5426_v36 = vsel %vm5362_vm2, %v5281_v58, %v5394_v24  ;;  %v12550_v58 = vld [vmem:[#allocation11_spill] sm:$0xff]  ;;  %v885_v24 = vpop.f32.mrf.mxu0 }
 0xc2c   :  { %5650 = vmatmul.f32.gmra.mxu2 %v5426_v36  ;;  %v874_v56 = vadd.f32 %v873_v3, %v12550_v58  ;;  %v883_v18 = vadd.f32 %v882_v20, %v12550_v58  ;;  %v886_v32 = vadd.f32 %v885_v24, %v12550_v58 }
 0xc2e   :  { %v5283_v29 = vpop.f32.mrf.mxu3  ;;  %v1193_v36 = vmul.f32 0.01, %v874_v56  ;;  %vm1065_vm10 = vcmp.ge.f32.partialorder %v874_v56, 0.0  ;;  %vm1068_vm15 = vcmp.ge.f32.partialorder %v883_v18, 0.0  ;;  %vm1069_vm2 = vcmp.ge.f32.partialorder %v886_v32, 0.0 }
 0xc2f   :  { %v5284_v7 = vadd.f32 %v5283_v29, %v10980_v41  ;;  %v6175_v29 = vld [vmem:[#allocation2 + $0x810] sm:$0xff] }
 0xc30   :  { %6179 = vmatpush.msra.mxu1 %v6175_v29 }
 0xc31   :  { %vm5363_vm3 = vcmp.ge.f32.partialorder %v5284_v7, 0.0  ;;  %v5395_v8 = vmul.f32 0.01, %v5284_v7 }
 0xc33   :  { %6624 = vmatmul.msk.f32.gmra.mxu3 %vm183_vm0, %v5137_v52  ;;  %v5427_v33 = vsel %vm5363_vm3, %v5284_v7, %v5395_v8  ;;  %v877_v52 = vadd.f32 %v876_v23, %v12550_v58  ;;  %v1321_v8 = vsel %vm1065_vm10, %v874_v56, %v1193_v36 }
 0xc34   :  { %5653 = vmatmul.f32.gmra.mxu2 %v5427_v33 }
 0xc36   :  { %v5286_v39 = vpop.f32.mrf.mxu3 }
 0xc37   :  { %v5287_v54 = vadd.f32 %v5286_v39, %v10980_v41  ;;  %v1194_v39 = vmul.f32 0.01, %v877_v52 }
 0xc39   :  { %vm5364_vm4 = vcmp.ge.f32.partialorder %v5287_v54, 0.0  ;;  %v5396_v22 = vmul.f32 0.01, %v5287_v54 }
 0xc3b   :  { %6625 = vmatmul.msk.f32.gmra.mxu3 %vm183_vm0, %v5138_v42  ;;  %v5428_v61 = vsel %vm5364_vm4, %v5287_v54, %v5396_v22  ;;  %v888_v42 = vpop.f32.mrf.mxu0 }
 0xc3c   :  { %5656 = vmatmul.f32.gmra.mxu2 %v5428_v61  ;;  %v880_v61 = vadd.f32 %v879_v43, %v12550_v58  ;;  %v1197_v43 = vmul.f32 0.01, %v886_v32 }
 0xc3e   :  { %v5289_v63 = vpop.f32.mrf.mxu3  ;;  %vm1067_vm13 = vcmp.ge.f32.partialorder %v880_v61, 0.0  ;;  %v1325_v47 = vsel %vm1069_vm2, %v886_v32, %v1197_v43 }
 0xc3f   :  { %v5290_v19 = vadd.f32 %v5289_v63, %v10980_v41 }
 0xc41   :  { %vm5365_vm5 = vcmp.ge.f32.partialorder %v5290_v19, 0.0  ;;  %v5397_v30 = vmul.f32 0.01, %v5290_v19 }
 0xc43   :  { %6626 = vmatmul.msk.f32.gmra.mxu3 %vm183_vm0, %v5139_v35  ;;  %v5429_v48 = vsel %vm5365_vm5, %v5290_v19, %v5397_v30  ;;  %v1195_v19 = vmul.f32 0.01, %v880_v61  ;;  %v6174_v30 = vld [vmem:[#allocation2 + $0x800] sm:$0xff] }
 0xc44   :  { %5659 = vmatmul.f32.gmra.mxu2 %v5429_v48  ;;  %v891_v48 = vpop.f32.mrf.mxu0  ;;  %6180 = vmatpush.msra.mxu1 %v6174_v30 }
 0xc45   :  { %v892_v15 = vadd.f32 %v891_v48, %v12550_v58 }
 0xc46   :  { %v5292_v60 = vpop.f32.mrf.mxu3 }
 0xc47   :  { %v5293_v16 = vadd.f32 %v5292_v60, %v10980_v41  ;;  %v1323_v60 = vsel %vm1067_vm13, %v880_v61, %v1195_v19  ;;  %v1199_v24 = vmul.f32 0.01, %v892_v15 }
 0xc49   :  { %vm5366_vm6 = vcmp.ge.f32.partialorder %v5293_v16, 0.0  ;;  %v5398_v17 = vmul.f32 0.01, %v5293_v16 }
 0xc4b   :  { %6627 = vmatmul.msk.f32.gmra.mxu3 %vm183_vm0, %v5140_v11  ;;  %v5430_v12 = vsel %vm5366_vm6, %v5293_v16, %v5398_v17  ;;  %v1196_v17 = vmul.f32 0.01, %v883_v18  ;;  %vm1071_vm6 = vcmp.ge.f32.partialorder %v892_v15, 0.0 }
 0xc4c   :  { %5662 = vmatmul.f32.gmra.mxu2 %v5430_v12 }
 0xc4e   :  { %v5295_v13 = vpop.f32.mrf.mxu3 }
 0xc4f   :  { %v5296_v14 = vadd.f32 %v5295_v13, %v10980_v41  ;;  %v1324_v13 = vsel %vm1068_vm15, %v883_v18, %v1196_v17 }
 0xc51   :  { %vm5367_vm7 = vcmp.ge.f32.partialorder %v5296_v14, 0.0  ;;  %v5399_v31 = vmul.f32 0.01, %v5296_v14 }
 0xc53   :  { %6628 = vmatmul.msk.f32.gmra.mxu3 %vm183_vm0, %v5141_v4  ;;  %v5431_v46 = vsel %vm5367_vm7, %v5296_v14, %v5399_v31  ;;  %v894_v4 = vpop.f32.mrf.mxu0 }
 0xc54   :  { %5665 = vmatmul.f32.gmra.mxu2 %v5431_v46 }
 0xc56   :  { %v5298_v21 = vpop.f32.mrf.mxu3 }
 0xc57   :  { %v5299_v1 = vadd.f32 %v5298_v21, %v10980_v41  ;;  %v6173_v21 = vld [vmem:[#allocation2 + $0x7f0] sm:$0xff] }
 0xc58   :  { %6181 = vmatpush.msra.mxu1 %v6173_v21 }
 0xc59   :  { %vm5368_vm8 = vcmp.ge.f32.partialorder %v5299_v1, 0.0  ;;  %v5400_v9 = vmul.f32 0.01, %v5299_v1 }
 0xc5b   :  { %6629 = vmatmul.msk.f32.gmra.mxu3 %vm183_vm0, %v5142_v28  ;;  %v5432_v5 = vsel %vm5368_vm8, %v5299_v1, %v5400_v9  ;;  %v889_v28 = vadd.f32 %v888_v42, %v12550_v58 }
 0xc5c   :  { %5668 = vmatmul.f32.gmra.mxu2 %v5432_v5  ;;  %v897_v5 = vpop.f32.mrf.mxu0 }
 0xc5d   :  { %vm1070_vm4 = vcmp.ge.f32.partialorder %v889_v28, 0.0  ;;  %v898_v61 = vadd.f32 %v897_v5, %v12550_v58 }
 0xc5e   :  { %v5301_v38 = vpop.f32.mrf.mxu3 }
 0xc5f   :  { %v5302_v26 = vadd.f32 %v5301_v38, %v10980_v41  ;;  %v1198_v38 = vmul.f32 0.01, %v889_v28  ;;  %vm1073_vm10 = vcmp.ge.f32.partialorder %v898_v61, 0.0 }
 0xc61   :  { %vm5369_vm9 = vcmp.ge.f32.partialorder %v5302_v26, 0.0  ;;  %v5401_v55 = vmul.f32 0.01, %v5302_v26 }
 0xc63   :  { %6630 = vmatmul.msk.f32.gmra.mxu3 %vm183_vm0, %v5143_v10  ;;  %v5433_v44 = vsel %vm5369_vm9, %v5302_v26, %v5401_v55  ;;  %vm1066_vm0 = vcmp.ge.f32.partialorder %v877_v52, 0.0  ;;  %v1326_v55 = vsel %vm1070_vm4, %v889_v28, %v1198_v38  ;;  %v6170_v28 = vld [vmem:[#allocation2 + $0x7c0] sm:$0xff] }
 0xc64   :  { %5671 = vmatmul.f32.gmra.mxu2 %v5433_v44  ;;  %v1322_v49 = vsel %vm1066_vm0, %v877_v52, %v1194_v39  ;;  %v1327_v52 = vsel %vm1071_vm6, %v892_v15, %v1199_v24 }
 0xc66   :  { %v5304_v6 = vpop.f32.mrf.mxu3 }
 0xc67   :  { %v5305_v51 = vadd.f32 %v5304_v6, %v10980_v41  ;;  %v900_v6 = vpop.f32.mrf.mxu0 }
 0xc68   :  { %v901_v18 = vadd.f32 %v900_v6, %v12550_v58 }
 0xc69   :  { %vm5370_vm11 = vcmp.ge.f32.partialorder %v5305_v51, 0.0  ;;  %v5402_v7 = vmul.f32 0.01, %v5305_v51 }
 0xc6a   :  { %vm1074_vm0 = vcmp.ge.f32.partialorder %v901_v18, 0.0 }
 0xc6b   :  { %5742 = vmatmul.f32.vlgmr.msra.gmra.mxu3 %v1321_v8  ;;  %v5434_v33 = vsel %vm5370_vm11, %v5305_v51, %v5402_v7  ;;  %v6172_v51 = vld [vmem:[#allocation2 + $0x7e0] sm:$0xff]  ;;  %v895_v7 = vadd.f32 %v894_v4, %v12550_v58 }
 0xc6c   :  { %5674 = vmatmul.f32.gmra.mxu2 %v5434_v33  ;;  %6182 = vmatpush.msra.mxu1 %v6172_v51  ;;  %v5935_v33 = vld [vmem:[#allocation2 + $0x630] sm:$0xff] }
 0xc6d   :  { %5967 = vmatpush.msrb.mxu0 %v5935_v33  ;;  %v1200_v39 = vmul.f32 0.01, %v895_v7  ;;  %vm1072_vm8 = vcmp.ge.f32.partialorder %v895_v7, 0.0 }
 0xc6e   :  { %v5307_v62 = vpop.f32.mrf.mxu3 }
 0xc6f   :  { %v5308_v54 = vadd.f32 %v5307_v62, %v10980_v41 }
 0xc71   :  { %vm5371_vm12 = vcmp.ge.f32.partialorder %v5308_v54, 0.0  ;;  %v5403_v22 = vmul.f32 0.01, %v5308_v54 }
 0xc73   :  { %5745 = vmatmul.f32.gmra.mxu3 %v1322_v49  ;;  %v5435_v45 = vsel %vm5371_vm12, %v5308_v54, %v5403_v22  ;;  %v903_v22 = vpop.f32.mrf.mxu0  ;;  %v1328_v49 = vsel %vm1072_vm8, %v895_v7, %v1200_v39 }
 0xc74   :  { %5677 = vmatmul.f32.gmra.mxu2 %v5435_v45 }
 0xc76   :  { %v5310_v63 = vpop.f32.mrf.mxu3 }
 0xc77   :  { %v5311_v35 = vadd.f32 %v5310_v63, %v10980_v41  ;;  %v11126_v63 = vpop.f32.mrf.mxu2 }
 0xc79   :  { %vm5372_vm14 = vcmp.ge.f32.partialorder %v5311_v35, 0.0  ;;  %v5404_v3 = vmul.f32 0.01, %v5311_v35 }
 0xc7b   :  { %5748 = vmatmul.f32.gmra.mxu3 %v1323_v60  ;;  %v5436_v16 = vsel %vm5372_vm14, %v5311_v35, %v5404_v3  ;;  %v1201_v35 = vmul.f32 0.01, %v898_v61  ;;  %v6171_v3 = vld [vmem:[#allocation2 + $0x7d0] sm:$0xff] }
 0xc7c   :  { %5680 = vmatmul.f32.gmra.mxu2 %v5436_v16  ;;  %6183 = vmatpush.msra.mxu1 %v6171_v3 }
 0xc7d   :  { %v1329_v60 = vsel %vm1073_vm10, %v898_v61, %v1201_v35 }
 0xc7e   :  { %v5313_v11 = vpop.f32.mrf.mxu3  ;;  %6184 = vmatpush.msra.mxu1 %v6170_v28 }
 0xc7f   :  { %v5314_v23 = vadd.f32 %v5313_v11, %v10980_v41  ;;  %v906_v11 = vpop.f32.mrf.mxu0  ;;  %v11131_v32 = vpop.f32.mrf.mxu2 }
 0xc80   :  { %v907_v5 = vadd.f32 %v906_v11, %v12550_v58  ;;  %v6168_v11 = vld [vmem:[#allocation2 + $0x7a0] sm:$0xff] }
 0xc81   :  { %vm5373_vm1 = vcmp.ge.f32.partialorder %v5314_v23, 0.0  ;;  %v5405_v12 = vmul.f32 0.01, %v5314_v23 }
 0xc82   :  { %vm1076_vm15 = vcmp.ge.f32.partialorder %v907_v5, 0.0 }
 0xc83   :  { %5751 = vmatmul.f32.gmra.mxu3 %v1324_v13  ;;  %v5437_v14 = vsel %vm5373_vm1, %v5314_v23, %v5405_v12  ;;  %v1202_v23 = vmul.f32 0.01, %v901_v18 }
 0xc84   :  { %5683 = vmatmul.f32.gmra.mxu2 %v5437_v14  ;;  %v904_v14 = vadd.f32 %v903_v22, %v12550_v58 }
 0xc85   :  { %v1330_v4 = vsel %vm1074_vm0, %v901_v18, %v1202_v23 }
 0xc86   :  { %v5316_v31 = vpop.f32.mrf.mxu3  ;;  %v1203_v21 = vmul.f32 0.01, %v904_v14  ;;  %vm1075_vm13 = vcmp.ge.f32.partialorder %v904_v14, 0.0 }
 0xc87   :  { %v5317_v46 = vadd.f32 %v5316_v31, %v10980_v41  ;;  %v909_v43 = vpop.f32.mrf.mxu0 }
 0xc89   :  { %vm5374_vm3 = vcmp.ge.f32.partialorder %v5317_v46, 0.0  ;;  %v5406_v1 = vmul.f32 0.01, %v5317_v46 }
 0xc8b   :  { %5754 = vmatmul.f32.gmra.mxu3 %v1325_v47  ;;  %v5438_v9 = vsel %vm5374_vm3, %v5317_v46, %v5406_v1 }
 0xc8c   :  { %5686 = vmatmul.f32.gmra.mxu2 %v5438_v9  ;;  %v11135_v9 = vpop.f32.mrf.mxu2 }
 0xc8e   :  { %v5319_v20 = vpop.f32.mrf.mxu3 }
 0xc8f   :  { %v5320_v26 = vadd.f32 %v5319_v20, %v10980_v41  ;;  %v1331_v20 = vsel %vm1075_vm13, %v904_v14, %v1203_v21 }
 0xc91   :  { %vm5375_vm5 = vcmp.ge.f32.partialorder %v5320_v26, 0.0  ;;  %v5407_v10 = vmul.f32 0.01, %v5320_v26 }
 0xc93   :  { %5757 = vmatmul.f32.gmra.mxu3 %v1326_v55  ;;  %v5439_v56 = vsel %vm5375_vm5, %v5320_v26, %v5407_v10  ;;  %v1204_v10 = vmul.f32 0.01, %v907_v5  ;;  %v912_v55 = vpop.f32.mrf.mxu0 }
 0xc94   :  { %5689 = vmatmul.f32.gmra.mxu2 %v5439_v56  ;;  %v11140_v6 = vpop.f32.mrf.mxu2 }
 0xc95   :  { %v1332_v24 = vsel %vm1076_vm15, %v907_v5, %v1204_v10 }
 0xc96   :  { %v5322_v44 = vpop.f32.mrf.mxu3 }
 0xc97   :  { %v5323_v36 = vadd.f32 %v5322_v44, %v10980_v41  ;;  %v910_v44 = vadd.f32 %v909_v43, %v12550_v58 }
 0xc99   :  { %vm5376_vm7 = vcmp.ge.f32.partialorder %v5323_v36, 0.0  ;;  %v5408_v29 = vmul.f32 0.01, %v5323_v36  ;;  %vm1077_vm2 = vcmp.ge.f32.partialorder %v910_v44, 0.0 }
 0xc9b   :  { %5760 = vmatmul.f32.gmra.mxu3 %v1327_v52  ;;  %v5440_v8 = vsel %vm5376_vm7, %v5323_v36, %v5408_v29  ;;  %v1205_v29 = vmul.f32 0.01, %v910_v44  ;;  %v6169_v52 = vld [vmem:[#allocation2 + $0x7b0] sm:$0xff]  ;;  %v915_v33 = vpop.f32.mrf.mxu0 }
 0xc9c   :  { %5692 = vmatmul.f32.gmra.mxu2 %v5440_v8  ;;  %6185 = vmatpush.msra.mxu1 %v6169_v52 }
 0xc9d   :  { %v1333_v39 = vsel %vm1077_vm2, %v910_v44, %v1205_v29 }
 0xc9e   :  { %v5325_v62 = vpop.f32.mrf.mxu3  ;;  %6186 = vmatpush.msra.mxu1 %v6168_v11 }
 0xc9f   :  { %v5326_v54 = vadd.f32 %v5325_v62, %v10980_v41  ;;  %v913_v62 = vadd.f32 %v912_v55, %v12550_v58  ;;  %v6167_v55 = vld [vmem:[#allocation2 + $0x790] sm:$0xff] }
 0xca0   :  { %6187 = vmatpush.msra.mxu1 %v6167_v55 }
 0xca1   :  { %vm5377_vm9 = vcmp.ge.f32.partialorder %v5326_v54, 0.0  ;;  %v5409_v42 = vmul.f32 0.01, %v5326_v54  ;;  %v1206_v61 = vmul.f32 0.01, %v913_v62  ;;  %vm1078_vm4 = vcmp.ge.f32.partialorder %v913_v62, 0.0 }
 0xca3   :  { %5763 = vmatmul.f32.gmra.mxu3 %v1328_v49  ;;  %v5441_v45 = vsel %vm5377_vm9, %v5326_v54, %v5409_v42  ;;  %v11144_v42 = vpop.f32.mrf.mxu2  ;;  %v1334_v35 = vsel %vm1078_vm4, %v913_v62, %v1206_v61  ;;  %v918_v3 = vpop.f32.mrf.mxu0  ;;  %v12551_v62 = vld [vmem:[#allocation137_spill] sm:$0xff] }
 0xca4   :  { %5695 = vmatmul.f32.gmra.mxu2 %v5441_v45  ;;  %v919_v23 = vadd.f32 %v918_v3, %v12550_v58 }
 0xca6   :  { %v5328_v19 = vpop.f32.mrf.mxu3  ;;  %vm1080_vm8 = vcmp.ge.f32.partialorder %v919_v23, 0.0 }
 0xca7   :  { %v5329_v30 = vadd.f32 %v5328_v19, %v10980_v41  ;;  %v916_v19 = vadd.f32 %v915_v33, %v12550_v58 }
 0xca9   :  { %vm5378_vm11 = vcmp.ge.f32.partialorder %v5329_v30, 0.0  ;;  %v5410_v48 = vmul.f32 0.01, %v5329_v30  ;;  %v1207_v18 = vmul.f32 0.01, %v916_v19  ;;  %vm1079_vm6 = vcmp.ge.f32.partialorder %v916_v19, 0.0 }
 0xcab   :  { %5766 = vmatmul.f32.gmra.mxu3 %v1329_v60  ;;  %v5442_v16 = vsel %vm5378_vm11, %v5329_v30, %v5410_v48  ;;  %v921_v14 = vpop.f32.mrf.mxu0 }
 0xcac   :  { %5698 = vmatmul.f32.gmra.mxu2 %v5442_v16  ;;  %v11149_v16 = vpop.f32.mrf.mxu2 }
 0xcae   :  { %v5331_v17 = vpop.f32.mrf.mxu3 }
 0xcaf   :  { %v5332_v12 = vadd.f32 %v5331_v17, %v10980_v41 }
 0xcb1   :  { %vm5379_vm12 = vcmp.ge.f32.partialorder %v5332_v12, 0.0  ;;  %v5411_v13 = vmul.f32 0.01, %v5332_v12 }
 0xcb3   :  { %5769 = vmatmul.f32.gmra.mxu3 %v1330_v4  ;;  %v5443_v31 = vsel %vm5379_vm12, %v5332_v12, %v5411_v13  ;;  %v1335_v12 = vsel %vm1079_vm6, %v916_v19, %v1207_v18  ;;  %v6166_v19 = vld [vmem:[#allocation2 + $0x780] sm:$0xff] }
 0xcb4   :  { %5701 = vmatmul.f32.gmra.mxu2 %v5443_v31  ;;  %v1208_v31 = vmul.f32 0.01, %v919_v23  ;;  %v11153_v21 = vpop.f32.mrf.mxu2  ;;  %6188 = vmatpush.msra.mxu1 %v6166_v19 }
 0xcb6   :  { %v5334_v46 = vpop.f32.mrf.mxu3  ;;  %v1336_v28 = vsel %vm1080_vm8, %v919_v23, %v1208_v31 }
 0xcb7   :  { %v5335_v1 = vadd.f32 %v5334_v46, %v10980_v41 }
 0xcb9   :  { %vm5380_vm14 = vcmp.ge.f32.partialorder %v5335_v1, 0.0  ;;  %v5412_v47 = vmul.f32 0.01, %v5335_v1 }
 0xcbb   :  { %5772 = vmatmul.f32.gmra.mxu3 %v1331_v20  ;;  %v5444_v38 = vsel %vm5380_vm14, %v5335_v1, %v5412_v47  ;;  %v922_v1 = vadd.f32 %v921_v14, %v12550_v58  ;;  %v12553_v14 = vld [vmem:[#allocation65_spill] sm:$0xff] }
 0xcbc   :  { %5704 = vmatmul.f32.gmra.mxu2 %v5444_v38  ;;  %v11156_v38 = vld [vmem:[#allocation5] sm:$0xff]  ;;  %v11165_v29 = vpop.f32.mrf.mxu2 }
 0xcbd   :  { %v1209_v20 = vmul.f32 0.01, %v922_v1  ;;  %vm1081_vm10 = vcmp.ge.f32.partialorder %v922_v1, 0.0 }
 0xcbe   :  { %v5337_v26 = vpop.f32.mrf.mxu3 }
 0xcbf   :  { %v5338_v15 = vadd.f32 %v5337_v26, %v10980_v41  ;;  %v11159_v26 = vperm.slane %v11156_v38, 5 }
 0xcc1   :  { %vm5381_vm1 = vcmp.ge.f32.partialorder %v5338_v15, 0.0  ;;  %v5413_v56 = vmul.f32 0.01, %v5338_v15 }
 0xcc3   :  { %5775 = vmatmul.f32.gmra.mxu3 %v1332_v24  ;;  %v5445_v36 = vsel %vm5381_vm1, %v5338_v15, %v5413_v56  ;;  %v924_v15 = vpop.f32.mrf.mxu0  ;;  %v1337_v24 = vsel %vm1081_vm10, %v922_v1, %v1209_v20  ;;  %v6165_v20 = vld [vmem:[#allocation2 + $0x770] sm:$0xff] }
 0xcc4   :  { %5707 = vmatmul.f32.gmra.mxu2 %v5445_v36  ;;  %v925_v44 = vadd.f32 %v924_v15, %v12550_v58  ;;  %v5518_v36 = vadd.f32 %v10888_v40, %v11159_v26  ;;  %v5521_v40 = vadd.f32 %v10899_v57, %v11159_v26  ;;  %v5524_v57 = vadd.f32 %v10907_v53, %v11159_v26  ;;  %v12554_v15 = vld [vmem:[#allocation221_spill] sm:$0xff] }
 0xcc5   :  { %v5527_v53 = vadd.f32 %v10918_v25, %v11159_v26  ;;  %6189 = vmatpush.msra.mxu1 %v6165_v20  ;;  %v937_v25 = vadd.f32 %v12554_v15, %v12550_v58 }
 0xcc6   :  { %v5340_v51 = vpop.f32.mrf.mxu3  ;;  %v1210_v52 = vmul.f32 0.01, %v925_v44  ;;  %vm1082_vm0 = vcmp.ge.f32.partialorder %v925_v44, 0.0  ;;  %v5634_v61 = vadd.f32 %v11131_v32, %v5521_v40  ;;  %v11179_v32 = vpop.f32.mrf.mxu2  ;;  %v5637_v11 = vadd.f32 %v11135_v9, %v5524_v57 }
 0xcc7   :  { %v5341_v7 = vadd.f32 %v5340_v51, %v10980_v41  ;;  %v5640_v9 = vadd.f32 %v11140_v6, %v5527_v53  ;;  %vm1086_vm4 = vcmp.ge.f32.partialorder %v937_v25, 0.0 }
 0xcc9   :  { %vm5382_vm3 = vcmp.ge.f32.partialorder %v5341_v7, 0.0  ;;  %v5414_v8 = vmul.f32 0.01, %v5341_v7 }
 0xccb   :  { %5778 = vmatmul.f32.gmra.mxu3 %v1333_v39  ;;  %v5446_v54 = vsel %vm5382_vm3, %v5341_v7, %v5414_v8  ;;  %v5631_v7 = vadd.f32 %v11126_v63, %v5518_v36  ;;  %v928_v39 = vadd.f32 %v12551_v62, %v12550_v58 }
 0xccc   :  { %5710 = vmatmul.f32.gmra.mxu2 %v5446_v54  ;;  %v1338_v54 = vsel %vm1082_vm0, %v925_v44, %v1210_v52 }
 0xccd   :  { %v1211_v63 = vmul.f32 0.01, %v928_v39  ;;  %vm1083_vm13 = vcmp.ge.f32.partialorder %v928_v39, 0.0 }
 0xcce   :  { %v5343_v22 = vpop.f32.mrf.mxu3  ;;  %v11189_v1 = vpop.f32.mrf.mxu2 }
 0xccf   :  { %v5344_v49 = vadd.f32 %v5343_v22, %v10980_v41  ;;  %v1339_v18 = vsel %vm1083_vm13, %v928_v39, %v1211_v63  ;;  %v6164_v63 = vld [vmem:[#allocation2 + $0x760] sm:$0xff] }
 0xcd0   :  { %6190 = vmatpush.msra.mxu1 %v6164_v63 }
 0xcd1   :  { %vm5383_vm5 = vcmp.ge.f32.partialorder %v5344_v49, 0.0  ;;  %v5415_v45 = vmul.f32 0.01, %v5344_v49 }
 0xcd3   :  { %5781 = vmatmul.f32.gmra.mxu3 %v1334_v35  ;;  %v5447_v30 = vsel %vm5383_vm5, %v5344_v49, %v5415_v45 }
 0xcd4   :  { %5713 = vmatmul.f32.gmra.mxu2 %v5447_v30  ;;  %v12552_v30 = vld [vmem:[#allocation172_spill] sm:$0xff] }
 0xcd5   :  { %v931_v3 = vadd.f32 %v12552_v30, %v12550_v58  ;;  %v5536_v30 = vadd.f32 %v10961_v2, %v11159_v26  ;;  %v5539_v2 = vadd.f32 %v10976_v50, %v11159_v26 }
 0xcd6   :  { %v5346_v48 = vpop.f32.mrf.mxu3 }
 0xcd7   :  { %v5347_v60 = vadd.f32 %v5346_v48, %v10980_v41  ;;  %v11175_v48 = vpop.f32.mrf.mxu1  ;;  %v1212_v23 = vmul.f32 0.01, %v931_v3  ;;  %vm1084_vm15 = vcmp.ge.f32.partialorder %v931_v3, 0.0 }
 0xcd8   :  { %v5542_v50 = vadd.f32 %v11175_v48, %v11159_v26 }
 0xcd9   :  { %vm5384_vm7 = vcmp.ge.f32.partialorder %v5347_v60, 0.0  ;;  %v5416_v17 = vmul.f32 0.01, %v5347_v60  ;;  %v1340_v31 = vsel %vm1084_vm15, %v931_v3, %v1212_v23  ;;  %v5649_v3 = vadd.f32 %v11153_v21, %v5536_v30 }
 0xcda   :  { %v5652_v21 = vadd.f32 %v11165_v29, %v5539_v2  ;;  %v5655_v29 = vadd.f32 %v11179_v32, %v5542_v50 }
 0xcdb   :  { %5784 = vmatmul.f32.gmra.mxu3 %v1335_v12  ;;  %v5448_v13 = vsel %vm5384_vm7, %v5347_v60, %v5416_v17 }
 0xcdc   :  { %5716 = vmatmul.f32.gmra.mxu2 %v5448_v13 }
 0xcde   :  { %v5349_v4 = vpop.f32.mrf.mxu3 }
 0xcdf   :  { %v5350_v43 = vadd.f32 %v5349_v4, %v10980_v41  ;;  %v934_v4 = vadd.f32 %v12553_v14, %v12550_v58 }
 0xce1   :  { %vm5385_vm9 = vcmp.ge.f32.partialorder %v5350_v43, 0.0  ;;  %v5417_v46 = vmul.f32 0.01, %v5350_v43  ;;  %vm1085_vm2 = vcmp.ge.f32.partialorder %v934_v4, 0.0 }
 0xce3   :  { %5787 = vmatmul.f32.gmra.mxu3 %v1336_v28  ;;  %v5449_v47 = vsel %vm5385_vm9, %v5350_v43, %v5417_v46  ;;  %v11186_v46 = vpop.f32.mrf.mxu1 }
 0xce4   :  { %5719 = vmatmul.f32.gmra.mxu2 %v5449_v47  ;;  %v1213_v47 = vmul.f32 0.01, %v934_v4  ;;  %v5545_v48 = vadd.f32 %v11186_v46, %v11159_v26 }
 0xce6   :  { %v5352_v5 = vpop.f32.mrf.mxu3  ;;  %v1341_v55 = vsel %vm1085_vm2, %v934_v4, %v1213_v47  ;;  %v12558_v47 = vld [vmem:[#allocation42_spill] sm:$0xff]  ;;  %v5658_v32 = vadd.f32 %v11189_v1, %v5545_v48 }
 0xce7   :  { %v5353_v10 = vadd.f32 %v5352_v5, %v10980_v41 }
 0xce9   :  { %vm5386_vm11 = vcmp.ge.f32.partialorder %v5353_v10, 0.0  ;;  %v5418_v56 = vmul.f32 0.01, %v5353_v10 }
 0xceb   :  { %5790 = vmatmul.f32.gmra.mxu3 %v1337_v24  ;;  %v5450_v51 = vsel %vm5386_vm11, %v5353_v10, %v5418_v56  ;;  %v5530_v56 = vadd.f32 %v10930_v59, %v11159_v26  ;;  %v11196_v24 = vpop.f32.mrf.mxu1  ;;  %v5533_v59 = vadd.f32 %v10948_v0, %v11159_v26 }
 0xcec   :  { %5722 = vmatmul.f32.gmra.mxu2 %v5450_v51  ;;  %v1214_v51 = vmul.f32 0.01, %v937_v25 }
 0xced   :  { %v5643_v6 = vadd.f32 %v11144_v42, %v5530_v56  ;;  %v5646_v42 = vadd.f32 %v11149_v16, %v5533_v59 }
 0xcee   :  { %v5743_v41 = vpop.f32.mrf.mxu3  ;;  %v1342_v62 = vsel %vm1086_vm4, %v937_v25, %v1214_v51 }
 0xcef   :  { %v5744_v8 = vadd.f32 %v5743_v41, %v5631_v7  ;;  %v11198_v41 = vpop.f32.mrf.mxu2 }
 0xcf1   :  { %v5871_v33 = vmul.f32 0.01, %v5744_v8  ;;  %vm5839_vm12 = vcmp.ge.f32.partialorder %v5744_v8, 0.0 }
 0xcf3   :  { %5793 = vmatmul.f32.gmra.mxu3 %v1338_v54  ;;  %v5903_v22 = vsel %vm5839_vm12, %v5744_v8, %v5871_v33  ;;  %v12555_v8 = vld [vmem:[#allocation234_spill] sm:$0xff] }
 0xcf4   :  { %5968 = vmatmul.f32.vlgmr.msrb.gmra.mxu0 %v5903_v22  ;;  %v940_v33 = vadd.f32 %v12555_v8, %v12550_v58 }
 0xcf6   :  { %v5746_v49 = vpop.f32.mrf.mxu3  ;;  %v1215_v40 = vmul.f32 0.01, %v940_v33  ;;  %vm1087_vm6 = vcmp.ge.f32.partialorder %v940_v33, 0.0 }
 0xcf7   :  { %v5747_v45 = vadd.f32 %v5746_v49, %v5634_v61  ;;  %v11205_v61 = vpop.f32.mrf.mxu1 }
 0xcf8   :  { %v1343_v0 = vsel %vm1087_vm6, %v940_v33, %v1215_v40 }
 0xcf9   :  { %vm5840_vm14 = vcmp.ge.f32.partialorder %v5747_v45, 0.0  ;;  %v5872_v35 = vmul.f32 0.01, %v5747_v45 }
 0xcfb   :  { %5796 = vmatmul.f32.gmra.mxu3 %v1339_v18  ;;  %v5904_v60 = vsel %vm5840_vm14, %v5747_v45, %v5872_v35  ;;  %v12556_v45 = vld [vmem:[#allocation168_spill] sm:$0xff]  ;;  %v11209_v35 = vpop.f32.mrf.mxu2 }
 0xcfc   :  { %5971 = vmatmul.f32.gmra.mxu0 %v5904_v60  ;;  %v943_v19 = vadd.f32 %v12556_v45, %v12550_v58 }
 0xcfe   :  { %v5749_v17 = vpop.f32.mrf.mxu3  ;;  %v1216_v57 = vmul.f32 0.01, %v943_v19  ;;  %vm1088_vm8 = vcmp.ge.f32.partialorder %v943_v19, 0.0 }
 0xcff   :  { %v5750_v12 = vadd.f32 %v5749_v17, %v5637_v11  ;;  %v12557_v17 = vld [vmem:[#allocation58_spill] sm:$0xff] }
 0xd00   :  { %v946_v23 = vadd.f32 %v12557_v17, %v12550_v58 }
 0xd01   :  { %vm5841_vm1 = vcmp.ge.f32.partialorder %v5750_v12, 0.0  ;;  %v5873_v13 = vmul.f32 0.01, %v5750_v12 }
 0xd02   :  { %v1217_v53 = vmul.f32 0.01, %v946_v23  ;;  %vm1089_vm10 = vcmp.ge.f32.partialorder %v946_v23, 0.0 }
 0xd03   :  { %5799 = vmatmul.f32.gmra.mxu3 %v1340_v31  ;;  %v5905_v43 = vsel %vm5841_vm1, %v5750_v12, %v5873_v13  ;;  %v11216_v12 = vpop.f32.mrf.mxu1  ;;  %v1344_v13 = vsel %vm1088_vm8, %v943_v19, %v1216_v57  ;;  %v11220_v4 = vpop.f32.mrf.mxu2 }
 0xd04   :  { %5974 = vmatmul.f32.gmra.mxu0 %v5905_v43  ;;  %v1345_v20 = vsel %vm1089_vm10, %v946_v23, %v1217_v53 }
 0xd06   :  { %v5752_v28 = vpop.f32.mrf.mxu3 }
 0xd07   :  { %v5753_v5 = vadd.f32 %v5752_v28, %v5640_v9  ;;  %v6163_v28 = vld [vmem:[#allocation2 + $0x750] sm:$0xff] }
 0xd08   :  { %6191 = vmatpush.msra.mxu1 %v6163_v28 }
 0xd09   :  { %vm5842_vm3 = vcmp.ge.f32.partialorder %v5753_v5, 0.0  ;;  %v5874_v10 = vmul.f32 0.01, %v5753_v5 }
 0xd0b   :  { %5802 = vmatmul.f32.gmra.mxu3 %v1341_v55  ;;  %v5906_v44 = vsel %vm5842_vm3, %v5753_v5, %v5874_v10  ;;  %v949_v5 = vadd.f32 %v12558_v47, %v12550_v58  ;;  %v11227_v15 = vpop.f32.mrf.mxu1  ;;  %v11230_v25 = vpop.f32.mrf.mxu2 }
 0xd0c   :  { %5977 = vmatmul.f32.gmra.mxu0 %v5906_v44 }
 0xd0d   :  { %v1218_v56 = vmul.f32 0.01, %v949_v5  ;;  %vm1090_vm0 = vcmp.ge.f32.partialorder %v949_v5, 0.0 }
 0xd0e   :  { %v5755_v36 = vpop.f32.mrf.mxu3 }
 0xd0f   :  { %v5756_v7 = vadd.f32 %v5755_v36, %v5643_v6  ;;  %v952_v36 = vadd.f32 %v10408_v27, %v12550_v58  ;;  %v1346_v51 = vsel %vm1090_vm0, %v949_v5, %v1218_v56  ;;  %v6162_v27 = vld [vmem:[#allocation2 + $0x740] sm:$0xff]  ;;  %v5557_v5 = vadd.f32 %v11227_v15, %v11159_v26 }
 0xd10   :  { %6192 = vmatpush.msra.mxu1 %v6162_v27 }
 0xd11   :  { %vm5843_vm5 = vcmp.ge.f32.partialorder %v5756_v7, 0.0  ;;  %v5875_v52 = vmul.f32 0.01, %v5756_v7  ;;  %v1219_v33 = vmul.f32 0.01, %v952_v36  ;;  %vm1091_vm13 = vcmp.ge.f32.partialorder %v952_v36, 0.0 }
 0xd12   :  { %v5670_v50 = vadd.f32 %v11230_v25, %v5557_v5 }
 0xd13   :  { %5805 = vmatmul.f32.gmra.mxu3 %v1342_v62  ;;  %v5907_v39 = vsel %vm5843_vm5, %v5756_v7, %v5875_v52  ;;  %v11237_v52 = vpop.f32.mrf.mxu1  ;;  %v11239_v59 = vpop.f32.mrf.mxu2  ;;  %v1347_v46 = vsel %vm1091_vm13, %v952_v36, %v1219_v33 }
 0xd14   :  { %5980 = vmatmul.f32.gmra.mxu0 %v5907_v39  ;;  %v5560_v15 = vadd.f32 %v11237_v52, %v11159_v26 }
 0xd16   :  { %v5758_v54 = vpop.f32.mrf.mxu3  ;;  %v5673_v48 = vadd.f32 %v11239_v59, %v5560_v15 }
 0xd17   :  { %v5759_v22 = vadd.f32 %v5758_v54, %v5646_v42  ;;  %v955_v42 = vadd.f32 %v10435_v37, %v12550_v58  ;;  %v5548_v54 = vadd.f32 %v11196_v24, %v11159_v26  ;;  %v958_v37 = vadd.f32 %v10462_v34, %v12550_v58  ;;  %v12559_v34 = vld [vmem:[#allocation79_spill] sm:$0xff] }
 0xd18   :  { %v5551_v24 = vadd.f32 %v11205_v61, %v11159_v26  ;;  %v961_v17 = vadd.f32 %v12559_v34, %v12550_v58  ;;  %v5554_v61 = vadd.f32 %v11216_v12, %v11159_v26 }
 0xd19   :  { %vm5844_vm7 = vcmp.ge.f32.partialorder %v5759_v22, 0.0  ;;  %v5876_v49 = vmul.f32 0.01, %v5759_v22  ;;  %v5661_v40 = vadd.f32 %v11198_v41, %v5548_v54  ;;  %vm1092_vm15 = vcmp.ge.f32.partialorder %v955_v42, 0.0 }
 0xd1a   :  { %v5664_v41 = vadd.f32 %v11209_v35, %v5551_v24  ;;  %vm1093_vm2 = vcmp.ge.f32.partialorder %v958_v37, 0.0  ;;  %v5667_v35 = vadd.f32 %v11220_v4, %v5554_v61  ;;  %vm1094_vm4 = vcmp.ge.f32.partialorder %v961_v17, 0.0 }
 0xd1b   :  { %5808 = vmatmul.f32.gmra.mxu3 %v1343_v0  ;;  %v5908_v16 = vsel %vm5844_vm7, %v5759_v22, %v5876_v49  ;;  %v1220_v49 = vmul.f32 0.01, %v955_v42  ;;  %v11246_v45 = vpop.f32.mrf.mxu1  ;;  %v11250_v0 = vpop.f32.mrf.mxu2 }
 0xd1c   :  { %5983 = vmatmul.f32.gmra.mxu0 %v5908_v16 }
 0xd1d   :  { %v1348_v30 = vsel %vm1092_vm15, %v955_v42, %v1220_v49 }
 0xd1e   :  { %v5761_v18 = vpop.f32.mrf.mxu3 }
 0xd1f   :  { %v5762_v60 = vadd.f32 %v5761_v18, %v5649_v3  ;;  %v1221_v18 = vmul.f32 0.01, %v958_v37 }
 0xd21   :  { %vm5845_vm9 = vcmp.ge.f32.partialorder %v5762_v60, 0.0  ;;  %v5877_v11 = vmul.f32 0.01, %v5762_v60 }
 0xd23   :  { %5811 = vmatmul.f32.gmra.mxu3 %v1344_v13  ;;  %v5909_v14 = vsel %vm5845_vm9, %v5762_v60, %v5877_v11  ;;  %v6161_v11 = vld [vmem:[#allocation2 + $0x730] sm:$0xff]  ;;  %v5565_v23 = vpop.f32.mrf.mxu1  ;;  %v1349_v13 = vsel %vm1093_vm2, %v958_v37, %v1221_v18 }
 0xd24   :  { %5986 = vmatmul.f32.gmra.mxu0 %v5909_v14  ;;  %6193 = vmatpush.msra.mxu1 %v6161_v11  ;;  %v5678_v14 = vpop.f32.mrf.mxu2 }
 0xd26   :  { %v5764_v31 = vpop.f32.mrf.mxu3 }
 0xd27   :  { %v5765_v43 = vadd.f32 %v5764_v31, %v5652_v21  ;;  %v1222_v31 = vmul.f32 0.01, %v961_v17 }
 0xd29   :  { %vm5846_vm11 = vcmp.ge.f32.partialorder %v5765_v43, 0.0  ;;  %v5878_v9 = vmul.f32 0.01, %v5765_v43  ;;  %v1350_v47 = vsel %vm1094_vm4, %v961_v17, %v1222_v31 }
 0xd2b   :  { %5814 = vmatmul.f32.gmra.mxu3 %v1345_v20  ;;  %v5910_v10 = vsel %vm5846_vm11, %v5765_v43, %v5878_v9  ;;  %v12560_v9 = vld [vmem:[#allocation49_spill] sm:$0xff]  ;;  %v5568_v20 = vpop.f32.mrf.mxu1 }
 0xd2c   :  { %5989 = vmatmul.f32.gmra.mxu0 %v5910_v10  ;;  %v964_v28 = vadd.f32 %v12560_v9, %v12550_v58  ;;  %v5681_v4 = vpop.f32.mrf.mxu2 }
 0xd2e   :  { %v5767_v55 = vpop.f32.mrf.mxu3  ;;  %vm1095_vm6 = vcmp.ge.f32.partialorder %v964_v28, 0.0 }
 0xd2f   :  { %v5768_v44 = vadd.f32 %v5767_v55, %v5655_v29  ;;  %v1223_v29 = vmul.f32 0.01, %v964_v28 }
 0xd31   :  { %v5879_v6 = vmul.f32 0.01, %v5768_v44  ;;  %vm5847_vm12 = vcmp.ge.f32.partialorder %v5768_v44, 0.0  ;;  %v1351_v36 = vsel %vm1095_vm6, %v964_v28, %v1223_v29 }
 0xd33   :  { %5817 = vmatmul.f32.gmra.mxu3 %v1346_v51  ;;  %v5911_v7 = vsel %vm5847_vm12, %v5768_v44, %v5879_v6  ;;  %v12561_v44 = vld [vmem:[#allocation242_spill] sm:$0xff]  ;;  %v5571_v25 = vpop.f32.mrf.mxu1 }
 0xd34   :  { %5992 = vmatmul.f32.gmra.mxu0 %v5911_v7  ;;  %v967_v6 = vadd.f32 %v12561_v44, %v12550_v58  ;;  %v5684_v33 = vpop.f32.mrf.mxu2  ;;  %v5563_v58 = vadd.f32 %v11246_v45, %v11159_v26  ;;  %v5572_v61 = vadd.f32 %v5571_v25, %v11159_v26 }
 0xd36   :  { %v5770_v8 = vpop.f32.mrf.mxu3  ;;  %vm1096_vm8 = vcmp.ge.f32.partialorder %v967_v6, 0.0  ;;  %v5676_v52 = vadd.f32 %v11250_v0, %v5563_v58 }
 0xd37   :  { %v5771_v62 = vadd.f32 %v5770_v8, %v5658_v32  ;;  %v1224_v32 = vmul.f32 0.01, %v967_v6 }
 0xd39   :  { %v5880_v39 = vmul.f32 0.01, %v5771_v62  ;;  %vm5848_vm14 = vcmp.ge.f32.partialorder %v5771_v62, 0.0 }
 0xd3b   :  { %5820 = vmatmul.f32.gmra.mxu3 %v1347_v46  ;;  %v5912_v1 = vsel %vm5848_vm14, %v5771_v62, %v5880_v39  ;;  %v1352_v39 = vsel %vm1096_vm8, %v967_v6, %v1224_v32  ;;  %v5574_v59 = vpop.f32.mrf.mxu1 }
 0xd3c   :  { %5995 = vmatmul.f32.gmra.mxu0 %v5912_v1  ;;  %v5687_v1 = vpop.f32.mrf.mxu2 }
 0xd3e   :  { %v5773_v22 = vpop.f32.mrf.mxu3 }
 0xd3f   :  { %v5774_v63 = vadd.f32 %v5773_v22, %v5661_v40  ;;  %v5566_v40 = vadd.f32 %v5565_v23, %v11159_v26 }
 0xd41   :  { %v5881_v19 = vmul.f32 0.01, %v5774_v63  ;;  %vm5849_vm1 = vcmp.ge.f32.partialorder %v5774_v63, 0.0  ;;  %v5679_v49 = vadd.f32 %v5678_v14, %v5566_v40 }
 0xd43   :  { %5823 = vmatmul.f32.gmra.mxu3 %v1348_v30  ;;  %v5913_v16 = vsel %vm5849_vm1, %v5774_v63, %v5881_v19  ;;  %v11275_v19 = vperm.slane %v11156_v38, 6  ;;  %v5577_v0 = vpop.f32.mrf.mxu1 }
 0xd44   :  { %5998 = vmatmul.f32.gmra.mxu0 %v5913_v16  ;;  %v5569_v16 = vadd.f32 %v5568_v20, %v11159_v26 }
 0xd46   :  { %v5776_v3 = vpop.f32.mrf.mxu3 }
 0xd47   :  { %v5777_v57 = vadd.f32 %v5776_v3, %v5664_v41  ;;  %v5690_v3 = vpop.f32.mrf.mxu2 }
 0xd49   :  { %v5882_v60 = vmul.f32 0.01, %v5777_v57  ;;  %vm5850_vm3 = vcmp.ge.f32.partialorder %v5777_v57, 0.0 }
 0xd4b   :  { %5826 = vmatmul.f32.gmra.mxu3 %v1349_v13  ;;  %v5914_v2 = vsel %vm5850_vm3, %v5777_v57, %v5882_v60  ;;  %v5682_v57 = vadd.f32 %v5681_v4, %v5569_v16  ;;  %v5580_v14 = vpop.f32.mrf.mxu1 }
 0xd4c   :  { %6001 = vmatmul.f32.gmra.mxu0 %v5914_v2 }
 0xd4e   :  { %v5779_v21 = vpop.f32.mrf.mxu3 }
 0xd4f   :  { %v5780_v53 = vadd.f32 %v5779_v21, %v5667_v35  ;;  %v5685_v21 = vadd.f32 %v5684_v33, %v5572_v61  ;;  %v5693_v31 = vpop.f32.mrf.mxu2 }
 0xd51   :  { %v5883_v43 = vmul.f32 0.01, %v5780_v53  ;;  %vm5851_vm5 = vcmp.ge.f32.partialorder %v5780_v53, 0.0 }
 0xd53   :  { %5829 = vmatmul.f32.gmra.mxu3 %v1350_v47  ;;  %v5915_v12 = vsel %vm5851_vm5, %v5780_v53, %v5883_v43 }
 0xd54   :  { %6004 = vmatmul.f32.gmra.mxu0 %v5915_v12  ;;  %v5575_v12 = vadd.f32 %v5574_v59, %v11159_v26 }
 0xd56   :  { %v5782_v10 = vpop.f32.mrf.mxu3  ;;  %v5688_v4 = vadd.f32 %v5687_v1, %v5575_v12 }
 0xd57   :  { %v5783_v55 = vadd.f32 %v5782_v10, %v5670_v50  ;;  %v5583_v10 = vpop.f32.mrf.mxu1  ;;  %v5696_v44 = vpop.f32.mrf.mxu2 }
 0xd59   :  { %v5884_v56 = vmul.f32 0.01, %v5783_v55  ;;  %vm5852_vm7 = vcmp.ge.f32.partialorder %v5783_v55, 0.0 }
 0xd5b   :  { %5832 = vmatmul.f32.gmra.mxu3 %v1351_v36  ;;  %v5916_v51 = vsel %vm5852_vm7, %v5783_v55, %v5884_v56 }
 0xd5c   :  { %6007 = vmatmul.f32.gmra.mxu0 %v5916_v51  ;;  %v5578_v51 = vadd.f32 %v5577_v0, %v11159_v26 }
 0xd5e   :  { %v5785_v7 = vpop.f32.mrf.mxu3 }
 0xd5f   :  { %v5786_v8 = vadd.f32 %v5785_v7, %v5673_v48  ;;  %v5691_v7 = vadd.f32 %v5690_v3, %v5578_v51 }
 0xd61   :  { %v5885_v62 = vmul.f32 0.01, %v5786_v8  ;;  %vm5853_vm9 = vcmp.ge.f32.partialorder %v5786_v8, 0.0 }
 0xd63   :  { %5835 = vmatmul.f32.gmra.mxu3 %v1352_v39  ;;  %v5917_v27 = vsel %vm5853_vm9, %v5786_v8, %v5885_v62  ;;  %v5586_v62 = vpop.f32.mrf.mxu1 }
 0xd64   :  { %6010 = vmatmul.f32.gmra.mxu0 %v5917_v27  ;;  %v5699_v27 = vpop.f32.mrf.mxu2 }
 0xd66   :  { %v5788_v42 = vpop.f32.mrf.mxu3 }
 0xd67   :  { %v5789_v46 = vadd.f32 %v5788_v42, %v5676_v52  ;;  %v5581_v42 = vadd.f32 %v5580_v14, %v11159_v26 }
 0xd69   :  { %v5886_v54 = vmul.f32 0.01, %v5789_v46  ;;  %vm5854_vm10 = vcmp.ge.f32.partialorder %v5789_v46, 0.0 }
 0xd6b   :  { %v5918_v22 = vsel %vm5854_vm10, %v5789_v46, %v5886_v54  ;;  %v5694_v54 = vadd.f32 %v5693_v31, %v5581_v42 }
 0xd6c   :  { %6013 = vmatmul.f32.gmra.mxu0 %v5918_v22 }
 0xd6e   :  { %v5791_v63 = vpop.f32.mrf.mxu3 }
 0xd6f   :  { %v5792_v45 = vadd.f32 %v5791_v63, %v5679_v49 }
 0xd71   :  { %v5887_v37 = vmul.f32 0.01, %v5792_v45  ;;  %v5969_v30 = vpop.f32.mrf.mxu0  ;;  %vm5855_vm11 = vcmp.ge.f32.partialorder %v5792_v45, 0.0 }
 0xd72   :  { %v5970_v24 = vadd.f32 %v5969_v30, %v11275_v19  ;;  %v5584_v30 = vadd.f32 %v5583_v10, %v11159_v26 }
 0xd73   :  { %v5919_v41 = vsel %vm5855_vm11, %v5792_v45, %v5887_v37  ;;  %v5589_v45 = vpop.f32.mrf.mxu1 }
 0xd74   :  { %vm6065_vm0 = vcmp.ge.f32.partialorder %v5970_v24, 0.0  ;;  %v6097_v18 = vmul.f32 0.01, %v5970_v24  ;;  %6016 = vmatmul.f32.gmra.mxu0 %v5919_v41  ;;  %v5697_v41 = vadd.f32 %v5696_v44, %v5584_v30 }
 0xd76   :  { %v5794_v60 = vpop.f32.mrf.mxu3  ;;  %v6129_v11 = vsel %vm6065_vm0, %v5970_v24, %v6097_v18  ;;  %v5702_v24 = vpop.f32.mrf.mxu2 }
 0xd77   :  { %v5795_v34 = vadd.f32 %v5794_v60, %v5682_v57  ;;  %6194 = vmatmul.f32.vlgmr.msra.gmra.mxu1 %v6129_v11 }
 0xd79   :  { %v5888_v17 = vmul.f32 0.01, %v5795_v34  ;;  %v5972_v23 = vpop.f32.mrf.mxu0  ;;  %vm5856_vm12 = vcmp.ge.f32.partialorder %v5795_v34, 0.0 }
 0xd7a   :  { %v5973_v13 = vadd.f32 %v5972_v23, %v11275_v19 }
 0xd7b   :  { %v5920_v2 = vsel %vm5856_vm12, %v5795_v34, %v5888_v17  ;;  %v5587_v17 = vadd.f32 %v5586_v62, %v11159_v26 }
 0xd7c   :  { %6019 = vmatmul.f32.gmra.mxu0 %v5920_v2  ;;  %vm6066_vm13 = vcmp.ge.f32.partialorder %v5973_v13, 0.0  ;;  %v6098_v35 = vmul.f32 0.01, %v5973_v13 }
 0xd7d   :  { %v5700_v2 = vadd.f32 %v5699_v27, %v5587_v17 }
 0xd7e   :  { %v5797_v53 = vpop.f32.mrf.mxu3  ;;  %v6130_v43 = vsel %vm6066_vm13, %v5973_v13, %v6098_v35  ;;  %v5592_v13 = vpop.f32.mrf.mxu1 }
 0xd7f   :  { %v5798_v9 = vadd.f32 %v5797_v53, %v5685_v21  ;;  %6197 = vmatmul.f32.gmra.mxu1 %v6130_v43  ;;  %v5705_v14 = vpop.f32.mrf.mxu2 }
 0xd81   :  { %v5889_v28 = vmul.f32 0.01, %v5798_v9  ;;  %v5975_v47 = vpop.f32.mrf.mxu0  ;;  %vm5857_vm14 = vcmp.ge.f32.partialorder %v5798_v9, 0.0 }
 0xd82   :  { %v5976_v5 = vadd.f32 %v5975_v47, %v11275_v19 }
 0xd83   :  { %v5921_v20 = vsel %vm5857_vm14, %v5798_v9, %v5889_v28  ;;  %v5590_v28 = vadd.f32 %v5589_v45, %v11159_v26 }
 0xd84   :  { %6022 = vmatmul.f32.gmra.mxu0 %v5921_v20  ;;  %vm6067_vm15 = vcmp.ge.f32.partialorder %v5976_v5, 0.0  ;;  %v6099_v50 = vmul.f32 0.01, %v5976_v5 }
 0xd85   :  { %v5703_v12 = vadd.f32 %v5702_v24, %v5590_v28 }
 0xd86   :  { %v5800_v29 = vpop.f32.mrf.mxu3  ;;  %v6131_v55 = vsel %vm6067_vm15, %v5976_v5, %v6099_v50  ;;  %v5595_v20 = vpop.f32.mrf.mxu1 }
 0xd87   :  { %v5801_v56 = vadd.f32 %v5800_v29, %v5688_v4  ;;  %6200 = vmatmul.f32.gmra.mxu1 %v6131_v55  ;;  %v5708_v29 = vpop.f32.mrf.mxu2 }
 0xd89   :  { %v5890_v6 = vmul.f32 0.01, %v5801_v56  ;;  %v5978_v36 = vpop.f32.mrf.mxu0  ;;  %vm5858_vm1 = vcmp.ge.f32.partialorder %v5801_v56, 0.0 }
 0xd8a   :  { %v5979_v15 = vadd.f32 %v5978_v36, %v11275_v19 }
 0xd8b   :  { %v5922_v48 = vsel %vm5858_vm1, %v5801_v56, %v5890_v6  ;;  %v5593_v6 = vadd.f32 %v5592_v13, %v11159_v26 }
 0xd8c   :  { %6025 = vmatmul.f32.gmra.mxu0 %v5922_v48  ;;  %vm6068_vm2 = vcmp.ge.f32.partialorder %v5979_v15, 0.0  ;;  %v6100_v25 = vmul.f32 0.01, %v5979_v15 }
 0xd8d   :  { %v5706_v51 = vadd.f32 %v5705_v14, %v5593_v6 }
 0xd8e   :  { %v5803_v32 = vpop.f32.mrf.mxu3  ;;  %v6132_v8 = vsel %vm6068_vm2, %v5979_v15, %v6100_v25 }
 0xd8f   :  { %v5804_v33 = vadd.f32 %v5803_v32, %v5691_v7  ;;  %6203 = vmatmul.f32.gmra.mxu1 %v6132_v8  ;;  %v5598_v32 = vpop.f32.mrf.mxu1  ;;  %v5711_v62 = vpop.f32.mrf.mxu2 }
 0xd91   :  { %v5891_v39 = vmul.f32 0.01, %v5804_v33  ;;  %v5981_v58 = vpop.f32.mrf.mxu0  ;;  %vm5859_vm3 = vcmp.ge.f32.partialorder %v5804_v33, 0.0 }
 0xd92   :  { %v5982_v52 = vadd.f32 %v5981_v58, %v11275_v19  ;;  %v5596_v58 = vadd.f32 %v5595_v20, %v11159_v26 }
 0xd93   :  { %v5923_v46 = vsel %vm5859_vm3, %v5804_v33, %v5891_v39 }
 0xd94   :  { %6028 = vmatmul.f32.gmra.mxu0 %v5923_v46  ;;  %vm6069_vm4 = vcmp.ge.f32.partialorder %v5982_v52, 0.0  ;;  %v6101_v59 = vmul.f32 0.01, %v5982_v52  ;;  %v5709_v42 = vadd.f32 %v5708_v29, %v5596_v58 }
 0xd96   :  { %v5806_v1 = vpop.f32.mrf.mxu3  ;;  %v6133_v40 = vsel %vm6069_vm4, %v5982_v52, %v6101_v59 }
 0xd97   :  { %v5807_v22 = vadd.f32 %v5806_v1, %v5694_v54  ;;  %6206 = vmatmul.f32.gmra.mxu1 %v6133_v40 }
 0xd99   :  { %v5892_v49 = vmul.f32 0.01, %v5807_v22  ;;  %v5984_v63 = vpop.f32.mrf.mxu0  ;;  %vm5860_vm5 = vcmp.ge.f32.partialorder %v5807_v22, 0.0 }
 0xd9a   :  { %v5985_v37 = vadd.f32 %v5984_v63, %v11275_v19  ;;  %v5599_v63 = vadd.f32 %v5598_v32, %v11159_v26 }
 0xd9b   :  { %v5924_v0 = vsel %vm5860_vm5, %v5807_v22, %v5892_v49  ;;  %v5601_v22 = vpop.f32.mrf.mxu1 }
 0xd9c   :  { %6031 = vmatmul.f32.gmra.mxu0 %v5924_v0  ;;  %vm6070_vm6 = vcmp.ge.f32.partialorder %v5985_v37, 0.0  ;;  %v6102_v16 = vmul.f32 0.01, %v5985_v37  ;;  %v5712_v0 = vadd.f32 %v5711_v62, %v5599_v63 }
 0xd9e   :  { %v5809_v3 = vpop.f32.mrf.mxu3  ;;  %v6134_v18 = vsel %vm6070_vm6, %v5985_v37, %v6102_v16  ;;  %v5714_v37 = vpop.f32.mrf.mxu2 }
 0xd9f   :  { %v5810_v57 = vadd.f32 %v5809_v3, %v5697_v41  ;;  %6209 = vmatmul.f32.gmra.mxu1 %v6134_v18 }
 0xda1   :  { %v5893_v60 = vmul.f32 0.01, %v5810_v57  ;;  %v5987_v11 = vpop.f32.mrf.mxu0  ;;  %vm5861_vm7 = vcmp.ge.f32.partialorder %v5810_v57, 0.0 }
 0xda2   :  { %v5988_v34 = vadd.f32 %v5987_v11, %v11275_v19 }
 0xda3   :  { %v5925_v23 = vsel %vm5861_vm7, %v5810_v57, %v5893_v60  ;;  %v5602_v60 = vadd.f32 %v5601_v22, %v11159_v26 }
 0xda4   :  { %6034 = vmatmul.f32.gmra.mxu0 %v5925_v23  ;;  %vm6071_vm8 = vcmp.ge.f32.partialorder %v5988_v34, 0.0  ;;  %v6103_v61 = vmul.f32 0.01, %v5988_v34 }
 0xda5   :  { %v5715_v23 = vadd.f32 %v5714_v37, %v5602_v60 }
 0xda6   :  { %v5812_v35 = vpop.f32.mrf.mxu3  ;;  %v6135_v21 = vsel %vm6071_vm8, %v5988_v34, %v6103_v61  ;;  %v5604_v34 = vpop.f32.mrf.mxu1 }
 0xda7   :  { %v5813_v31 = vadd.f32 %v5812_v35, %v5700_v2  ;;  %6212 = vmatmul.f32.gmra.mxu1 %v6135_v21  ;;  %v5717_v13 = vpop.f32.mrf.mxu2 }
 0xda9   :  { %v5894_v53 = vmul.f32 0.01, %v5813_v31  ;;  %v5990_v43 = vpop.f32.mrf.mxu0  ;;  %vm5862_vm9 = vcmp.ge.f32.partialorder %v5813_v31, 0.0 }
 0xdaa   :  { %v5991_v9 = vadd.f32 %v5990_v43, %v11275_v19 }
 0xdab   :  { %v5926_v47 = vsel %vm5862_vm9, %v5813_v31, %v5894_v53  ;;  %v5605_v53 = vadd.f32 %v5604_v34, %v11159_v26 }
 0xdac   :  { %6037 = vmatmul.f32.gmra.mxu0 %v5926_v47  ;;  %vm6072_vm10 = vcmp.ge.f32.partialorder %v5991_v9, 0.0  ;;  %v6104_v5 = vmul.f32 0.01, %v5991_v9 }
 0xdad   :  { %v5718_v28 = vadd.f32 %v5717_v13, %v5605_v53 }
 0xdae   :  { %v5815_v50 = vpop.f32.mrf.mxu3  ;;  %v6136_v4 = vsel %vm6072_vm10, %v5991_v9, %v6104_v5  ;;  %v5607_v47 = vpop.f32.mrf.mxu1 }
 0xdaf   :  { %v5816_v10 = vadd.f32 %v5815_v50, %v5703_v12  ;;  %6215 = vmatmul.f32.gmra.mxu1 %v6136_v4  ;;  %v5720_v50 = vpop.f32.mrf.mxu2 }
 0xdb1   :  { %v5895_v55 = vmul.f32 0.01, %v5816_v10  ;;  %v5993_v56 = vpop.f32.mrf.mxu0  ;;  %vm5863_vm11 = vcmp.ge.f32.partialorder %v5816_v10, 0.0 }
 0xdb2   :  { %v5994_v44 = vadd.f32 %v5993_v56, %v11275_v19 }
 0xdb3   :  { %v5927_v36 = vsel %vm5863_vm11, %v5816_v10, %v5895_v55  ;;  %v5608_v55 = vadd.f32 %v5607_v47, %v11159_v26 }
 0xdb4   :  { %v6105_v15 = vmul.f32 0.01, %v5994_v44  ;;  %6040 = vmatmul.f32.gmra.mxu0 %v5927_v36  ;;  %vm6073_vm0 = vcmp.ge.f32.partialorder %v5994_v44, 0.0 }
 0xdb5   :  { %v5721_v6 = vadd.f32 %v5720_v50, %v5608_v55 }
 0xdb6   :  { %v5818_v48 = vpop.f32.mrf.mxu3  ;;  %v6137_v25 = vsel %vm6073_vm0, %v5994_v44, %v6105_v15 }
 0xdb7   :  { %v5819_v7 = vadd.f32 %v5818_v48, %v5706_v51  ;;  %6218 = vmatmul.f32.gmra.mxu1 %v6137_v25  ;;  %v5610_v48 = vpop.f32.mrf.mxu1  ;;  %v5723_v32 = vpop.f32.mrf.mxu2 }
 0xdb9   :  { %v5896_v8 = vmul.f32 0.01, %v5819_v7  ;;  %v5996_v33 = vpop.f32.mrf.mxu0  ;;  %vm5864_vm12 = vcmp.ge.f32.partialorder %v5819_v7, 0.0 }
 0xdba   :  { %v5997_v39 = vadd.f32 %v5996_v33, %v11275_v19  ;;  %v5611_v33 = vadd.f32 %v5610_v48, %v11159_v26 }
 0xdbb   :  { %v5928_v27 = vsel %vm5864_vm12, %v5819_v7, %v5896_v8 }
 0xdbc   :  { %v6106_v52 = vmul.f32 0.01, %v5997_v39  ;;  %6043 = vmatmul.f32.gmra.mxu0 %v5928_v27  ;;  %vm6074_vm13 = vcmp.ge.f32.partialorder %v5997_v39, 0.0  ;;  %v5724_v58 = vadd.f32 %v5723_v32, %v5611_v33 }
 0xdbe   :  { %v5821_v46 = vpop.f32.mrf.mxu3  ;;  %v6138_v59 = vsel %vm6074_vm13, %v5997_v39, %v6106_v52 }
 0xdbf   :  { %v5822_v54 = vadd.f32 %v5821_v46, %v5709_v42  ;;  %6221 = vmatmul.f32.gmra.mxu1 %v6138_v59 }
 0xdc1   :  { %v5897_v1 = vmul.f32 0.01, %v5822_v54  ;;  %v5999_v40 = vpop.f32.mrf.mxu0  ;;  %vm5865_vm14 = vcmp.ge.f32.partialorder %v5822_v54, 0.0 }
 0xdc2   :  { %v6000_v49 = vadd.f32 %v5999_v40, %v11275_v19 }
 0xdc3   :  { %v5929_v45 = vsel %vm5865_vm14, %v5822_v54, %v5897_v1 }
 0xdc4   :  { %v6107_v30 = vmul.f32 0.01, %v6000_v49  ;;  %6046 = vmatmul.f32.gmra.mxu0 %v5929_v45  ;;  %vm6075_vm15 = vcmp.ge.f32.partialorder %v6000_v49, 0.0 }
 0xdc6   :  { %v5824_v24 = vpop.f32.mrf.mxu3  ;;  %v6139_v16 = vsel %vm6075_vm15, %v6000_v49, %v6107_v30  ;;  %v11309_v49 = vperm.slane %v11156_v38, 7 }
 0xdc7   :  { %v5825_v41 = vadd.f32 %v5824_v24, %v5712_v0  ;;  %6224 = vmatmul.f32.gmra.mxu1 %v6139_v16 }
 0xdc9   :  { %v5898_v3 = vmul.f32 0.01, %v5825_v41  ;;  %v6002_v18 = vpop.f32.mrf.mxu0  ;;  %vm5866_vm1 = vcmp.ge.f32.partialorder %v5825_v41, 0.0 }
 0xdca   :  { %v6003_v57 = vadd.f32 %v6002_v18, %v11275_v19 }
 0xdcb   :  { %v5930_v11 = vsel %vm5866_vm1, %v5825_v41, %v5898_v3 }
 0xdcc   :  { %v6108_v17 = vmul.f32 0.01, %v6003_v57  ;;  %6049 = vmatmul.f32.gmra.mxu0 %v5930_v11  ;;  %vm6076_vm2 = vcmp.ge.f32.partialorder %v6003_v57, 0.0 }
 0xdce   :  { %v5827_v61 = vpop.f32.mrf.mxu3  ;;  %v6140_v2 = vsel %vm6076_vm2, %v6003_v57, %v6108_v17 }
 0xdcf   :  { %v5828_v14 = vadd.f32 %v5827_v61, %v5715_v23  ;;  %6227 = vmatmul.f32.gmra.mxu1 %v6140_v2 }
 0xdd1   :  { %v5899_v35 = vmul.f32 0.01, %v5828_v14  ;;  %v6005_v21 = vpop.f32.mrf.mxu0  ;;  %vm5867_vm3 = vcmp.ge.f32.partialorder %v5828_v14, 0.0 }
 0xdd2   :  { %v6006_v31 = vadd.f32 %v6005_v21, %v11275_v19 }
 0xdd3   :  { %v5931_v43 = vsel %vm5867_vm3, %v5828_v14, %v5899_v35 }
 0xdd4   :  { %v6109_v9 = vmul.f32 0.01, %v6006_v31  ;;  %6052 = vmatmul.f32.gmra.mxu0 %v5931_v43  ;;  %vm6077_vm4 = vcmp.ge.f32.partialorder %v6006_v31, 0.0 }
 0xdd6   :  { %v5830_v5 = vpop.f32.mrf.mxu3  ;;  %v6141_v12 = vsel %vm6077_vm4, %v6006_v31, %v6109_v9 }
 0xdd7   :  { %v5831_v20 = vadd.f32 %v5830_v5, %v5718_v28  ;;  %6230 = vmatmul.f32.gmra.mxu1 %v6141_v12 }
 0xdd9   :  { %v5900_v4 = vmul.f32 0.01, %v5831_v20  ;;  %v6008_v10 = vpop.f32.mrf.mxu0  ;;  %vm5868_vm5 = vcmp.ge.f32.partialorder %v5831_v20, 0.0 }
 0xdda   :  { %v6009_v29 = vadd.f32 %v6008_v10, %v11275_v19 }
 0xddb   :  { %v5932_v56 = vsel %vm5868_vm5, %v5831_v20, %v5900_v4 }
 0xddc   :  { %v6110_v44 = vmul.f32 0.01, %v6009_v29  ;;  %6055 = vmatmul.f32.gmra.mxu0 %v5932_v56  ;;  %vm6078_vm6 = vcmp.ge.f32.partialorder %v6009_v29, 0.0 }
 0xdde   :  { %v5833_v36 = vpop.f32.mrf.mxu3  ;;  %v6142_v15 = vsel %vm6078_vm6, %v6009_v29, %v6110_v44 }
 0xddf   :  { %v5834_v51 = vadd.f32 %v5833_v36, %v5721_v6  ;;  %6233 = vmatmul.f32.gmra.mxu1 %v6142_v15 }
 0xde1   :  { %v5901_v25 = vmul.f32 0.01, %v5834_v51  ;;  %v6011_v7 = vpop.f32.mrf.mxu0  ;;  %vm5869_vm7 = vcmp.ge.f32.partialorder %v5834_v51, 0.0 }
 0xde2   :  { %v6012_v8 = vadd.f32 %v6011_v7, %v11275_v19 }
 0xde3   :  { %v5933_v62 = vsel %vm5869_vm7, %v5834_v51, %v5901_v25 }
 0xde4   :  { %v6111_v39 = vmul.f32 0.01, %v6012_v8  ;;  %6058 = vmatmul.f32.gmra.mxu0 %v5933_v62  ;;  %vm6079_vm8 = vcmp.ge.f32.partialorder %v6012_v8, 0.0 }
 0xde6   :  { %v5836_v27 = vpop.f32.mrf.mxu3  ;;  %v6143_v52 = vsel %vm6079_vm8, %v6012_v8, %v6111_v39 }
 0xde7   :  { %v5837_v42 = vadd.f32 %v5836_v27, %v5724_v58  ;;  %6236 = vmatmul.f32.gmra.mxu1 %v6143_v52 }
 0xde9   :  { %v5902_v46 = vmul.f32 0.01, %v5837_v42  ;;  %v6014_v59 = vpop.f32.mrf.mxu0  ;;  %vm5870_vm9 = vcmp.ge.f32.partialorder %v5837_v42, 0.0 }
 0xdea   :  { %v6015_v54 = vadd.f32 %v6014_v59, %v11275_v19 }
 0xdeb   :  { %v5934_v1 = vsel %vm5870_vm9, %v5837_v42, %v5902_v46 }
 0xdec   :  { %v6112_v40 = vmul.f32 0.01, %v6015_v54  ;;  %6061 = vmatmul.f32.gmra.mxu0 %v5934_v1  ;;  %vm6080_vm10 = vcmp.ge.f32.partialorder %v6015_v54, 0.0 }
 0xdee   :  { %v6144_v22 = vsel %vm6080_vm10, %v6015_v54, %v6112_v40 }
 0xdef   :  { %6239 = vmatmul.f32.gmra.mxu1 %v6144_v22 }
 0xdf1   :  { %v6017_v26 = vpop.f32.mrf.mxu0 }
 0xdf2   :  { %v6018_v63 = vadd.f32 %v6017_v26, %v11275_v19 }
 0xdf4   :  { %v6113_v45 = vmul.f32 0.01, %v6018_v63  ;;  %v6195_v37 = vpop.f32.mrf.mxu1  ;;  %vm6081_vm11 = vcmp.ge.f32.partialorder %v6018_v63, 0.0 }
 0xdf5   :  { %v6196_v30 = vadd.f32 %v6195_v37, %v11309_v49 }
 0xdf6   :  { %v6145_v0 = vsel %vm6081_vm11, %v6018_v63, %v6113_v45 }
 0xdf7   :  { %6915 = vtanh.f32 %v6196_v30  ;;  %6242 = vmatmul.f32.gmra.mxu1 %v6145_v0 }
 0xdf9   :  { %v6020_v24 = vpop.f32.mrf.mxu0 }
 0xdfa   :  { %v6021_v16 = vadd.f32 %v6020_v24, %v11275_v19 }
 0xdfc   :  { %v6114_v41 = vmul.f32 0.01, %v6021_v16  ;;  %v6198_v3 = vpop.f32.mrf.mxu1  ;;  %vm6082_vm0 = vcmp.ge.f32.partialorder %v6021_v16, 0.0 }
 0xdfd   :  { %v6916_v18 = vpop.eup %6915  ;;  %v6199_v38 = vadd.f32 %v6198_v3, %v11309_v49 }
 0xdfe   :  { %6323 = vst [vmem:[#allocation7] sm:$0xff] %v6916_v18  ;;  %v6146_v57 = vsel %vm6082_vm0, %v6021_v16, %v6114_v41 }
 0xdff   :  { %6917 = vtanh.f32 %v6199_v38  ;;  %6245 = vmatmul.f32.gmra.mxu1 %v6146_v57 }
 0xe01   :  { %v6023_v60 = vpop.f32.mrf.mxu0 }
 0xe02   :  { %v6024_v11 = vadd.f32 %v6023_v60, %v11275_v19 }
 0xe04   :  { %v6115_v34 = vmul.f32 0.01, %v6024_v11  ;;  %v6201_v17 = vpop.f32.mrf.mxu1  ;;  %vm6083_vm12 = vcmp.ge.f32.partialorder %v6024_v11, 0.0 }
 0xe05   :  { %v6918_v23 = vpop.eup %6917  ;;  %v6202_v13 = vadd.f32 %v6201_v17, %v11309_v49 }
 0xe06   :  { %6324 = vst [vmem:[#allocation7 + $0x8] sm:$0xff] %v6918_v23  ;;  %v6147_v61 = vsel %vm6083_vm12, %v6024_v11, %v6115_v34 }
 0xe07   :  { %6919 = vtanh.f32 %v6202_v13  ;;  %6248 = vmatmul.f32.gmra.mxu1 %v6147_v61 }
 0xe09   :  { %v6026_v2 = vpop.f32.mrf.mxu0 }
 0xe0a   :  { %v6027_v14 = vadd.f32 %v6026_v2, %v11275_v19 }
 0xe0c   :  { %v6116_v35 = vmul.f32 0.01, %v6027_v14  ;;  %v6204_v21 = vpop.f32.mrf.mxu1  ;;  %vm6084_vm13 = vcmp.ge.f32.partialorder %v6027_v14, 0.0 }
 0xe0d   :  { %v6920_v31 = vpop.eup %6919  ;;  %v6205_v53 = vadd.f32 %v6204_v21, %v11309_v49 }
 0xe0e   :  { %6325 = vst [vmem:[#allocation7 + $0x10] sm:$0xff] %v6920_v31  ;;  %v6148_v43 = vsel %vm6084_vm13, %v6027_v14, %v6116_v35 }
 0xe0f   :  { %6921 = vtanh.f32 %v6205_v53  ;;  %6251 = vmatmul.f32.gmra.mxu1 %v6148_v43 }
 0xe11   :  { %v6029_v9 = vpop.f32.mrf.mxu0 }
 0xe12   :  { %v6030_v28 = vadd.f32 %v6029_v9, %v11275_v19 }
 0xe14   :  { %v6117_v47 = vmul.f32 0.01, %v6030_v28  ;;  %v6207_v5 = vpop.f32.mrf.mxu1  ;;  %vm6085_vm14 = vcmp.ge.f32.partialorder %v6030_v28, 0.0 }
 0xe15   :  { %v6922_v12 = vpop.eup %6921  ;;  %v6208_v20 = vadd.f32 %v6207_v5, %v11309_v49 }
 0xe16   :  { %6326 = vst [vmem:[#allocation7 + $0x18] sm:$0xff] %v6922_v12  ;;  %v6149_v50 = vsel %vm6085_vm14, %v6030_v28, %v6117_v47 }
 0xe17   :  { %6923 = vtanh.f32 %v6208_v20  ;;  %6254 = vmatmul.f32.gmra.mxu1 %v6149_v50 }
 0xe19   :  { %v6032_v4 = vpop.f32.mrf.mxu0 }
 0xe1a   :  { %v6033_v10 = vadd.f32 %v6032_v4, %v11275_v19 }
 0xe1c   :  { %v6118_v29 = vmul.f32 0.01, %v6033_v10  ;;  %v6210_v55 = vpop.f32.mrf.mxu1  ;;  %vm6086_vm15 = vcmp.ge.f32.partialorder %v6033_v10, 0.0 }
 0xe1d   :  { %v6924_v56 = vpop.eup %6923  ;;  %v6211_v44 = vadd.f32 %v6210_v55, %v11309_v49 }
 0xe1e   :  { %6327 = vst [vmem:[#allocation7 + $0x20] sm:$0xff] %v6924_v56  ;;  %v6150_v6 = vsel %vm6086_vm15, %v6033_v10, %v6118_v29 }
 0xe1f   :  { %6925 = vtanh.f32 %v6211_v44  ;;  %6257 = vmatmul.f32.gmra.mxu1 %v6150_v6 }
 0xe21   :  { %v6035_v36 = vpop.f32.mrf.mxu0 }
 0xe22   :  { %v6036_v15 = vadd.f32 %v6035_v36, %v11275_v19 }
 0xe24   :  { %v6119_v51 = vmul.f32 0.01, %v6036_v15  ;;  %v6213_v48 = vpop.f32.mrf.mxu1  ;;  %vm6087_vm1 = vcmp.ge.f32.partialorder %v6036_v15, 0.0 }
 0xe25   :  { %v6926_v25 = vpop.eup %6925  ;;  %v6214_v7 = vadd.f32 %v6213_v48, %v11309_v49 }
 0xe26   :  { %6328 = vst [vmem:[#allocation7 + $0x28] sm:$0xff] %v6926_v25  ;;  %v6151_v32 = vsel %vm6087_vm1, %v6036_v15, %v6119_v51 }
 0xe27   :  { %6927 = vtanh.f32 %v6214_v7  ;;  %6260 = vmatmul.f32.gmra.mxu1 %v6151_v32 }
 0xe29   :  { %v6038_v8 = vpop.f32.mrf.mxu0 }
 0xe2a   :  { %v6039_v33 = vadd.f32 %v6038_v8, %v11275_v19 }
 0xe2c   :  { %v6120_v62 = vmul.f32 0.01, %v6039_v33  ;;  %v6216_v39 = vpop.f32.mrf.mxu1  ;;  %vm6088_vm2 = vcmp.ge.f32.partialorder %v6039_v33, 0.0 }
 0xe2d   :  { %v6928_v58 = vpop.eup %6927  ;;  %v6217_v27 = vadd.f32 %v6216_v39, %v11309_v49 }
 0xe2e   :  { %6329 = vst [vmem:[#allocation7 + $0x30] sm:$0xff] %v6928_v58  ;;  %v6152_v52 = vsel %vm6088_vm2, %v6039_v33, %v6120_v62 }
 0xe2f   :  { %6929 = vtanh.f32 %v6217_v27  ;;  %6263 = vmatmul.f32.gmra.mxu1 %v6152_v52 }
 0xe31   :  { %v6041_v42 = vpop.f32.mrf.mxu0 }
 0xe32   :  { %v6042_v46 = vadd.f32 %v6041_v42, %v11275_v19 }
 0xe34   :  { %v6121_v59 = vmul.f32 0.01, %v6042_v46  ;;  %v6219_v54 = vpop.f32.mrf.mxu1  ;;  %vm6089_vm3 = vcmp.ge.f32.partialorder %v6042_v46, 0.0 }
 0xe35   :  { %v6930_v1 = vpop.eup %6929  ;;  %v6220_v40 = vadd.f32 %v6219_v54, %v11309_v49 }
 0xe36   :  { %6330 = vst [vmem:[#allocation7 + $0x38] sm:$0xff] %v6930_v1  ;;  %v6153_v22 = vsel %vm6089_vm3, %v6042_v46, %v6121_v59 }
 0xe37   :  { %6931 = vtanh.f32 %v6220_v40  ;;  %6266 = vmatmul.f32.gmra.mxu1 %v6153_v22 }
 0xe39   :  { %v6044_v26 = vpop.f32.mrf.mxu0 }
 0xe3a   :  { %v6045_v63 = vadd.f32 %v6044_v26, %v11275_v19 }
 0xe3c   :  { %v6122_v45 = vmul.f32 0.01, %v6045_v63  ;;  %v6222_v37 = vpop.f32.mrf.mxu1  ;;  %vm6090_vm4 = vcmp.ge.f32.partialorder %v6045_v63, 0.0 }
 0xe3d   :  { %v6932_v30 = vpop.eup %6931  ;;  %v6223_v0 = vadd.f32 %v6222_v37, %v11309_v49 }
 0xe3e   :  { %6331 = vst [vmem:[#allocation7 + $0x40] sm:$0xff] %v6932_v30  ;;  %v6154_v24 = vsel %vm6090_vm4, %v6045_v63, %v6122_v45 }
 0xe3f   :  { %6933 = vtanh.f32 %v6223_v0  ;;  %6269 = vmatmul.f32.gmra.mxu1 %v6154_v24 }
 0xe41   :  { %v6047_v16 = vpop.f32.mrf.mxu0 }
 0xe42   :  { %v6048_v41 = vadd.f32 %v6047_v16, %v11275_v19 }
 0xe44   :  { %v6123_v3 = vmul.f32 0.01, %v6048_v41  ;;  %v6225_v18 = vpop.f32.mrf.mxu1  ;;  %vm6091_vm5 = vcmp.ge.f32.partialorder %v6048_v41, 0.0 }
 0xe45   :  { %v6934_v38 = vpop.eup %6933  ;;  %v6226_v57 = vadd.f32 %v6225_v18, %v11309_v49 }
 0xe46   :  { %6332 = vst [vmem:[#allocation7 + $0x48] sm:$0xff] %v6934_v38  ;;  %v6155_v60 = vsel %vm6091_vm5, %v6048_v41, %v6123_v3 }
 0xe47   :  { %6935 = vtanh.f32 %v6226_v57  ;;  %6272 = vmatmul.f32.gmra.mxu1 %v6155_v60 }
 0xe49   :  { %v6050_v11 = vpop.f32.mrf.mxu0 }
 0xe4a   :  { %v6051_v34 = vadd.f32 %v6050_v11, %v11275_v19 }
 0xe4c   :  { %v6124_v17 = vmul.f32 0.01, %v6051_v34  ;;  %v6228_v23 = vpop.f32.mrf.mxu1  ;;  %vm6092_vm6 = vcmp.ge.f32.partialorder %v6051_v34, 0.0 }
 0xe4d   :  { %v6936_v13 = vpop.eup %6935  ;;  %v6229_v61 = vadd.f32 %v6228_v23, %v11309_v49 }
 0xe4e   :  { %6333 = vst [vmem:[#allocation7 + $0x50] sm:$0xff] %v6936_v13  ;;  %v6156_v2 = vsel %vm6092_vm6, %v6051_v34, %v6124_v17 }
 0xe4f   :  { %6937 = vtanh.f32 %v6229_v61  ;;  %6275 = vmatmul.f32.gmra.mxu1 %v6156_v2 }
 0xe51   :  { %v6053_v14 = vpop.f32.mrf.mxu0 }
 0xe52   :  { %v6054_v35 = vadd.f32 %v6053_v14, %v11275_v19 }
 0xe54   :  { %v6125_v21 = vmul.f32 0.01, %v6054_v35  ;;  %v6231_v31 = vpop.f32.mrf.mxu1  ;;  %vm6093_vm7 = vcmp.ge.f32.partialorder %v6054_v35, 0.0 }
 0xe55   :  { %v6938_v53 = vpop.eup %6937  ;;  %v6232_v43 = vadd.f32 %v6231_v31, %v11309_v49 }
 0xe56   :  { %6334 = vst [vmem:[#allocation7 + $0x58] sm:$0xff] %v6938_v53  ;;  %v6157_v9 = vsel %vm6093_vm7, %v6054_v35, %v6125_v21 }
 0xe57   :  { %6939 = vtanh.f32 %v6232_v43  ;;  %6278 = vmatmul.f32.gmra.mxu1 %v6157_v9 }
 0xe59   :  { %v6056_v28 = vpop.f32.mrf.mxu0 }
 0xe5a   :  { %v6057_v47 = vadd.f32 %v6056_v28, %v11275_v19 }
 0xe5c   :  { %v6126_v5 = vmul.f32 0.01, %v6057_v47  ;;  %v6234_v12 = vpop.f32.mrf.mxu1  ;;  %vm6094_vm8 = vcmp.ge.f32.partialorder %v6057_v47, 0.0 }
 0xe5d   :  { %v6940_v20 = vpop.eup %6939  ;;  %v6235_v50 = vadd.f32 %v6234_v12, %v11309_v49 }
 0xe5e   :  { %6335 = vst [vmem:[#allocation7 + $0x60] sm:$0xff] %v6940_v20  ;;  %v6158_v4 = vsel %vm6094_vm8, %v6057_v47, %v6126_v5 }
 0xe5f   :  { %6941 = vtanh.f32 %v6235_v50  ;;  %6281 = vmatmul.f32.gmra.mxu1 %v6158_v4 }
 0xe61   :  { %v6059_v10 = vpop.f32.mrf.mxu0 }
 0xe62   :  { %v6060_v29 = vadd.f32 %v6059_v10, %v11275_v19 }
 0xe64   :  { %v6127_v55 = vmul.f32 0.01, %v6060_v29  ;;  %v6237_v56 = vpop.f32.mrf.mxu1  ;;  %vm6095_vm9 = vcmp.ge.f32.partialorder %v6060_v29, 0.0 }
 0xe65   :  { %v6942_v44 = vpop.eup %6941  ;;  %v6238_v6 = vadd.f32 %v6237_v56, %v11309_v49 }
 0xe66   :  { %6336 = vst [vmem:[#allocation7 + $0x68] sm:$0xff] %v6942_v44  ;;  %v6159_v36 = vsel %vm6095_vm9, %v6060_v29, %v6127_v55 }
 0xe67   :  { %6943 = vtanh.f32 %v6238_v6  ;;  %6284 = vmatmul.f32.gmra.mxu1 %v6159_v36 }
 0xe69   :  { %v6062_v15 = vpop.f32.mrf.mxu0 }
 0xe6a   :  { %v6063_v51 = vadd.f32 %v6062_v15, %v11275_v19 }
 0xe6c   :  { %v6128_v48 = vmul.f32 0.01, %v6063_v51  ;;  %v6240_v25 = vpop.f32.mrf.mxu1  ;;  %vm6096_vm10 = vcmp.ge.f32.partialorder %v6063_v51, 0.0 }
 0xe6d   :  { %v6944_v7 = vpop.eup %6943  ;;  %v6241_v32 = vadd.f32 %v6240_v25, %v11309_v49 }
 0xe6e   :  { %6337 = vst [vmem:[#allocation7 + $0x70] sm:$0xff] %v6944_v7  ;;  %v6160_v8 = vsel %vm6096_vm10, %v6063_v51, %v6128_v48 }
 0xe6f   :  { %6945 = vtanh.f32 %v6241_v32  ;;  %6287 = vmatmul.f32.gmra.mxu1 %v6160_v8 }
 0xe74   :  { %v6243_v33 = vpop.f32.mrf.mxu1 }
 0xe75   :  { %v6946_v62 = vpop.eup %6945  ;;  %v6244_v39 = vadd.f32 %v6243_v33, %v11309_v49 }
 0xe76   :  { %6338 = vst [vmem:[#allocation7 + $0x78] sm:$0xff] %v6946_v62 }
 0xe77   :  { %6947 = vtanh.f32 %v6244_v39 }
 0xe7c   :  { %v6246_v58 = vpop.f32.mrf.mxu1 }
 0xe7d   :  { %v6948_v27 = vpop.eup %6947  ;;  %v6247_v19 = vadd.f32 %v6246_v58, %v11309_v49 }
 0xe7e   :  { %6339 = vst [vmem:[#allocation7 + $0x80] sm:$0xff] %v6948_v27 }
 0xe7f   :  { %6949 = vtanh.f32 %v6247_v19 }
 0xe84   :  { %v6249_v52 = vpop.f32.mrf.mxu1 }
 0xe85   :  { %v6950_v42 = vpop.eup %6949  ;;  %v6250_v46 = vadd.f32 %v6249_v52, %v11309_v49 }
 0xe86   :  { %6340 = vst [vmem:[#allocation7 + $0x88] sm:$0xff] %v6950_v42 }
 0xe87   :  { %6951 = vtanh.f32 %v6250_v46 }
 0xe8c   :  { %v6252_v59 = vpop.f32.mrf.mxu1 }
 0xe8d   :  { %v6952_v54 = vpop.eup %6951  ;;  %v6253_v1 = vadd.f32 %v6252_v59, %v11309_v49 }
 0xe8e   :  { %6341 = vst [vmem:[#allocation7 + $0x90] sm:$0xff] %v6952_v54 }
 0xe8f   :  { %6953 = vtanh.f32 %v6253_v1 }
 0xe94   :  { %v6255_v40 = vpop.f32.mrf.mxu1 }
 0xe95   :  { %v6954_v22 = vpop.eup %6953  ;;  %v6256_v26 = vadd.f32 %v6255_v40, %v11309_v49 }
 0xe96   :  { %6342 = vst [vmem:[#allocation7 + $0x98] sm:$0xff] %v6954_v22 }
 0xe97   :  { %6955 = vtanh.f32 %v6256_v26 }
 0xe9c   :  { %v6258_v63 = vpop.f32.mrf.mxu1 }
 0xe9d   :  { %v6956_v45 = vpop.eup %6955  ;;  %v6259_v37 = vadd.f32 %v6258_v63, %v11309_v49 }
 0xe9e   :  { %6343 = vst [vmem:[#allocation7 + $0xa0] sm:$0xff] %v6956_v45 }
 0xe9f   :  { %6957 = vtanh.f32 %v6259_v37 }
 0xea4   :  { %v6261_v30 = vpop.f32.mrf.mxu1 }
 0xea5   :  { %v6958_v0 = vpop.eup %6957  ;;  %v6262_v24 = vadd.f32 %v6261_v30, %v11309_v49 }
 0xea6   :  { %6344 = vst [vmem:[#allocation7 + $0xa8] sm:$0xff] %v6958_v0 }
 0xea7   :  { %6959 = vtanh.f32 %v6262_v24 }
 0xeac   :  { %v6264_v16 = vpop.f32.mrf.mxu1 }
 0xead   :  { %v6960_v41 = vpop.eup %6959  ;;  %v6265_v3 = vadd.f32 %v6264_v16, %v11309_v49 }
 0xeae   :  { %6345 = vst [vmem:[#allocation7 + $0xb0] sm:$0xff] %v6960_v41 }
 0xeaf   :  { %6961 = vtanh.f32 %v6265_v3 }
 0xeb4   :  { %v6267_v18 = vpop.f32.mrf.mxu1 }
 0xeb5   :  { %v6962_v38 = vpop.eup %6961  ;;  %v6268_v57 = vadd.f32 %v6267_v18, %v11309_v49 }
 0xeb6   :  { %6346 = vst [vmem:[#allocation7 + $0xb8] sm:$0xff] %v6962_v38 }
 0xeb7   :  { %6963 = vtanh.f32 %v6268_v57 }
 0xebc   :  { %v6270_v60 = vpop.f32.mrf.mxu1 }
 0xebd   :  { %v6964_v11 = vpop.eup %6963  ;;  %v6271_v34 = vadd.f32 %v6270_v60, %v11309_v49 }
 0xebe   :  { %6347 = vst [vmem:[#allocation7 + $0xc0] sm:$0xff] %v6964_v11 }
 0xebf   :  { %6965 = vtanh.f32 %v6271_v34 }
 0xec4   :  { %v6273_v17 = vpop.f32.mrf.mxu1 }
 0xec5   :  { %v6966_v23 = vpop.eup %6965  ;;  %v6274_v13 = vadd.f32 %v6273_v17, %v11309_v49 }
 0xec6   :  { %6348 = vst [vmem:[#allocation7 + $0xc8] sm:$0xff] %v6966_v23 }
 0xec7   :  { %6967 = vtanh.f32 %v6274_v13 }
 0xecc   :  { %v6276_v61 = vpop.f32.mrf.mxu1 }
 0xecd   :  { %v6968_v2 = vpop.eup %6967  ;;  %v6277_v14 = vadd.f32 %v6276_v61, %v11309_v49 }
 0xece   :  { %6349 = vst [vmem:[#allocation7 + $0xd0] sm:$0xff] %v6968_v2 }
 0xecf   :  { %6969 = vtanh.f32 %v6277_v14 }
 0xed4   :  { %v6279_v35 = vpop.f32.mrf.mxu1 }
 0xed5   :  { %v6970_v21 = vpop.eup %6969  ;;  %v6280_v31 = vadd.f32 %v6279_v35, %v11309_v49 }
 0xed6   :  { %6350 = vst [vmem:[#allocation7 + $0xd8] sm:$0xff] %v6970_v21 }
 0xed7   :  { %6971 = vtanh.f32 %v6280_v31 }
 0xedc   :  { %v6282_v53 = vpop.f32.mrf.mxu1 }
 0xedd   :  { %v6972_v43 = vpop.eup %6971  ;;  %v6283_v9 = vadd.f32 %v6282_v53, %v11309_v49 }
 0xede   :  { %6351 = vst [vmem:[#allocation7 + $0xe0] sm:$0xff] %v6972_v43 }
 0xedf   :  { %6973 = vtanh.f32 %v6283_v9 }
 0xee4   :  { %v6285_v28 = vpop.f32.mrf.mxu1 }
 0xee5   :  { %v6974_v47 = vpop.eup %6973  ;;  %v6286_v5 = vadd.f32 %v6285_v28, %v11309_v49 }
 0xee6   :  { %6352 = vst [vmem:[#allocation7 + $0xe8] sm:$0xff] %v6974_v47 }
 0xee7   :  { %6975 = vtanh.f32 %v6286_v5 }
 0xeec   :  { %v6288_v12 = vpop.f32.mrf.mxu1 }
 0xeed   :  { %v6976_v20 = vpop.eup %6975  ;;  %v6289_v50 = vadd.f32 %v6288_v12, %v11309_v49 }
 0xeee   :  { %6353 = vst [vmem:[#allocation7 + $0xf0] sm:$0xff] %v6976_v20 }
 0xeef   :  { %6977 = vtanh.f32 %v6289_v50 }
 0xef5   :  { %v6978_v4 = vpop.eup %6977 }
 0xef6   :  { %6354 = vst [vmem:[#allocation7 + $0xf8] sm:$0xff] %v6978_v4 }
 0xef7   :  { %6367 = dma.vmem_to_hbm [thread:$0]  %s6360_s10, 4096, %s6362_s13, [#allocation4], %s7066_s14, %s7066_s14, %s7067_s15  }
 0xef8   :  { %7058 = dma.done.wait [#allocation4], 4096  }
 0xef9   :  { %7059 = vsyncadd [#allocation4], 4294963200 }
 0xefa   :  { %6372 = vsyncpa [#allocation3], 1 }
 0xefb   :  { %6373 = vsyncpa [#allocation6], 1 }
 0xefc   :  { %6374 = vsyncpa [#allocation4], 1 }

</bundles_post_ra>
